<compile_context>
chip_gen: v6e
topology: v6e:2x2x1
jax: 0.10.0
libtpu: 0.0.40
codegen_flags: <defaults>
</compile_context>

<pallas_src>
import functools
import math

import numpy as np
import jax
import jax.numpy as jnp
from jax.experimental import pallas as pl
from jax.experimental.pallas import tpu as pltpu


# ----------------------------------------------------------------------------
# pallas_call helpers
# ----------------------------------------------------------------------------
def _spec(shape):
    nd = len(shape)
    return pl.BlockSpec(shape, lambda i, _nd=nd: (0,) * _nd)


def _call(kernel, args, out_shapes, scratch_shapes=()):
    multi = isinstance(out_shapes, (tuple, list))
    outs = tuple(out_shapes) if multi else (out_shapes,)
    out_specs = tuple(_spec(o.shape) for o in outs)
    return pl.pallas_call(
        kernel,
        out_shape=tuple(outs) if multi else outs[0],
        grid=(1,),
        in_specs=[_spec(a.shape) for a in args],
        out_specs=out_specs if multi else out_specs[0],
        scratch_shapes=list(scratch_shapes),
    )(*args)


# ----------------------------------------------------------------------------
# Kernels
# ----------------------------------------------------------------------------
def _linear_kernel(*refs, n_terms, use_scale, use_shift, use_prelu):
    """y = prelu( sum_i x_i @ w_i  * scale + shift )  (all optional)."""
    idx = 0
    acc = None
    for _ in range(n_terms):
        x = refs[idx][...]; idx += 1
        w = refs[idx][...]; idx += 1
        part = jnp.dot(x.astype(jnp.bfloat16), w,
                       preferred_element_type=jnp.float32)
        acc = part if acc is None else acc + part
    y = acc
    if use_scale:
        y = y * refs[idx][...]; idx += 1
    if use_shift:
        y = y + refs[idx][...]; idx += 1
    if use_prelu:
        a = refs[idx][...]; idx += 1
        y = jnp.where(y >= 0.0, y, y * a)
    o_ref = refs[idx]
    o_ref[...] = y.astype(o_ref.dtype)


def _se_cbr_kernel(*refs, T, n_se, has_br):
    """Fused SE-separable CBR: depthwise (pre-extracted taps) -> GAP (pool
    matmul) -> SE dense -> channel scale (unpool matmul) -> pointwise conv ->
    BN -> PReLU [-> extra BR affine+PReLU as a 2nd output]."""
    idx = 0
    p_ref = refs[idx]; idx += 1          # [T, M, Cin]  bf16 patches
    dww_ref = refs[idx]; idx += 1        # [T, 1, Cin]  f32 depthwise weights
    pool_ref = refs[idx]; idx += 1       # [N, M]       bf16 (1/HW per batch)
    unpool_ref = refs[idx]; idx += 1     # [M, N]       bf16 one-hot

    acc = None
    for t in range(T):
        v = p_ref[t] * dww_ref[t]        # promotes to f32
        acc = v if acc is None else acc + v          # [M, Cin] f32

    s = jnp.dot(pool_ref[...], acc.astype(jnp.bfloat16),
                preferred_element_type=jnp.float32)   # [N, Cin] per-batch mean
    for _ in range(n_se):
        w = refs[idx][...]; idx += 1
        b = refs[idx][...]; idx += 1
        a = refs[idx][...]; idx += 1
        s = jnp.dot(s.astype(jnp.bfloat16), w,
                    preferred_element_type=jnp.float32) + b
        s = jnp.where(s >= 0.0, s, s * a)
    srows = jnp.dot(unpool_ref[...], s.astype(jnp.bfloat16),
                    preferred_element_type=jnp.float32)  # [M, Cin]
    xs = acc * srows                                     # SE channel scale

    pw = refs[idx][...]; idx += 1
    y = jnp.dot(xs.astype(jnp.bfloat16), pw, preferred_element_type=jnp.float32)
    y = y * refs[idx][...]; idx += 1     # BN scale
    y = y + refs[idx][...]; idx += 1     # BN shift
    a = refs[idx][...]; idx += 1         # PReLU
    y = jnp.where(y >= 0.0, y, y * a)

    if has_br:
        brs = refs[idx][...]; idx += 1
        brh = refs[idx][...]; idx += 1
        bra = refs[idx][...]; idx += 1
        ybr = y * brs + brh
        ybr = jnp.where(ybr >= 0.0, ybr, ybr * bra)
        o_ref = refs[idx]
        obr_ref = refs[idx + 1]
        o_ref[...] = y.astype(o_ref.dtype)
        obr_ref[...] = ybr.astype(obr_ref.dtype)
    else:
        o_ref = refs[idx]
        o_ref[...] = y.astype(o_ref.dtype)


def _sb_module_kernel(*refs, taps1, taps2, M, r0, add, has_br2):
    """Fully fused SBmodule (2 branches):
    grouped 1x1 (+shuffle) matmul -> both depthwise branches (padded 2D VMEM
    scratch + per-tap mask-folded weights) -> PReLU -> both pointwise convs
    (zero-column-padded weights, summed) -> folded BN/residual/PReLU epilogue
    [-> extra BR affine+PReLU]."""
    idx = 0
    x_ref = refs[idx]; idx += 1          # [M, Cin] bf16
    c1w_ref = refs[idx]; idx += 1        # [Cin, n] bf16
    wm1_ref = refs[idx]; idx += 1        # [T1, M, n] f32 (mask * BN-folded w)
    sh1_ref = refs[idx]; idx += 1        # [1, n]
    a1_ref = refs[idx]; idx += 1         # [1, n]
    pw1_ref = refs[idx]; idx += 1        # [n, Cout] bf16 (zero-padded columns)
    wm2_ref = refs[idx]; idx += 1
    sh2_ref = refs[idx]; idx += 1
    a2_ref = refs[idx]; idx += 1
    pw2_ref = refs[idx]; idx += 1
    sc_ref = refs[idx]; idx += 1         # [1, Cout] block-BN * module-BN scale
    off_ref = refs[idx]; idx += 1        # [1, Cout] folded shift
    if add:
        rs_ref = refs[idx]; idx += 1     # [1, Cout] module-BN scale for residual
    al_ref = refs[idx]; idx += 1         # [1, Cout] module PReLU
    if has_br2:
        brs_ref = refs[idx]; idx += 1
        brh_ref = refs[idx]; idx += 1
        bra_ref = refs[idx]; idx += 1
    o_ref = refs[idx]; idx += 1
    pad_ref = refs[idx]; idx += 1        # scratch [R, n] f32

    x = x_ref[...]
    h1 = jnp.dot(x, c1w_ref[...], preferred_element_type=jnp.float32)  # [M, n]

    # zero-fill so masked (OOB) taps read zeros, then place the rows aligned.
    pad_ref[...] = jnp.zeros_like(pad_ref)
    pad_ref[r0:r0 + M, :] = h1

    def branch(taps, wm_ref, shv_ref, av_ref):
        acc = None
        for t, s in enumerate(taps):                 # s = static row shift
            v = pad_ref[r0 + s:r0 + s + M, :] * wm_ref[t]
            acc = v if acc is None else acc + v
        z = acc + shv_ref[...]
        z = jnp.where(z >= 0.0, z, z * av_ref[...])  # block's PReLU (pre 1x1)
        return z.astype(jnp.bfloat16)

    d1 = branch(taps1, wm1_ref, sh1_ref, a1_ref)
    d2 = branch(taps2, wm2_ref, sh2_ref, a2_ref)
    y = (jnp.dot(d1, pw1_ref[...], preferred_element_type=jnp.float32) +
         jnp.dot(d2, pw2_ref[...], preferred_element_type=jnp.float32))
    y = y * sc_ref[...] + off_ref[...]
    if add:
        y = y + x.astype(jnp.float32) * rs_ref[...]
    y = jnp.where(y >= 0.0, y, y * al_ref[...])
    if has_br2:
        y = y * brs_ref[...] + brh_ref[...]
        y = jnp.where(y >= 0.0, y, y * bra_ref[...])
    o_ref[...] = y.astype(o_ref.dtype)


# ----------------------------------------------------------------------------
# XLA glue (pad / strided slices only)
# ----------------------------------------------------------------------------
def extract_patches_taps(x, k, stride):
    """x: [N,H,W,C] -> [k*k, N*Ho*Wo, C]; tap order (ky, kx) row-major."""
    N, H, W, C = x.shape
    p = (k - 1) // 2
    xp = jnp.pad(x, ((0, 0), (p, p), (p, p), (0, 0)))
    Ho = (H + 2 * p - k) // stride + 1
    Wo = (W + 2 * p - k) // stride + 1
    pats = [xp[:, i:i + stride * (Ho - 1) + 1:stride,
                  j:j + stride * (Wo - 1) + 1:stride, :]
            for i in range(k) for j in range(k)]
    return jnp.stack(pats, axis=0).reshape(k * k, N * Ho * Wo, C), Ho, Wo


def extract_im2col(x, k, stride):
    """x: [N,H,W,C] -> [N*Ho*Wo, k*k*C]; column order (ky, kx, c)."""
    N, H, W, C = x.shape
    p = (k - 1) // 2
    xp = jnp.pad(x, ((0, 0), (p, p), (p, p), (0, 0)))
    Ho = (H + 2 * p - k) // stride + 1
    Wo = (W + 2 * p - k) // stride + 1
    pats = [xp[:, i:i + stride * (Ho - 1) + 1:stride,
                  j:j + stride * (Wo - 1) + 1:stride, :]
            for i in range(k) for j in range(k)]
    cols = jnp.concatenate(pats, axis=-1)
    return cols.reshape(N * Ho * Wo, k * k * C), Ho, Wo


# ----------------------------------------------------------------------------
# Pallas wrappers
# ----------------------------------------------------------------------------
def pallas_linear(terms, scale=None, shift=None, prelu=None,
                  out_dtype=jnp.bfloat16):
    M = terms[0][0].shape[0]
    Cout = terms[0][1].shape[1]
    args = []
    for x, w in terms:
        args += [x, w.astype(jnp.bfloat16)]
    if scale is not None:
        args.append(scale)
    if shift is not None:
        args.append(shift)
    if prelu is not None:
        args.append(prelu)
    kernel = functools.partial(_linear_kernel, n_terms=len(terms),
                               use_scale=scale is not None,
                               use_shift=shift is not None,
                               use_prelu=prelu is not None)
    return _call(kernel, args, jax.ShapeDtypeStruct((M, Cout), out_dtype))


def se_separable_cbr_fwd(p, x_nhwc):
    patches, Ho, Wo = extract_patches_taps(x_nhwc, p['k'], p['stride'])
    T, M, _ = patches.shape
    Cout = p['pw_w'].shape[1]
    has_br = p['br'] is not None
    args = [patches, p['dw_w'], p['pool'], p['unpool']]
    for (w, b, a) in p['se']:
        args += [w, b, a]
    args += [p['pw_w'], p['scale'], p['shift'], p['alpha']]
    if has_br:
        args += list(p['br'])
    kernel = functools.partial(_se_cbr_kernel, T=T, n_se=len(p['se']),
                               has_br=has_br)
    if has_br:
        out_shape = (jax.ShapeDtypeStruct((M, Cout), jnp.bfloat16),
                     jax.ShapeDtypeStruct((M, Cout), jnp.bfloat16))
    else:
        out_shape = jax.ShapeDtypeStruct((M, Cout), jnp.bfloat16)
    return _call(kernel, args, out_shape), Ho, Wo


def sb_module_fwd(p, x_flat):
    M, _ = x_flat.shape
    Cout = p['cout']
    b1, b2 = p['blocks']
    has_br2 = p['br'] is not None
    args = [x_flat, p['c1_w'],
            b1['wm'], b1['shift'], b1['alpha'], b1['pw'],
            b2['wm'], b2['shift'], b2['alpha'], b2['pw'],
            p['scale'], p['shift']]
    if p['add']:
        args.append(p['rscale'])
    args.append(p['alpha'])
    if has_br2:
        args += list(p['br'])
    n = p['c1_w'].shape[1]
    R = 2 * p['r0'] + M
    kernel = functools.partial(_sb_module_kernel, taps1=b1['taps'],
                               taps2=b2['taps'], M=M, r0=p['r0'],
                               add=p['add'], has_br2=has_br2)
    return _call(kernel, args, jax.ShapeDtypeStruct((M, Cout), jnp.bfloat16),
                 scratch_shapes=[pltpu.VMEM((R, n), jnp.float32)])


# ----------------------------------------------------------------------------
# Forward pass
# ----------------------------------------------------------------------------
def sbnet_encoder_forward(P, x_nchw):
    x = jnp.transpose(x_nchw, (0, 2, 3, 1)).astype(jnp.bfloat16)   # NHWC bf16
    N = x.shape[0]

    # level1: dense 3x3/s2 conv + BN + PReLU (im2col + one fused matmul)
    L1 = P['level1']
    cols, H1, W1 = extract_im2col(x, L1['k'], L1['stride'])
    out1 = pallas_linear([(cols, L1['w'])], scale=L1['scale'],
                         shift=L1['shift'], prelu=L1['alpha'])
    out1 = out1.reshape(N, H1, W1, -1)

    # level2_0 / level3_0: fused SE-separable CBR
    out2, H2, W2 = se_separable_cbr_fwd(P['level2_0'], out1)
    out2 = out2.reshape(N, H2, W2, -1)
    (out3_0, out3_0_br), H3, W3 = se_separable_cbr_fwd(P['level3_0'], out2)

    # level3 SBmodules (flat [M,C]); BR3[dim1:] folded into the last module
    h = out3_0
    for mp in P['level3']:
        h = sb_module_fwd(mp, h)
    out3_br = h

    # level4_0: input = BR3(cat(out3_0, out3)); BR3 already folded into
    # producers, so only a channel concat (fuses into the patch extraction).
    cat3 = jnp.concatenate([out3_0_br.reshape(N, H3, W3, -1),
                            out3_br.reshape(N, H3, W3, -1)], axis=-1)
    (out4_0, out4_0_br), H4, W4 = se_separable_cbr_fwd(P['level4_0'], cat3)

    h = out4_0
    for mp in P['level4']:
        h = sb_module_fwd(mp, h)
    out4_br = h                                   # BR4[dim2:] folded in

    # classifier 1x1 conv over BR4(cat(out4_0, out4)); the concat is avoided
    # by splitting the classifier weight along K (two matmul terms).
    cls = pallas_linear([(out4_0_br, P['cls_w1']), (out4_br, P['cls_w2'])],
                        out_dtype=jnp.float32)
    cls = cls.reshape(N, H4, W4, -1)
    return jnp.transpose(cls, (0, 3, 1, 2))        # NHWC -> NCHW


# ----------------------------------------------------------------------------
# Deterministic parameter construction (BNs folded for inference)
# ----------------------------------------------------------------------------
class ParamGen:
    def __init__(self, seed):
        self._key = jax.random.PRNGKey(seed)

    def normal(self, shape, scale=1.0):
        self._key, sub = jax.random.split(self._key)
        return scale * jax.random.normal(sub, shape, dtype=jnp.float32)


def make_bn(pg, c, eps=1e-3):
    gamma = 1.0 + 0.1 * pg.normal((c,))
    beta = 0.1 * pg.normal((c,))
    mean = 0.1 * pg.normal((c,))
    var = 1.0 + 0.1 * jnp.abs(pg.normal((c,)))
    scale = gamma * jax.lax.rsqrt(var + eps)
    shift = beta - mean * scale
    return scale, shift


def make_prelu(pg, c):
    return 0.25 + 0.05 * pg.normal((c,))


def row(v):
    return jnp.asarray(v, jnp.float32).reshape(1, -1)


def init_cbr(pg, cin, cout, k, stride):
    s, sh = make_bn(pg, cout)
    w = pg.normal((k, k, cin, cout), 1.0 / math.sqrt(k * k * cin))
    return dict(k=k, stride=stride,
                w=w.reshape(k * k * cin, cout).astype(jnp.bfloat16),
                scale=row(s), shift=row(sh), alpha=row(make_prelu(pg, cout)))


def init_se_cbr(pg, cin, cout, k, stride, divide, N, Ho, Wo):
    dw = pg.normal((k * k, cin), 1.0 / math.sqrt(k * k)).reshape(k * k, 1, cin)
    layers = []
    if divide > 1:
        mid = int(cin / divide)
        layers.append((pg.normal((cin, mid), 1.0 / math.sqrt(cin)).astype(jnp.bfloat16),
                       row(0.05 * pg.normal((mid,))), row(make_prelu(pg, mid))))
        layers.append((pg.normal((mid, cin), 1.0 / math.sqrt(mid)).astype(jnp.bfloat16),
                       row(0.05 * pg.normal((cin,))), row(make_prelu(pg, cin))))
    else:
        layers.append((pg.normal((cin, cin), 1.0 / math.sqrt(cin)).astype(jnp.bfloat16),
                       row(0.05 * pg.normal((cin,))), row(make_prelu(pg, cin))))
    s, sh = make_bn(pg, cout)
    M = N * Ho * Wo
    hw = Ho * Wo
    pool = np.zeros((N, M), np.float32)
    unpool = np.zeros((M, N), np.float32)
    for b in range(N):
        pool[b, b * hw:(b + 1) * hw] = 1.0 / hw
        unpool[b * hw:(b + 1) * hw, b] = 1.0
    return dict(k=k, stride=stride, dw_w=dw, se=layers,
                pw_w=pg.normal((cin, cout), 1.0 / math.sqrt(cin)).astype(jnp.bfloat16),
                scale=row(s), shift=row(sh), alpha=row(make_prelu(pg, cout)),
                pool=jnp.asarray(pool, jnp.bfloat16),
                unpool=jnp.asarray(unpool, jnp.bfloat16),
                br=None)


def _branch_geometry(cfg, N, H, W):
    """Taps (as flat row shifts) + per-tap validity masks for zero padding."""
    k, avg = cfg
    p = (k - 1) // 2
    if avg == 0:
        offs = [(dy, dx) for dy in range(-1, 2) for dx in range(-1, 2)]
    else:
        # TODO(synk): avgsize > 1 branch (AvgPool2d + UpsamplingBilinear2d) not
        # implemented; chosen configs only use avgsize in {0, 1}.
        assert avg == 1, "avgsize > 1 path not supported by this script"
        offs = [(dy, 0) for dy in range(-p, p + 1)] + \
               [(0, dx) for dx in range(-p, p + 1)]
    M = N * H * W
    shifts = tuple(dy * W + dx for (dy, dx) in offs)
    mask = np.zeros((len(offs), M), np.float32)
    for t, (dy, dx) in enumerate(offs):
        for b in range(N):
            for i in range(H):
                for j in range(W):
                    if 0 <= i + dy < H and 0 <= j + dx < W:
                        mask[t, (b * H + i) * W + j] = 1.0
    return shifts, mask


def init_sb_block(pg, nin, bout, cfg, N, H, W, cout_total, col_lo):
    k, avg = cfg
    shifts, mask = _branch_geometry(cfg, N, H, W)
    if avg == 0:
        w = pg.normal((9, nin), 1.0 / 3.0)
        s, sh = make_bn(pg, nin)
        w_taps = w * s[None, :]
        shift = sh
    else:
        w_v = pg.normal((k, nin), 1.0 / math.sqrt(k))
        w_h = pg.normal((k, nin), 1.0 / math.sqrt(k))
        sv, shv = make_bn(pg, nin)
        s_h, shh = make_bn(pg, nin)
        w_taps = jnp.concatenate([w_v * sv[None, :], w_h * s_h[None, :]], axis=0)
        shift = shv + shh
    # fold the boundary mask into the (BN-folded) tap weights: one multiply/tap
    wm = jnp.asarray(mask)[:, :, None] * w_taps[:, None, :]       # [T, M, nin]
    pw = pg.normal((nin, bout), 1.0 / math.sqrt(nin))
    pw_full = jnp.zeros((nin, cout_total), jnp.float32)
    pw_full = pw_full.at[:, col_lo:col_lo + bout].set(pw)          # lane-dense
    bn_s, bn_sh = make_bn(pg, bout)
    return dict(taps=shifts, wm=wm, shift=row(shift),
                alpha=row(make_prelu(pg, nin)),
                pw=pw_full.astype(jnp.bfloat16),
                bn_scale=bn_s, bn_shift=bn_sh, bout=bout)


def init_sb_module(pg, cin, cout, add, config, N, H, W):
    group_n = len(config)
    assert group_n == 2, "fused SBmodule kernel expects exactly 2 branches"
    n = cout // group_n
    n1 = cout - group_n * n
    cin_g = cin // group_n
    n_g = n // group_n
    # grouped 1x1 conv as a block-diagonal weight; channel shuffle folded in as
    # a column permutation (computed once at init).
    wbd = jnp.zeros((cin, n), jnp.float32)
    for g in range(group_n):
        wg = pg.normal((cin_g, n_g), 1.0 / math.sqrt(cin_g))
        wbd = wbd.at[g * cin_g:(g + 1) * cin_g, g * n_g:(g + 1) * n_g].set(wg)
    perm = np.array([(c % group_n) * n_g + (c // group_n) for c in range(n)])
    c1_w = wbd[:, perm].astype(jnp.bfloat16)

    blocks, col, max_shift = [], 0, 0
    for i, cfg in enumerate(config):
        bout = n + n1 if i == 0 else n
        blk = init_sb_block(pg, n, bout, cfg, N, H, W, cout, col)
        col += bout
        max_shift = max(max_shift, max(abs(s) for s in blk['taps']))
        blocks.append(blk)
    r0 = max(8, ((max_shift + 7) // 8) * 8)    # aligned interior row offset

    s2, sh2 = make_bn(pg, cout)                # module BR BatchNorm
    s1 = jnp.concatenate([b['bn_scale'] for b in blocks])
    sh1 = jnp.concatenate([b['bn_shift'] for b in blocks])
    return dict(c1_w=c1_w, blocks=blocks, cout=cout, r0=r0,
                scale=row(s1 * s2), shift=row(sh1 * s2 + sh2),
                alpha=row(make_prelu(pg, cout)), add=add,
                rscale=row(s2) if add else None, br=None)


def init_encoder(pg, config, classes=20, p=2, q=2, chnn=1, N=2, H=32, W=32):
    dim1 = 24
    dim2 = 48 + 4 * (chnn - 1)
    dim3 = 72 + 4 * (chnn - 1)
    dim4 = 96 + 4 * (chnn - 1)
    H1, W1 = H // 2, W // 2
    H2, W2 = H1 // 2, W1 // 2
    H3, W3 = H2 // 2, W2 // 2
    H4, W4 = H3 // 2, W3 // 2

    P = {}
    P['level1'] = init_cbr(pg, 3, 16, 3, 2)
    P['level2_0'] = init_se_cbr(pg, 16, classes, 3, 2, 1, N, H2, W2)
    P['level3_0'] = init_se_cbr(pg, classes, dim1, 3, 2, 1, N, H3, W3)
    P['level3'] = []
    for i in range(p):
        if i == 0:
            P['level3'].append(init_sb_module(pg, dim1, dim2, False, config[i], N, H3, W3))
        else:
            P['level3'].append(init_sb_module(pg, dim2, dim2, True, config[i], N, H3, W3))
    # BR3 folded into its producers: [0:dim1] -> level3_0 (2nd output),
    # [dim1:] -> last level3 module epilogue.
    s3, sh3 = make_bn(pg, dim2 + dim1)
    a3 = make_prelu(pg, dim2 + dim1)
    P['level3_0']['br'] = (row(s3[:dim1]), row(sh3[:dim1]), row(a3[:dim1]))
    P['level3'][-1]['br'] = (row(s3[dim1:]), row(sh3[dim1:]), row(a3[dim1:]))

    P['level4_0'] = init_se_cbr(pg, dim2 + dim1, dim2, 3, 2, 2, N, H4, W4)
    P['level4'] = []
    for i in range(0, q // 2):
        if i == 0:
            P['level4'].append(init_sb_module(pg, dim2, dim3, False, config[p + i], N, H4, W4))
        else:
            P['level4'].append(init_sb_module(pg, dim3, dim3, True, config[p + i], N, H4, W4))
    for i in range(q // 2, q):
        if i == q // 2:
            P['level4'].append(init_sb_module(pg, dim3, dim4, False, config[p + i], N, H4, W4))
        else:
            P['level4'].append(init_sb_module(pg, dim4, dim4, True, config[p + i], N, H4, W4))
    # BR4 folded: [0:dim2] -> level4_0 (2nd output), [dim2:] -> last level4 module
    s4, sh4 = make_bn(pg, dim4 + dim2)
    a4 = make_prelu(pg, dim4 + dim2)
    P['level4_0']['br'] = (row(s4[:dim2]), row(sh4[:dim2]), row(a4[:dim2]))
    P['level4'][-1]['br'] = (row(s4[dim2:]), row(sh4[dim2:]), row(a4[dim2:]))

    w_cls = pg.normal((dim4 + dim2, classes), 1.0 / math.sqrt(dim4 + dim2))
    P['cls_w1'] = w_cls[:dim2].astype(jnp.bfloat16)    # pairs with out4_0
    P['cls_w2'] = w_cls[dim2:].astype(jnp.bfloat16)    # pairs with out4
    return P


# ----------------------------------------------------------------------------
# Main
# ----------------------------------------------------------------------------
if __name__ == "__main__":
    # p + q SBmodule configs (each: [kSize, avgsize] per branch)
    config = [
        [[3, 1], [5, 1]],   # level3[0]
        [[3, 0], [3, 1]],   # level3[1]  (add=True residual)
        [[3, 1], [5, 1]],   # level4[0]
        [[3, 1], [3, 0]],   # level4[1]
    ]
    classes, p_depth, q_depth = 20, 2, 2
    N, H, W = 2, 32, 32

    pg = ParamGen(seed=42)
    params = init_encoder(pg, config, classes=classes, p=p_depth, q=q_depth,
                          chnn=1, N=N, H=H, W=W)

    key = jax.random.PRNGKey(0)
    x = jax.random.normal(key, (N, 3, H, W), dtype=jnp.float32)  # NCHW

    fwd = jax.jit(lambda inp: sbnet_encoder_forward(params, inp))
    out = jax.block_until_ready(fwd(x))

    assert out.shape == (N, classes, H // 16, W // 16), out.shape
    assert out.dtype == jnp.float32
    print("KERNEL_OK")
</pallas_src>

<mosaic_0001>
module attributes {stable_mosaic.version = 11 : i64} {
  func.func @_linear_kernel(%arg0: i32, %arg1: memref<512x27xbf16, #tpu.memory_space<vmem>>, %arg2: memref<27x16xbf16, #tpu.memory_space<vmem>>, %arg3: memref<1x16xf32, #tpu.memory_space<vmem>>, %arg4: memref<1x16xf32, #tpu.memory_space<vmem>>, %arg5: memref<1x16xf32, #tpu.memory_space<vmem>>, %arg6: memref<512x16xbf16, #tpu.memory_space<vmem>>) attributes {dimension_semantics = [#tpu.dimension_semantics<arbitrary>], iteration_bounds = array<i64: 1>, scalar_prefetch = 0 : i64, scratch_operands = 0 : i64, tpu.core_type = #tpu.core_type<tc>, window_params = [{pipeline_mode = #tpu.pipeline_mode<synchronous>, transform_indices = @transform_0, window_bounds = array<i64: 512, 27>}, {pipeline_mode = #tpu.pipeline_mode<synchronous>, transform_indices = @transform_1, window_bounds = array<i64: 27, 16>}, {pipeline_mode = #tpu.pipeline_mode<synchronous>, transform_indices = @transform_2, window_bounds = array<i64: 1, 16>}, {pipeline_mode = #tpu.pipeline_mode<synchronous>, transform_indices = @transform_3, window_bounds = array<i64: 1, 16>}, {pipeline_mode = #tpu.pipeline_mode<synchronous>, transform_indices = @transform_4, window_bounds = array<i64: 1, 16>}, {pipeline_mode = #tpu.pipeline_mode<synchronous>, transform_indices = @transform_5, window_bounds = array<i64: 512, 16>}]} {
    %c0 = arith.constant 0 : index
    %c0_0 = arith.constant 0 : index
    %0 = vector.load %arg1[%c0, %c0_0] : memref<512x27xbf16, #tpu.memory_space<vmem>>, vector<512x27xbf16>
    %c0_1 = arith.constant 0 : index
    %c0_2 = arith.constant 0 : index
    %1 = vector.load %arg2[%c0_1, %c0_2] : memref<27x16xbf16, #tpu.memory_space<vmem>>, vector<27x16xbf16>
    %cst = arith.constant dense<0.000000e+00> : vector<512x16xf32>
    %2 = tpu.matmul %0, %1, %cst {dimension_numbers = #tpu.dot_dimension_numbers<[1], [0], [0], [1], [0, 0, 1, 1], [], []>} : vector<512x27xbf16>, vector<27x16xbf16>, vector<512x16xf32> -> vector<512x16xf32>
    %c0_3 = arith.constant 0 : index
    %c0_4 = arith.constant 0 : index
    %3 = vector.load %arg3[%c0_3, %c0_4] : memref<1x16xf32, #tpu.memory_space<vmem>>, vector<1x16xf32>
    %4 = vector.broadcast %3 : vector<1x16xf32> to vector<512x16xf32>
    %5 = arith.mulf %2, %4 : vector<512x16xf32>
    %c0_5 = arith.constant 0 : index
    %c0_6 = arith.constant 0 : index
    %6 = vector.load %arg4[%c0_5, %c0_6] : memref<1x16xf32, #tpu.memory_space<vmem>>, vector<1x16xf32>
    %7 = vector.broadcast %6 : vector<1x16xf32> to vector<512x16xf32>
    %8 = arith.addf %5, %7 : vector<512x16xf32>
    %c0_7 = arith.constant 0 : index
    %c0_8 = arith.constant 0 : index
    %9 = vector.load %arg5[%c0_7, %c0_8] : memref<1x16xf32, #tpu.memory_space<vmem>>, vector<1x16xf32>
    %cst_9 = arith.constant 0.000000e+00 : f32
    %10 = vector.broadcast %cst_9 : f32 to vector<512x16xf32>
    %11 = arith.cmpf oge, %8, %10 : vector<512x16xf32>
    %12 = vector.broadcast %9 : vector<1x16xf32> to vector<512x16xf32>
    %13 = arith.mulf %8, %12 : vector<512x16xf32>
    %14 = arith.select %11, %8, %13 : vector<512x16xi1>, vector<512x16xf32>
    %15 = arith.truncf %14 : vector<512x16xf32> to vector<512x16xbf16>
    %c0_10 = arith.constant 0 : index
    %c0_11 = arith.constant 0 : index
    %16 = vector.load %arg6[%c0_10, %c0_11] : memref<512x16xbf16, #tpu.memory_space<vmem>>, vector<512x16xbf16>
    tpu.vector_store %arg6[%c0_10, %c0_11], %15 {strides = array<i32>} : memref<512x16xbf16, #tpu.memory_space<vmem>>, vector<512x16xbf16>,
    return
  }
  func.func @transform_0(%arg0: i32) -> (i32, i32) {
    %c0_i32 = arith.constant 0 : i32
    %c0_i32_0 = arith.constant 0 : i32
    %c0_i32_1 = arith.constant 0 : i32
    return %c0_i32, %c0_i32_0 : i32, i32
  }
  func.func @transform_1(%arg0: i32) -> (i32, i32) {
    %c0_i32 = arith.constant 0 : i32
    %c0_i32_0 = arith.constant 0 : i32
    %c0_i32_1 = arith.constant 0 : i32
    return %c0_i32, %c0_i32_0 : i32, i32
  }
  func.func @transform_2(%arg0: i32) -> (i32, i32) {
    %c0_i32 = arith.constant 0 : i32
    %c0_i32_0 = arith.constant 0 : i32
    %c0_i32_1 = arith.constant 0 : i32
    return %c0_i32, %c0_i32_0 : i32, i32
  }
  func.func @transform_3(%arg0: i32) -> (i32, i32) {
    %c0_i32 = arith.constant 0 : i32
    %c0_i32_0 = arith.constant 0 : i32
    %c0_i32_1 = arith.constant 0 : i32
    return %c0_i32, %c0_i32_0 : i32, i32
  }
  func.func @transform_4(%arg0: i32) -> (i32, i32) {
    %c0_i32 = arith.constant 0 : i32
    %c0_i32_0 = arith.constant 0 : i32
    %c0_i32_1 = arith.constant 0 : i32
    return %c0_i32, %c0_i32_0 : i32, i32
  }
  func.func @transform_5(%arg0: i32) -> (i32, i32) {
    %c0_i32 = arith.constant 0 : i32
    %c0_i32_0 = arith.constant 0 : i32
    %c0_i32_1 = arith.constant 0 : i32
    return %c0_i32, %c0_i32_0 : i32, i32
  }
}

module attributes {stable_mosaic.version = 11 : i64} {
  func.func @_se_cbr_kernel(%arg0: i32, %arg1: memref<9x128x16xbf16, #tpu.memory_space<vmem>>, %arg2: memref<9x1x16xf32, #tpu.memory_space<vmem>>, %arg3: memref<2x128xbf16, #tpu.memory_space<vmem>>, %arg4: memref<128x2xbf16, #tpu.memory_space<vmem>>, %arg5: memref<16x16xbf16, #tpu.memory_space<vmem>>, %arg6: memref<1x16xf32, #tpu.memory_space<vmem>>, %arg7: memref<1x16xf32, #tpu.memory_space<vmem>>, %arg8: memref<16x20xbf16, #tpu.memory_space<vmem>>, %arg9: memref<1x20xf32, #tpu.memory_space<vmem>>, %arg10: memref<1x20xf32, #tpu.memory_space<vmem>>, %arg11: memref<1x20xf32, #tpu.memory_space<vmem>>, %arg12: memref<128x20xbf16, #tpu.memory_space<vmem>>) attributes {dimension_semantics = [#tpu.dimension_semantics<arbitrary>], iteration_bounds = array<i64: 1>, scalar_prefetch = 0 : i64, scratch_operands = 0 : i64, tpu.core_type = #tpu.core_type<tc>, window_params = [{pipeline_mode = #tpu.pipeline_mode<synchronous>, transform_indices = @transform_0, window_bounds = array<i64: 9, 128, 16>}, {pipeline_mode = #tpu.pipeline_mode<synchronous>, transform_indices = @transform_1, window_bounds = array<i64: 9, 1, 16>}, {pipeline_mode = #tpu.pipeline_mode<synchronous>, transform_indices = @transform_2, window_bounds = array<i64: 2, 128>}, {pipeline_mode = #tpu.pipeline_mode<synchronous>, transform_indices = @transform_3, window_bounds = array<i64: 128, 2>}, {pipeline_mode = #tpu.pipeline_mode<synchronous>, transform_indices = @transform_4, window_bounds = array<i64: 16, 16>}, {pipeline_mode = #tpu.pipeline_mode<synchronous>, transform_indices = @transform_5, window_bounds = array<i64: 1, 16>}, {pipeline_mode = #tpu.pipeline_mode<synchronous>, transform_indices = @transform_6, window_bounds = array<i64: 1, 16>}, {pipeline_mode = #tpu.pipeline_mode<synchronous>, transform_indices = @transform_7, window_bounds = array<i64: 16, 20>}, {pipeline_mode = #tpu.pipeline_mode<synchronous>, transform_indices = @transform_8, window_bounds = array<i64: 1, 20>}, {pipeline_mode = #tpu.pipeline_mode<synchronous>, transform_indices = @transform_9, window_bounds = array<i64: 1, 20>}, {pipeline_mode = #tpu.pipeline_mode<synchronous>, transform_indices = @transform_10, window_bounds = array<i64: 1, 20>}, {pipeline_mode = #tpu.pipeline_mode<synchronous>, transform_indices = @transform_11, window_bounds = array<i64: 128, 20>}]} {
    %c0 = arith.constant 0 : index
    %c0_0 = arith.constant 0 : index
    %c0_1 = arith.constant 0 : index
    %0 = vector.load %arg1[%c0, %c0_0, %c0_1] : memref<9x128x16xbf16, #tpu.memory_space<vmem>>, vector<1x128x16xbf16>
    %1 = vector.shape_cast %0 : vector<1x128x16xbf16> to vector<128x16xbf16>
    %c0_2 = arith.constant 0 : index
    %c0_3 = arith.constant 0 : index
    %c0_4 = arith.constant 0 : index
    %2 = vector.load %arg2[%c0_2, %c0_3, %c0_4] : memref<9x1x16xf32, #tpu.memory_space<vmem>>, vector<1x1x16xf32>
    %3 = vector.shape_cast %2 : vector<1x1x16xf32> to vector<1x16xf32>
    %4 = arith.extf %1 : vector<128x16xbf16> to vector<128x16xf32>
    %5 = vector.broadcast %3 : vector<1x16xf32> to vector<128x16xf32>
    %6 = arith.mulf %4, %5 : vector<128x16xf32>
    %c1 = arith.constant 1 : index
    %c0_5 = arith.constant 0 : index
    %c0_6 = arith.constant 0 : index
    %7 = vector.load %arg1[%c1, %c0_5, %c0_6] : memref<9x128x16xbf16, #tpu.memory_space<vmem>>, vector<1x128x16xbf16>
    %8 = vector.shape_cast %7 : vector<1x128x16xbf16> to vector<128x16xbf16>
    %c1_7 = arith.constant 1 : index
    %c0_8 = arith.constant 0 : index
    %c0_9 = arith.constant 0 : index
    %9 = vector.load %arg2[%c1_7, %c0_8, %c0_9] : memref<9x1x16xf32, #tpu.memory_space<vmem>>, vector<1x1x16xf32>
    %10 = vector.shape_cast %9 : vector<1x1x16xf32> to vector<1x16xf32>
    %11 = arith.extf %8 : vector<128x16xbf16> to vector<128x16xf32>
    %12 = vector.broadcast %10 : vector<1x16xf32> to vector<128x16xf32>
    %13 = arith.mulf %11, %12 : vector<128x16xf32>
    %14 = arith.addf %6, %13 : vector<128x16xf32>
    %c2 = arith.constant 2 : index
    %c0_10 = arith.constant 0 : index
    %c0_11 = arith.constant 0 : index
    %15 = vector.load %arg1[%c2, %c0_10, %c0_11] : memref<9x128x16xbf16, #tpu.memory_space<vmem>>, vector<1x128x16xbf16>
    %16 = vector.shape_cast %15 : vector<1x128x16xbf16> to vector<128x16xbf16>
    %c2_12 = arith.constant 2 : index
    %c0_13 = arith.constant 0 : index
    %c0_14 = arith.constant 0 : index
    %17 = vector.load %arg2[%c2_12, %c0_13, %c0_14] : memref<9x1x16xf32, #tpu.memory_space<vmem>>, vector<1x1x16xf32>
    %18 = vector.shape_cast %17 : vector<1x1x16xf32> to vector<1x16xf32>
    %19 = arith.extf %16 : vector<128x16xbf16> to vector<128x16xf32>
    %20 = vector.broadcast %18 : vector<1x16xf32> to vector<128x16xf32>
    %21 = arith.mulf %19, %20 : vector<128x16xf32>
    %22 = arith.addf %14, %21 : vector<128x16xf32>
    %c3 = arith.constant 3 : index
    %c0_15 = arith.constant 0 : index
    %c0_16 = arith.constant 0 : index
    %23 = vector.load %arg1[%c3, %c0_15, %c0_16] : memref<9x128x16xbf16, #tpu.memory_space<vmem>>, vector<1x128x16xbf16>
    %24 = vector.shape_cast %23 : vector<1x128x16xbf16> to vector<128x16xbf16>
    %c3_17 = arith.constant 3 : index
    %c0_18 = arith.constant 0 : index
    %c0_19 = arith.constant 0 : index
    %25 = vector.load %arg2[%c3_17, %c0_18, %c0_19] : memref<9x1x16xf32, #tpu.memory_space<vmem>>, vector<1x1x16xf32>
    %26 = vector.shape_cast %25 : vector<1x1x16xf32> to vector<1x16xf32>
    %27 = arith.extf %24 : vector<128x16xbf16> to vector<128x16xf32>
    %28 = vector.broadcast %26 : vector<1x16xf32> to vector<128x16xf32>
    %29 = arith.mulf %27, %28 : vector<128x16xf32>
    %30 = arith.addf %22, %29 : vector<128x16xf32>
    %c4 = arith.constant 4 : index
    %c0_20 = arith.constant 0 : index
    %c0_21 = arith.constant 0 : index
    %31 = vector.load %arg1[%c4, %c0_20, %c0_21] : memref<9x128x16xbf16, #tpu.memory_space<vmem>>, vector<1x128x16xbf16>
    %32 = vector.shape_cast %31 : vector<1x128x16xbf16> to vector<128x16xbf16>
    %c4_22 = arith.constant 4 : index
    %c0_23 = arith.constant 0 : index
    %c0_24 = arith.constant 0 : index
    %33 = vector.load %arg2[%c4_22, %c0_23, %c0_24] : memref<9x1x16xf32, #tpu.memory_space<vmem>>, vector<1x1x16xf32>
    %34 = vector.shape_cast %33 : vector<1x1x16xf32> to vector<1x16xf32>
    %35 = arith.extf %32 : vector<128x16xbf16> to vector<128x16xf32>
    %36 = vector.broadcast %34 : vector<1x16xf32> to vector<128x16xf32>
    %37 = arith.mulf %35, %36 : vector<128x16xf32>
    %38 = arith.addf %30, %37 : vector<128x16xf32>
    %c5 = arith.constant 5 : index
    %c0_25 = arith.constant 0 : index
    %c0_26 = arith.constant 0 : index
    %39 = vector.load %arg1[%c5, %c0_25, %c0_26] : memref<9x128x16xbf16, #tpu.memory_space<vmem>>, vector<1x128x16xbf16>
    %40 = vector.shape_cast %39 : vector<1x128x16xbf16> to vector<128x16xbf16>
    %c5_27 = arith.constant 5 : index
    %c0_28 = arith.constant 0 : index
    %c0_29 = arith.constant 0 : index
    %41 = vector.load %arg2[%c5_27, %c0_28, %c0_29] : memref<9x1x16xf32, #tpu.memory_space<vmem>>, vector<1x1x16xf32>
    %42 = vector.shape_cast %41 : vector<1x1x16xf32> to vector<1x16xf32>
    %43 = arith.extf %40 : vector<128x16xbf16> to vector<128x16xf32>
    %44 = vector.broadcast %42 : vector<1x16xf32> to vector<128x16xf32>
    %45 = arith.mulf %43, %44 : vector<128x16xf32>
    %46 = arith.addf %38, %45 : vector<128x16xf32>
    %c6 = arith.constant 6 : index
    %c0_30 = arith.constant 0 : index
    %c0_31 = arith.constant 0 : index
    %47 = vector.load %arg1[%c6, %c0_30, %c0_31] : memref<9x128x16xbf16, #tpu.memory_space<vmem>>, vector<1x128x16xbf16>
    %48 = vector.shape_cast %47 : vector<1x128x16xbf16> to vector<128x16xbf16>
    %c6_32 = arith.constant 6 : index
    %c0_33 = arith.constant 0 : index
    %c0_34 = arith.constant 0 : index
    %49 = vector.load %arg2[%c6_32, %c0_33, %c0_34] : memref<9x1x16xf32, #tpu.memory_space<vmem>>, vector<1x1x16xf32>
    %50 = vector.shape_cast %49 : vector<1x1x16xf32> to vector<1x16xf32>
    %51 = arith.extf %48 : vector<128x16xbf16> to vector<128x16xf32>
    %52 = vector.broadcast %50 : vector<1x16xf32> to vector<128x16xf32>
    %53 = arith.mulf %51, %52 : vector<128x16xf32>
    %54 = arith.addf %46, %53 : vector<128x16xf32>
    %c7 = arith.constant 7 : index
    %c0_35 = arith.constant 0 : index
    %c0_36 = arith.constant 0 : index
    %55 = vector.load %arg1[%c7, %c0_35, %c0_36] : memref<9x128x16xbf16, #tpu.memory_space<vmem>>, vector<1x128x16xbf16>
    %56 = vector.shape_cast %55 : vector<1x128x16xbf16> to vector<128x16xbf16>
    %c7_37 = arith.constant 7 : index
    %c0_38 = arith.constant 0 : index
    %c0_39 = arith.constant 0 : index
    %57 = vector.load %arg2[%c7_37, %c0_38, %c0_39] : memref<9x1x16xf32, #tpu.memory_space<vmem>>, vector<1x1x16xf32>
    %58 = vector.shape_cast %57 : vector<1x1x16xf32> to vector<1x16xf32>
    %59 = arith.extf %56 : vector<128x16xbf16> to vector<128x16xf32>
    %60 = vector.broadcast %58 : vector<1x16xf32> to vector<128x16xf32>
    %61 = arith.mulf %59, %60 : vector<128x16xf32>
    %62 = arith.addf %54, %61 : vector<128x16xf32>
    %c8 = arith.constant 8 : index
    %c0_40 = arith.constant 0 : index
    %c0_41 = arith.constant 0 : index
    %63 = vector.load %arg1[%c8, %c0_40, %c0_41] : memref<9x128x16xbf16, #tpu.memory_space<vmem>>, vector<1x128x16xbf16>
    %64 = vector.shape_cast %63 : vector<1x128x16xbf16> to vector<128x16xbf16>
    %c8_42 = arith.constant 8 : index
    %c0_43 = arith.constant 0 : index
    %c0_44 = arith.constant 0 : index
    %65 = vector.load %arg2[%c8_42, %c0_43, %c0_44] : memref<9x1x16xf32, #tpu.memory_space<vmem>>, vector<1x1x16xf32>
    %66 = vector.shape_cast %65 : vector<1x1x16xf32> to vector<1x16xf32>
    %67 = arith.extf %64 : vector<128x16xbf16> to vector<128x16xf32>
    %68 = vector.broadcast %66 : vector<1x16xf32> to vector<128x16xf32>
    %69 = arith.mulf %67, %68 : vector<128x16xf32>
    %70 = arith.addf %62, %69 : vector<128x16xf32>
    %c0_45 = arith.constant 0 : index
    %c0_46 = arith.constant 0 : index
    %71 = vector.load %arg3[%c0_45, %c0_46] : memref<2x128xbf16, #tpu.memory_space<vmem>>, vector<2x128xbf16>
    %72 = arith.truncf %70 : vector<128x16xf32> to vector<128x16xbf16>
    %cst = arith.constant dense<0.000000e+00> : vector<2x16xf32>
    %73 = tpu.matmul %71, %72, %cst {dimension_numbers = #tpu.dot_dimension_numbers<[1], [0], [0], [1], [0, 0, 1, 1], [], []>} : vector<2x128xbf16>, vector<128x16xbf16>, vector<2x16xf32> -> vector<2x16xf32>
    %c0_47 = arith.constant 0 : index
    %c0_48 = arith.constant 0 : index
    %74 = vector.load %arg5[%c0_47, %c0_48] : memref<16x16xbf16, #tpu.memory_space<vmem>>, vector<16x16xbf16>
    %c0_49 = arith.constant 0 : index
    %c0_50 = arith.constant 0 : index
    %75 = vector.load %arg6[%c0_49, %c0_50] : memref<1x16xf32, #tpu.memory_space<vmem>>, vector<1x16xf32>
    %c0_51 = arith.constant 0 : index
    %c0_52 = arith.constant 0 : index
    %76 = vector.load %arg7[%c0_51, %c0_52] : memref<1x16xf32, #tpu.memory_space<vmem>>, vector<1x16xf32>
    %77 = arith.truncf %73 : vector<2x16xf32> to vector<2x16xbf16>
    %cst_53 = arith.constant dense<0.000000e+00> : vector<2x16xf32>
    %78 = tpu.matmul %77, %74, %cst_53 {dimension_numbers = #tpu.dot_dimension_numbers<[1], [0], [0], [1], [0, 0, 1, 1], [], []>} : vector<2x16xbf16>, vector<16x16xbf16>, vector<2x16xf32> -> vector<2x16xf32>
    %79 = vector.broadcast %75 : vector<1x16xf32> to vector<2x16xf32>
    %80 = arith.addf %78, %79 : vector<2x16xf32>
    %cst_54 = arith.constant 0.000000e+00 : f32
    %81 = vector.broadcast %cst_54 : f32 to vector<2x16xf32>
    %82 = arith.cmpf oge, %80, %81 : vector<2x16xf32>
    %83 = vector.broadcast %76 : vector<1x16xf32> to vector<2x16xf32>
    %84 = arith.mulf %80, %83 : vector<2x16xf32>
    %85 = arith.select %82, %80, %84 : vector<2x16xi1>, vector<2x16xf32>
    %c0_55 = arith.constant 0 : index
    %c0_56 = arith.constant 0 : index
    %86 = vector.load %arg4[%c0_55, %c0_56] : memref<128x2xbf16, #tpu.memory_space<vmem>>, vector<128x2xbf16>
    %87 = arith.truncf %85 : vector<2x16xf32> to vector<2x16xbf16>
    %cst_57 = arith.constant dense<0.000000e+00> : vector<128x16xf32>
    %88 = tpu.matmul %86, %87, %cst_57 {dimension_numbers = #tpu.dot_dimension_numbers<[1], [0], [0], [1], [0, 0, 1, 1], [], []>} : vector<128x2xbf16>, vector<2x16xbf16>, vector<128x16xf32> -> vector<128x16xf32>
    %89 = arith.mulf %70, %88 : vector<128x16xf32>
    %c0_58 = arith.constant 0 : index
    %c0_59 = arith.constant 0 : index
    %90 = vector.load %arg8[%c0_58, %c0_59] : memref<16x20xbf16, #tpu.memory_space<vmem>>, vector<16x20xbf16>
    %91 = arith.truncf %89 : vector<128x16xf32> to vector<128x16xbf16>
    %cst_60 = arith.constant dense<0.000000e+00> : vector<128x20xf32>
    %92 = tpu.matmul %91, %90, %cst_60 {dimension_numbers = #tpu.dot_dimension_numbers<[1], [0], [0], [1], [0, 0, 1, 1], [], []>} : vector<128x16xbf16>, vector<16x20xbf16>, vector<128x20xf32> -> vector<128x20xf32>
    %c0_61 = arith.constant 0 : index
    %c0_62 = arith.constant 0 : index
    %93 = vector.load %arg9[%c0_61, %c0_62] : memref<1x20xf32, #tpu.memory_space<vmem>>, vector<1x20xf32>
    %94 = vector.broadcast %93 : vector<1x20xf32> to vector<128x20xf32>
    %95 = arith.mulf %92, %94 : vector<128x20xf32>
    %c0_63 = arith.constant 0 : index
    %c0_64 = arith.constant 0 : index
    %96 = vector.load %arg10[%c0_63, %c0_64] : memref<1x20xf32, #tpu.memory_space<vmem>>, vector<1x20xf32>
    %97 = vector.broadcast %96 : vector<1x20xf32> to vector<128x20xf32>
    %98 = arith.addf %95, %97 : vector<128x20xf32>
    %c0_65 = arith.constant 0 : index
    %c0_66 = arith.constant 0 : index
    %99 = vector.load %arg11[%c0_65, %c0_66] : memref<1x20xf32, #tpu.memory_space<vmem>>, vector<1x20xf32>
    %cst_67 = arith.constant 0.000000e+00 : f32
    %100 = vector.broadcast %cst_67 : f32 to vector<128x20xf32>
    %101 = arith.cmpf oge, %98, %100 : vector<128x20xf32>
    %102 = vector.broadcast %99 : vector<1x20xf32> to vector<128x20xf32>
    %103 = arith.mulf %98, %102 : vector<128x20xf32>
    %104 = arith.select %101, %98, %103 : vector<128x20xi1>, vector<128x20xf32>
    %105 = arith.truncf %104 : vector<128x20xf32> to vector<128x20xbf16>
    %c0_68 = arith.constant 0 : index
    %c0_69 = arith.constant 0 : index
    %106 = vector.load %arg12[%c0_68, %c0_69] : memref<128x20xbf16, #tpu.memory_space<vmem>>, vector<128x20xbf16>
    tpu.vector_store %arg12[%c0_68, %c0_69], %105 {strides = array<i32>} : memref<128x20xbf16, #tpu.memory_space<vmem>>, vector<128x20xbf16>,
    return
  }
  func.func @transform_0(%arg0: i32) -> (i32, i32, i32) {
    %c0_i32 = arith.constant 0 : i32
    %c0_i32_0 = arith.constant 0 : i32
    %c0_i32_1 = arith.constant 0 : i32
    %c0_i32_2 = arith.constant 0 : i32
    return %c0_i32, %c0_i32_0, %c0_i32_1 : i32, i32, i32
  }
  func.func @transform_1(%arg0: i32) -> (i32, i32, i32) {
    %c0_i32 = arith.constant 0 : i32
    %c0_i32_0 = arith.constant 0 : i32
    %c0_i32_1 = arith.constant 0 : i32
    %c0_i32_2 = arith.constant 0 : i32
    return %c0_i32, %c0_i32_0, %c0_i32_1 : i32, i32, i32
  }
  func.func @transform_2(%arg0: i32) -> (i32, i32) {
    %c0_i32 = arith.constant 0 : i32
    %c0_i32_0 = arith.constant 0 : i32
    %c0_i32_1 = arith.constant 0 : i32
    return %c0_i32, %c0_i32_0 : i32, i32
  }
  func.func @transform_3(%arg0: i32) -> (i32, i32) {
    %c0_i32 = arith.constant 0 : i32
    %c0_i32_0 = arith.constant 0 : i32
    %c0_i32_1 = arith.constant 0 : i32
    return %c0_i32, %c0_i32_0 : i32, i32
  }
  func.func @transform_4(%arg0: i32) -> (i32, i32) {
    %c0_i32 = arith.constant 0 : i32
    %c0_i32_0 = arith.constant 0 : i32
    %c0_i32_1 = arith.constant 0 : i32
    return %c0_i32, %c0_i32_0 : i32, i32
  }
  func.func @transform_5(%arg0: i32) -> (i32, i32) {
    %c0_i32 = arith.constant 0 : i32
    %c0_i32_0 = arith.constant 0 : i32
    %c0_i32_1 = arith.constant 0 : i32
    return %c0_i32, %c0_i32_0 : i32, i32
  }
  func.func @transform_6(%arg0: i32) -> (i32, i32) {
    %c0_i32 = arith.constant 0 : i32
    %c0_i32_0 = arith.constant 0 : i32
    %c0_i32_1 = arith.constant 0 : i32
    return %c0_i32, %c0_i32_0 : i32, i32
  }
  func.func @transform_7(%arg0: i32) -> (i32, i32) {
    %c0_i32 = arith.constant 0 : i32
    %c0_i32_0 = arith.constant 0 : i32
    %c0_i32_1 = arith.constant 0 : i32
    return %c0_i32, %c0_i32_0 : i32, i32
  }
  func.func @transform_8(%arg0: i32) -> (i32, i32) {
    %c0_i32 = arith.constant 0 : i32
    %c0_i32_0 = arith.constant 0 : i32
    %c0_i32_1 = arith.constant 0 : i32
    return %c0_i32, %c0_i32_0 : i32, i32
  }
  func.func @transform_9(%arg0: i32) -> (i32, i32) {
    %c0_i32 = arith.constant 0 : i32
    %c0_i32_0 = arith.constant 0 : i32
    %c0_i32_1 = arith.constant 0 : i32
    return %c0_i32, %c0_i32_0 : i32, i32
  }
  func.func @transform_10(%arg0: i32) -> (i32, i32) {
    %c0_i32 = arith.constant 0 : i32
    %c0_i32_0 = arith.constant 0 : i32
    %c0_i32_1 = arith.constant 0 : i32
    return %c0_i32, %c0_i32_0 : i32, i32
  }
  func.func @transform_11(%arg0: i32) -> (i32, i32) {
    %c0_i32 = arith.constant 0 : i32
    %c0_i32_0 = arith.constant 0 : i32
    %c0_i32_1 = arith.constant 0 : i32
    return %c0_i32, %c0_i32_0 : i32, i32
  }
}

module attributes {stable_mosaic.version = 11 : i64} {
  func.func @_sb_module_kernel(%arg0: i32, %arg1: memref<32x24xbf16, #tpu.memory_space<vmem>>, %arg2: memref<24x24xbf16, #tpu.memory_space<vmem>>, %arg3: memref<6x32x24xf32, #tpu.memory_space<vmem>>, %arg4: memref<1x24xf32, #tpu.memory_space<vmem>>, %arg5: memref<1x24xf32, #tpu.memory_space<vmem>>, %arg6: memref<24x48xbf16, #tpu.memory_space<vmem>>, %arg7: memref<10x32x24xf32, #tpu.memory_space<vmem>>, %arg8: memref<1x24xf32, #tpu.memory_space<vmem>>, %arg9: memref<1x24xf32, #tpu.memory_space<vmem>>, %arg10: memref<24x48xbf16, #tpu.memory_space<vmem>>, %arg11: memref<1x48xf32, #tpu.memory_space<vmem>>, %arg12: memref<1x48xf32, #tpu.memory_space<vmem>>, %arg13: memref<1x48xf32, #tpu.memory_space<vmem>>, %arg14: memref<32x48xbf16, #tpu.memory_space<vmem>>, %arg15: memref<48x24xf32, #tpu.memory_space<vmem>>) attributes {dimension_semantics = [#tpu.dimension_semantics<arbitrary>], iteration_bounds = array<i64: 1>, scalar_prefetch = 0 : i64, scratch_operands = 1 : i64, tpu.core_type = #tpu.core_type<tc>, window_params = [{pipeline_mode = #tpu.pipeline_mode<synchronous>, transform_indices = @transform_0, window_bounds = array<i64: 32, 24>}, {pipeline_mode = #tpu.pipeline_mode<synchronous>, transform_indices = @transform_1, window_bounds = array<i64: 24, 24>}, {pipeline_mode = #tpu.pipeline_mode<synchronous>, transform_indices = @transform_2, window_bounds = array<i64: 6, 32, 24>}, {pipeline_mode = #tpu.pipeline_mode<synchronous>, transform_indices = @transform_3, window_bounds = array<i64: 1, 24>}, {pipeline_mode = #tpu.pipeline_mode<synchronous>, transform_indices = @transform_4, window_bounds = array<i64: 1, 24>}, {pipeline_mode = #tpu.pipeline_mode<synchronous>, transform_indices = @transform_5, window_bounds = array<i64: 24, 48>}, {pipeline_mode = #tpu.pipeline_mode<synchronous>, transform_indices = @transform_6, window_bounds = array<i64: 10, 32, 24>}, {pipeline_mode = #tpu.pipeline_mode<synchronous>, transform_indices = @transform_7, window_bounds = array<i64: 1, 24>}, {pipeline_mode = #tpu.pipeline_mode<synchronous>, transform_indices = @transform_8, window_bounds = array<i64: 1, 24>}, {pipeline_mode = #tpu.pipeline_mode<synchronous>, transform_indices = @transform_9, window_bounds = array<i64: 24, 48>}, {pipeline_mode = #tpu.pipeline_mode<synchronous>, transform_indices = @transform_10, window_bounds = array<i64: 1, 48>}, {pipeline_mode = #tpu.pipeline_mode<synchronous>, transform_indices = @transform_11, window_bounds = array<i64: 1, 48>}, {pipeline_mode = #tpu.pipeline_mode<synchronous>, transform_indices = @transform_12, window_bounds = array<i64: 1, 48>}, {pipeline_mode = #tpu.pipeline_mode<synchronous>, transform_indices = @transform_13, window_bounds = array<i64: 32, 48>}]} {
    %c0 = arith.constant 0 : index
    %c0_0 = arith.constant 0 : index
    %0 = vector.load %arg1[%c0, %c0_0] : memref<32x24xbf16, #tpu.memory_space<vmem>>, vector<32x24xbf16>
    %c0_1 = arith.constant 0 : index
    %c0_2 = arith.constant 0 : index
    %1 = vector.load %arg2[%c0_1, %c0_2] : memref<24x24xbf16, #tpu.memory_space<vmem>>, vector<24x24xbf16>
    %cst = arith.constant dense<0.000000e+00> : vector<32x24xf32>
    %2 = tpu.matmul %0, %1, %cst {dimension_numbers = #tpu.dot_dimension_numbers<[1], [0], [0], [1], [0, 0, 1, 1], [], []>} : vector<32x24xbf16>, vector<24x24xbf16>, vector<32x24xf32> -> vector<32x24xf32>
    %cst_3 = arith.constant 0.000000e+00 : f32
    %3 = vector.broadcast %cst_3 : f32 to vector<48x24xf32>
    %c0_4 = arith.constant 0 : index
    %c0_5 = arith.constant 0 : index
    %4 = vector.load %arg15[%c0_4, %c0_5] : memref<48x24xf32, #tpu.memory_space<vmem>>, vector<48x24xf32>
    tpu.vector_store %arg15[%c0_4, %c0_5], %3 {strides = array<i32>} : memref<48x24xf32, #tpu.memory_space<vmem>>, vector<48x24xf32>,
    %c8 = arith.constant 8 : index
    %c0_6 = arith.constant 0 : index
    %5 = vector.load %arg15[%c8, %c0_6] : memref<48x24xf32, #tpu.memory_space<vmem>>, vector<32x24xf32>
    tpu.vector_store %arg15[%c8, %c0_6], %2 {strides = array<i32>} : memref<48x24xf32, #tpu.memory_space<vmem>>, vector<32x24xf32>,
    %c4 = arith.constant 4 : index
    %c0_7 = arith.constant 0 : index
    %6 = vector.load %arg15[%c4, %c0_7] : memref<48x24xf32, #tpu.memory_space<vmem>>, vector<32x24xf32>
    %c0_8 = arith.constant 0 : index
    %c0_9 = arith.constant 0 : index
    %c0_10 = arith.constant 0 : index
    %7 = vector.load %arg3[%c0_8, %c0_9, %c0_10] : memref<6x32x24xf32, #tpu.memory_space<vmem>>, vector<1x32x24xf32>
    %8 = vector.shape_cast %7 : vector<1x32x24xf32> to vector<32x24xf32>
    %9 = arith.mulf %6, %8 : vector<32x24xf32>
    %c8_11 = arith.constant 8 : index
    %c0_12 = arith.constant 0 : index
    %10 = vector.load %arg15[%c8_11, %c0_12] : memref<48x24xf32, #tpu.memory_space<vmem>>, vector<32x24xf32>
    %c1 = arith.constant 1 : index
    %c0_13 = arith.constant 0 : index
    %c0_14 = arith.constant 0 : index
    %11 = vector.load %arg3[%c1, %c0_13, %c0_14] : memref<6x32x24xf32, #tpu.memory_space<vmem>>, vector<1x32x24xf32>
    %12 = vector.shape_cast %11 : vector<1x32x24xf32> to vector<32x24xf32>
    %13 = arith.mulf %10, %12 : vector<32x24xf32>
    %14 = arith.addf %9, %13 : vector<32x24xf32>
    %c12 = arith.constant 12 : index
    %c0_15 = arith.constant 0 : index
    %15 = vector.load %arg15[%c12, %c0_15] : memref<48x24xf32, #tpu.memory_space<vmem>>, vector<32x24xf32>
    %c2 = arith.constant 2 : index
    %c0_16 = arith.constant 0 : index
    %c0_17 = arith.constant 0 : index
    %16 = vector.load %arg3[%c2, %c0_16, %c0_17] : memref<6x32x24xf32, #tpu.memory_space<vmem>>, vector<1x32x24xf32>
    %17 = vector.shape_cast %16 : vector<1x32x24xf32> to vector<32x24xf32>
    %18 = arith.mulf %15, %17 : vector<32x24xf32>
    %19 = arith.addf %14, %18 : vector<32x24xf32>
    %c7 = arith.constant 7 : index
    %c0_18 = arith.constant 0 : index
    %20 = vector.load %arg15[%c7, %c0_18] : memref<48x24xf32, #tpu.memory_space<vmem>>, vector<32x24xf32>
    %c3 = arith.constant 3 : index
    %c0_19 = arith.constant 0 : index
    %c0_20 = arith.constant 0 : index
    %21 = vector.load %arg3[%c3, %c0_19, %c0_20] : memref<6x32x24xf32, #tpu.memory_space<vmem>>, vector<1x32x24xf32>
    %22 = vector.shape_cast %21 : vector<1x32x24xf32> to vector<32x24xf32>
    %23 = arith.mulf %20, %22 : vector<32x24xf32>
    %24 = arith.addf %19, %23 : vector<32x24xf32>
    %c8_21 = arith.constant 8 : index
    %c0_22 = arith.constant 0 : index
    %25 = vector.load %arg15[%c8_21, %c0_22] : memref<48x24xf32, #tpu.memory_space<vmem>>, vector<32x24xf32>
    %c4_23 = arith.constant 4 : index
    %c0_24 = arith.constant 0 : index
    %c0_25 = arith.constant 0 : index
    %26 = vector.load %arg3[%c4_23, %c0_24, %c0_25] : memref<6x32x24xf32, #tpu.memory_space<vmem>>, vector<1x32x24xf32>
    %27 = vector.shape_cast %26 : vector<1x32x24xf32> to vector<32x24xf32>
    %28 = arith.mulf %25, %27 : vector<32x24xf32>
    %29 = arith.addf %24, %28 : vector<32x24xf32>
    %c9 = arith.constant 9 : index
    %c0_26 = arith.constant 0 : index
    %30 = vector.load %arg15[%c9, %c0_26] : memref<48x24xf32, #tpu.memory_space<vmem>>, vector<32x24xf32>
    %c5 = arith.constant 5 : index
    %c0_27 = arith.constant 0 : index
    %c0_28 = arith.constant 0 : index
    %31 = vector.load %arg3[%c5, %c0_27, %c0_28] : memref<6x32x24xf32, #tpu.memory_space<vmem>>, vector<1x32x24xf32>
    %32 = vector.shape_cast %31 : vector<1x32x24xf32> to vector<32x24xf32>
    %33 = arith.mulf %30, %32 : vector<32x24xf32>
    %34 = arith.addf %29, %33 : vector<32x24xf32>
    %c0_29 = arith.constant 0 : index
    %c0_30 = arith.constant 0 : index
    %35 = vector.load %arg4[%c0_29, %c0_30] : memref<1x24xf32, #tpu.memory_space<vmem>>, vector<1x24xf32>
    %36 = vector.broadcast %35 : vector<1x24xf32> to vector<32x24xf32>
    %37 = arith.addf %34, %36 : vector<32x24xf32>
    %cst_31 = arith.constant 0.000000e+00 : f32
    %38 = vector.broadcast %cst_31 : f32 to vector<32x24xf32>
    %39 = arith.cmpf oge, %37, %38 : vector<32x24xf32>
    %c0_32 = arith.constant 0 : index
    %c0_33 = arith.constant 0 : index
    %40 = vector.load %arg5[%c0_32, %c0_33] : memref<1x24xf32, #tpu.memory_space<vmem>>, vector<1x24xf32>
    %41 = vector.broadcast %40 : vector<1x24xf32> to vector<32x24xf32>
    %42 = arith.mulf %37, %41 : vector<32x24xf32>
    %43 = arith.select %39, %37, %42 : vector<32x24xi1>, vector<32x24xf32>
    %44 = arith.truncf %43 : vector<32x24xf32> to vector<32x24xbf16>
    %c0_34 = arith.constant 0 : index
    %c0_35 = arith.constant 0 : index
    %45 = vector.load %arg15[%c0_34, %c0_35] : memref<48x24xf32, #tpu.memory_space<vmem>>, vector<32x24xf32>
    %c0_36 = arith.constant 0 : index
    %c0_37 = arith.constant 0 : index
    %c0_38 = arith.constant 0 : index
    %46 = vector.load %arg7[%c0_36, %c0_37, %c0_38] : memref<10x32x24xf32, #tpu.memory_space<vmem>>, vector<1x32x24xf32>
    %47 = vector.shape_cast %46 : vector<1x32x24xf32> to vector<32x24xf32>
    %48 = arith.mulf %45, %47 : vector<32x24xf32>
    %c4_39 = arith.constant 4 : index
    %c0_40 = arith.constant 0 : index
    %49 = vector.load %arg15[%c4_39, %c0_40] : memref<48x24xf32, #tpu.memory_space<vmem>>, vector<32x24xf32>
    %c1_41 = arith.constant 1 : index
    %c0_42 = arith.constant 0 : index
    %c0_43 = arith.constant 0 : index
    %50 = vector.load %arg7[%c1_41, %c0_42, %c0_43] : memref<10x32x24xf32, #tpu.memory_space<vmem>>, vector<1x32x24xf32>
    %51 = vector.shape_cast %50 : vector<1x32x24xf32> to vector<32x24xf32>
    %52 = arith.mulf %49, %51 : vector<32x24xf32>
    %53 = arith.addf %48, %52 : vector<32x24xf32>
    %c8_44 = arith.constant 8 : index
    %c0_45 = arith.constant 0 : index
    %54 = vector.load %arg15[%c8_44, %c0_45] : memref<48x24xf32, #tpu.memory_space<vmem>>, vector<32x24xf32>
    %c2_46 = arith.constant 2 : index
    %c0_47 = arith.constant 0 : index
    %c0_48 = arith.constant 0 : index
    %55 = vector.load %arg7[%c2_46, %c0_47, %c0_48] : memref<10x32x24xf32, #tpu.memory_space<vmem>>, vector<1x32x24xf32>
    %56 = vector.shape_cast %55 : vector<1x32x24xf32> to vector<32x24xf32>
    %57 = arith.mulf %54, %56 : vector<32x24xf32>
    %58 = arith.addf %53, %57 : vector<32x24xf32>
    %c12_49 = arith.constant 12 : index
    %c0_50 = arith.constant 0 : index
    %59 = vector.load %arg15[%c12_49, %c0_50] : memref<48x24xf32, #tpu.memory_space<vmem>>, vector<32x24xf32>
    %c3_51 = arith.constant 3 : index
    %c0_52 = arith.constant 0 : index
    %c0_53 = arith.constant 0 : index
    %60 = vector.load %arg7[%c3_51, %c0_52, %c0_53] : memref<10x32x24xf32, #tpu.memory_space<vmem>>, vector<1x32x24xf32>
    %61 = vector.shape_cast %60 : vector<1x32x24xf32> to vector<32x24xf32>
    %62 = arith.mulf %59, %61 : vector<32x24xf32>
    %63 = arith.addf %58, %62 : vector<32x24xf32>
    %c16 = arith.constant 16 : index
    %c0_54 = arith.constant 0 : index
    %64 = vector.load %arg15[%c16, %c0_54] : memref<48x24xf32, #tpu.memory_space<vmem>>, vector<32x24xf32>
    %c4_55 = arith.constant 4 : index
    %c0_56 = arith.constant 0 : index
    %c0_57 = arith.constant 0 : index
    %65 = vector.load %arg7[%c4_55, %c0_56, %c0_57] : memref<10x32x24xf32, #tpu.memory_space<vmem>>, vector<1x32x24xf32>
    %66 = vector.shape_cast %65 : vector<1x32x24xf32> to vector<32x24xf32>
    %67 = arith.mulf %64, %66 : vector<32x24xf32>
    %68 = arith.addf %63, %67 : vector<32x24xf32>
    %c6 = arith.constant 6 : index
    %c0_58 = arith.constant 0 : index
    %69 = vector.load %arg15[%c6, %c0_58] : memref<48x24xf32, #tpu.memory_space<vmem>>, vector<32x24xf32>
    %c5_59 = arith.constant 5 : index
    %c0_60 = arith.constant 0 : index
    %c0_61 = arith.constant 0 : index
    %70 = vector.load %arg7[%c5_59, %c0_60, %c0_61] : memref<10x32x24xf32, #tpu.memory_space<vmem>>, vector<1x32x24xf32>
    %71 = vector.shape_cast %70 : vector<1x32x24xf32> to vector<32x24xf32>
    %72 = arith.mulf %69, %71 : vector<32x24xf32>
    %73 = arith.addf %68, %72 : vector<32x24xf32>
    %c7_62 = arith.constant 7 : index
    %c0_63 = arith.constant 0 : index
    %74 = vector.load %arg15[%c7_62, %c0_63] : memref<48x24xf32, #tpu.memory_space<vmem>>, vector<32x24xf32>
    %c6_64 = arith.constant 6 : index
    %c0_65 = arith.constant 0 : index
    %c0_66 = arith.constant 0 : index
    %75 = vector.load %arg7[%c6_64, %c0_65, %c0_66] : memref<10x32x24xf32, #tpu.memory_space<vmem>>, vector<1x32x24xf32>
    %76 = vector.shape_cast %75 : vector<1x32x24xf32> to vector<32x24xf32>
    %77 = arith.mulf %74, %76 : vector<32x24xf32>
    %78 = arith.addf %73, %77 : vector<32x24xf32>
    %c8_67 = arith.constant 8 : index
    %c0_68 = arith.constant 0 : index
    %79 = vector.load %arg15[%c8_67, %c0_68] : memref<48x24xf32, #tpu.memory_space<vmem>>, vector<32x24xf32>
    %c7_69 = arith.constant 7 : index
    %c0_70 = arith.constant 0 : index
    %c0_71 = arith.constant 0 : index
    %80 = vector.load %arg7[%c7_69, %c0_70, %c0_71] : memref<10x32x24xf32, #tpu.memory_space<vmem>>, vector<1x32x24xf32>
    %81 = vector.shape_cast %80 : vector<1x32x24xf32> to vector<32x24xf32>
    %82 = arith.mulf %79, %81 : vector<32x24xf32>
    %83 = arith.addf %78, %82 : vector<32x24xf32>
    %c9_72 = arith.constant 9 : index
    %c0_73 = arith.constant 0 : index
    %84 = vector.load %arg15[%c9_72, %c0_73] : memref<48x24xf32, #tpu.memory_space<vmem>>, vector<32x24xf32>
    %c8_74 = arith.constant 8 : index
    %c0_75 = arith.constant 0 : index
    %c0_76 = arith.constant 0 : index
    %85 = vector.load %arg7[%c8_74, %c0_75, %c0_76] : memref<10x32x24xf32, #tpu.memory_space<vmem>>, vector<1x32x24xf32>
    %86 = vector.shape_cast %85 : vector<1x32x24xf32> to vector<32x24xf32>
    %87 = arith.mulf %84, %86 : vector<32x24xf32>
    %88 = arith.addf %83, %87 : vector<32x24xf32>
    %c10 = arith.constant 10 : index
    %c0_77 = arith.constant 0 : index
    %89 = vector.load %arg15[%c10, %c0_77] : memref<48x24xf32, #tpu.memory_space<vmem>>, vector<32x24xf32>
    %c9_78 = arith.constant 9 : index
    %c0_79 = arith.constant 0 : index
    %c0_80 = arith.constant 0 : index
    %90 = vector.load %arg7[%c9_78, %c0_79, %c0_80] : memref<10x32x24xf32, #tpu.memory_space<vmem>>, vector<1x32x24xf32>
    %91 = vector.shape_cast %90 : vector<1x32x24xf32> to vector<32x24xf32>
    %92 = arith.mulf %89, %91 : vector<32x24xf32>
    %93 = arith.addf %88, %92 : vector<32x24xf32>
    %c0_81 = arith.constant 0 : index
    %c0_82 = arith.constant 0 : index
    %94 = vector.load %arg8[%c0_81, %c0_82] : memref<1x24xf32, #tpu.memory_space<vmem>>, vector<1x24xf32>
    %95 = vector.broadcast %94 : vector<1x24xf32> to vector<32x24xf32>
    %96 = arith.addf %93, %95 : vector<32x24xf32>
    %cst_83 = arith.constant 0.000000e+00 : f32
    %97 = vector.broadcast %cst_83 : f32 to vector<32x24xf32>
    %98 = arith.cmpf oge, %96, %97 : vector<32x24xf32>
    %c0_84 = arith.constant 0 : index
    %c0_85 = arith.constant 0 : index
    %99 = vector.load %arg9[%c0_84, %c0_85] : memref<1x24xf32, #tpu.memory_space<vmem>>, vector<1x24xf32>
    %100 = vector.broadcast %99 : vector<1x24xf32> to vector<32x24xf32>
    %101 = arith.mulf %96, %100 : vector<32x24xf32>
    %102 = arith.select %98, %96, %101 : vector<32x24xi1>, vector<32x24xf32>
    %103 = arith.truncf %102 : vector<32x24xf32> to vector<32x24xbf16>
    %c0_86 = arith.constant 0 : index
    %c0_87 = arith.constant 0 : index
    %104 = vector.load %arg6[%c0_86, %c0_87] : memref<24x48xbf16, #tpu.memory_space<vmem>>, vector<24x48xbf16>
    %cst_88 = arith.constant dense<0.000000e+00> : vector<32x48xf32>
    %105 = tpu.matmul %44, %104, %cst_88 {dimension_numbers = #tpu.dot_dimension_numbers<[1], [0], [0], [1], [0, 0, 1, 1], [], []>} : vector<32x24xbf16>, vector<24x48xbf16>, vector<32x48xf32> -> vector<32x48xf32>
    %c0_89 = arith.constant 0 : index
    %c0_90 = arith.constant 0 : index
    %106 = vector.load %arg10[%c0_89, %c0_90] : memref<24x48xbf16, #tpu.memory_space<vmem>>, vector<24x48xbf16>
    %cst_91 = arith.constant dense<0.000000e+00> : vector<32x48xf32>
    %107 = tpu.matmul %103, %106, %cst_91 {dimension_numbers = #tpu.dot_dimension_numbers<[1], [0], [0], [1], [0, 0, 1, 1], [], []>} : vector<32x24xbf16>, vector<24x48xbf16>, vector<32x48xf32> -> vector<32x48xf32>
    %108 = arith.addf %105, %107 : vector<32x48xf32>
    %c0_92 = arith.constant 0 : index
    %c0_93 = arith.constant 0 : index
    %109 = vector.load %arg11[%c0_92, %c0_93] : memref<1x48xf32, #tpu.memory_space<vmem>>, vector<1x48xf32>
    %110 = vector.broadcast %109 : vector<1x48xf32> to vector<32x48xf32>
    %111 = arith.mulf %108, %110 : vector<32x48xf32>
    %c0_94 = arith.constant 0 : index
    %c0_95 = arith.constant 0 : index
    %112 = vector.load %arg12[%c0_94, %c0_95] : memref<1x48xf32, #tpu.memory_space<vmem>>, vector<1x48xf32>
    %113 = vector.broadcast %112 : vector<1x48xf32> to vector<32x48xf32>
    %114 = arith.addf %111, %113 : vector<32x48xf32>
    %cst_96 = arith.constant 0.000000e+00 : f32
    %115 = vector.broadcast %cst_96 : f32 to vector<32x48xf32>
    %116 = arith.cmpf oge, %114, %115 : vector<32x48xf32>
    %c0_97 = arith.constant 0 : index
    %c0_98 = arith.constant 0 : index
    %117 = vector.load %arg13[%c0_97, %c0_98] : memref<1x48xf32, #tpu.memory_space<vmem>>, vector<1x48xf32>
    %118 = vector.broadcast %117 : vector<1x48xf32> to vector<32x48xf32>
    %119 = arith.mulf %114, %118 : vector<32x48xf32>
    %120 = arith.select %116, %114, %119 : vector<32x48xi1>, vector<32x48xf32>
    %121 = arith.truncf %120 : vector<32x48xf32> to vector<32x48xbf16>
    %c0_99 = arith.constant 0 : index
    %c0_100 = arith.constant 0 : index
    %122 = vector.load %arg14[%c0_99, %c0_100] : memref<32x48xbf16, #tpu.memory_space<vmem>>, vector<32x48xbf16>
    tpu.vector_store %arg14[%c0_99, %c0_100], %121 {strides = array<i32>} : memref<32x48xbf16, #tpu.memory_space<vmem>>, vector<32x48xbf16>,
    return
  }
  func.func @transform_0(%arg0: i32) -> (i32, i32) {
    %c0_i32 = arith.constant 0 : i32
    %c0_i32_0 = arith.constant 0 : i32
    %c0_i32_1 = arith.constant 0 : i32
    return %c0_i32, %c0_i32_0 : i32, i32
  }
  func.func @transform_1(%arg0: i32) -> (i32, i32) {
    %c0_i32 = arith.constant 0 : i32
    %c0_i32_0 = arith.constant 0 : i32
    %c0_i32_1 = arith.constant 0 : i32
    return %c0_i32, %c0_i32_0 : i32, i32
  }
  func.func @transform_2(%arg0: i32) -> (i32, i32, i32) {
    %c0_i32 = arith.constant 0 : i32
    %c0_i32_0 = arith.constant 0 : i32
    %c0_i32_1 = arith.constant 0 : i32
    %c0_i32_2 = arith.constant 0 : i32
    return %c0_i32, %c0_i32_0, %c0_i32_1 : i32, i32, i32
  }
  func.func @transform_3(%arg0: i32) -> (i32, i32) {
    %c0_i32 = arith.constant 0 : i32
    %c0_i32_0 = arith.constant 0 : i32
    %c0_i32_1 = arith.constant 0 : i32
    return %c0_i32, %c0_i32_0 : i32, i32
  }
  func.func @transform_4(%arg0: i32) -> (i32, i32) {
    %c0_i32 = arith.constant 0 : i32
    %c0_i32_0 = arith.constant 0 : i32
    %c0_i32_1 = arith.constant 0 : i32
    return %c0_i32, %c0_i32_0 : i32, i32
  }
  func.func @transform_5(%arg0: i32) -> (i32, i32) {
    %c0_i32 = arith.constant 0 : i32
    %c0_i32_0 = arith.constant 0 : i32
    %c0_i32_1 = arith.constant 0 : i32
    return %c0_i32, %c0_i32_0 : i32, i32
  }
  func.func @transform_6(%arg0: i32) -> (i32, i32, i32) {
    %c0_i32 = arith.constant 0 : i32
    %c0_i32_0 = arith.constant 0 : i32
    %c0_i32_1 = arith.constant 0 : i32
    %c0_i32_2 = arith.constant 0 : i32
    return %c0_i32, %c0_i32_0, %c0_i32_1 : i32, i32, i32
  }
  func.func @transform_7(%arg0: i32) -> (i32, i32) {
    %c0_i32 = arith.constant 0 : i32
    %c0_i32_0 = arith.constant 0 : i32
    %c0_i32_1 = arith.constant 0 : i32
    return %c0_i32, %c0_i32_0 : i32, i32
  }
  func.func @transform_8(%arg0: i32) -> (i32, i32) {
    %c0_i32 = arith.constant 0 : i32
    %c0_i32_0 = arith.constant 0 : i32
    %c0_i32_1 = arith.constant 0 : i32
    return %c0_i32, %c0_i32_0 : i32, i32
  }
  func.func @transform_9(%arg0: i32) -> (i32, i32) {
    %c0_i32 = arith.constant 0 : i32
    %c0_i32_0 = arith.constant 0 : i32
    %c0_i32_1 = arith.constant 0 : i32
    return %c0_i32, %c0_i32_0 : i32, i32
  }
  func.func @transform_10(%arg0: i32) -> (i32, i32) {
    %c0_i32 = arith.constant 0 : i32
    %c0_i32_0 = arith.constant 0 : i32
    %c0_i32_1 = arith.constant 0 : i32
    return %c0_i32, %c0_i32_0 : i32, i32
  }
  func.func @transform_11(%arg0: i32) -> (i32, i32) {
    %c0_i32 = arith.constant 0 : i32
    %c0_i32_0 = arith.constant 0 : i32
    %c0_i32_1 = arith.constant 0 : i32
    return %c0_i32, %c0_i32_0 : i32, i32
  }
  func.func @transform_12(%arg0: i32) -> (i32, i32) {
    %c0_i32 = arith.constant 0 : i32
    %c0_i32_0 = arith.constant 0 : i32
    %c0_i32_1 = arith.constant 0 : i32
    return %c0_i32, %c0_i32_0 : i32, i32
  }
  func.func @transform_13(%arg0: i32) -> (i32, i32) {
    %c0_i32 = arith.constant 0 : i32
    %c0_i32_0 = arith.constant 0 : i32
    %c0_i32_1 = arith.constant 0 : i32
    return %c0_i32, %c0_i32_0 : i32, i32
  }
}

module attributes {stable_mosaic.version = 11 : i64} {
  func.func @_se_cbr_kernel(%arg0: i32, %arg1: memref<9x32x20xbf16, #tpu.memory_space<vmem>>, %arg2: memref<9x1x20xf32, #tpu.memory_space<vmem>>, %arg3: memref<2x32xbf16, #tpu.memory_space<vmem>>, %arg4: memref<32x2xbf16, #tpu.memory_space<vmem>>, %arg5: memref<20x20xbf16, #tpu.memory_space<vmem>>, %arg6: memref<1x20xf32, #tpu.memory_space<vmem>>, %arg7: memref<1x20xf32, #tpu.memory_space<vmem>>, %arg8: memref<20x24xbf16, #tpu.memory_space<vmem>>, %arg9: memref<1x24xf32, #tpu.memory_space<vmem>>, %arg10: memref<1x24xf32, #tpu.memory_space<vmem>>, %arg11: memref<1x24xf32, #tpu.memory_space<vmem>>, %arg12: memref<1x24xf32, #tpu.memory_space<vmem>>, %arg13: memref<1x24xf32, #tpu.memory_space<vmem>>, %arg14: memref<1x24xf32, #tpu.memory_space<vmem>>, %arg15: memref<32x24xbf16, #tpu.memory_space<vmem>>, %arg16: memref<32x24xbf16, #tpu.memory_space<vmem>>) attributes {dimension_semantics = [#tpu.dimension_semantics<arbitrary>], iteration_bounds = array<i64: 1>, scalar_prefetch = 0 : i64, scratch_operands = 0 : i64, tpu.core_type = #tpu.core_type<tc>, window_params = [{pipeline_mode = #tpu.pipeline_mode<synchronous>, transform_indices = @transform_0, window_bounds = array<i64: 9, 32, 20>}, {pipeline_mode = #tpu.pipeline_mode<synchronous>, transform_indices = @transform_1, window_bounds = array<i64: 9, 1, 20>}, {pipeline_mode = #tpu.pipeline_mode<synchronous>, transform_indices = @transform_2, window_bounds = array<i64: 2, 32>}, {pipeline_mode = #tpu.pipeline_mode<synchronous>, transform_indices = @transform_3, window_bounds = array<i64: 32, 2>}, {pipeline_mode = #tpu.pipeline_mode<synchronous>, transform_indices = @transform_4, window_bounds = array<i64: 20, 20>}, {pipeline_mode = #tpu.pipeline_mode<synchronous>, transform_indices = @transform_5, window_bounds = array<i64: 1, 20>}, {pipeline_mode = #tpu.pipeline_mode<synchronous>, transform_indices = @transform_6, window_bounds = array<i64: 1, 20>}, {pipeline_mode = #tpu.pipeline_mode<synchronous>, transform_indices = @transform_7, window_bounds = array<i64: 20, 24>}, {pipeline_mode = #tpu.pipeline_mode<synchronous>, transform_indices = @transform_8, window_bounds = array<i64: 1, 24>}, {pipeline_mode = #tpu.pipeline_mode<synchronous>, transform_indices = @transform_9, window_bounds = array<i64: 1, 24>}, {pipeline_mode = #tpu.pipeline_mode<synchronous>, transform_indices = @transform_10, window_bounds = array<i64: 1, 24>}, {pipeline_mode = #tpu.pipeline_mode<synchronous>, transform_indices = @transform_11, window_bounds = array<i64: 1, 24>}, {pipeline_mode = #tpu.pipeline_mode<synchronous>, transform_indices = @transform_12, window_bounds = array<i64: 1, 24>}, {pipeline_mode = #tpu.pipeline_mode<synchronous>, transform_indices = @transform_13, window_bounds = array<i64: 1, 24>}, {pipeline_mode = #tpu.pipeline_mode<synchronous>, transform_indices = @transform_14, window_bounds = array<i64: 32, 24>}, {pipeline_mode = #tpu.pipeline_mode<synchronous>, transform_indices = @transform_15, window_bounds = array<i64: 32, 24>}]} {
    %c0 = arith.constant 0 : index
    %c0_0 = arith.constant 0 : index
    %c0_1 = arith.constant 0 : index
    %0 = vector.load %arg1[%c0, %c0_0, %c0_1] : memref<9x32x20xbf16, #tpu.memory_space<vmem>>, vector<1x32x20xbf16>
    %1 = vector.shape_cast %0 : vector<1x32x20xbf16> to vector<32x20xbf16>
    %c0_2 = arith.constant 0 : index
    %c0_3 = arith.constant 0 : index
    %c0_4 = arith.constant 0 : index
    %2 = vector.load %arg2[%c0_2, %c0_3, %c0_4] : memref<9x1x20xf32, #tpu.memory_space<vmem>>, vector<1x1x20xf32>
    %3 = vector.shape_cast %2 : vector<1x1x20xf32> to vector<1x20xf32>
    %4 = arith.extf %1 : vector<32x20xbf16> to vector<32x20xf32>
    %5 = vector.broadcast %3 : vector<1x20xf32> to vector<32x20xf32>
    %6 = arith.mulf %4, %5 : vector<32x20xf32>
    %c1 = arith.constant 1 : index
    %c0_5 = arith.constant 0 : index
    %c0_6 = arith.constant 0 : index
    %7 = vector.load %arg1[%c1, %c0_5, %c0_6] : memref<9x32x20xbf16, #tpu.memory_space<vmem>>, vector<1x32x20xbf16>
    %8 = vector.shape_cast %7 : vector<1x32x20xbf16> to vector<32x20xbf16>
    %c1_7 = arith.constant 1 : index
    %c0_8 = arith.constant 0 : index
    %c0_9 = arith.constant 0 : index
    %9 = vector.load %arg2[%c1_7, %c0_8, %c0_9] : memref<9x1x20xf32, #tpu.memory_space<vmem>>, vector<1x1x20xf32>
    %10 = vector.shape_cast %9 : vector<1x1x20xf32> to vector<1x20xf32>
    %11 = arith.extf %8 : vector<32x20xbf16> to vector<32x20xf32>
    %12 = vector.broadcast %10 : vector<1x20xf32> to vector<32x20xf32>
    %13 = arith.mulf %11, %12 : vector<32x20xf32>
    %14 = arith.addf %6, %13 : vector<32x20xf32>
    %c2 = arith.constant 2 : index
    %c0_10 = arith.constant 0 : index
    %c0_11 = arith.constant 0 : index
    %15 = vector.load %arg1[%c2, %c0_10, %c0_11] : memref<9x32x20xbf16, #tpu.memory_space<vmem>>, vector<1x32x20xbf16>
    %16 = vector.shape_cast %15 : vector<1x32x20xbf16> to vector<32x20xbf16>
    %c2_12 = arith.constant 2 : index
    %c0_13 = arith.constant 0 : index
    %c0_14 = arith.constant 0 : index
    %17 = vector.load %arg2[%c2_12, %c0_13, %c0_14] : memref<9x1x20xf32, #tpu.memory_space<vmem>>, vector<1x1x20xf32>
    %18 = vector.shape_cast %17 : vector<1x1x20xf32> to vector<1x20xf32>
    %19 = arith.extf %16 : vector<32x20xbf16> to vector<32x20xf32>
    %20 = vector.broadcast %18 : vector<1x20xf32> to vector<32x20xf32>
    %21 = arith.mulf %19, %20 : vector<32x20xf32>
    %22 = arith.addf %14, %21 : vector<32x20xf32>
    %c3 = arith.constant 3 : index
    %c0_15 = arith.constant 0 : index
    %c0_16 = arith.constant 0 : index
    %23 = vector.load %arg1[%c3, %c0_15, %c0_16] : memref<9x32x20xbf16, #tpu.memory_space<vmem>>, vector<1x32x20xbf16>
    %24 = vector.shape_cast %23 : vector<1x32x20xbf16> to vector<32x20xbf16>
    %c3_17 = arith.constant 3 : index
    %c0_18 = arith.constant 0 : index
    %c0_19 = arith.constant 0 : index
    %25 = vector.load %arg2[%c3_17, %c0_18, %c0_19] : memref<9x1x20xf32, #tpu.memory_space<vmem>>, vector<1x1x20xf32>
    %26 = vector.shape_cast %25 : vector<1x1x20xf32> to vector<1x20xf32>
    %27 = arith.extf %24 : vector<32x20xbf16> to vector<32x20xf32>
    %28 = vector.broadcast %26 : vector<1x20xf32> to vector<32x20xf32>
    %29 = arith.mulf %27, %28 : vector<32x20xf32>
    %30 = arith.addf %22, %29 : vector<32x20xf32>
    %c4 = arith.constant 4 : index
    %c0_20 = arith.constant 0 : index
    %c0_21 = arith.constant 0 : index
    %31 = vector.load %arg1[%c4, %c0_20, %c0_21] : memref<9x32x20xbf16, #tpu.memory_space<vmem>>, vector<1x32x20xbf16>
    %32 = vector.shape_cast %31 : vector<1x32x20xbf16> to vector<32x20xbf16>
    %c4_22 = arith.constant 4 : index
    %c0_23 = arith.constant 0 : index
    %c0_24 = arith.constant 0 : index
    %33 = vector.load %arg2[%c4_22, %c0_23, %c0_24] : memref<9x1x20xf32, #tpu.memory_space<vmem>>, vector<1x1x20xf32>
    %34 = vector.shape_cast %33 : vector<1x1x20xf32> to vector<1x20xf32>
    %35 = arith.extf %32 : vector<32x20xbf16> to vector<32x20xf32>
    %36 = vector.broadcast %34 : vector<1x20xf32> to vector<32x20xf32>
    %37 = arith.mulf %35, %36 : vector<32x20xf32>
    %38 = arith.addf %30, %37 : vector<32x20xf32>
    %c5 = arith.constant 5 : index
    %c0_25 = arith.constant 0 : index
    %c0_26 = arith.constant 0 : index
    %39 = vector.load %arg1[%c5, %c0_25, %c0_26] : memref<9x32x20xbf16, #tpu.memory_space<vmem>>, vector<1x32x20xbf16>
    %40 = vector.shape_cast %39 : vector<1x32x20xbf16> to vector<32x20xbf16>
    %c5_27 = arith.constant 5 : index
    %c0_28 = arith.constant 0 : index
    %c0_29 = arith.constant 0 : index
    %41 = vector.load %arg2[%c5_27, %c0_28, %c0_29] : memref<9x1x20xf32, #tpu.memory_space<vmem>>, vector<1x1x20xf32>
    %42 = vector.shape_cast %41 : vector<1x1x20xf32> to vector<1x20xf32>
    %43 = arith.extf %40 : vector<32x20xbf16> to vector<32x20xf32>
    %44 = vector.broadcast %42 : vector<1x20xf32> to vector<32x20xf32>
    %45 = arith.mulf %43, %44 : vector<32x20xf32>
    %46 = arith.addf %38, %45 : vector<32x20xf32>
    %c6 = arith.constant 6 : index
    %c0_30 = arith.constant 0 : index
    %c0_31 = arith.constant 0 : index
    %47 = vector.load %arg1[%c6, %c0_30, %c0_31] : memref<9x32x20xbf16, #tpu.memory_space<vmem>>, vector<1x32x20xbf16>
    %48 = vector.shape_cast %47 : vector<1x32x20xbf16> to vector<32x20xbf16>
    %c6_32 = arith.constant 6 : index
    %c0_33 = arith.constant 0 : index
    %c0_34 = arith.constant 0 : index
    %49 = vector.load %arg2[%c6_32, %c0_33, %c0_34] : memref<9x1x20xf32, #tpu.memory_space<vmem>>, vector<1x1x20xf32>
    %50 = vector.shape_cast %49 : vector<1x1x20xf32> to vector<1x20xf32>
    %51 = arith.extf %48 : vector<32x20xbf16> to vector<32x20xf32>
    %52 = vector.broadcast %50 : vector<1x20xf32> to vector<32x20xf32>
    %53 = arith.mulf %51, %52 : vector<32x20xf32>
    %54 = arith.addf %46, %53 : vector<32x20xf32>
    %c7 = arith.constant 7 : index
    %c0_35 = arith.constant 0 : index
    %c0_36 = arith.constant 0 : index
    %55 = vector.load %arg1[%c7, %c0_35, %c0_36] : memref<9x32x20xbf16, #tpu.memory_space<vmem>>, vector<1x32x20xbf16>
    %56 = vector.shape_cast %55 : vector<1x32x20xbf16> to vector<32x20xbf16>
    %c7_37 = arith.constant 7 : index
    %c0_38 = arith.constant 0 : index
    %c0_39 = arith.constant 0 : index
    %57 = vector.load %arg2[%c7_37, %c0_38, %c0_39] : memref<9x1x20xf32, #tpu.memory_space<vmem>>, vector<1x1x20xf32>
    %58 = vector.shape_cast %57 : vector<1x1x20xf32> to vector<1x20xf32>
    %59 = arith.extf %56 : vector<32x20xbf16> to vector<32x20xf32>
    %60 = vector.broadcast %58 : vector<1x20xf32> to vector<32x20xf32>
    %61 = arith.mulf %59, %60 : vector<32x20xf32>
    %62 = arith.addf %54, %61 : vector<32x20xf32>
    %c8 = arith.constant 8 : index
    %c0_40 = arith.constant 0 : index
    %c0_41 = arith.constant 0 : index
    %63 = vector.load %arg1[%c8, %c0_40, %c0_41] : memref<9x32x20xbf16, #tpu.memory_space<vmem>>, vector<1x32x20xbf16>
    %64 = vector.shape_cast %63 : vector<1x32x20xbf16> to vector<32x20xbf16>
    %c8_42 = arith.constant 8 : index
    %c0_43 = arith.constant 0 : index
    %c0_44 = arith.constant 0 : index
    %65 = vector.load %arg2[%c8_42, %c0_43, %c0_44] : memref<9x1x20xf32, #tpu.memory_space<vmem>>, vector<1x1x20xf32>
    %66 = vector.shape_cast %65 : vector<1x1x20xf32> to vector<1x20xf32>
    %67 = arith.extf %64 : vector<32x20xbf16> to vector<32x20xf32>
    %68 = vector.broadcast %66 : vector<1x20xf32> to vector<32x20xf32>
    %69 = arith.mulf %67, %68 : vector<32x20xf32>
    %70 = arith.addf %62, %69 : vector<32x20xf32>
    %c0_45 = arith.constant 0 : index
    %c0_46 = arith.constant 0 : index
    %71 = vector.load %arg3[%c0_45, %c0_46] : memref<2x32xbf16, #tpu.memory_space<vmem>>, vector<2x32xbf16>
    %72 = arith.truncf %70 : vector<32x20xf32> to vector<32x20xbf16>
    %cst = arith.constant dense<0.000000e+00> : vector<2x20xf32>
    %73 = tpu.matmul %71, %72, %cst {dimension_numbers = #tpu.dot_dimension_numbers<[1], [0], [0], [1], [0, 0, 1, 1], [], []>} : vector<2x32xbf16>, vector<32x20xbf16>, vector<2x20xf32> -> vector<2x20xf32>
    %c0_47 = arith.constant 0 : index
    %c0_48 = arith.constant 0 : index
    %74 = vector.load %arg5[%c0_47, %c0_48] : memref<20x20xbf16, #tpu.memory_space<vmem>>, vector<20x20xbf16>
    %c0_49 = arith.constant 0 : index
    %c0_50 = arith.constant 0 : index
    %75 = vector.load %arg6[%c0_49, %c0_50] : memref<1x20xf32, #tpu.memory_space<vmem>>, vector<1x20xf32>
    %c0_51 = arith.constant 0 : index
    %c0_52 = arith.constant 0 : index
    %76 = vector.load %arg7[%c0_51, %c0_52] : memref<1x20xf32, #tpu.memory_space<vmem>>, vector<1x20xf32>
    %77 = arith.truncf %73 : vector<2x20xf32> to vector<2x20xbf16>
    %cst_53 = arith.constant dense<0.000000e+00> : vector<2x20xf32>
    %78 = tpu.matmul %77, %74, %cst_53 {dimension_numbers = #tpu.dot_dimension_numbers<[1], [0], [0], [1], [0, 0, 1, 1], [], []>} : vector<2x20xbf16>, vector<20x20xbf16>, vector<2x20xf32> -> vector<2x20xf32>
    %79 = vector.broadcast %75 : vector<1x20xf32> to vector<2x20xf32>
    %80 = arith.addf %78, %79 : vector<2x20xf32>
    %cst_54 = arith.constant 0.000000e+00 : f32
    %81 = vector.broadcast %cst_54 : f32 to vector<2x20xf32>
    %82 = arith.cmpf oge, %80, %81 : vector<2x20xf32>
    %83 = vector.broadcast %76 : vector<1x20xf32> to vector<2x20xf32>
    %84 = arith.mulf %80, %83 : vector<2x20xf32>
    %85 = arith.select %82, %80, %84 : vector<2x20xi1>, vector<2x20xf32>
    %c0_55 = arith.constant 0 : index
    %c0_56 = arith.constant 0 : index
    %86 = vector.load %arg4[%c0_55, %c0_56] : memref<32x2xbf16, #tpu.memory_space<vmem>>, vector<32x2xbf16>
    %87 = arith.truncf %85 : vector<2x20xf32> to vector<2x20xbf16>
    %cst_57 = arith.constant dense<0.000000e+00> : vector<32x20xf32>
    %88 = tpu.matmul %86, %87, %cst_57 {dimension_numbers = #tpu.dot_dimension_numbers<[1], [0], [0], [1], [0, 0, 1, 1], [], []>} : vector<32x2xbf16>, vector<2x20xbf16>, vector<32x20xf32> -> vector<32x20xf32>
    %89 = arith.mulf %70, %88 : vector<32x20xf32>
    %c0_58 = arith.constant 0 : index
    %c0_59 = arith.constant 0 : index
    %90 = vector.load %arg8[%c0_58, %c0_59] : memref<20x24xbf16, #tpu.memory_space<vmem>>, vector<20x24xbf16>
    %91 = arith.truncf %89 : vector<32x20xf32> to vector<32x20xbf16>
    %cst_60 = arith.constant dense<0.000000e+00> : vector<32x24xf32>
    %92 = tpu.matmul %91, %90, %cst_60 {dimension_numbers = #tpu.dot_dimension_numbers<[1], [0], [0], [1], [0, 0, 1, 1], [], []>} : vector<32x20xbf16>, vector<20x24xbf16>, vector<32x24xf32> -> vector<32x24xf32>
    %c0_61 = arith.constant 0 : index
    %c0_62 = arith.constant 0 : index
    %93 = vector.load %arg9[%c0_61, %c0_62] : memref<1x24xf32, #tpu.memory_space<vmem>>, vector<1x24xf32>
    %94 = vector.broadcast %93 : vector<1x24xf32> to vector<32x24xf32>
    %95 = arith.mulf %92, %94 : vector<32x24xf32>
    %c0_63 = arith.constant 0 : index
    %c0_64 = arith.constant 0 : index
    %96 = vector.load %arg10[%c0_63, %c0_64] : memref<1x24xf32, #tpu.memory_space<vmem>>, vector<1x24xf32>
    %97 = vector.broadcast %96 : vector<1x24xf32> to vector<32x24xf32>
    %98 = arith.addf %95, %97 : vector<32x24xf32>
    %c0_65 = arith.constant 0 : index
    %c0_66 = arith.constant 0 : index
    %99 = vector.load %arg11[%c0_65, %c0_66] : memref<1x24xf32, #tpu.memory_space<vmem>>, vector<1x24xf32>
    %cst_67 = arith.constant 0.000000e+00 : f32
    %100 = vector.broadcast %cst_67 : f32 to vector<32x24xf32>
    %101 = arith.cmpf oge, %98, %100 : vector<32x24xf32>
    %102 = vector.broadcast %99 : vector<1x24xf32> to vector<32x24xf32>
    %103 = arith.mulf %98, %102 : vector<32x24xf32>
    %104 = arith.select %101, %98, %103 : vector<32x24xi1>, vector<32x24xf32>
    %c0_68 = arith.constant 0 : index
    %c0_69 = arith.constant 0 : index
    %105 = vector.load %arg12[%c0_68, %c0_69] : memref<1x24xf32, #tpu.memory_space<vmem>>, vector<1x24xf32>
    %c0_70 = arith.constant 0 : index
    %c0_71 = arith.constant 0 : index
    %106 = vector.load %arg13[%c0_70, %c0_71] : memref<1x24xf32, #tpu.memory_space<vmem>>, vector<1x24xf32>
    %c0_72 = arith.constant 0 : index
    %c0_73 = arith.constant 0 : index
    %107 = vector.load %arg14[%c0_72, %c0_73] : memref<1x24xf32, #tpu.memory_space<vmem>>, vector<1x24xf32>
    %108 = vector.broadcast %105 : vector<1x24xf32> to vector<32x24xf32>
    %109 = arith.mulf %104, %108 : vector<32x24xf32>
    %110 = vector.broadcast %106 : vector<1x24xf32> to vector<32x24xf32>
    %111 = arith.addf %109, %110 : vector<32x24xf32>
    %cst_74 = arith.constant 0.000000e+00 : f32
    %112 = vector.broadcast %cst_74 : f32 to vector<32x24xf32>
    %113 = arith.cmpf oge, %111, %112 : vector<32x24xf32>
    %114 = vector.broadcast %107 : vector<1x24xf32> to vector<32x24xf32>
    %115 = arith.mulf %111, %114 : vector<32x24xf32>
    %116 = arith.select %113, %111, %115 : vector<32x24xi1>, vector<32x24xf32>
    %117 = arith.truncf %104 : vector<32x24xf32> to vector<32x24xbf16>
    %c0_75 = arith.constant 0 : index
    %c0_76 = arith.constant 0 : index
    %118 = vector.load %arg15[%c0_75, %c0_76] : memref<32x24xbf16, #tpu.memory_space<vmem>>, vector<32x24xbf16>
    tpu.vector_store %arg15[%c0_75, %c0_76], %117 {strides = array<i32>} : memref<32x24xbf16, #tpu.memory_space<vmem>>, vector<32x24xbf16>,
    %119 = arith.truncf %116 : vector<32x24xf32> to vector<32x24xbf16>
    %c0_77 = arith.constant 0 : index
    %c0_78 = arith.constant 0 : index
    %120 = vector.load %arg16[%c0_77, %c0_78] : memref<32x24xbf16, #tpu.memory_space<vmem>>, vector<32x24xbf16>
    tpu.vector_store %arg16[%c0_77, %c0_78], %119 {strides = array<i32>} : memref<32x24xbf16, #tpu.memory_space<vmem>>, vector<32x24xbf16>,
    return
  }
  func.func @transform_0(%arg0: i32) -> (i32, i32, i32) {
    %c0_i32 = arith.constant 0 : i32
    %c0_i32_0 = arith.constant 0 : i32
    %c0_i32_1 = arith.constant 0 : i32
    %c0_i32_2 = arith.constant 0 : i32
    return %c0_i32, %c0_i32_0, %c0_i32_1 : i32, i32, i32
  }
  func.func @transform_1(%arg0: i32) -> (i32, i32, i32) {
    %c0_i32 = arith.constant 0 : i32
    %c0_i32_0 = arith.constant 0 : i32
    %c0_i32_1 = arith.constant 0 : i32
    %c0_i32_2 = arith.constant 0 : i32
    return %c0_i32, %c0_i32_0, %c0_i32_1 : i32, i32, i32
  }
  func.func @transform_2(%arg0: i32) -> (i32, i32) {
    %c0_i32 = arith.constant 0 : i32
    %c0_i32_0 = arith.constant 0 : i32
    %c0_i32_1 = arith.constant 0 : i32
    return %c0_i32, %c0_i32_0 : i32, i32
  }
  func.func @transform_3(%arg0: i32) -> (i32, i32) {
    %c0_i32 = arith.constant 0 : i32
    %c0_i32_0 = arith.constant 0 : i32
    %c0_i32_1 = arith.constant 0 : i32
    return %c0_i32, %c0_i32_0 : i32, i32
  }
  func.func @transform_4(%arg0: i32) -> (i32, i32) {
    %c0_i32 = arith.constant 0 : i32
    %c0_i32_0 = arith.constant 0 : i32
    %c0_i32_1 = arith.constant 0 : i32
    return %c0_i32, %c0_i32_0 : i32, i32
  }
  func.func @transform_5(%arg0: i32) -> (i32, i32) {
    %c0_i32 = arith.constant 0 : i32
    %c0_i32_0 = arith.constant 0 : i32
    %c0_i32_1 = arith.constant 0 : i32
    return %c0_i32, %c0_i32_0 : i32, i32
  }
  func.func @transform_6(%arg0: i32) -> (i32, i32) {
    %c0_i32 = arith.constant 0 : i32
    %c0_i32_0 = arith.constant 0 : i32
    %c0_i32_1 = arith.constant 0 : i32
    return %c0_i32, %c0_i32_0 : i32, i32
  }
  func.func @transform_7(%arg0: i32) -> (i32, i32) {
    %c0_i32 = arith.constant 0 : i32
    %c0_i32_0 = arith.constant 0 : i32
    %c0_i32_1 = arith.constant 0 : i32
    return %c0_i32, %c0_i32_0 : i32, i32
  }
  func.func @transform_8(%arg0: i32) -> (i32, i32) {
    %c0_i32 = arith.constant 0 : i32
    %c0_i32_0 = arith.constant 0 : i32
    %c0_i32_1 = arith.constant 0 : i32
    return %c0_i32, %c0_i32_0 : i32, i32
  }
  func.func @transform_9(%arg0: i32) -> (i32, i32) {
    %c0_i32 = arith.constant 0 : i32
    %c0_i32_0 = arith.constant 0 : i32
    %c0_i32_1 = arith.constant 0 : i32
    return %c0_i32, %c0_i32_0 : i32, i32
  }
  func.func @transform_10(%arg0: i32) -> (i32, i32) {
    %c0_i32 = arith.constant 0 : i32
    %c0_i32_0 = arith.constant 0 : i32
    %c0_i32_1 = arith.constant 0 : i32
    return %c0_i32, %c0_i32_0 : i32, i32
  }
  func.func @transform_11(%arg0: i32) -> (i32, i32) {
    %c0_i32 = arith.constant 0 : i32
    %c0_i32_0 = arith.constant 0 : i32
    %c0_i32_1 = arith.constant 0 : i32
    return %c0_i32, %c0_i32_0 : i32, i32
  }
  func.func @transform_12(%arg0: i32) -> (i32, i32) {
    %c0_i32 = arith.constant 0 : i32
    %c0_i32_0 = arith.constant 0 : i32
    %c0_i32_1 = arith.constant 0 : i32
    return %c0_i32, %c0_i32_0 : i32, i32
  }
  func.func @transform_13(%arg0: i32) -> (i32, i32) {
    %c0_i32 = arith.constant 0 : i32
    %c0_i32_0 = arith.constant 0 : i32
    %c0_i32_1 = arith.constant 0 : i32
    return %c0_i32, %c0_i32_0 : i32, i32
  }
  func.func @transform_14(%arg0: i32) -> (i32, i32) {
    %c0_i32 = arith.constant 0 : i32
    %c0_i32_0 = arith.constant 0 : i32
    %c0_i32_1 = arith.constant 0 : i32
    return %c0_i32, %c0_i32_0 : i32, i32
  }
  func.func @transform_15(%arg0: i32) -> (i32, i32) {
    %c0_i32 = arith.constant 0 : i32
    %c0_i32_0 = arith.constant 0 : i32
    %c0_i32_1 = arith.constant 0 : i32
    return %c0_i32, %c0_i32_0 : i32, i32
  }
}

module attributes {stable_mosaic.version = 11 : i64} {
  func.func @_sb_module_kernel(%arg0: i32, %arg1: memref<32x48xbf16, #tpu.memory_space<vmem>>, %arg2: memref<48x24xbf16, #tpu.memory_space<vmem>>, %arg3: memref<9x32x24xf32, #tpu.memory_space<vmem>>, %arg4: memref<1x24xf32, #tpu.memory_space<vmem>>, %arg5: memref<1x24xf32, #tpu.memory_space<vmem>>, %arg6: memref<24x48xbf16, #tpu.memory_space<vmem>>, %arg7: memref<6x32x24xf32, #tpu.memory_space<vmem>>, %arg8: memref<1x24xf32, #tpu.memory_space<vmem>>, %arg9: memref<1x24xf32, #tpu.memory_space<vmem>>, %arg10: memref<24x48xbf16, #tpu.memory_space<vmem>>, %arg11: memref<1x48xf32, #tpu.memory_space<vmem>>, %arg12: memref<1x48xf32, #tpu.memory_space<vmem>>, %arg13: memref<1x48xf32, #tpu.memory_space<vmem>>, %arg14: memref<1x48xf32, #tpu.memory_space<vmem>>, %arg15: memref<1x48xf32, #tpu.memory_space<vmem>>, %arg16: memref<1x48xf32, #tpu.memory_space<vmem>>, %arg17: memref<1x48xf32, #tpu.memory_space<vmem>>, %arg18: memref<32x48xbf16, #tpu.memory_space<vmem>>, %arg19: memref<48x24xf32, #tpu.memory_space<vmem>>) attributes {dimension_semantics = [#tpu.dimension_semantics<arbitrary>], iteration_bounds = array<i64: 1>, scalar_prefetch = 0 : i64, scratch_operands = 1 : i64, tpu.core_type = #tpu.core_type<tc>, window_params = [{pipeline_mode = #tpu.pipeline_mode<synchronous>, transform_indices = @transform_0, window_bounds = array<i64: 32, 48>}, {pipeline_mode = #tpu.pipeline_mode<synchronous>, transform_indices = @transform_1, window_bounds = array<i64: 48, 24>}, {pipeline_mode = #tpu.pipeline_mode<synchronous>, transform_indices = @transform_2, window_bounds = array<i64: 9, 32, 24>}, {pipeline_mode = #tpu.pipeline_mode<synchronous>, transform_indices = @transform_3, window_bounds = array<i64: 1, 24>}, {pipeline_mode = #tpu.pipeline_mode<synchronous>, transform_indices = @transform_4, window_bounds = array<i64: 1, 24>}, {pipeline_mode = #tpu.pipeline_mode<synchronous>, transform_indices = @transform_5, window_bounds = array<i64: 24, 48>}, {pipeline_mode = #tpu.pipeline_mode<synchronous>, transform_indices = @transform_6, window_bounds = array<i64: 6, 32, 24>}, {pipeline_mode = #tpu.pipeline_mode<synchronous>, transform_indices = @transform_7, window_bounds = array<i64: 1, 24>}, {pipeline_mode = #tpu.pipeline_mode<synchronous>, transform_indices = @transform_8, window_bounds = array<i64: 1, 24>}, {pipeline_mode = #tpu.pipeline_mode<synchronous>, transform_indices = @transform_9, window_bounds = array<i64: 24, 48>}, {pipeline_mode = #tpu.pipeline_mode<synchronous>, transform_indices = @transform_10, window_bounds = array<i64: 1, 48>}, {pipeline_mode = #tpu.pipeline_mode<synchronous>, transform_indices = @transform_11, window_bounds = array<i64: 1, 48>}, {pipeline_mode = #tpu.pipeline_mode<synchronous>, transform_indices = @transform_12, window_bounds = array<i64: 1, 48>}, {pipeline_mode = #tpu.pipeline_mode<synchronous>, transform_indices = @transform_13, window_bounds = array<i64: 1, 48>}, {pipeline_mode = #tpu.pipeline_mode<synchronous>, transform_indices = @transform_14, window_bounds = array<i64: 1, 48>}, {pipeline_mode = #tpu.pipeline_mode<synchronous>, transform_indices = @transform_15, window_bounds = array<i64: 1, 48>}, {pipeline_mode = #tpu.pipeline_mode<synchronous>, transform_indices = @transform_16, window_bounds = array<i64: 1, 48>}, {pipeline_mode = #tpu.pipeline_mode<synchronous>, transform_indices = @transform_17, window_bounds = array<i64: 32, 48>}]} {
    %c0 = arith.constant 0 : index
    %c0_0 = arith.constant 0 : index
    %0 = vector.load %arg1[%c0, %c0_0] : memref<32x48xbf16, #tpu.memory_space<vmem>>, vector<32x48xbf16>
    %c0_1 = arith.constant 0 : index
    %c0_2 = arith.constant 0 : index
    %1 = vector.load %arg2[%c0_1, %c0_2] : memref<48x24xbf16, #tpu.memory_space<vmem>>, vector<48x24xbf16>
    %cst = arith.constant dense<0.000000e+00> : vector<32x24xf32>
    %2 = tpu.matmul %0, %1, %cst {dimension_numbers = #tpu.dot_dimension_numbers<[1], [0], [0], [1], [0, 0, 1, 1], [], []>} : vector<32x48xbf16>, vector<48x24xbf16>, vector<32x24xf32> -> vector<32x24xf32>
    %cst_3 = arith.constant 0.000000e+00 : f32
    %3 = vector.broadcast %cst_3 : f32 to vector<48x24xf32>
    %c0_4 = arith.constant 0 : index
    %c0_5 = arith.constant 0 : index
    %4 = vector.load %arg19[%c0_4, %c0_5] : memref<48x24xf32, #tpu.memory_space<vmem>>, vector<48x24xf32>
    tpu.vector_store %arg19[%c0_4, %c0_5], %3 {strides = array<i32>} : memref<48x24xf32, #tpu.memory_space<vmem>>, vector<48x24xf32>,
    %c8 = arith.constant 8 : index
    %c0_6 = arith.constant 0 : index
    %5 = vector.load %arg19[%c8, %c0_6] : memref<48x24xf32, #tpu.memory_space<vmem>>, vector<32x24xf32>
    tpu.vector_store %arg19[%c8, %c0_6], %2 {strides = array<i32>} : memref<48x24xf32, #tpu.memory_space<vmem>>, vector<32x24xf32>,
    %c3 = arith.constant 3 : index
    %c0_7 = arith.constant 0 : index
    %6 = vector.load %arg19[%c3, %c0_7] : memref<48x24xf32, #tpu.memory_space<vmem>>, vector<32x24xf32>
    %c0_8 = arith.constant 0 : index
    %c0_9 = arith.constant 0 : index
    %c0_10 = arith.constant 0 : index
    %7 = vector.load %arg3[%c0_8, %c0_9, %c0_10] : memref<9x32x24xf32, #tpu.memory_space<vmem>>, vector<1x32x24xf32>
    %8 = vector.shape_cast %7 : vector<1x32x24xf32> to vector<32x24xf32>
    %9 = arith.mulf %6, %8 : vector<32x24xf32>
    %c4 = arith.constant 4 : index
    %c0_11 = arith.constant 0 : index
    %10 = vector.load %arg19[%c4, %c0_11] : memref<48x24xf32, #tpu.memory_space<vmem>>, vector<32x24xf32>
    %c1 = arith.constant 1 : index
    %c0_12 = arith.constant 0 : index
    %c0_13 = arith.constant 0 : index
    %11 = vector.load %arg3[%c1, %c0_12, %c0_13] : memref<9x32x24xf32, #tpu.memory_space<vmem>>, vector<1x32x24xf32>
    %12 = vector.shape_cast %11 : vector<1x32x24xf32> to vector<32x24xf32>
    %13 = arith.mulf %10, %12 : vector<32x24xf32>
    %14 = arith.addf %9, %13 : vector<32x24xf32>
    %c5 = arith.constant 5 : index
    %c0_14 = arith.constant 0 : index
    %15 = vector.load %arg19[%c5, %c0_14] : memref<48x24xf32, #tpu.memory_space<vmem>>, vector<32x24xf32>
    %c2 = arith.constant 2 : index
    %c0_15 = arith.constant 0 : index
    %c0_16 = arith.constant 0 : index
    %16 = vector.load %arg3[%c2, %c0_15, %c0_16] : memref<9x32x24xf32, #tpu.memory_space<vmem>>, vector<1x32x24xf32>
    %17 = vector.shape_cast %16 : vector<1x32x24xf32> to vector<32x24xf32>
    %18 = arith.mulf %15, %17 : vector<32x24xf32>
    %19 = arith.addf %14, %18 : vector<32x24xf32>
    %c7 = arith.constant 7 : index
    %c0_17 = arith.constant 0 : index
    %20 = vector.load %arg19[%c7, %c0_17] : memref<48x24xf32, #tpu.memory_space<vmem>>, vector<32x24xf32>
    %c3_18 = arith.constant 3 : index
    %c0_19 = arith.constant 0 : index
    %c0_20 = arith.constant 0 : index
    %21 = vector.load %arg3[%c3_18, %c0_19, %c0_20] : memref<9x32x24xf32, #tpu.memory_space<vmem>>, vector<1x32x24xf32>
    %22 = vector.shape_cast %21 : vector<1x32x24xf32> to vector<32x24xf32>
    %23 = arith.mulf %20, %22 : vector<32x24xf32>
    %24 = arith.addf %19, %23 : vector<32x24xf32>
    %c8_21 = arith.constant 8 : index
    %c0_22 = arith.constant 0 : index
    %25 = vector.load %arg19[%c8_21, %c0_22] : memref<48x24xf32, #tpu.memory_space<vmem>>, vector<32x24xf32>
    %c4_23 = arith.constant 4 : index
    %c0_24 = arith.constant 0 : index
    %c0_25 = arith.constant 0 : index
    %26 = vector.load %arg3[%c4_23, %c0_24, %c0_25] : memref<9x32x24xf32, #tpu.memory_space<vmem>>, vector<1x32x24xf32>
    %27 = vector.shape_cast %26 : vector<1x32x24xf32> to vector<32x24xf32>
    %28 = arith.mulf %25, %27 : vector<32x24xf32>
    %29 = arith.addf %24, %28 : vector<32x24xf32>
    %c9 = arith.constant 9 : index
    %c0_26 = arith.constant 0 : index
    %30 = vector.load %arg19[%c9, %c0_26] : memref<48x24xf32, #tpu.memory_space<vmem>>, vector<32x24xf32>
    %c5_27 = arith.constant 5 : index
    %c0_28 = arith.constant 0 : index
    %c0_29 = arith.constant 0 : index
    %31 = vector.load %arg3[%c5_27, %c0_28, %c0_29] : memref<9x32x24xf32, #tpu.memory_space<vmem>>, vector<1x32x24xf32>
    %32 = vector.shape_cast %31 : vector<1x32x24xf32> to vector<32x24xf32>
    %33 = arith.mulf %30, %32 : vector<32x24xf32>
    %34 = arith.addf %29, %33 : vector<32x24xf32>
    %c11 = arith.constant 11 : index
    %c0_30 = arith.constant 0 : index
    %35 = vector.load %arg19[%c11, %c0_30] : memref<48x24xf32, #tpu.memory_space<vmem>>, vector<32x24xf32>
    %c6 = arith.constant 6 : index
    %c0_31 = arith.constant 0 : index
    %c0_32 = arith.constant 0 : index
    %36 = vector.load %arg3[%c6, %c0_31, %c0_32] : memref<9x32x24xf32, #tpu.memory_space<vmem>>, vector<1x32x24xf32>
    %37 = vector.shape_cast %36 : vector<1x32x24xf32> to vector<32x24xf32>
    %38 = arith.mulf %35, %37 : vector<32x24xf32>
    %39 = arith.addf %34, %38 : vector<32x24xf32>
    %c12 = arith.constant 12 : index
    %c0_33 = arith.constant 0 : index
    %40 = vector.load %arg19[%c12, %c0_33] : memref<48x24xf32, #tpu.memory_space<vmem>>, vector<32x24xf32>
    %c7_34 = arith.constant 7 : index
    %c0_35 = arith.constant 0 : index
    %c0_36 = arith.constant 0 : index
    %41 = vector.load %arg3[%c7_34, %c0_35, %c0_36] : memref<9x32x24xf32, #tpu.memory_space<vmem>>, vector<1x32x24xf32>
    %42 = vector.shape_cast %41 : vector<1x32x24xf32> to vector<32x24xf32>
    %43 = arith.mulf %40, %42 : vector<32x24xf32>
    %44 = arith.addf %39, %43 : vector<32x24xf32>
    %c13 = arith.constant 13 : index
    %c0_37 = arith.constant 0 : index
    %45 = vector.load %arg19[%c13, %c0_37] : memref<48x24xf32, #tpu.memory_space<vmem>>, vector<32x24xf32>
    %c8_38 = arith.constant 8 : index
    %c0_39 = arith.constant 0 : index
    %c0_40 = arith.constant 0 : index
    %46 = vector.load %arg3[%c8_38, %c0_39, %c0_40] : memref<9x32x24xf32, #tpu.memory_space<vmem>>, vector<1x32x24xf32>
    %47 = vector.shape_cast %46 : vector<1x32x24xf32> to vector<32x24xf32>
    %48 = arith.mulf %45, %47 : vector<32x24xf32>
    %49 = arith.addf %44, %48 : vector<32x24xf32>
    %c0_41 = arith.constant 0 : index
    %c0_42 = arith.constant 0 : index
    %50 = vector.load %arg4[%c0_41, %c0_42] : memref<1x24xf32, #tpu.memory_space<vmem>>, vector<1x24xf32>
    %51 = vector.broadcast %50 : vector<1x24xf32> to vector<32x24xf32>
    %52 = arith.addf %49, %51 : vector<32x24xf32>
    %cst_43 = arith.constant 0.000000e+00 : f32
    %53 = vector.broadcast %cst_43 : f32 to vector<32x24xf32>
    %54 = arith.cmpf oge, %52, %53 : vector<32x24xf32>
    %c0_44 = arith.constant 0 : index
    %c0_45 = arith.constant 0 : index
    %55 = vector.load %arg5[%c0_44, %c0_45] : memref<1x24xf32, #tpu.memory_space<vmem>>, vector<1x24xf32>
    %56 = vector.broadcast %55 : vector<1x24xf32> to vector<32x24xf32>
    %57 = arith.mulf %52, %56 : vector<32x24xf32>
    %58 = arith.select %54, %52, %57 : vector<32x24xi1>, vector<32x24xf32>
    %59 = arith.truncf %58 : vector<32x24xf32> to vector<32x24xbf16>
    %c4_46 = arith.constant 4 : index
    %c0_47 = arith.constant 0 : index
    %60 = vector.load %arg19[%c4_46, %c0_47] : memref<48x24xf32, #tpu.memory_space<vmem>>, vector<32x24xf32>
    %c0_48 = arith.constant 0 : index
    %c0_49 = arith.constant 0 : index
    %c0_50 = arith.constant 0 : index
    %61 = vector.load %arg7[%c0_48, %c0_49, %c0_50] : memref<6x32x24xf32, #tpu.memory_space<vmem>>, vector<1x32x24xf32>
    %62 = vector.shape_cast %61 : vector<1x32x24xf32> to vector<32x24xf32>
    %63 = arith.mulf %60, %62 : vector<32x24xf32>
    %c8_51 = arith.constant 8 : index
    %c0_52 = arith.constant 0 : index
    %64 = vector.load %arg19[%c8_51, %c0_52] : memref<48x24xf32, #tpu.memory_space<vmem>>, vector<32x24xf32>
    %c1_53 = arith.constant 1 : index
    %c0_54 = arith.constant 0 : index
    %c0_55 = arith.constant 0 : index
    %65 = vector.load %arg7[%c1_53, %c0_54, %c0_55] : memref<6x32x24xf32, #tpu.memory_space<vmem>>, vector<1x32x24xf32>
    %66 = vector.shape_cast %65 : vector<1x32x24xf32> to vector<32x24xf32>
    %67 = arith.mulf %64, %66 : vector<32x24xf32>
    %68 = arith.addf %63, %67 : vector<32x24xf32>
    %c12_56 = arith.constant 12 : index
    %c0_57 = arith.constant 0 : index
    %69 = vector.load %arg19[%c12_56, %c0_57] : memref<48x24xf32, #tpu.memory_space<vmem>>, vector<32x24xf32>
    %c2_58 = arith.constant 2 : index
    %c0_59 = arith.constant 0 : index
    %c0_60 = arith.constant 0 : index
    %70 = vector.load %arg7[%c2_58, %c0_59, %c0_60] : memref<6x32x24xf32, #tpu.memory_space<vmem>>, vector<1x32x24xf32>
    %71 = vector.shape_cast %70 : vector<1x32x24xf32> to vector<32x24xf32>
    %72 = arith.mulf %69, %71 : vector<32x24xf32>
    %73 = arith.addf %68, %72 : vector<32x24xf32>
    %c7_61 = arith.constant 7 : index
    %c0_62 = arith.constant 0 : index
    %74 = vector.load %arg19[%c7_61, %c0_62] : memref<48x24xf32, #tpu.memory_space<vmem>>, vector<32x24xf32>
    %c3_63 = arith.constant 3 : index
    %c0_64 = arith.constant 0 : index
    %c0_65 = arith.constant 0 : index
    %75 = vector.load %arg7[%c3_63, %c0_64, %c0_65] : memref<6x32x24xf32, #tpu.memory_space<vmem>>, vector<1x32x24xf32>
    %76 = vector.shape_cast %75 : vector<1x32x24xf32> to vector<32x24xf32>
    %77 = arith.mulf %74, %76 : vector<32x24xf32>
    %78 = arith.addf %73, %77 : vector<32x24xf32>
    %c8_66 = arith.constant 8 : index
    %c0_67 = arith.constant 0 : index
    %79 = vector.load %arg19[%c8_66, %c0_67] : memref<48x24xf32, #tpu.memory_space<vmem>>, vector<32x24xf32>
    %c4_68 = arith.constant 4 : index
    %c0_69 = arith.constant 0 : index
    %c0_70 = arith.constant 0 : index
    %80 = vector.load %arg7[%c4_68, %c0_69, %c0_70] : memref<6x32x24xf32, #tpu.memory_space<vmem>>, vector<1x32x24xf32>
    %81 = vector.shape_cast %80 : vector<1x32x24xf32> to vector<32x24xf32>
    %82 = arith.mulf %79, %81 : vector<32x24xf32>
    %83 = arith.addf %78, %82 : vector<32x24xf32>
    %c9_71 = arith.constant 9 : index
    %c0_72 = arith.constant 0 : index
    %84 = vector.load %arg19[%c9_71, %c0_72] : memref<48x24xf32, #tpu.memory_space<vmem>>, vector<32x24xf32>
    %c5_73 = arith.constant 5 : index
    %c0_74 = arith.constant 0 : index
    %c0_75 = arith.constant 0 : index
    %85 = vector.load %arg7[%c5_73, %c0_74, %c0_75] : memref<6x32x24xf32, #tpu.memory_space<vmem>>, vector<1x32x24xf32>
    %86 = vector.shape_cast %85 : vector<1x32x24xf32> to vector<32x24xf32>
    %87 = arith.mulf %84, %86 : vector<32x24xf32>
    %88 = arith.addf %83, %87 : vector<32x24xf32>
    %c0_76 = arith.constant 0 : index
    %c0_77 = arith.constant 0 : index
    %89 = vector.load %arg8[%c0_76, %c0_77] : memref<1x24xf32, #tpu.memory_space<vmem>>, vector<1x24xf32>
    %90 = vector.broadcast %89 : vector<1x24xf32> to vector<32x24xf32>
    %91 = arith.addf %88, %90 : vector<32x24xf32>
    %cst_78 = arith.constant 0.000000e+00 : f32
    %92 = vector.broadcast %cst_78 : f32 to vector<32x24xf32>
    %93 = arith.cmpf oge, %91, %92 : vector<32x24xf32>
    %c0_79 = arith.constant 0 : index
    %c0_80 = arith.constant 0 : index
    %94 = vector.load %arg9[%c0_79, %c0_80] : memref<1x24xf32, #tpu.memory_space<vmem>>, vector<1x24xf32>
    %95 = vector.broadcast %94 : vector<1x24xf32> to vector<32x24xf32>
    %96 = arith.mulf %91, %95 : vector<32x24xf32>
    %97 = arith.select %93, %91, %96 : vector<32x24xi1>, vector<32x24xf32>
    %98 = arith.truncf %97 : vector<32x24xf32> to vector<32x24xbf16>
    %c0_81 = arith.constant 0 : index
    %c0_82 = arith.constant 0 : index
    %99 = vector.load %arg6[%c0_81, %c0_82] : memref<24x48xbf16, #tpu.memory_space<vmem>>, vector<24x48xbf16>
    %cst_83 = arith.constant dense<0.000000e+00> : vector<32x48xf32>
    %100 = tpu.matmul %59, %99, %cst_83 {dimension_numbers = #tpu.dot_dimension_numbers<[1], [0], [0], [1], [0, 0, 1, 1], [], []>} : vector<32x24xbf16>, vector<24x48xbf16>, vector<32x48xf32> -> vector<32x48xf32>
    %c0_84 = arith.constant 0 : index
    %c0_85 = arith.constant 0 : index
    %101 = vector.load %arg10[%c0_84, %c0_85] : memref<24x48xbf16, #tpu.memory_space<vmem>>, vector<24x48xbf16>
    %cst_86 = arith.constant dense<0.000000e+00> : vector<32x48xf32>
    %102 = tpu.matmul %98, %101, %cst_86 {dimension_numbers = #tpu.dot_dimension_numbers<[1], [0], [0], [1], [0, 0, 1, 1], [], []>} : vector<32x24xbf16>, vector<24x48xbf16>, vector<32x48xf32> -> vector<32x48xf32>
    %103 = arith.addf %100, %102 : vector<32x48xf32>
    %c0_87 = arith.constant 0 : index
    %c0_88 = arith.constant 0 : index
    %104 = vector.load %arg11[%c0_87, %c0_88] : memref<1x48xf32, #tpu.memory_space<vmem>>, vector<1x48xf32>
    %105 = vector.broadcast %104 : vector<1x48xf32> to vector<32x48xf32>
    %106 = arith.mulf %103, %105 : vector<32x48xf32>
    %c0_89 = arith.constant 0 : index
    %c0_90 = arith.constant 0 : index
    %107 = vector.load %arg12[%c0_89, %c0_90] : memref<1x48xf32, #tpu.memory_space<vmem>>, vector<1x48xf32>
    %108 = vector.broadcast %107 : vector<1x48xf32> to vector<32x48xf32>
    %109 = arith.addf %106, %108 : vector<32x48xf32>
    %110 = arith.extf %0 : vector<32x48xbf16> to vector<32x48xf32>
    %c0_91 = arith.constant 0 : index
    %c0_92 = arith.constant 0 : index
    %111 = vector.load %arg13[%c0_91, %c0_92] : memref<1x48xf32, #tpu.memory_space<vmem>>, vector<1x48xf32>
    %112 = vector.broadcast %111 : vector<1x48xf32> to vector<32x48xf32>
    %113 = arith.mulf %110, %112 : vector<32x48xf32>
    %114 = arith.addf %109, %113 : vector<32x48xf32>
    %cst_93 = arith.constant 0.000000e+00 : f32
    %115 = vector.broadcast %cst_93 : f32 to vector<32x48xf32>
    %116 = arith.cmpf oge, %114, %115 : vector<32x48xf32>
    %c0_94 = arith.constant 0 : index
    %c0_95 = arith.constant 0 : index
    %117 = vector.load %arg14[%c0_94, %c0_95] : memref<1x48xf32, #tpu.memory_space<vmem>>, vector<1x48xf32>
    %118 = vector.broadcast %117 : vector<1x48xf32> to vector<32x48xf32>
    %119 = arith.mulf %114, %118 : vector<32x48xf32>
    %120 = arith.select %116, %114, %119 : vector<32x48xi1>, vector<32x48xf32>
    %c0_96 = arith.constant 0 : index
    %c0_97 = arith.constant 0 : index
    %121 = vector.load %arg15[%c0_96, %c0_97] : memref<1x48xf32, #tpu.memory_space<vmem>>, vector<1x48xf32>
    %122 = vector.broadcast %121 : vector<1x48xf32> to vector<32x48xf32>
    %123 = arith.mulf %120, %122 : vector<32x48xf32>
    %c0_98 = arith.constant 0 : index
    %c0_99 = arith.constant 0 : index
    %124 = vector.load %arg16[%c0_98, %c0_99] : memref<1x48xf32, #tpu.memory_space<vmem>>, vector<1x48xf32>
    %125 = vector.broadcast %124 : vector<1x48xf32> to vector<32x48xf32>
    %126 = arith.addf %123, %125 : vector<32x48xf32>
    %cst_100 = arith.constant 0.000000e+00 : f32
    %127 = vector.broadcast %cst_100 : f32 to vector<32x48xf32>
    %128 = arith.cmpf oge, %126, %127 : vector<32x48xf32>
    %c0_101 = arith.constant 0 : index
    %c0_102 = arith.constant 0 : index
    %129 = vector.load %arg17[%c0_101, %c0_102] : memref<1x48xf32, #tpu.memory_space<vmem>>, vector<1x48xf32>
    %130 = vector.broadcast %129 : vector<1x48xf32> to vector<32x48xf32>
    %131 = arith.mulf %126, %130 : vector<32x48xf32>
    %132 = arith.select %128, %126, %131 : vector<32x48xi1>, vector<32x48xf32>
    %133 = arith.truncf %132 : vector<32x48xf32> to vector<32x48xbf16>
    %c0_103 = arith.constant 0 : index
    %c0_104 = arith.constant 0 : index
    %134 = vector.load %arg18[%c0_103, %c0_104] : memref<32x48xbf16, #tpu.memory_space<vmem>>, vector<32x48xbf16>
    tpu.vector_store %arg18[%c0_103, %c0_104], %133 {strides = array<i32>} : memref<32x48xbf16, #tpu.memory_space<vmem>>, vector<32x48xbf16>,
    return
  }
  func.func @transform_0(%arg0: i32) -> (i32, i32) {
    %c0_i32 = arith.constant 0 : i32
    %c0_i32_0 = arith.constant 0 : i32
    %c0_i32_1 = arith.constant 0 : i32
    return %c0_i32, %c0_i32_0 : i32, i32
  }
  func.func @transform_1(%arg0: i32) -> (i32, i32) {
    %c0_i32 = arith.constant 0 : i32
    %c0_i32_0 = arith.constant 0 : i32
    %c0_i32_1 = arith.constant 0 : i32
    return %c0_i32, %c0_i32_0 : i32, i32
  }
  func.func @transform_2(%arg0: i32) -> (i32, i32, i32) {
    %c0_i32 = arith.constant 0 : i32
    %c0_i32_0 = arith.constant 0 : i32
    %c0_i32_1 = arith.constant 0 : i32
    %c0_i32_2 = arith.constant 0 : i32
    return %c0_i32, %c0_i32_0, %c0_i32_1 : i32, i32, i32
  }
  func.func @transform_3(%arg0: i32) -> (i32, i32) {
    %c0_i32 = arith.constant 0 : i32
    %c0_i32_0 = arith.constant 0 : i32
    %c0_i32_1 = arith.constant 0 : i32
    return %c0_i32, %c0_i32_0 : i32, i32
  }
  func.func @transform_4(%arg0: i32) -> (i32, i32) {
    %c0_i32 = arith.constant 0 : i32
    %c0_i32_0 = arith.constant 0 : i32
    %c0_i32_1 = arith.constant 0 : i32
    return %c0_i32, %c0_i32_0 : i32, i32
  }
  func.func @transform_5(%arg0: i32) -> (i32, i32) {
    %c0_i32 = arith.constant 0 : i32
    %c0_i32_0 = arith.constant 0 : i32
    %c0_i32_1 = arith.constant 0 : i32
    return %c0_i32, %c0_i32_0 : i32, i32
  }
  func.func @transform_6(%arg0: i32) -> (i32, i32, i32) {
    %c0_i32 = arith.constant 0 : i32
    %c0_i32_0 = arith.constant 0 : i32
    %c0_i32_1 = arith.constant 0 : i32
    %c0_i32_2 = arith.constant 0 : i32
    return %c0_i32, %c0_i32_0, %c0_i32_1 : i32, i32, i32
  }
  func.func @transform_7(%arg0: i32) -> (i32, i32) {
    %c0_i32 = arith.constant 0 : i32
    %c0_i32_0 = arith.constant 0 : i32
    %c0_i32_1 = arith.constant 0 : i32
    return %c0_i32, %c0_i32_0 : i32, i32
  }
  func.func @transform_8(%arg0: i32) -> (i32, i32) {
    %c0_i32 = arith.constant 0 : i32
    %c0_i32_0 = arith.constant 0 : i32
    %c0_i32_1 = arith.constant 0 : i32
    return %c0_i32, %c0_i32_0 : i32, i32
  }
  func.func @transform_9(%arg0: i32) -> (i32, i32) {
    %c0_i32 = arith.constant 0 : i32
    %c0_i32_0 = arith.constant 0 : i32
    %c0_i32_1 = arith.constant 0 : i32
    return %c0_i32, %c0_i32_0 : i32, i32
  }
  func.func @transform_10(%arg0: i32) -> (i32, i32) {
    %c0_i32 = arith.constant 0 : i32
    %c0_i32_0 = arith.constant 0 : i32
    %c0_i32_1 = arith.constant 0 : i32
    return %c0_i32, %c0_i32_0 : i32, i32
  }
  func.func @transform_11(%arg0: i32) -> (i32, i32) {
    %c0_i32 = arith.constant 0 : i32
    %c0_i32_0 = arith.constant 0 : i32
    %c0_i32_1 = arith.constant 0 : i32
    return %c0_i32, %c0_i32_0 : i32, i32
  }
  func.func @transform_12(%arg0: i32) -> (i32, i32) {
    %c0_i32 = arith.constant 0 : i32
    %c0_i32_0 = arith.constant 0 : i32
    %c0_i32_1 = arith.constant 0 : i32
    return %c0_i32, %c0_i32_0 : i32, i32
  }
  func.func @transform_13(%arg0: i32) -> (i32, i32) {
    %c0_i32 = arith.constant 0 : i32
    %c0_i32_0 = arith.constant 0 : i32
    %c0_i32_1 = arith.constant 0 : i32
    return %c0_i32, %c0_i32_0 : i32, i32
  }
  func.func @transform_14(%arg0: i32) -> (i32, i32) {
    %c0_i32 = arith.constant 0 : i32
    %c0_i32_0 = arith.constant 0 : i32
    %c0_i32_1 = arith.constant 0 : i32
    return %c0_i32, %c0_i32_0 : i32, i32
  }
  func.func @transform_15(%arg0: i32) -> (i32, i32) {
    %c0_i32 = arith.constant 0 : i32
    %c0_i32_0 = arith.constant 0 : i32
    %c0_i32_1 = arith.constant 0 : i32
    return %c0_i32, %c0_i32_0 : i32, i32
  }
  func.func @transform_16(%arg0: i32) -> (i32, i32) {
    %c0_i32 = arith.constant 0 : i32
    %c0_i32_0 = arith.constant 0 : i32
    %c0_i32_1 = arith.constant 0 : i32
    return %c0_i32, %c0_i32_0 : i32, i32
  }
  func.func @transform_17(%arg0: i32) -> (i32, i32) {
    %c0_i32 = arith.constant 0 : i32
    %c0_i32_0 = arith.constant 0 : i32
    %c0_i32_1 = arith.constant 0 : i32
    return %c0_i32, %c0_i32_0 : i32, i32
  }
}

module attributes {stable_mosaic.version = 11 : i64} {
  func.func @_linear_kernel(%arg0: i32, %arg1: memref<8x48xbf16, #tpu.memory_space<vmem>>, %arg2: memref<48x20xbf16, #tpu.memory_space<vmem>>, %arg3: memref<8x96xbf16, #tpu.memory_space<vmem>>, %arg4: memref<96x20xbf16, #tpu.memory_space<vmem>>, %arg5: memref<8x20xf32, #tpu.memory_space<vmem>>) attributes {dimension_semantics = [#tpu.dimension_semantics<arbitrary>], iteration_bounds = array<i64: 1>, scalar_prefetch = 0 : i64, scratch_operands = 0 : i64, tpu.core_type = #tpu.core_type<tc>, window_params = [{pipeline_mode = #tpu.pipeline_mode<synchronous>, transform_indices = @transform_0, window_bounds = array<i64: 8, 48>}, {pipeline_mode = #tpu.pipeline_mode<synchronous>, transform_indices = @transform_1, window_bounds = array<i64: 48, 20>}, {pipeline_mode = #tpu.pipeline_mode<synchronous>, transform_indices = @transform_2, window_bounds = array<i64: 8, 96>}, {pipeline_mode = #tpu.pipeline_mode<synchronous>, transform_indices = @transform_3, window_bounds = array<i64: 96, 20>}, {pipeline_mode = #tpu.pipeline_mode<synchronous>, transform_indices = @transform_4, window_bounds = array<i64: 8, 20>}]} {
    %c0 = arith.constant 0 : index
    %c0_0 = arith.constant 0 : index
    %0 = vector.load %arg1[%c0, %c0_0] : memref<8x48xbf16, #tpu.memory_space<vmem>>, vector<8x48xbf16>
    %c0_1 = arith.constant 0 : index
    %c0_2 = arith.constant 0 : index
    %1 = vector.load %arg2[%c0_1, %c0_2] : memref<48x20xbf16, #tpu.memory_space<vmem>>, vector<48x20xbf16>
    %cst = arith.constant dense<0.000000e+00> : vector<8x20xf32>
    %2 = tpu.matmul %0, %1, %cst {dimension_numbers = #tpu.dot_dimension_numbers<[1], [0], [0], [1], [0, 0, 1, 1], [], []>} : vector<8x48xbf16>, vector<48x20xbf16>, vector<8x20xf32> -> vector<8x20xf32>
    %c0_3 = arith.constant 0 : index
    %c0_4 = arith.constant 0 : index
    %3 = vector.load %arg3[%c0_3, %c0_4] : memref<8x96xbf16, #tpu.memory_space<vmem>>, vector<8x96xbf16>
    %c0_5 = arith.constant 0 : index
    %c0_6 = arith.constant 0 : index
    %4 = vector.load %arg4[%c0_5, %c0_6] : memref<96x20xbf16, #tpu.memory_space<vmem>>, vector<96x20xbf16>
    %cst_7 = arith.constant dense<0.000000e+00> : vector<8x20xf32>
    %5 = tpu.matmul %3, %4, %cst_7 {dimension_numbers = #tpu.dot_dimension_numbers<[1], [0], [0], [1], [0, 0, 1, 1], [], []>} : vector<8x96xbf16>, vector<96x20xbf16>, vector<8x20xf32> -> vector<8x20xf32>
    %6 = arith.addf %2, %5 : vector<8x20xf32>
    %c0_8 = arith.constant 0 : index
    %c0_9 = arith.constant 0 : index
    %7 = vector.load %arg5[%c0_8, %c0_9] : memref<8x20xf32, #tpu.memory_space<vmem>>, vector<8x20xf32>
    tpu.vector_store %arg5[%c0_8, %c0_9], %6 {strides = array<i32>} : memref<8x20xf32, #tpu.memory_space<vmem>>, vector<8x20xf32>,
    return
  }
  func.func @transform_0(%arg0: i32) -> (i32, i32) {
    %c0_i32 = arith.constant 0 : i32
    %c0_i32_0 = arith.constant 0 : i32
    %c0_i32_1 = arith.constant 0 : i32
    return %c0_i32, %c0_i32_0 : i32, i32
  }
  func.func @transform_1(%arg0: i32) -> (i32, i32) {
    %c0_i32 = arith.constant 0 : i32
    %c0_i32_0 = arith.constant 0 : i32
    %c0_i32_1 = arith.constant 0 : i32
    return %c0_i32, %c0_i32_0 : i32, i32
  }
  func.func @transform_2(%arg0: i32) -> (i32, i32) {
    %c0_i32 = arith.constant 0 : i32
    %c0_i32_0 = arith.constant 0 : i32
    %c0_i32_1 = arith.constant 0 : i32
    return %c0_i32, %c0_i32_0 : i32, i32
  }
  func.func @transform_3(%arg0: i32) -> (i32, i32) {
    %c0_i32 = arith.constant 0 : i32
    %c0_i32_0 = arith.constant 0 : i32
    %c0_i32_1 = arith.constant 0 : i32
    return %c0_i32, %c0_i32_0 : i32, i32
  }
  func.func @transform_4(%arg0: i32) -> (i32, i32) {
    %c0_i32 = arith.constant 0 : i32
    %c0_i32_0 = arith.constant 0 : i32
    %c0_i32_1 = arith.constant 0 : i32
    return %c0_i32, %c0_i32_0 : i32, i32
  }
}

module attributes {stable_mosaic.version = 11 : i64} {
  func.func @_se_cbr_kernel(%arg0: i32, %arg1: memref<9x8x72xbf16, #tpu.memory_space<vmem>>, %arg2: memref<9x1x72xf32, #tpu.memory_space<vmem>>, %arg3: memref<2x8xbf16, #tpu.memory_space<vmem>>, %arg4: memref<8x2xbf16, #tpu.memory_space<vmem>>, %arg5: memref<72x36xbf16, #tpu.memory_space<vmem>>, %arg6: memref<1x36xf32, #tpu.memory_space<vmem>>, %arg7: memref<1x36xf32, #tpu.memory_space<vmem>>, %arg8: memref<36x72xbf16, #tpu.memory_space<vmem>>, %arg9: memref<1x72xf32, #tpu.memory_space<vmem>>, %arg10: memref<1x72xf32, #tpu.memory_space<vmem>>, %arg11: memref<72x48xbf16, #tpu.memory_space<vmem>>, %arg12: memref<1x48xf32, #tpu.memory_space<vmem>>, %arg13: memref<1x48xf32, #tpu.memory_space<vmem>>, %arg14: memref<1x48xf32, #tpu.memory_space<vmem>>, %arg15: memref<1x48xf32, #tpu.memory_space<vmem>>, %arg16: memref<1x48xf32, #tpu.memory_space<vmem>>, %arg17: memref<1x48xf32, #tpu.memory_space<vmem>>, %arg18: memref<8x48xbf16, #tpu.memory_space<vmem>>, %arg19: memref<8x48xbf16, #tpu.memory_space<vmem>>) attributes {dimension_semantics = [#tpu.dimension_semantics<arbitrary>], iteration_bounds = array<i64: 1>, scalar_prefetch = 0 : i64, scratch_operands = 0 : i64, tpu.core_type = #tpu.core_type<tc>, window_params = [{pipeline_mode = #tpu.pipeline_mode<synchronous>, transform_indices = @transform_0, window_bounds = array<i64: 9, 8, 72>}, {pipeline_mode = #tpu.pipeline_mode<synchronous>, transform_indices = @transform_1, window_bounds = array<i64: 9, 1, 72>}, {pipeline_mode = #tpu.pipeline_mode<synchronous>, transform_indices = @transform_2, window_bounds = array<i64: 2, 8>}, {pipeline_mode = #tpu.pipeline_mode<synchronous>, transform_indices = @transform_3, window_bounds = array<i64: 8, 2>}, {pipeline_mode = #tpu.pipeline_mode<synchronous>, transform_indices = @transform_4, window_bounds = array<i64: 72, 36>}, {pipeline_mode = #tpu.pipeline_mode<synchronous>, transform_indices = @transform_5, window_bounds = array<i64: 1, 36>}, {pipeline_mode = #tpu.pipeline_mode<synchronous>, transform_indices = @transform_6, window_bounds = array<i64: 1, 36>}, {pipeline_mode = #tpu.pipeline_mode<synchronous>, transform_indices = @transform_7, window_bounds = array<i64: 36, 72>}, {pipeline_mode = #tpu.pipeline_mode<synchronous>, transform_indices = @transform_8, window_bounds = array<i64: 1, 72>}, {pipeline_mode = #tpu.pipeline_mode<synchronous>, transform_indices = @transform_9, window_bounds = array<i64: 1, 72>}, {pipeline_mode = #tpu.pipeline_mode<synchronous>, transform_indices = @transform_10, window_bounds = array<i64: 72, 48>}, {pipeline_mode = #tpu.pipeline_mode<synchronous>, transform_indices = @transform_11, window_bounds = array<i64: 1, 48>}, {pipeline_mode = #tpu.pipeline_mode<synchronous>, transform_indices = @transform_12, window_bounds = array<i64: 1, 48>}, {pipeline_mode = #tpu.pipeline_mode<synchronous>, transform_indices = @transform_13, window_bounds = array<i64: 1, 48>}, {pipeline_mode = #tpu.pipeline_mode<synchronous>, transform_indices = @transform_14, window_bounds = array<i64: 1, 48>}, {pipeline_mode = #tpu.pipeline_mode<synchronous>, transform_indices = @transform_15, window_bounds = array<i64: 1, 48>}, {pipeline_mode = #tpu.pipeline_mode<synchronous>, transform_indices = @transform_16, window_bounds = array<i64: 1, 48>}, {pipeline_mode = #tpu.pipeline_mode<synchronous>, transform_indices = @transform_17, window_bounds = array<i64: 8, 48>}, {pipeline_mode = #tpu.pipeline_mode<synchronous>, transform_indices = @transform_18, window_bounds = array<i64: 8, 48>}]} {
    %c0 = arith.constant 0 : index
    %c0_0 = arith.constant 0 : index
    %c0_1 = arith.constant 0 : index
    %0 = vector.load %arg1[%c0, %c0_0, %c0_1] : memref<9x8x72xbf16, #tpu.memory_space<vmem>>, vector<1x8x72xbf16>
    %1 = vector.shape_cast %0 : vector<1x8x72xbf16> to vector<8x72xbf16>
    %c0_2 = arith.constant 0 : index
    %c0_3 = arith.constant 0 : index
    %c0_4 = arith.constant 0 : index
    %2 = vector.load %arg2[%c0_2, %c0_3, %c0_4] : memref<9x1x72xf32, #tpu.memory_space<vmem>>, vector<1x1x72xf32>
    %3 = vector.shape_cast %2 : vector<1x1x72xf32> to vector<1x72xf32>
    %4 = arith.extf %1 : vector<8x72xbf16> to vector<8x72xf32>
    %5 = vector.broadcast %3 : vector<1x72xf32> to vector<8x72xf32>
    %6 = arith.mulf %4, %5 : vector<8x72xf32>
    %c1 = arith.constant 1 : index
    %c0_5 = arith.constant 0 : index
    %c0_6 = arith.constant 0 : index
    %7 = vector.load %arg1[%c1, %c0_5, %c0_6] : memref<9x8x72xbf16, #tpu.memory_space<vmem>>, vector<1x8x72xbf16>
    %8 = vector.shape_cast %7 : vector<1x8x72xbf16> to vector<8x72xbf16>
    %c1_7 = arith.constant 1 : index
    %c0_8 = arith.constant 0 : index
    %c0_9 = arith.constant 0 : index
    %9 = vector.load %arg2[%c1_7, %c0_8, %c0_9] : memref<9x1x72xf32, #tpu.memory_space<vmem>>, vector<1x1x72xf32>
    %10 = vector.shape_cast %9 : vector<1x1x72xf32> to vector<1x72xf32>
    %11 = arith.extf %8 : vector<8x72xbf16> to vector<8x72xf32>
    %12 = vector.broadcast %10 : vector<1x72xf32> to vector<8x72xf32>
    %13 = arith.mulf %11, %12 : vector<8x72xf32>
    %14 = arith.addf %6, %13 : vector<8x72xf32>
    %c2 = arith.constant 2 : index
    %c0_10 = arith.constant 0 : index
    %c0_11 = arith.constant 0 : index
    %15 = vector.load %arg1[%c2, %c0_10, %c0_11] : memref<9x8x72xbf16, #tpu.memory_space<vmem>>, vector<1x8x72xbf16>
    %16 = vector.shape_cast %15 : vector<1x8x72xbf16> to vector<8x72xbf16>
    %c2_12 = arith.constant 2 : index
    %c0_13 = arith.constant 0 : index
    %c0_14 = arith.constant 0 : index
    %17 = vector.load %arg2[%c2_12, %c0_13, %c0_14] : memref<9x1x72xf32, #tpu.memory_space<vmem>>, vector<1x1x72xf32>
    %18 = vector.shape_cast %17 : vector<1x1x72xf32> to vector<1x72xf32>
    %19 = arith.extf %16 : vector<8x72xbf16> to vector<8x72xf32>
    %20 = vector.broadcast %18 : vector<1x72xf32> to vector<8x72xf32>
    %21 = arith.mulf %19, %20 : vector<8x72xf32>
    %22 = arith.addf %14, %21 : vector<8x72xf32>
    %c3 = arith.constant 3 : index
    %c0_15 = arith.constant 0 : index
    %c0_16 = arith.constant 0 : index
    %23 = vector.load %arg1[%c3, %c0_15, %c0_16] : memref<9x8x72xbf16, #tpu.memory_space<vmem>>, vector<1x8x72xbf16>
    %24 = vector.shape_cast %23 : vector<1x8x72xbf16> to vector<8x72xbf16>
    %c3_17 = arith.constant 3 : index
    %c0_18 = arith.constant 0 : index
    %c0_19 = arith.constant 0 : index
    %25 = vector.load %arg2[%c3_17, %c0_18, %c0_19] : memref<9x1x72xf32, #tpu.memory_space<vmem>>, vector<1x1x72xf32>
    %26 = vector.shape_cast %25 : vector<1x1x72xf32> to vector<1x72xf32>
    %27 = arith.extf %24 : vector<8x72xbf16> to vector<8x72xf32>
    %28 = vector.broadcast %26 : vector<1x72xf32> to vector<8x72xf32>
    %29 = arith.mulf %27, %28 : vector<8x72xf32>
    %30 = arith.addf %22, %29 : vector<8x72xf32>
    %c4 = arith.constant 4 : index
    %c0_20 = arith.constant 0 : index
    %c0_21 = arith.constant 0 : index
    %31 = vector.load %arg1[%c4, %c0_20, %c0_21] : memref<9x8x72xbf16, #tpu.memory_space<vmem>>, vector<1x8x72xbf16>
    %32 = vector.shape_cast %31 : vector<1x8x72xbf16> to vector<8x72xbf16>
    %c4_22 = arith.constant 4 : index
    %c0_23 = arith.constant 0 : index
    %c0_24 = arith.constant 0 : index
    %33 = vector.load %arg2[%c4_22, %c0_23, %c0_24] : memref<9x1x72xf32, #tpu.memory_space<vmem>>, vector<1x1x72xf32>
    %34 = vector.shape_cast %33 : vector<1x1x72xf32> to vector<1x72xf32>
    %35 = arith.extf %32 : vector<8x72xbf16> to vector<8x72xf32>
    %36 = vector.broadcast %34 : vector<1x72xf32> to vector<8x72xf32>
    %37 = arith.mulf %35, %36 : vector<8x72xf32>
    %38 = arith.addf %30, %37 : vector<8x72xf32>
    %c5 = arith.constant 5 : index
    %c0_25 = arith.constant 0 : index
    %c0_26 = arith.constant 0 : index
    %39 = vector.load %arg1[%c5, %c0_25, %c0_26] : memref<9x8x72xbf16, #tpu.memory_space<vmem>>, vector<1x8x72xbf16>
    %40 = vector.shape_cast %39 : vector<1x8x72xbf16> to vector<8x72xbf16>
    %c5_27 = arith.constant 5 : index
    %c0_28 = arith.constant 0 : index
    %c0_29 = arith.constant 0 : index
    %41 = vector.load %arg2[%c5_27, %c0_28, %c0_29] : memref<9x1x72xf32, #tpu.memory_space<vmem>>, vector<1x1x72xf32>
    %42 = vector.shape_cast %41 : vector<1x1x72xf32> to vector<1x72xf32>
    %43 = arith.extf %40 : vector<8x72xbf16> to vector<8x72xf32>
    %44 = vector.broadcast %42 : vector<1x72xf32> to vector<8x72xf32>
    %45 = arith.mulf %43, %44 : vector<8x72xf32>
    %46 = arith.addf %38, %45 : vector<8x72xf32>
    %c6 = arith.constant 6 : index
    %c0_30 = arith.constant 0 : index
    %c0_31 = arith.constant 0 : index
    %47 = vector.load %arg1[%c6, %c0_30, %c0_31] : memref<9x8x72xbf16, #tpu.memory_space<vmem>>, vector<1x8x72xbf16>
    %48 = vector.shape_cast %47 : vector<1x8x72xbf16> to vector<8x72xbf16>
    %c6_32 = arith.constant 6 : index
    %c0_33 = arith.constant 0 : index
    %c0_34 = arith.constant 0 : index
    %49 = vector.load %arg2[%c6_32, %c0_33, %c0_34] : memref<9x1x72xf32, #tpu.memory_space<vmem>>, vector<1x1x72xf32>
    %50 = vector.shape_cast %49 : vector<1x1x72xf32> to vector<1x72xf32>
    %51 = arith.extf %48 : vector<8x72xbf16> to vector<8x72xf32>
    %52 = vector.broadcast %50 : vector<1x72xf32> to vector<8x72xf32>
    %53 = arith.mulf %51, %52 : vector<8x72xf32>
    %54 = arith.addf %46, %53 : vector<8x72xf32>
    %c7 = arith.constant 7 : index
    %c0_35 = arith.constant 0 : index
    %c0_36 = arith.constant 0 : index
    %55 = vector.load %arg1[%c7, %c0_35, %c0_36] : memref<9x8x72xbf16, #tpu.memory_space<vmem>>, vector<1x8x72xbf16>
    %56 = vector.shape_cast %55 : vector<1x8x72xbf16> to vector<8x72xbf16>
    %c7_37 = arith.constant 7 : index
    %c0_38 = arith.constant 0 : index
    %c0_39 = arith.constant 0 : index
    %57 = vector.load %arg2[%c7_37, %c0_38, %c0_39] : memref<9x1x72xf32, #tpu.memory_space<vmem>>, vector<1x1x72xf32>
    %58 = vector.shape_cast %57 : vector<1x1x72xf32> to vector<1x72xf32>
    %59 = arith.extf %56 : vector<8x72xbf16> to vector<8x72xf32>
    %60 = vector.broadcast %58 : vector<1x72xf32> to vector<8x72xf32>
    %61 = arith.mulf %59, %60 : vector<8x72xf32>
    %62 = arith.addf %54, %61 : vector<8x72xf32>
    %c8 = arith.constant 8 : index
    %c0_40 = arith.constant 0 : index
    %c0_41 = arith.constant 0 : index
    %63 = vector.load %arg1[%c8, %c0_40, %c0_41] : memref<9x8x72xbf16, #tpu.memory_space<vmem>>, vector<1x8x72xbf16>
    %64 = vector.shape_cast %63 : vector<1x8x72xbf16> to vector<8x72xbf16>
    %c8_42 = arith.constant 8 : index
    %c0_43 = arith.constant 0 : index
    %c0_44 = arith.constant 0 : index
    %65 = vector.load %arg2[%c8_42, %c0_43, %c0_44] : memref<9x1x72xf32, #tpu.memory_space<vmem>>, vector<1x1x72xf32>
    %66 = vector.shape_cast %65 : vector<1x1x72xf32> to vector<1x72xf32>
    %67 = arith.extf %64 : vector<8x72xbf16> to vector<8x72xf32>
    %68 = vector.broadcast %66 : vector<1x72xf32> to vector<8x72xf32>
    %69 = arith.mulf %67, %68 : vector<8x72xf32>
    %70 = arith.addf %62, %69 : vector<8x72xf32>
    %c0_45 = arith.constant 0 : index
    %c0_46 = arith.constant 0 : index
    %71 = vector.load %arg3[%c0_45, %c0_46] : memref<2x8xbf16, #tpu.memory_space<vmem>>, vector<2x8xbf16>
    %72 = arith.truncf %70 : vector<8x72xf32> to vector<8x72xbf16>
    %cst = arith.constant dense<0.000000e+00> : vector<2x72xf32>
    %73 = tpu.matmul %71, %72, %cst {dimension_numbers = #tpu.dot_dimension_numbers<[1], [0], [0], [1], [0, 0, 1, 1], [], []>} : vector<2x8xbf16>, vector<8x72xbf16>, vector<2x72xf32> -> vector<2x72xf32>
    %c0_47 = arith.constant 0 : index
    %c0_48 = arith.constant 0 : index
    %74 = vector.load %arg5[%c0_47, %c0_48] : memref<72x36xbf16, #tpu.memory_space<vmem>>, vector<72x36xbf16>
    %c0_49 = arith.constant 0 : index
    %c0_50 = arith.constant 0 : index
    %75 = vector.load %arg6[%c0_49, %c0_50] : memref<1x36xf32, #tpu.memory_space<vmem>>, vector<1x36xf32>
    %c0_51 = arith.constant 0 : index
    %c0_52 = arith.constant 0 : index
    %76 = vector.load %arg7[%c0_51, %c0_52] : memref<1x36xf32, #tpu.memory_space<vmem>>, vector<1x36xf32>
    %77 = arith.truncf %73 : vector<2x72xf32> to vector<2x72xbf16>
    %cst_53 = arith.constant dense<0.000000e+00> : vector<2x36xf32>
    %78 = tpu.matmul %77, %74, %cst_53 {dimension_numbers = #tpu.dot_dimension_numbers<[1], [0], [0], [1], [0, 0, 1, 1], [], []>} : vector<2x72xbf16>, vector<72x36xbf16>, vector<2x36xf32> -> vector<2x36xf32>
    %79 = vector.broadcast %75 : vector<1x36xf32> to vector<2x36xf32>
    %80 = arith.addf %78, %79 : vector<2x36xf32>
    %cst_54 = arith.constant 0.000000e+00 : f32
    %81 = vector.broadcast %cst_54 : f32 to vector<2x36xf32>
    %82 = arith.cmpf oge, %80, %81 : vector<2x36xf32>
    %83 = vector.broadcast %76 : vector<1x36xf32> to vector<2x36xf32>
    %84 = arith.mulf %80, %83 : vector<2x36xf32>
    %85 = arith.select %82, %80, %84 : vector<2x36xi1>, vector<2x36xf32>
    %c0_55 = arith.constant 0 : index
    %c0_56 = arith.constant 0 : index
    %86 = vector.load %arg8[%c0_55, %c0_56] : memref<36x72xbf16, #tpu.memory_space<vmem>>, vector<36x72xbf16>
    %c0_57 = arith.constant 0 : index
    %c0_58 = arith.constant 0 : index
    %87 = vector.load %arg9[%c0_57, %c0_58] : memref<1x72xf32, #tpu.memory_space<vmem>>, vector<1x72xf32>
    %c0_59 = arith.constant 0 : index
    %c0_60 = arith.constant 0 : index
    %88 = vector.load %arg10[%c0_59, %c0_60] : memref<1x72xf32, #tpu.memory_space<vmem>>, vector<1x72xf32>
    %89 = arith.truncf %85 : vector<2x36xf32> to vector<2x36xbf16>
    %cst_61 = arith.constant dense<0.000000e+00> : vector<2x72xf32>
    %90 = tpu.matmul %89, %86, %cst_61 {dimension_numbers = #tpu.dot_dimension_numbers<[1], [0], [0], [1], [0, 0, 1, 1], [], []>} : vector<2x36xbf16>, vector<36x72xbf16>, vector<2x72xf32> -> vector<2x72xf32>
    %91 = vector.broadcast %87 : vector<1x72xf32> to vector<2x72xf32>
    %92 = arith.addf %90, %91 : vector<2x72xf32>
    %cst_62 = arith.constant 0.000000e+00 : f32
    %93 = vector.broadcast %cst_62 : f32 to vector<2x72xf32>
    %94 = arith.cmpf oge, %92, %93 : vector<2x72xf32>
    %95 = vector.broadcast %88 : vector<1x72xf32> to vector<2x72xf32>
    %96 = arith.mulf %92, %95 : vector<2x72xf32>
    %97 = arith.select %94, %92, %96 : vector<2x72xi1>, vector<2x72xf32>
    %c0_63 = arith.constant 0 : index
    %c0_64 = arith.constant 0 : index
    %98 = vector.load %arg4[%c0_63, %c0_64] : memref<8x2xbf16, #tpu.memory_space<vmem>>, vector<8x2xbf16>
    %99 = arith.truncf %97 : vector<2x72xf32> to vector<2x72xbf16>
    %cst_65 = arith.constant dense<0.000000e+00> : vector<8x72xf32>
    %100 = tpu.matmul %98, %99, %cst_65 {dimension_numbers = #tpu.dot_dimension_numbers<[1], [0], [0], [1], [0, 0, 1, 1], [], []>} : vector<8x2xbf16>, vector<2x72xbf16>, vector<8x72xf32> -> vector<8x72xf32>
    %101 = arith.mulf %70, %100 : vector<8x72xf32>
    %c0_66 = arith.constant 0 : index
    %c0_67 = arith.constant 0 : index
    %102 = vector.load %arg11[%c0_66, %c0_67] : memref<72x48xbf16, #tpu.memory_space<vmem>>, vector<72x48xbf16>
    %103 = arith.truncf %101 : vector<8x72xf32> to vector<8x72xbf16>
    %cst_68 = arith.constant dense<0.000000e+00> : vector<8x48xf32>
    %104 = tpu.matmul %103, %102, %cst_68 {dimension_numbers = #tpu.dot_dimension_numbers<[1], [0], [0], [1], [0, 0, 1, 1], [], []>} : vector<8x72xbf16>, vector<72x48xbf16>, vector<8x48xf32> -> vector<8x48xf32>
    %c0_69 = arith.constant 0 : index
    %c0_70 = arith.constant 0 : index
    %105 = vector.load %arg12[%c0_69, %c0_70] : memref<1x48xf32, #tpu.memory_space<vmem>>, vector<1x48xf32>
    %106 = vector.broadcast %105 : vector<1x48xf32> to vector<8x48xf32>
    %107 = arith.mulf %104, %106 : vector<8x48xf32>
    %c0_71 = arith.constant 0 : index
    %c0_72 = arith.constant 0 : index
    %108 = vector.load %arg13[%c0_71, %c0_72] : memref<1x48xf32, #tpu.memory_space<vmem>>, vector<1x48xf32>
    %109 = vector.broadcast %108 : vector<1x48xf32> to vector<8x48xf32>
    %110 = arith.addf %107, %109 : vector<8x48xf32>
    %c0_73 = arith.constant 0 : index
    %c0_74 = arith.constant 0 : index
    %111 = vector.load %arg14[%c0_73, %c0_74] : memref<1x48xf32, #tpu.memory_space<vmem>>, vector<1x48xf32>
    %cst_75 = arith.constant 0.000000e+00 : f32
    %112 = vector.broadcast %cst_75 : f32 to vector<8x48xf32>
    %113 = arith.cmpf oge, %110, %112 : vector<8x48xf32>
    %114 = vector.broadcast %111 : vector<1x48xf32> to vector<8x48xf32>
    %115 = arith.mulf %110, %114 : vector<8x48xf32>
    %116 = arith.select %113, %110, %115 : vector<8x48xi1>, vector<8x48xf32>
    %c0_76 = arith.constant 0 : index
    %c0_77 = arith.constant 0 : index
    %117 = vector.load %arg15[%c0_76, %c0_77] : memref<1x48xf32, #tpu.memory_space<vmem>>, vector<1x48xf32>
    %c0_78 = arith.constant 0 : index
    %c0_79 = arith.constant 0 : index
    %118 = vector.load %arg16[%c0_78, %c0_79] : memref<1x48xf32, #tpu.memory_space<vmem>>, vector<1x48xf32>
    %c0_80 = arith.constant 0 : index
    %c0_81 = arith.constant 0 : index
    %119 = vector.load %arg17[%c0_80, %c0_81] : memref<1x48xf32, #tpu.memory_space<vmem>>, vector<1x48xf32>
    %120 = vector.broadcast %117 : vector<1x48xf32> to vector<8x48xf32>
    %121 = arith.mulf %116, %120 : vector<8x48xf32>
    %122 = vector.broadcast %118 : vector<1x48xf32> to vector<8x48xf32>
    %123 = arith.addf %121, %122 : vector<8x48xf32>
    %cst_82 = arith.constant 0.000000e+00 : f32
    %124 = vector.broadcast %cst_82 : f32 to vector<8x48xf32>
    %125 = arith.cmpf oge, %123, %124 : vector<8x48xf32>
    %126 = vector.broadcast %119 : vector<1x48xf32> to vector<8x48xf32>
    %127 = arith.mulf %123, %126 : vector<8x48xf32>
    %128 = arith.select %125, %123, %127 : vector<8x48xi1>, vector<8x48xf32>
    %129 = arith.truncf %116 : vector<8x48xf32> to vector<8x48xbf16>
    %c0_83 = arith.constant 0 : index
    %c0_84 = arith.constant 0 : index
    %130 = vector.load %arg18[%c0_83, %c0_84] : memref<8x48xbf16, #tpu.memory_space<vmem>>, vector<8x48xbf16>
    tpu.vector_store %arg18[%c0_83, %c0_84], %129 {strides = array<i32>} : memref<8x48xbf16, #tpu.memory_space<vmem>>, vector<8x48xbf16>,
    %131 = arith.truncf %128 : vector<8x48xf32> to vector<8x48xbf16>
    %c0_85 = arith.constant 0 : index
    %c0_86 = arith.constant 0 : index
    %132 = vector.load %arg19[%c0_85, %c0_86] : memref<8x48xbf16, #tpu.memory_space<vmem>>, vector<8x48xbf16>
    tpu.vector_store %arg19[%c0_85, %c0_86], %131 {strides = array<i32>} : memref<8x48xbf16, #tpu.memory_space<vmem>>, vector<8x48xbf16>,
    return
  }
  func.func @transform_0(%arg0: i32) -> (i32, i32, i32) {
    %c0_i32 = arith.constant 0 : i32
    %c0_i32_0 = arith.constant 0 : i32
    %c0_i32_1 = arith.constant 0 : i32
    %c0_i32_2 = arith.constant 0 : i32
    return %c0_i32, %c0_i32_0, %c0_i32_1 : i32, i32, i32
  }
  func.func @transform_1(%arg0: i32) -> (i32, i32, i32) {
    %c0_i32 = arith.constant 0 : i32
    %c0_i32_0 = arith.constant 0 : i32
    %c0_i32_1 = arith.constant 0 : i32
    %c0_i32_2 = arith.constant 0 : i32
    return %c0_i32, %c0_i32_0, %c0_i32_1 : i32, i32, i32
  }
  func.func @transform_2(%arg0: i32) -> (i32, i32) {
    %c0_i32 = arith.constant 0 : i32
    %c0_i32_0 = arith.constant 0 : i32
    %c0_i32_1 = arith.constant 0 : i32
    return %c0_i32, %c0_i32_0 : i32, i32
  }
  func.func @transform_3(%arg0: i32) -> (i32, i32) {
    %c0_i32 = arith.constant 0 : i32
    %c0_i32_0 = arith.constant 0 : i32
    %c0_i32_1 = arith.constant 0 : i32
    return %c0_i32, %c0_i32_0 : i32, i32
  }
  func.func @transform_4(%arg0: i32) -> (i32, i32) {
    %c0_i32 = arith.constant 0 : i32
    %c0_i32_0 = arith.constant 0 : i32
    %c0_i32_1 = arith.constant 0 : i32
    return %c0_i32, %c0_i32_0 : i32, i32
  }
  func.func @transform_5(%arg0: i32) -> (i32, i32) {
    %c0_i32 = arith.constant 0 : i32
    %c0_i32_0 = arith.constant 0 : i32
    %c0_i32_1 = arith.constant 0 : i32
    return %c0_i32, %c0_i32_0 : i32, i32
  }
  func.func @transform_6(%arg0: i32) -> (i32, i32) {
    %c0_i32 = arith.constant 0 : i32
    %c0_i32_0 = arith.constant 0 : i32
    %c0_i32_1 = arith.constant 0 : i32
    return %c0_i32, %c0_i32_0 : i32, i32
  }
  func.func @transform_7(%arg0: i32) -> (i32, i32) {
    %c0_i32 = arith.constant 0 : i32
    %c0_i32_0 = arith.constant 0 : i32
    %c0_i32_1 = arith.constant 0 : i32
    return %c0_i32, %c0_i32_0 : i32, i32
  }
  func.func @transform_8(%arg0: i32) -> (i32, i32) {
    %c0_i32 = arith.constant 0 : i32
    %c0_i32_0 = arith.constant 0 : i32
    %c0_i32_1 = arith.constant 0 : i32
    return %c0_i32, %c0_i32_0 : i32, i32
  }
  func.func @transform_9(%arg0: i32) -> (i32, i32) {
    %c0_i32 = arith.constant 0 : i32
    %c0_i32_0 = arith.constant 0 : i32
    %c0_i32_1 = arith.constant 0 : i32
    return %c0_i32, %c0_i32_0 : i32, i32
  }
  func.func @transform_10(%arg0: i32) -> (i32, i32) {
    %c0_i32 = arith.constant 0 : i32
    %c0_i32_0 = arith.constant 0 : i32
    %c0_i32_1 = arith.constant 0 : i32
    return %c0_i32, %c0_i32_0 : i32, i32
  }
  func.func @transform_11(%arg0: i32) -> (i32, i32) {
    %c0_i32 = arith.constant 0 : i32
    %c0_i32_0 = arith.constant 0 : i32
    %c0_i32_1 = arith.constant 0 : i32
    return %c0_i32, %c0_i32_0 : i32, i32
  }
  func.func @transform_12(%arg0: i32) -> (i32, i32) {
    %c0_i32 = arith.constant 0 : i32
    %c0_i32_0 = arith.constant 0 : i32
    %c0_i32_1 = arith.constant 0 : i32
    return %c0_i32, %c0_i32_0 : i32, i32
  }
  func.func @transform_13(%arg0: i32) -> (i32, i32) {
    %c0_i32 = arith.constant 0 : i32
    %c0_i32_0 = arith.constant 0 : i32
    %c0_i32_1 = arith.constant 0 : i32
    return %c0_i32, %c0_i32_0 : i32, i32
  }
  func.func @transform_14(%arg0: i32) -> (i32, i32) {
    %c0_i32 = arith.constant 0 : i32
    %c0_i32_0 = arith.constant 0 : i32
    %c0_i32_1 = arith.constant 0 : i32
    return %c0_i32, %c0_i32_0 : i32, i32
  }
  func.func @transform_15(%arg0: i32) -> (i32, i32) {
    %c0_i32 = arith.constant 0 : i32
    %c0_i32_0 = arith.constant 0 : i32
    %c0_i32_1 = arith.constant 0 : i32
    return %c0_i32, %c0_i32_0 : i32, i32
  }
  func.func @transform_16(%arg0: i32) -> (i32, i32) {
    %c0_i32 = arith.constant 0 : i32
    %c0_i32_0 = arith.constant 0 : i32
    %c0_i32_1 = arith.constant 0 : i32
    return %c0_i32, %c0_i32_0 : i32, i32
  }
  func.func @transform_17(%arg0: i32) -> (i32, i32) {
    %c0_i32 = arith.constant 0 : i32
    %c0_i32_0 = arith.constant 0 : i32
    %c0_i32_1 = arith.constant 0 : i32
    return %c0_i32, %c0_i32_0 : i32, i32
  }
  func.func @transform_18(%arg0: i32) -> (i32, i32) {
    %c0_i32 = arith.constant 0 : i32
    %c0_i32_0 = arith.constant 0 : i32
    %c0_i32_1 = arith.constant 0 : i32
    return %c0_i32, %c0_i32_0 : i32, i32
  }
}

module attributes {stable_mosaic.version = 11 : i64} {
  func.func @_sb_module_kernel(%arg0: i32, %arg1: memref<8x48xbf16, #tpu.memory_space<vmem>>, %arg2: memref<48x36xbf16, #tpu.memory_space<vmem>>, %arg3: memref<6x8x36xf32, #tpu.memory_space<vmem>>, %arg4: memref<1x36xf32, #tpu.memory_space<vmem>>, %arg5: memref<1x36xf32, #tpu.memory_space<vmem>>, %arg6: memref<36x72xbf16, #tpu.memory_space<vmem>>, %arg7: memref<10x8x36xf32, #tpu.memory_space<vmem>>, %arg8: memref<1x36xf32, #tpu.memory_space<vmem>>, %arg9: memref<1x36xf32, #tpu.memory_space<vmem>>, %arg10: memref<36x72xbf16, #tpu.memory_space<vmem>>, %arg11: memref<1x72xf32, #tpu.memory_space<vmem>>, %arg12: memref<1x72xf32, #tpu.memory_space<vmem>>, %arg13: memref<1x72xf32, #tpu.memory_space<vmem>>, %arg14: memref<8x72xbf16, #tpu.memory_space<vmem>>, %arg15: memref<24x36xf32, #tpu.memory_space<vmem>>) attributes {dimension_semantics = [#tpu.dimension_semantics<arbitrary>], iteration_bounds = array<i64: 1>, scalar_prefetch = 0 : i64, scratch_operands = 1 : i64, tpu.core_type = #tpu.core_type<tc>, window_params = [{pipeline_mode = #tpu.pipeline_mode<synchronous>, transform_indices = @transform_0, window_bounds = array<i64: 8, 48>}, {pipeline_mode = #tpu.pipeline_mode<synchronous>, transform_indices = @transform_1, window_bounds = array<i64: 48, 36>}, {pipeline_mode = #tpu.pipeline_mode<synchronous>, transform_indices = @transform_2, window_bounds = array<i64: 6, 8, 36>}, {pipeline_mode = #tpu.pipeline_mode<synchronous>, transform_indices = @transform_3, window_bounds = array<i64: 1, 36>}, {pipeline_mode = #tpu.pipeline_mode<synchronous>, transform_indices = @transform_4, window_bounds = array<i64: 1, 36>}, {pipeline_mode = #tpu.pipeline_mode<synchronous>, transform_indices = @transform_5, window_bounds = array<i64: 36, 72>}, {pipeline_mode = #tpu.pipeline_mode<synchronous>, transform_indices = @transform_6, window_bounds = array<i64: 10, 8, 36>}, {pipeline_mode = #tpu.pipeline_mode<synchronous>, transform_indices = @transform_7, window_bounds = array<i64: 1, 36>}, {pipeline_mode = #tpu.pipeline_mode<synchronous>, transform_indices = @transform_8, window_bounds = array<i64: 1, 36>}, {pipeline_mode = #tpu.pipeline_mode<synchronous>, transform_indices = @transform_9, window_bounds = array<i64: 36, 72>}, {pipeline_mode = #tpu.pipeline_mode<synchronous>, transform_indices = @transform_10, window_bounds = array<i64: 1, 72>}, {pipeline_mode = #tpu.pipeline_mode<synchronous>, transform_indices = @transform_11, window_bounds = array<i64: 1, 72>}, {pipeline_mode = #tpu.pipeline_mode<synchronous>, transform_indices = @transform_12, window_bounds = array<i64: 1, 72>}, {pipeline_mode = #tpu.pipeline_mode<synchronous>, transform_indices = @transform_13, window_bounds = array<i64: 8, 72>}]} {
    %c0 = arith.constant 0 : index
    %c0_0 = arith.constant 0 : index
    %0 = vector.load %arg1[%c0, %c0_0] : memref<8x48xbf16, #tpu.memory_space<vmem>>, vector<8x48xbf16>
    %c0_1 = arith.constant 0 : index
    %c0_2 = arith.constant 0 : index
    %1 = vector.load %arg2[%c0_1, %c0_2] : memref<48x36xbf16, #tpu.memory_space<vmem>>, vector<48x36xbf16>
    %cst = arith.constant dense<0.000000e+00> : vector<8x36xf32>
    %2 = tpu.matmul %0, %1, %cst {dimension_numbers = #tpu.dot_dimension_numbers<[1], [0], [0], [1], [0, 0, 1, 1], [], []>} : vector<8x48xbf16>, vector<48x36xbf16>, vector<8x36xf32> -> vector<8x36xf32>
    %cst_3 = arith.constant 0.000000e+00 : f32
    %3 = vector.broadcast %cst_3 : f32 to vector<24x36xf32>
    %c0_4 = arith.constant 0 : index
    %c0_5 = arith.constant 0 : index
    %4 = vector.load %arg15[%c0_4, %c0_5] : memref<24x36xf32, #tpu.memory_space<vmem>>, vector<24x36xf32>
    tpu.vector_store %arg15[%c0_4, %c0_5], %3 {strides = array<i32>} : memref<24x36xf32, #tpu.memory_space<vmem>>, vector<24x36xf32>,
    %c8 = arith.constant 8 : index
    %c0_6 = arith.constant 0 : index
    %5 = vector.load %arg15[%c8, %c0_6] : memref<24x36xf32, #tpu.memory_space<vmem>>, vector<8x36xf32>
    tpu.vector_store %arg15[%c8, %c0_6], %2 {strides = array<i32>} : memref<24x36xf32, #tpu.memory_space<vmem>>, vector<8x36xf32>,
    %c6 = arith.constant 6 : index
    %c0_7 = arith.constant 0 : index
    %6 = vector.load %arg15[%c6, %c0_7] : memref<24x36xf32, #tpu.memory_space<vmem>>, vector<8x36xf32>
    %c0_8 = arith.constant 0 : index
    %c0_9 = arith.constant 0 : index
    %c0_10 = arith.constant 0 : index
    %7 = vector.load %arg3[%c0_8, %c0_9, %c0_10] : memref<6x8x36xf32, #tpu.memory_space<vmem>>, vector<1x8x36xf32>
    %8 = vector.shape_cast %7 : vector<1x8x36xf32> to vector<8x36xf32>
    %9 = arith.mulf %6, %8 : vector<8x36xf32>
    %c8_11 = arith.constant 8 : index
    %c0_12 = arith.constant 0 : index
    %10 = vector.load %arg15[%c8_11, %c0_12] : memref<24x36xf32, #tpu.memory_space<vmem>>, vector<8x36xf32>
    %c1 = arith.constant 1 : index
    %c0_13 = arith.constant 0 : index
    %c0_14 = arith.constant 0 : index
    %11 = vector.load %arg3[%c1, %c0_13, %c0_14] : memref<6x8x36xf32, #tpu.memory_space<vmem>>, vector<1x8x36xf32>
    %12 = vector.shape_cast %11 : vector<1x8x36xf32> to vector<8x36xf32>
    %13 = arith.mulf %10, %12 : vector<8x36xf32>
    %14 = arith.addf %9, %13 : vector<8x36xf32>
    %c10 = arith.constant 10 : index
    %c0_15 = arith.constant 0 : index
    %15 = vector.load %arg15[%c10, %c0_15] : memref<24x36xf32, #tpu.memory_space<vmem>>, vector<8x36xf32>
    %c2 = arith.constant 2 : index
    %c0_16 = arith.constant 0 : index
    %c0_17 = arith.constant 0 : index
    %16 = vector.load %arg3[%c2, %c0_16, %c0_17] : memref<6x8x36xf32, #tpu.memory_space<vmem>>, vector<1x8x36xf32>
    %17 = vector.shape_cast %16 : vector<1x8x36xf32> to vector<8x36xf32>
    %18 = arith.mulf %15, %17 : vector<8x36xf32>
    %19 = arith.addf %14, %18 : vector<8x36xf32>
    %c7 = arith.constant 7 : index
    %c0_18 = arith.constant 0 : index
    %20 = vector.load %arg15[%c7, %c0_18] : memref<24x36xf32, #tpu.memory_space<vmem>>, vector<8x36xf32>
    %c3 = arith.constant 3 : index
    %c0_19 = arith.constant 0 : index
    %c0_20 = arith.constant 0 : index
    %21 = vector.load %arg3[%c3, %c0_19, %c0_20] : memref<6x8x36xf32, #tpu.memory_space<vmem>>, vector<1x8x36xf32>
    %22 = vector.shape_cast %21 : vector<1x8x36xf32> to vector<8x36xf32>
    %23 = arith.mulf %20, %22 : vector<8x36xf32>
    %24 = arith.addf %19, %23 : vector<8x36xf32>
    %c8_21 = arith.constant 8 : index
    %c0_22 = arith.constant 0 : index
    %25 = vector.load %arg15[%c8_21, %c0_22] : memref<24x36xf32, #tpu.memory_space<vmem>>, vector<8x36xf32>
    %c4 = arith.constant 4 : index
    %c0_23 = arith.constant 0 : index
    %c0_24 = arith.constant 0 : index
    %26 = vector.load %arg3[%c4, %c0_23, %c0_24] : memref<6x8x36xf32, #tpu.memory_space<vmem>>, vector<1x8x36xf32>
    %27 = vector.shape_cast %26 : vector<1x8x36xf32> to vector<8x36xf32>
    %28 = arith.mulf %25, %27 : vector<8x36xf32>
    %29 = arith.addf %24, %28 : vector<8x36xf32>
    %c9 = arith.constant 9 : index
    %c0_25 = arith.constant 0 : index
    %30 = vector.load %arg15[%c9, %c0_25] : memref<24x36xf32, #tpu.memory_space<vmem>>, vector<8x36xf32>
    %c5 = arith.constant 5 : index
    %c0_26 = arith.constant 0 : index
    %c0_27 = arith.constant 0 : index
    %31 = vector.load %arg3[%c5, %c0_26, %c0_27] : memref<6x8x36xf32, #tpu.memory_space<vmem>>, vector<1x8x36xf32>
    %32 = vector.shape_cast %31 : vector<1x8x36xf32> to vector<8x36xf32>
    %33 = arith.mulf %30, %32 : vector<8x36xf32>
    %34 = arith.addf %29, %33 : vector<8x36xf32>
    %c0_28 = arith.constant 0 : index
    %c0_29 = arith.constant 0 : index
    %35 = vector.load %arg4[%c0_28, %c0_29] : memref<1x36xf32, #tpu.memory_space<vmem>>, vector<1x36xf32>
    %36 = vector.broadcast %35 : vector<1x36xf32> to vector<8x36xf32>
    %37 = arith.addf %34, %36 : vector<8x36xf32>
    %cst_30 = arith.constant 0.000000e+00 : f32
    %38 = vector.broadcast %cst_30 : f32 to vector<8x36xf32>
    %39 = arith.cmpf oge, %37, %38 : vector<8x36xf32>
    %c0_31 = arith.constant 0 : index
    %c0_32 = arith.constant 0 : index
    %40 = vector.load %arg5[%c0_31, %c0_32] : memref<1x36xf32, #tpu.memory_space<vmem>>, vector<1x36xf32>
    %41 = vector.broadcast %40 : vector<1x36xf32> to vector<8x36xf32>
    %42 = arith.mulf %37, %41 : vector<8x36xf32>
    %43 = arith.select %39, %37, %42 : vector<8x36xi1>, vector<8x36xf32>
    %44 = arith.truncf %43 : vector<8x36xf32> to vector<8x36xbf16>
    %c4_33 = arith.constant 4 : index
    %c0_34 = arith.constant 0 : index
    %45 = vector.load %arg15[%c4_33, %c0_34] : memref<24x36xf32, #tpu.memory_space<vmem>>, vector<8x36xf32>
    %c0_35 = arith.constant 0 : index
    %c0_36 = arith.constant 0 : index
    %c0_37 = arith.constant 0 : index
    %46 = vector.load %arg7[%c0_35, %c0_36, %c0_37] : memref<10x8x36xf32, #tpu.memory_space<vmem>>, vector<1x8x36xf32>
    %47 = vector.shape_cast %46 : vector<1x8x36xf32> to vector<8x36xf32>
    %48 = arith.mulf %45, %47 : vector<8x36xf32>
    %c6_38 = arith.constant 6 : index
    %c0_39 = arith.constant 0 : index
    %49 = vector.load %arg15[%c6_38, %c0_39] : memref<24x36xf32, #tpu.memory_space<vmem>>, vector<8x36xf32>
    %c1_40 = arith.constant 1 : index
    %c0_41 = arith.constant 0 : index
    %c0_42 = arith.constant 0 : index
    %50 = vector.load %arg7[%c1_40, %c0_41, %c0_42] : memref<10x8x36xf32, #tpu.memory_space<vmem>>, vector<1x8x36xf32>
    %51 = vector.shape_cast %50 : vector<1x8x36xf32> to vector<8x36xf32>
    %52 = arith.mulf %49, %51 : vector<8x36xf32>
    %53 = arith.addf %48, %52 : vector<8x36xf32>
    %c8_43 = arith.constant 8 : index
    %c0_44 = arith.constant 0 : index
    %54 = vector.load %arg15[%c8_43, %c0_44] : memref<24x36xf32, #tpu.memory_space<vmem>>, vector<8x36xf32>
    %c2_45 = arith.constant 2 : index
    %c0_46 = arith.constant 0 : index
    %c0_47 = arith.constant 0 : index
    %55 = vector.load %arg7[%c2_45, %c0_46, %c0_47] : memref<10x8x36xf32, #tpu.memory_space<vmem>>, vector<1x8x36xf32>
    %56 = vector.shape_cast %55 : vector<1x8x36xf32> to vector<8x36xf32>
    %57 = arith.mulf %54, %56 : vector<8x36xf32>
    %58 = arith.addf %53, %57 : vector<8x36xf32>
    %c10_48 = arith.constant 10 : index
    %c0_49 = arith.constant 0 : index
    %59 = vector.load %arg15[%c10_48, %c0_49] : memref<24x36xf32, #tpu.memory_space<vmem>>, vector<8x36xf32>
    %c3_50 = arith.constant 3 : index
    %c0_51 = arith.constant 0 : index
    %c0_52 = arith.constant 0 : index
    %60 = vector.load %arg7[%c3_50, %c0_51, %c0_52] : memref<10x8x36xf32, #tpu.memory_space<vmem>>, vector<1x8x36xf32>
    %61 = vector.shape_cast %60 : vector<1x8x36xf32> to vector<8x36xf32>
    %62 = arith.mulf %59, %61 : vector<8x36xf32>
    %63 = arith.addf %58, %62 : vector<8x36xf32>
    %c12 = arith.constant 12 : index
    %c0_53 = arith.constant 0 : index
    %64 = vector.load %arg15[%c12, %c0_53] : memref<24x36xf32, #tpu.memory_space<vmem>>, vector<8x36xf32>
    %c4_54 = arith.constant 4 : index
    %c0_55 = arith.constant 0 : index
    %c0_56 = arith.constant 0 : index
    %65 = vector.load %arg7[%c4_54, %c0_55, %c0_56] : memref<10x8x36xf32, #tpu.memory_space<vmem>>, vector<1x8x36xf32>
    %66 = vector.shape_cast %65 : vector<1x8x36xf32> to vector<8x36xf32>
    %67 = arith.mulf %64, %66 : vector<8x36xf32>
    %68 = arith.addf %63, %67 : vector<8x36xf32>
    %c6_57 = arith.constant 6 : index
    %c0_58 = arith.constant 0 : index
    %69 = vector.load %arg15[%c6_57, %c0_58] : memref<24x36xf32, #tpu.memory_space<vmem>>, vector<8x36xf32>
    %c5_59 = arith.constant 5 : index
    %c0_60 = arith.constant 0 : index
    %c0_61 = arith.constant 0 : index
    %70 = vector.load %arg7[%c5_59, %c0_60, %c0_61] : memref<10x8x36xf32, #tpu.memory_space<vmem>>, vector<1x8x36xf32>
    %71 = vector.shape_cast %70 : vector<1x8x36xf32> to vector<8x36xf32>
    %72 = arith.mulf %69, %71 : vector<8x36xf32>
    %73 = arith.addf %68, %72 : vector<8x36xf32>
    %c7_62 = arith.constant 7 : index
    %c0_63 = arith.constant 0 : index
    %74 = vector.load %arg15[%c7_62, %c0_63] : memref<24x36xf32, #tpu.memory_space<vmem>>, vector<8x36xf32>
    %c6_64 = arith.constant 6 : index
    %c0_65 = arith.constant 0 : index
    %c0_66 = arith.constant 0 : index
    %75 = vector.load %arg7[%c6_64, %c0_65, %c0_66] : memref<10x8x36xf32, #tpu.memory_space<vmem>>, vector<1x8x36xf32>
    %76 = vector.shape_cast %75 : vector<1x8x36xf32> to vector<8x36xf32>
    %77 = arith.mulf %74, %76 : vector<8x36xf32>
    %78 = arith.addf %73, %77 : vector<8x36xf32>
    %c8_67 = arith.constant 8 : index
    %c0_68 = arith.constant 0 : index
    %79 = vector.load %arg15[%c8_67, %c0_68] : memref<24x36xf32, #tpu.memory_space<vmem>>, vector<8x36xf32>
    %c7_69 = arith.constant 7 : index
    %c0_70 = arith.constant 0 : index
    %c0_71 = arith.constant 0 : index
    %80 = vector.load %arg7[%c7_69, %c0_70, %c0_71] : memref<10x8x36xf32, #tpu.memory_space<vmem>>, vector<1x8x36xf32>
    %81 = vector.shape_cast %80 : vector<1x8x36xf32> to vector<8x36xf32>
    %82 = arith.mulf %79, %81 : vector<8x36xf32>
    %83 = arith.addf %78, %82 : vector<8x36xf32>
    %c9_72 = arith.constant 9 : index
    %c0_73 = arith.constant 0 : index
    %84 = vector.load %arg15[%c9_72, %c0_73] : memref<24x36xf32, #tpu.memory_space<vmem>>, vector<8x36xf32>
    %c8_74 = arith.constant 8 : index
    %c0_75 = arith.constant 0 : index
    %c0_76 = arith.constant 0 : index
    %85 = vector.load %arg7[%c8_74, %c0_75, %c0_76] : memref<10x8x36xf32, #tpu.memory_space<vmem>>, vector<1x8x36xf32>
    %86 = vector.shape_cast %85 : vector<1x8x36xf32> to vector<8x36xf32>
    %87 = arith.mulf %84, %86 : vector<8x36xf32>
    %88 = arith.addf %83, %87 : vector<8x36xf32>
    %c10_77 = arith.constant 10 : index
    %c0_78 = arith.constant 0 : index
    %89 = vector.load %arg15[%c10_77, %c0_78] : memref<24x36xf32, #tpu.memory_space<vmem>>, vector<8x36xf32>
    %c9_79 = arith.constant 9 : index
    %c0_80 = arith.constant 0 : index
    %c0_81 = arith.constant 0 : index
    %90 = vector.load %arg7[%c9_79, %c0_80, %c0_81] : memref<10x8x36xf32, #tpu.memory_space<vmem>>, vector<1x8x36xf32>
    %91 = vector.shape_cast %90 : vector<1x8x36xf32> to vector<8x36xf32>
    %92 = arith.mulf %89, %91 : vector<8x36xf32>
    %93 = arith.addf %88, %92 : vector<8x36xf32>
    %c0_82 = arith.constant 0 : index
    %c0_83 = arith.constant 0 : index
    %94 = vector.load %arg8[%c0_82, %c0_83] : memref<1x36xf32, #tpu.memory_space<vmem>>, vector<1x36xf32>
    %95 = vector.broadcast %94 : vector<1x36xf32> to vector<8x36xf32>
    %96 = arith.addf %93, %95 : vector<8x36xf32>
    %cst_84 = arith.constant 0.000000e+00 : f32
    %97 = vector.broadcast %cst_84 : f32 to vector<8x36xf32>
    %98 = arith.cmpf oge, %96, %97 : vector<8x36xf32>
    %c0_85 = arith.constant 0 : index
    %c0_86 = arith.constant 0 : index
    %99 = vector.load %arg9[%c0_85, %c0_86] : memref<1x36xf32, #tpu.memory_space<vmem>>, vector<1x36xf32>
    %100 = vector.broadcast %99 : vector<1x36xf32> to vector<8x36xf32>
    %101 = arith.mulf %96, %100 : vector<8x36xf32>
    %102 = arith.select %98, %96, %101 : vector<8x36xi1>, vector<8x36xf32>
    %103 = arith.truncf %102 : vector<8x36xf32> to vector<8x36xbf16>
    %c0_87 = arith.constant 0 : index
    %c0_88 = arith.constant 0 : index
    %104 = vector.load %arg6[%c0_87, %c0_88] : memref<36x72xbf16, #tpu.memory_space<vmem>>, vector<36x72xbf16>
    %cst_89 = arith.constant dense<0.000000e+00> : vector<8x72xf32>
    %105 = tpu.matmul %44, %104, %cst_89 {dimension_numbers = #tpu.dot_dimension_numbers<[1], [0], [0], [1], [0, 0, 1, 1], [], []>} : vector<8x36xbf16>, vector<36x72xbf16>, vector<8x72xf32> -> vector<8x72xf32>
    %c0_90 = arith.constant 0 : index
    %c0_91 = arith.constant 0 : index
    %106 = vector.load %arg10[%c0_90, %c0_91] : memref<36x72xbf16, #tpu.memory_space<vmem>>, vector<36x72xbf16>
    %cst_92 = arith.constant dense<0.000000e+00> : vector<8x72xf32>
    %107 = tpu.matmul %103, %106, %cst_92 {dimension_numbers = #tpu.dot_dimension_numbers<[1], [0], [0], [1], [0, 0, 1, 1], [], []>} : vector<8x36xbf16>, vector<36x72xbf16>, vector<8x72xf32> -> vector<8x72xf32>
    %108 = arith.addf %105, %107 : vector<8x72xf32>
    %c0_93 = arith.constant 0 : index
    %c0_94 = arith.constant 0 : index
    %109 = vector.load %arg11[%c0_93, %c0_94] : memref<1x72xf32, #tpu.memory_space<vmem>>, vector<1x72xf32>
    %110 = vector.broadcast %109 : vector<1x72xf32> to vector<8x72xf32>
    %111 = arith.mulf %108, %110 : vector<8x72xf32>
    %c0_95 = arith.constant 0 : index
    %c0_96 = arith.constant 0 : index
    %112 = vector.load %arg12[%c0_95, %c0_96] : memref<1x72xf32, #tpu.memory_space<vmem>>, vector<1x72xf32>
    %113 = vector.broadcast %112 : vector<1x72xf32> to vector<8x72xf32>
    %114 = arith.addf %111, %113 : vector<8x72xf32>
    %cst_97 = arith.constant 0.000000e+00 : f32
    %115 = vector.broadcast %cst_97 : f32 to vector<8x72xf32>
    %116 = arith.cmpf oge, %114, %115 : vector<8x72xf32>
    %c0_98 = arith.constant 0 : index
    %c0_99 = arith.constant 0 : index
    %117 = vector.load %arg13[%c0_98, %c0_99] : memref<1x72xf32, #tpu.memory_space<vmem>>, vector<1x72xf32>
    %118 = vector.broadcast %117 : vector<1x72xf32> to vector<8x72xf32>
    %119 = arith.mulf %114, %118 : vector<8x72xf32>
    %120 = arith.select %116, %114, %119 : vector<8x72xi1>, vector<8x72xf32>
    %121 = arith.truncf %120 : vector<8x72xf32> to vector<8x72xbf16>
    %c0_100 = arith.constant 0 : index
    %c0_101 = arith.constant 0 : index
    %122 = vector.load %arg14[%c0_100, %c0_101] : memref<8x72xbf16, #tpu.memory_space<vmem>>, vector<8x72xbf16>
    tpu.vector_store %arg14[%c0_100, %c0_101], %121 {strides = array<i32>} : memref<8x72xbf16, #tpu.memory_space<vmem>>, vector<8x72xbf16>,
    return
  }
  func.func @transform_0(%arg0: i32) -> (i32, i32) {
    %c0_i32 = arith.constant 0 : i32
    %c0_i32_0 = arith.constant 0 : i32
    %c0_i32_1 = arith.constant 0 : i32
    return %c0_i32, %c0_i32_0 : i32, i32
  }
  func.func @transform_1(%arg0: i32) -> (i32, i32) {
    %c0_i32 = arith.constant 0 : i32
    %c0_i32_0 = arith.constant 0 : i32
    %c0_i32_1 = arith.constant 0 : i32
    return %c0_i32, %c0_i32_0 : i32, i32
  }
  func.func @transform_2(%arg0: i32) -> (i32, i32, i32) {
    %c0_i32 = arith.constant 0 : i32
    %c0_i32_0 = arith.constant 0 : i32
    %c0_i32_1 = arith.constant 0 : i32
    %c0_i32_2 = arith.constant 0 : i32
    return %c0_i32, %c0_i32_0, %c0_i32_1 : i32, i32, i32
  }
  func.func @transform_3(%arg0: i32) -> (i32, i32) {
    %c0_i32 = arith.constant 0 : i32
    %c0_i32_0 = arith.constant 0 : i32
    %c0_i32_1 = arith.constant 0 : i32
    return %c0_i32, %c0_i32_0 : i32, i32
  }
  func.func @transform_4(%arg0: i32) -> (i32, i32) {
    %c0_i32 = arith.constant 0 : i32
    %c0_i32_0 = arith.constant 0 : i32
    %c0_i32_1 = arith.constant 0 : i32
    return %c0_i32, %c0_i32_0 : i32, i32
  }
  func.func @transform_5(%arg0: i32) -> (i32, i32) {
    %c0_i32 = arith.constant 0 : i32
    %c0_i32_0 = arith.constant 0 : i32
    %c0_i32_1 = arith.constant 0 : i32
    return %c0_i32, %c0_i32_0 : i32, i32
  }
  func.func @transform_6(%arg0: i32) -> (i32, i32, i32) {
    %c0_i32 = arith.constant 0 : i32
    %c0_i32_0 = arith.constant 0 : i32
    %c0_i32_1 = arith.constant 0 : i32
    %c0_i32_2 = arith.constant 0 : i32
    return %c0_i32, %c0_i32_0, %c0_i32_1 : i32, i32, i32
  }
  func.func @transform_7(%arg0: i32) -> (i32, i32) {
    %c0_i32 = arith.constant 0 : i32
    %c0_i32_0 = arith.constant 0 : i32
    %c0_i32_1 = arith.constant 0 : i32
    return %c0_i32, %c0_i32_0 : i32, i32
  }
  func.func @transform_8(%arg0: i32) -> (i32, i32) {
    %c0_i32 = arith.constant 0 : i32
    %c0_i32_0 = arith.constant 0 : i32
    %c0_i32_1 = arith.constant 0 : i32
    return %c0_i32, %c0_i32_0 : i32, i32
  }
  func.func @transform_9(%arg0: i32) -> (i32, i32) {
    %c0_i32 = arith.constant 0 : i32
    %c0_i32_0 = arith.constant 0 : i32
    %c0_i32_1 = arith.constant 0 : i32
    return %c0_i32, %c0_i32_0 : i32, i32
  }
  func.func @transform_10(%arg0: i32) -> (i32, i32) {
    %c0_i32 = arith.constant 0 : i32
    %c0_i32_0 = arith.constant 0 : i32
    %c0_i32_1 = arith.constant 0 : i32
    return %c0_i32, %c0_i32_0 : i32, i32
  }
  func.func @transform_11(%arg0: i32) -> (i32, i32) {
    %c0_i32 = arith.constant 0 : i32
    %c0_i32_0 = arith.constant 0 : i32
    %c0_i32_1 = arith.constant 0 : i32
    return %c0_i32, %c0_i32_0 : i32, i32
  }
  func.func @transform_12(%arg0: i32) -> (i32, i32) {
    %c0_i32 = arith.constant 0 : i32
    %c0_i32_0 = arith.constant 0 : i32
    %c0_i32_1 = arith.constant 0 : i32
    return %c0_i32, %c0_i32_0 : i32, i32
  }
  func.func @transform_13(%arg0: i32) -> (i32, i32) {
    %c0_i32 = arith.constant 0 : i32
    %c0_i32_0 = arith.constant 0 : i32
    %c0_i32_1 = arith.constant 0 : i32
    return %c0_i32, %c0_i32_0 : i32, i32
  }
}

module attributes {stable_mosaic.version = 11 : i64} {
  func.func @_sb_module_kernel(%arg0: i32, %arg1: memref<8x72xbf16, #tpu.memory_space<vmem>>, %arg2: memref<72x48xbf16, #tpu.memory_space<vmem>>, %arg3: memref<6x8x48xf32, #tpu.memory_space<vmem>>, %arg4: memref<1x48xf32, #tpu.memory_space<vmem>>, %arg5: memref<1x48xf32, #tpu.memory_space<vmem>>, %arg6: memref<48x96xbf16, #tpu.memory_space<vmem>>, %arg7: memref<9x8x48xf32, #tpu.memory_space<vmem>>, %arg8: memref<1x48xf32, #tpu.memory_space<vmem>>, %arg9: memref<1x48xf32, #tpu.memory_space<vmem>>, %arg10: memref<48x96xbf16, #tpu.memory_space<vmem>>, %arg11: memref<1x96xf32, #tpu.memory_space<vmem>>, %arg12: memref<1x96xf32, #tpu.memory_space<vmem>>, %arg13: memref<1x96xf32, #tpu.memory_space<vmem>>, %arg14: memref<1x96xf32, #tpu.memory_space<vmem>>, %arg15: memref<1x96xf32, #tpu.memory_space<vmem>>, %arg16: memref<1x96xf32, #tpu.memory_space<vmem>>, %arg17: memref<8x96xbf16, #tpu.memory_space<vmem>>, %arg18: memref<24x48xf32, #tpu.memory_space<vmem>>) attributes {dimension_semantics = [#tpu.dimension_semantics<arbitrary>], iteration_bounds = array<i64: 1>, scalar_prefetch = 0 : i64, scratch_operands = 1 : i64, tpu.core_type = #tpu.core_type<tc>, window_params = [{pipeline_mode = #tpu.pipeline_mode<synchronous>, transform_indices = @transform_0, window_bounds = array<i64: 8, 72>}, {pipeline_mode = #tpu.pipeline_mode<synchronous>, transform_indices = @transform_1, window_bounds = array<i64: 72, 48>}, {pipeline_mode = #tpu.pipeline_mode<synchronous>, transform_indices = @transform_2, window_bounds = array<i64: 6, 8, 48>}, {pipeline_mode = #tpu.pipeline_mode<synchronous>, transform_indices = @transform_3, window_bounds = array<i64: 1, 48>}, {pipeline_mode = #tpu.pipeline_mode<synchronous>, transform_indices = @transform_4, window_bounds = array<i64: 1, 48>}, {pipeline_mode = #tpu.pipeline_mode<synchronous>, transform_indices = @transform_5, window_bounds = array<i64: 48, 96>}, {pipeline_mode = #tpu.pipeline_mode<synchronous>, transform_indices = @transform_6, window_bounds = array<i64: 9, 8, 48>}, {pipeline_mode = #tpu.pipeline_mode<synchronous>, transform_indices = @transform_7, window_bounds = array<i64: 1, 48>}, {pipeline_mode = #tpu.pipeline_mode<synchronous>, transform_indices = @transform_8, window_bounds = array<i64: 1, 48>}, {pipeline_mode = #tpu.pipeline_mode<synchronous>, transform_indices = @transform_9, window_bounds = array<i64: 48, 96>}, {pipeline_mode = #tpu.pipeline_mode<synchronous>, transform_indices = @transform_10, window_bounds = array<i64: 1, 96>}, {pipeline_mode = #tpu.pipeline_mode<synchronous>, transform_indices = @transform_11, window_bounds = array<i64: 1, 96>}, {pipeline_mode = #tpu.pipeline_mode<synchronous>, transform_indices = @transform_12, window_bounds = array<i64: 1, 96>}, {pipeline_mode = #tpu.pipeline_mode<synchronous>, transform_indices = @transform_13, window_bounds = array<i64: 1, 96>}, {pipeline_mode = #tpu.pipeline_mode<synchronous>, transform_indices = @transform_14, window_bounds = array<i64: 1, 96>}, {pipeline_mode = #tpu.pipeline_mode<synchronous>, transform_indices = @transform_15, window_bounds = array<i64: 1, 96>}, {pipeline_mode = #tpu.pipeline_mode<synchronous>, transform_indices = @transform_16, window_bounds = array<i64: 8, 96>}]} {
    %c0 = arith.constant 0 : index
    %c0_0 = arith.constant 0 : index
    %0 = vector.load %arg1[%c0, %c0_0] : memref<8x72xbf16, #tpu.memory_space<vmem>>, vector<8x72xbf16>
    %c0_1 = arith.constant 0 : index
    %c0_2 = arith.constant 0 : index
    %1 = vector.load %arg2[%c0_1, %c0_2] : memref<72x48xbf16, #tpu.memory_space<vmem>>, vector<72x48xbf16>
    %cst = arith.constant dense<0.000000e+00> : vector<8x48xf32>
    %2 = tpu.matmul %0, %1, %cst {dimension_numbers = #tpu.dot_dimension_numbers<[1], [0], [0], [1], [0, 0, 1, 1], [], []>} : vector<8x72xbf16>, vector<72x48xbf16>, vector<8x48xf32> -> vector<8x48xf32>
    %cst_3 = arith.constant 0.000000e+00 : f32
    %3 = vector.broadcast %cst_3 : f32 to vector<24x48xf32>
    %c0_4 = arith.constant 0 : index
    %c0_5 = arith.constant 0 : index
    %4 = vector.load %arg18[%c0_4, %c0_5] : memref<24x48xf32, #tpu.memory_space<vmem>>, vector<24x48xf32>
    tpu.vector_store %arg18[%c0_4, %c0_5], %3 {strides = array<i32>} : memref<24x48xf32, #tpu.memory_space<vmem>>, vector<24x48xf32>,
    %c8 = arith.constant 8 : index
    %c0_6 = arith.constant 0 : index
    %5 = vector.load %arg18[%c8, %c0_6] : memref<24x48xf32, #tpu.memory_space<vmem>>, vector<8x48xf32>
    tpu.vector_store %arg18[%c8, %c0_6], %2 {strides = array<i32>} : memref<24x48xf32, #tpu.memory_space<vmem>>, vector<8x48xf32>,
    %c6 = arith.constant 6 : index
    %c0_7 = arith.constant 0 : index
    %6 = vector.load %arg18[%c6, %c0_7] : memref<24x48xf32, #tpu.memory_space<vmem>>, vector<8x48xf32>
    %c0_8 = arith.constant 0 : index
    %c0_9 = arith.constant 0 : index
    %c0_10 = arith.constant 0 : index
    %7 = vector.load %arg3[%c0_8, %c0_9, %c0_10] : memref<6x8x48xf32, #tpu.memory_space<vmem>>, vector<1x8x48xf32>
    %8 = vector.shape_cast %7 : vector<1x8x48xf32> to vector<8x48xf32>
    %9 = arith.mulf %6, %8 : vector<8x48xf32>
    %c8_11 = arith.constant 8 : index
    %c0_12 = arith.constant 0 : index
    %10 = vector.load %arg18[%c8_11, %c0_12] : memref<24x48xf32, #tpu.memory_space<vmem>>, vector<8x48xf32>
    %c1 = arith.constant 1 : index
    %c0_13 = arith.constant 0 : index
    %c0_14 = arith.constant 0 : index
    %11 = vector.load %arg3[%c1, %c0_13, %c0_14] : memref<6x8x48xf32, #tpu.memory_space<vmem>>, vector<1x8x48xf32>
    %12 = vector.shape_cast %11 : vector<1x8x48xf32> to vector<8x48xf32>
    %13 = arith.mulf %10, %12 : vector<8x48xf32>
    %14 = arith.addf %9, %13 : vector<8x48xf32>
    %c10 = arith.constant 10 : index
    %c0_15 = arith.constant 0 : index
    %15 = vector.load %arg18[%c10, %c0_15] : memref<24x48xf32, #tpu.memory_space<vmem>>, vector<8x48xf32>
    %c2 = arith.constant 2 : index
    %c0_16 = arith.constant 0 : index
    %c0_17 = arith.constant 0 : index
    %16 = vector.load %arg3[%c2, %c0_16, %c0_17] : memref<6x8x48xf32, #tpu.memory_space<vmem>>, vector<1x8x48xf32>
    %17 = vector.shape_cast %16 : vector<1x8x48xf32> to vector<8x48xf32>
    %18 = arith.mulf %15, %17 : vector<8x48xf32>
    %19 = arith.addf %14, %18 : vector<8x48xf32>
    %c7 = arith.constant 7 : index
    %c0_18 = arith.constant 0 : index
    %20 = vector.load %arg18[%c7, %c0_18] : memref<24x48xf32, #tpu.memory_space<vmem>>, vector<8x48xf32>
    %c3 = arith.constant 3 : index
    %c0_19 = arith.constant 0 : index
    %c0_20 = arith.constant 0 : index
    %21 = vector.load %arg3[%c3, %c0_19, %c0_20] : memref<6x8x48xf32, #tpu.memory_space<vmem>>, vector<1x8x48xf32>
    %22 = vector.shape_cast %21 : vector<1x8x48xf32> to vector<8x48xf32>
    %23 = arith.mulf %20, %22 : vector<8x48xf32>
    %24 = arith.addf %19, %23 : vector<8x48xf32>
    %c8_21 = arith.constant 8 : index
    %c0_22 = arith.constant 0 : index
    %25 = vector.load %arg18[%c8_21, %c0_22] : memref<24x48xf32, #tpu.memory_space<vmem>>, vector<8x48xf32>
    %c4 = arith.constant 4 : index
    %c0_23 = arith.constant 0 : index
    %c0_24 = arith.constant 0 : index
    %26 = vector.load %arg3[%c4, %c0_23, %c0_24] : memref<6x8x48xf32, #tpu.memory_space<vmem>>, vector<1x8x48xf32>
    %27 = vector.shape_cast %26 : vector<1x8x48xf32> to vector<8x48xf32>
    %28 = arith.mulf %25, %27 : vector<8x48xf32>
    %29 = arith.addf %24, %28 : vector<8x48xf32>
    %c9 = arith.constant 9 : index
    %c0_25 = arith.constant 0 : index
    %30 = vector.load %arg18[%c9, %c0_25] : memref<24x48xf32, #tpu.memory_space<vmem>>, vector<8x48xf32>
    %c5 = arith.constant 5 : index
    %c0_26 = arith.constant 0 : index
    %c0_27 = arith.constant 0 : index
    %31 = vector.load %arg3[%c5, %c0_26, %c0_27] : memref<6x8x48xf32, #tpu.memory_space<vmem>>, vector<1x8x48xf32>
    %32 = vector.shape_cast %31 : vector<1x8x48xf32> to vector<8x48xf32>
    %33 = arith.mulf %30, %32 : vector<8x48xf32>
    %34 = arith.addf %29, %33 : vector<8x48xf32>
    %c0_28 = arith.constant 0 : index
    %c0_29 = arith.constant 0 : index
    %35 = vector.load %arg4[%c0_28, %c0_29] : memref<1x48xf32, #tpu.memory_space<vmem>>, vector<1x48xf32>
    %36 = vector.broadcast %35 : vector<1x48xf32> to vector<8x48xf32>
    %37 = arith.addf %34, %36 : vector<8x48xf32>
    %cst_30 = arith.constant 0.000000e+00 : f32
    %38 = vector.broadcast %cst_30 : f32 to vector<8x48xf32>
    %39 = arith.cmpf oge, %37, %38 : vector<8x48xf32>
    %c0_31 = arith.constant 0 : index
    %c0_32 = arith.constant 0 : index
    %40 = vector.load %arg5[%c0_31, %c0_32] : memref<1x48xf32, #tpu.memory_space<vmem>>, vector<1x48xf32>
    %41 = vector.broadcast %40 : vector<1x48xf32> to vector<8x48xf32>
    %42 = arith.mulf %37, %41 : vector<8x48xf32>
    %43 = arith.select %39, %37, %42 : vector<8x48xi1>, vector<8x48xf32>
    %44 = arith.truncf %43 : vector<8x48xf32> to vector<8x48xbf16>
    %c5_33 = arith.constant 5 : index
    %c0_34 = arith.constant 0 : index
    %45 = vector.load %arg18[%c5_33, %c0_34] : memref<24x48xf32, #tpu.memory_space<vmem>>, vector<8x48xf32>
    %c0_35 = arith.constant 0 : index
    %c0_36 = arith.constant 0 : index
    %c0_37 = arith.constant 0 : index
    %46 = vector.load %arg7[%c0_35, %c0_36, %c0_37] : memref<9x8x48xf32, #tpu.memory_space<vmem>>, vector<1x8x48xf32>
    %47 = vector.shape_cast %46 : vector<1x8x48xf32> to vector<8x48xf32>
    %48 = arith.mulf %45, %47 : vector<8x48xf32>
    %c6_38 = arith.constant 6 : index
    %c0_39 = arith.constant 0 : index
    %49 = vector.load %arg18[%c6_38, %c0_39] : memref<24x48xf32, #tpu.memory_space<vmem>>, vector<8x48xf32>
    %c1_40 = arith.constant 1 : index
    %c0_41 = arith.constant 0 : index
    %c0_42 = arith.constant 0 : index
    %50 = vector.load %arg7[%c1_40, %c0_41, %c0_42] : memref<9x8x48xf32, #tpu.memory_space<vmem>>, vector<1x8x48xf32>
    %51 = vector.shape_cast %50 : vector<1x8x48xf32> to vector<8x48xf32>
    %52 = arith.mulf %49, %51 : vector<8x48xf32>
    %53 = arith.addf %48, %52 : vector<8x48xf32>
    %c7_43 = arith.constant 7 : index
    %c0_44 = arith.constant 0 : index
    %54 = vector.load %arg18[%c7_43, %c0_44] : memref<24x48xf32, #tpu.memory_space<vmem>>, vector<8x48xf32>
    %c2_45 = arith.constant 2 : index
    %c0_46 = arith.constant 0 : index
    %c0_47 = arith.constant 0 : index
    %55 = vector.load %arg7[%c2_45, %c0_46, %c0_47] : memref<9x8x48xf32, #tpu.memory_space<vmem>>, vector<1x8x48xf32>
    %56 = vector.shape_cast %55 : vector<1x8x48xf32> to vector<8x48xf32>
    %57 = arith.mulf %54, %56 : vector<8x48xf32>
    %58 = arith.addf %53, %57 : vector<8x48xf32>
    %c7_48 = arith.constant 7 : index
    %c0_49 = arith.constant 0 : index
    %59 = vector.load %arg18[%c7_48, %c0_49] : memref<24x48xf32, #tpu.memory_space<vmem>>, vector<8x48xf32>
    %c3_50 = arith.constant 3 : index
    %c0_51 = arith.constant 0 : index
    %c0_52 = arith.constant 0 : index
    %60 = vector.load %arg7[%c3_50, %c0_51, %c0_52] : memref<9x8x48xf32, #tpu.memory_space<vmem>>, vector<1x8x48xf32>
    %61 = vector.shape_cast %60 : vector<1x8x48xf32> to vector<8x48xf32>
    %62 = arith.mulf %59, %61 : vector<8x48xf32>
    %63 = arith.addf %58, %62 : vector<8x48xf32>
    %c8_53 = arith.constant 8 : index
    %c0_54 = arith.constant 0 : index
    %64 = vector.load %arg18[%c8_53, %c0_54] : memref<24x48xf32, #tpu.memory_space<vmem>>, vector<8x48xf32>
    %c4_55 = arith.constant 4 : index
    %c0_56 = arith.constant 0 : index
    %c0_57 = arith.constant 0 : index
    %65 = vector.load %arg7[%c4_55, %c0_56, %c0_57] : memref<9x8x48xf32, #tpu.memory_space<vmem>>, vector<1x8x48xf32>
    %66 = vector.shape_cast %65 : vector<1x8x48xf32> to vector<8x48xf32>
    %67 = arith.mulf %64, %66 : vector<8x48xf32>
    %68 = arith.addf %63, %67 : vector<8x48xf32>
    %c9_58 = arith.constant 9 : index
    %c0_59 = arith.constant 0 : index
    %69 = vector.load %arg18[%c9_58, %c0_59] : memref<24x48xf32, #tpu.memory_space<vmem>>, vector<8x48xf32>
    %c5_60 = arith.constant 5 : index
    %c0_61 = arith.constant 0 : index
    %c0_62 = arith.constant 0 : index
    %70 = vector.load %arg7[%c5_60, %c0_61, %c0_62] : memref<9x8x48xf32, #tpu.memory_space<vmem>>, vector<1x8x48xf32>
    %71 = vector.shape_cast %70 : vector<1x8x48xf32> to vector<8x48xf32>
    %72 = arith.mulf %69, %71 : vector<8x48xf32>
    %73 = arith.addf %68, %72 : vector<8x48xf32>
    %c9_63 = arith.constant 9 : index
    %c0_64 = arith.constant 0 : index
    %74 = vector.load %arg18[%c9_63, %c0_64] : memref<24x48xf32, #tpu.memory_space<vmem>>, vector<8x48xf32>
    %c6_65 = arith.constant 6 : index
    %c0_66 = arith.constant 0 : index
    %c0_67 = arith.constant 0 : index
    %75 = vector.load %arg7[%c6_65, %c0_66, %c0_67] : memref<9x8x48xf32, #tpu.memory_space<vmem>>, vector<1x8x48xf32>
    %76 = vector.shape_cast %75 : vector<1x8x48xf32> to vector<8x48xf32>
    %77 = arith.mulf %74, %76 : vector<8x48xf32>
    %78 = arith.addf %73, %77 : vector<8x48xf32>
    %c10_68 = arith.constant 10 : index
    %c0_69 = arith.constant 0 : index
    %79 = vector.load %arg18[%c10_68, %c0_69] : memref<24x48xf32, #tpu.memory_space<vmem>>, vector<8x48xf32>
    %c7_70 = arith.constant 7 : index
    %c0_71 = arith.constant 0 : index
    %c0_72 = arith.constant 0 : index
    %80 = vector.load %arg7[%c7_70, %c0_71, %c0_72] : memref<9x8x48xf32, #tpu.memory_space<vmem>>, vector<1x8x48xf32>
    %81 = vector.shape_cast %80 : vector<1x8x48xf32> to vector<8x48xf32>
    %82 = arith.mulf %79, %81 : vector<8x48xf32>
    %83 = arith.addf %78, %82 : vector<8x48xf32>
    %c11 = arith.constant 11 : index
    %c0_73 = arith.constant 0 : index
    %84 = vector.load %arg18[%c11, %c0_73] : memref<24x48xf32, #tpu.memory_space<vmem>>, vector<8x48xf32>
    %c8_74 = arith.constant 8 : index
    %c0_75 = arith.constant 0 : index
    %c0_76 = arith.constant 0 : index
    %85 = vector.load %arg7[%c8_74, %c0_75, %c0_76] : memref<9x8x48xf32, #tpu.memory_space<vmem>>, vector<1x8x48xf32>
    %86 = vector.shape_cast %85 : vector<1x8x48xf32> to vector<8x48xf32>
    %87 = arith.mulf %84, %86 : vector<8x48xf32>
    %88 = arith.addf %83, %87 : vector<8x48xf32>
    %c0_77 = arith.constant 0 : index
    %c0_78 = arith.constant 0 : index
    %89 = vector.load %arg8[%c0_77, %c0_78] : memref<1x48xf32, #tpu.memory_space<vmem>>, vector<1x48xf32>
    %90 = vector.broadcast %89 : vector<1x48xf32> to vector<8x48xf32>
    %91 = arith.addf %88, %90 : vector<8x48xf32>
    %cst_79 = arith.constant 0.000000e+00 : f32
    %92 = vector.broadcast %cst_79 : f32 to vector<8x48xf32>
    %93 = arith.cmpf oge, %91, %92 : vector<8x48xf32>
    %c0_80 = arith.constant 0 : index
    %c0_81 = arith.constant 0 : index
    %94 = vector.load %arg9[%c0_80, %c0_81] : memref<1x48xf32, #tpu.memory_space<vmem>>, vector<1x48xf32>
    %95 = vector.broadcast %94 : vector<1x48xf32> to vector<8x48xf32>
    %96 = arith.mulf %91, %95 : vector<8x48xf32>
    %97 = arith.select %93, %91, %96 : vector<8x48xi1>, vector<8x48xf32>
    %98 = arith.truncf %97 : vector<8x48xf32> to vector<8x48xbf16>
    %c0_82 = arith.constant 0 : index
    %c0_83 = arith.constant 0 : index
    %99 = vector.load %arg6[%c0_82, %c0_83] : memref<48x96xbf16, #tpu.memory_space<vmem>>, vector<48x96xbf16>
    %cst_84 = arith.constant dense<0.000000e+00> : vector<8x96xf32>
    %100 = tpu.matmul %44, %99, %cst_84 {dimension_numbers = #tpu.dot_dimension_numbers<[1], [0], [0], [1], [0, 0, 1, 1], [], []>} : vector<8x48xbf16>, vector<48x96xbf16>, vector<8x96xf32> -> vector<8x96xf32>
    %c0_85 = arith.constant 0 : index
    %c0_86 = arith.constant 0 : index
    %101 = vector.load %arg10[%c0_85, %c0_86] : memref<48x96xbf16, #tpu.memory_space<vmem>>, vector<48x96xbf16>
    %cst_87 = arith.constant dense<0.000000e+00> : vector<8x96xf32>
    %102 = tpu.matmul %98, %101, %cst_87 {dimension_numbers = #tpu.dot_dimension_numbers<[1], [0], [0], [1], [0, 0, 1, 1], [], []>} : vector<8x48xbf16>, vector<48x96xbf16>, vector<8x96xf32> -> vector<8x96xf32>
    %103 = arith.addf %100, %102 : vector<8x96xf32>
    %c0_88 = arith.constant 0 : index
    %c0_89 = arith.constant 0 : index
    %104 = vector.load %arg11[%c0_88, %c0_89] : memref<1x96xf32, #tpu.memory_space<vmem>>, vector<1x96xf32>
    %105 = vector.broadcast %104 : vector<1x96xf32> to vector<8x96xf32>
    %106 = arith.mulf %103, %105 : vector<8x96xf32>
    %c0_90 = arith.constant 0 : index
    %c0_91 = arith.constant 0 : index
    %107 = vector.load %arg12[%c0_90, %c0_91] : memref<1x96xf32, #tpu.memory_space<vmem>>, vector<1x96xf32>
    %108 = vector.broadcast %107 : vector<1x96xf32> to vector<8x96xf32>
    %109 = arith.addf %106, %108 : vector<8x96xf32>
    %cst_92 = arith.constant 0.000000e+00 : f32
    %110 = vector.broadcast %cst_92 : f32 to vector<8x96xf32>
    %111 = arith.cmpf oge, %109, %110 : vector<8x96xf32>
    %c0_93 = arith.constant 0 : index
    %c0_94 = arith.constant 0 : index
    %112 = vector.load %arg13[%c0_93, %c0_94] : memref<1x96xf32, #tpu.memory_space<vmem>>, vector<1x96xf32>
    %113 = vector.broadcast %112 : vector<1x96xf32> to vector<8x96xf32>
    %114 = arith.mulf %109, %113 : vector<8x96xf32>
    %115 = arith.select %111, %109, %114 : vector<8x96xi1>, vector<8x96xf32>
    %c0_95 = arith.constant 0 : index
    %c0_96 = arith.constant 0 : index
    %116 = vector.load %arg14[%c0_95, %c0_96] : memref<1x96xf32, #tpu.memory_space<vmem>>, vector<1x96xf32>
    %117 = vector.broadcast %116 : vector<1x96xf32> to vector<8x96xf32>
    %118 = arith.mulf %115, %117 : vector<8x96xf32>
    %c0_97 = arith.constant 0 : index
    %c0_98 = arith.constant 0 : index
    %119 = vector.load %arg15[%c0_97, %c0_98] : memref<1x96xf32, #tpu.memory_space<vmem>>, vector<1x96xf32>
    %120 = vector.broadcast %119 : vector<1x96xf32> to vector<8x96xf32>
    %121 = arith.addf %118, %120 : vector<8x96xf32>
    %cst_99 = arith.constant 0.000000e+00 : f32
    %122 = vector.broadcast %cst_99 : f32 to vector<8x96xf32>
    %123 = arith.cmpf oge, %121, %122 : vector<8x96xf32>
    %c0_100 = arith.constant 0 : index
    %c0_101 = arith.constant 0 : index
    %124 = vector.load %arg16[%c0_100, %c0_101] : memref<1x96xf32, #tpu.memory_space<vmem>>, vector<1x96xf32>
    %125 = vector.broadcast %124 : vector<1x96xf32> to vector<8x96xf32>
    %126 = arith.mulf %121, %125 : vector<8x96xf32>
    %127 = arith.select %123, %121, %126 : vector<8x96xi1>, vector<8x96xf32>
    %128 = arith.truncf %127 : vector<8x96xf32> to vector<8x96xbf16>
    %c0_102 = arith.constant 0 : index
    %c0_103 = arith.constant 0 : index
    %129 = vector.load %arg17[%c0_102, %c0_103] : memref<8x96xbf16, #tpu.memory_space<vmem>>, vector<8x96xbf16>
    tpu.vector_store %arg17[%c0_102, %c0_103], %128 {strides = array<i32>} : memref<8x96xbf16, #tpu.memory_space<vmem>>, vector<8x96xbf16>,
    return
  }
  func.func @transform_0(%arg0: i32) -> (i32, i32) {
    %c0_i32 = arith.constant 0 : i32
    %c0_i32_0 = arith.constant 0 : i32
    %c0_i32_1 = arith.constant 0 : i32
    return %c0_i32, %c0_i32_0 : i32, i32
  }
  func.func @transform_1(%arg0: i32) -> (i32, i32) {
    %c0_i32 = arith.constant 0 : i32
    %c0_i32_0 = arith.constant 0 : i32
    %c0_i32_1 = arith.constant 0 : i32
    return %c0_i32, %c0_i32_0 : i32, i32
  }
  func.func @transform_2(%arg0: i32) -> (i32, i32, i32) {
    %c0_i32 = arith.constant 0 : i32
    %c0_i32_0 = arith.constant 0 : i32
    %c0_i32_1 = arith.constant 0 : i32
    %c0_i32_2 = arith.constant 0 : i32
    return %c0_i32, %c0_i32_0, %c0_i32_1 : i32, i32, i32
  }
  func.func @transform_3(%arg0: i32) -> (i32, i32) {
    %c0_i32 = arith.constant 0 : i32
    %c0_i32_0 = arith.constant 0 : i32
    %c0_i32_1 = arith.constant 0 : i32
    return %c0_i32, %c0_i32_0 : i32, i32
  }
  func.func @transform_4(%arg0: i32) -> (i32, i32) {
    %c0_i32 = arith.constant 0 : i32
    %c0_i32_0 = arith.constant 0 : i32
    %c0_i32_1 = arith.constant 0 : i32
    return %c0_i32, %c0_i32_0 : i32, i32
  }
  func.func @transform_5(%arg0: i32) -> (i32, i32) {
    %c0_i32 = arith.constant 0 : i32
    %c0_i32_0 = arith.constant 0 : i32
    %c0_i32_1 = arith.constant 0 : i32
    return %c0_i32, %c0_i32_0 : i32, i32
  }
  func.func @transform_6(%arg0: i32) -> (i32, i32, i32) {
    %c0_i32 = arith.constant 0 : i32
    %c0_i32_0 = arith.constant 0 : i32
    %c0_i32_1 = arith.constant 0 : i32
    %c0_i32_2 = arith.constant 0 : i32
    return %c0_i32, %c0_i32_0, %c0_i32_1 : i32, i32, i32
  }
  func.func @transform_7(%arg0: i32) -> (i32, i32) {
    %c0_i32 = arith.constant 0 : i32
    %c0_i32_0 = arith.constant 0 : i32
    %c0_i32_1 = arith.constant 0 : i32
    return %c0_i32, %c0_i32_0 : i32, i32
  }
  func.func @transform_8(%arg0: i32) -> (i32, i32) {
    %c0_i32 = arith.constant 0 : i32
    %c0_i32_0 = arith.constant 0 : i32
    %c0_i32_1 = arith.constant 0 : i32
    return %c0_i32, %c0_i32_0 : i32, i32
  }
  func.func @transform_9(%arg0: i32) -> (i32, i32) {
    %c0_i32 = arith.constant 0 : i32
    %c0_i32_0 = arith.constant 0 : i32
    %c0_i32_1 = arith.constant 0 : i32
    return %c0_i32, %c0_i32_0 : i32, i32
  }
  func.func @transform_10(%arg0: i32) -> (i32, i32) {
    %c0_i32 = arith.constant 0 : i32
    %c0_i32_0 = arith.constant 0 : i32
    %c0_i32_1 = arith.constant 0 : i32
    return %c0_i32, %c0_i32_0 : i32, i32
  }
  func.func @transform_11(%arg0: i32) -> (i32, i32) {
    %c0_i32 = arith.constant 0 : i32
    %c0_i32_0 = arith.constant 0 : i32
    %c0_i32_1 = arith.constant 0 : i32
    return %c0_i32, %c0_i32_0 : i32, i32
  }
  func.func @transform_12(%arg0: i32) -> (i32, i32) {
    %c0_i32 = arith.constant 0 : i32
    %c0_i32_0 = arith.constant 0 : i32
    %c0_i32_1 = arith.constant 0 : i32
    return %c0_i32, %c0_i32_0 : i32, i32
  }
  func.func @transform_13(%arg0: i32) -> (i32, i32) {
    %c0_i32 = arith.constant 0 : i32
    %c0_i32_0 = arith.constant 0 : i32
    %c0_i32_1 = arith.constant 0 : i32
    return %c0_i32, %c0_i32_0 : i32, i32
  }
  func.func @transform_14(%arg0: i32) -> (i32, i32) {
    %c0_i32 = arith.constant 0 : i32
    %c0_i32_0 = arith.constant 0 : i32
    %c0_i32_1 = arith.constant 0 : i32
    return %c0_i32, %c0_i32_0 : i32, i32
  }
  func.func @transform_15(%arg0: i32) -> (i32, i32) {
    %c0_i32 = arith.constant 0 : i32
    %c0_i32_0 = arith.constant 0 : i32
    %c0_i32_1 = arith.constant 0 : i32
    return %c0_i32, %c0_i32_0 : i32, i32
  }
  func.func @transform_16(%arg0: i32) -> (i32, i32) {
    %c0_i32 = arith.constant 0 : i32
    %c0_i32_0 = arith.constant 0 : i32
    %c0_i32_1 = arith.constant 0 : i32
    return %c0_i32, %c0_i32_0 : i32, i32
  }
}

</mosaic_0001>

<bundles_post_ra>
// kernel: _lambda_.9
= control target key start
LH: loop header
LB: loop body
LE: loop exit
PB: predicated region body
PF: predicated region fallthrough
CT: control target
= control target key end

     0   :  { %vm357_vm0 = vcmask 1044480   ;;  %vm358_vm1 = vcmask 1045504   ;;  %v1657_v1 = vmov 65535   ;;  %vm260_vm2 = vcmask 220160   ;;  %s2340_s1 = inlined_call_operand.vmem [shape: bf16[27,16], index: 1, kind: input, shape index: {}]   ;;  %s2341_s0 = inlined_call_operand.vmem [shape: bf16[512,27], index: 0, kind: input, shape index: {}]   ;;  %s2342_s2 = inlined_call_operand.vmem [shape: f32[1,16], index: 2, kind: input, shape index: {}]   ;;  %s2343_s3 = inlined_call_operand.vmem [shape: f32[1,16], index: 3, kind: input, shape index: {}]   ;;  %s2344_s4 = inlined_call_operand.vmem [shape: f32[1,16], index: 4, kind: input, shape index: {}]   ;;  %s2345_s5 = inlined_call_operand.vmem [shape: bf16[512,16], index: 5, kind: output, shape index: {}]  }
   0x1   :  { %v1623_v0 = vld [vmem:[%s2340_s1 + $0x8] sm:$0x3f]   ;;  %v359_v2 = vsel %vm357_vm0, 4294967295, %v1657_v1  ;;  %v1625_v4 = vld [vmem:[%s2341_s0] sm:$0xff]   ;;  %v1629_v10 = vld [vmem:[%s2341_s0 + $0x10] sm:$0xff]   ;;  %vm1250_vm3 = vcmask 125952  }
   0x2   :  { %v360_v3 = vsel %vm358_vm1, %v359_v2, 0  ;;  %v1624_v6 = vld [vmem:[%s2340_s1] sm:$0xff]   ;;  %1554 = vmatprep.mubr.msk.bf16.mxu0 %vm260_vm2, %v1625_v4  ;;  %v1627_v8 = vld [vmem:[%s2341_s0 + $0x8] sm:$0xff]   ;;  %v1630_v11 = vld [vmem:[%s2341_s0 + $0x90] sm:$0xff]  }
   0x3   :  { %v362_v5 = vand.u32 %v1623_v0, %v360_v3  ;;  %v1626_v7 = vld [vmem:[%s2341_s0 + $0x80] sm:$0xff]   ;;  %v1628_v9 = vld [vmem:[%s2341_s0 + $0x88] sm:$0xff]   ;;  %v1631_v12 = vld [vmem:[%s2341_s0 + $0x18] sm:$0xff]  }
   0x4   :  { %1586 = vmatprep.mubr.msk.bf16.mxu1 %vm260_vm2, %v1626_v7  ;;  %v1632_v13 = vld [vmem:[%s2341_s0 + $0x98] sm:$0xff]   ;;  %v1633_v14 = vld [vmem:[%s2341_s0 + $0x20] sm:$0xff]   ;;  %v1635_v16 = vld [vmem:[%s2341_s0 + $0x28] sm:$0xff]  }
   0x5   :  { %1550 = vmatprep.subr.bf16.mxu0 %v362_v5  ;;  %1618 = vmatprep.subr.bf16.mxu1 %v362_v5  ;;  %v1634_v15 = vld [vmem:[%s2341_s0 + $0xa0] sm:$0xff]   ;;  %v1636_v17 = vld [vmem:[%s2341_s0 + $0xa8] sm:$0xff]   ;;  %v1637_v18 = vld [vmem:[%s2341_s0 + $0x30] sm:$0xff]  }
   0x6   :  { %1551 = vmatpush3.bf16.msra.mxu0 %v362_v5  ;;  %1620 = vmatpush3.bf16.msra.mxu1 %v362_v5  ;;  %v1638_v19 = vld [vmem:[%s2341_s0 + $0xb0] sm:$0xff]   ;;  %v1639_v20 = vld [vmem:[%s2341_s0 + $0x38] sm:$0xff]   ;;  %v1641_v22 = vld [vmem:[%s2341_s0 + $0x40] sm:$0xff]  }
   0x7   :  { %1552 = vmatprep.subr.bf16.mxu0 %v1624_v6  ;;  %1619 = vmatprep.subr.bf16.mxu1 %v1624_v6  ;;  %v1640_v21 = vld [vmem:[%s2341_s0 + $0xb8] sm:$0xff]   ;;  %v1642_v23 = vld [vmem:[%s2341_s0 + $0xc0] sm:$0xff]   ;;  %v1643_v24 = vld [vmem:[%s2341_s0 + $0x48] sm:$0xff]  }
   0x8   :  { %v1644_v25 = vld [vmem:[%s2341_s0 + $0xc8] sm:$0xff]   ;;  %v1645_v26 = vld [vmem:[%s2341_s0 + $0x50] sm:$0xff]   ;;  %v1647_v28 = vld [vmem:[%s2341_s0 + $0x58] sm:$0xff]  }
   0x9   :  { %v1646_v27 = vld [vmem:[%s2341_s0 + $0xd0] sm:$0xff]   ;;  %v1648_v29 = vld [vmem:[%s2341_s0 + $0xd8] sm:$0xff]   ;;  %v1649_v30 = vld [vmem:[%s2341_s0 + $0x60] sm:$0xff]  }
   0xa   :  { %1553 = vmatpush3.bf16.msra.mxu0 %v1624_v6  ;;  %1621 = vmatpush3.bf16.msra.mxu1 %v1624_v6  ;;  %v1650_v31 = vld [vmem:[%s2341_s0 + $0xe0] sm:$0xff]   ;;  %v1651_v32 = vld [vmem:[%s2341_s0 + $0x68] sm:$0xff]   ;;  %v1653_v34 = vld [vmem:[%s2341_s0 + $0x70] sm:$0xff]  }
   0xb   :  { %v1652_v33 = vld [vmem:[%s2341_s0 + $0xe8] sm:$0xff]   ;;  %v1654_v35 = vld [vmem:[%s2341_s0 + $0xf0] sm:$0xff]   ;;  %v1655_v36 = vld [vmem:[%s2341_s0 + $0x78] sm:$0xff]  }
   0xc   :  { %v1656_v37 = vld [vmem:[%s2341_s0 + $0xf8] sm:$0xff]   ;;  %v1825_v38 = vld [vmem:[%s2342_s2] ss:$0 sm:$0xff] }
   0xd   :  { %1555 = vmatmul.mubr.msk.bf16.vlgmr.msra.gmra.mxu0 %vm260_vm2, %v1627_v8  ;;  %1587 = vmatmul.mubr.msk.bf16.vlgmr.msra.gmra.mxu1 %vm260_vm2, %v1628_v9  ;;  %v1830_v40 = vld [vmem:[%s2343_s3] ss:$0 sm:$0xff] }
   0xe   :  { %1558 = vmatprep.mubr.msk.bf16.mxu0 %vm260_vm2, %v1629_v10  ;;  %1590 = vmatprep.mubr.msk.bf16.mxu1 %vm260_vm2, %v1630_v11  ;;  %v1837_v44 = vld [vmem:[%s2344_s4] ss:$0 sm:$0xff] }
  0x15   :  { %1559 = vmatmul.mubr.msk.bf16.gmra.mxu0 %vm260_vm2, %v1631_v12  ;;  %1591 = vmatmul.mubr.msk.bf16.gmra.mxu1 %vm260_vm2, %v1632_v13 }
  0x16   :  { %1562 = vmatprep.mubr.msk.bf16.mxu0 %vm260_vm2, %v1633_v14  ;;  %1594 = vmatprep.mubr.msk.bf16.mxu1 %vm260_vm2, %v1634_v15 }
  0x1d   :  { %1563 = vmatmul.mubr.msk.bf16.gmra.mxu0 %vm260_vm2, %v1635_v16  ;;  %1595 = vmatmul.mubr.msk.bf16.gmra.mxu1 %vm260_vm2, %v1636_v17 }
  0x1e   :  { %1566 = vmatprep.mubr.msk.bf16.mxu0 %vm260_vm2, %v1637_v18  ;;  %1598 = vmatprep.mubr.msk.bf16.mxu1 %vm260_vm2, %v1638_v19 }
  0x25   :  { %1567 = vmatmul.mubr.msk.bf16.gmra.mxu0 %vm260_vm2, %v1639_v20  ;;  %1599 = vmatmul.mubr.msk.bf16.gmra.mxu1 %vm260_vm2, %v1640_v21 }
  0x26   :  { %1570 = vmatprep.mubr.msk.bf16.mxu0 %vm260_vm2, %v1641_v22  ;;  %1602 = vmatprep.mubr.msk.bf16.mxu1 %vm260_vm2, %v1642_v23 }
  0x2d   :  { %1571 = vmatmul.mubr.msk.bf16.gmra.mxu0 %vm260_vm2, %v1643_v24  ;;  %1603 = vmatmul.mubr.msk.bf16.gmra.mxu1 %vm260_vm2, %v1644_v25 }
  0x2e   :  { %1574 = vmatprep.mubr.msk.bf16.mxu0 %vm260_vm2, %v1645_v26  ;;  %1606 = vmatprep.mubr.msk.bf16.mxu1 %vm260_vm2, %v1646_v27 }
  0x35   :  { %1575 = vmatmul.mubr.msk.bf16.gmra.mxu0 %vm260_vm2, %v1647_v28  ;;  %1607 = vmatmul.mubr.msk.bf16.gmra.mxu1 %vm260_vm2, %v1648_v29 }
  0x36   :  { %1578 = vmatprep.mubr.msk.bf16.mxu0 %vm260_vm2, %v1649_v30  ;;  %1610 = vmatprep.mubr.msk.bf16.mxu1 %vm260_vm2, %v1650_v31 }
  0x3d   :  { %1579 = vmatmul.mubr.msk.bf16.gmra.mxu0 %vm260_vm2, %v1651_v32  ;;  %1611 = vmatmul.mubr.msk.bf16.gmra.mxu1 %vm260_vm2, %v1652_v33 }
  0x3e   :  { %1582 = vmatprep.mubr.msk.bf16.mxu0 %vm260_vm2, %v1653_v34  ;;  %1614 = vmatprep.mubr.msk.bf16.mxu1 %vm260_vm2, %v1654_v35 }
  0x45   :  { %1583 = vmatmul.mubr.msk.bf16.gmra.mxu0 %vm260_vm2, %v1655_v36  ;;  %1615 = vmatmul.mubr.msk.bf16.gmra.mxu1 %vm260_vm2, %v1656_v37 }
  0xcd   :  { %v1556_v39 = vpop.f32.mrf.mxu0  ;;  %v1588_v41 = vpop.f32.mrf.mxu1 }
  0xce   :  { %v662_v42 = vmul.f32 %v1556_v39, %v1825_v38  ;;  %v694_v43 = vmul.f32 %v1588_v41, %v1825_v38 }
  0xcf   :  { %v398_v45 = vpop.f32.mrf.mxu0  ;;  %v526_v46 = vpop.f32.mrf.mxu1 }
  0xd0   :  { %v733_v47 = vadd.f32 %v1830_v40, %v662_v42  ;;  %v765_v48 = vadd.f32 %v1830_v40, %v694_v43  ;;  %v660_v49 = vmul.f32 %v1825_v38, %v398_v45  ;;  %v692_v50 = vmul.f32 %v1825_v38, %v526_v46 }
  0xd1   :  { %v1557_v51 = vpop.f32.mrf.mxu0  ;;  %v1589_v52 = vpop.f32.mrf.mxu1 }
  0xd2   :  { %vm798_vm4 = vcmp.ge.f32.partialorder %v733_v47, 0.0  ;;  %v868_v53 = vmul.f32 %v1837_v44, %v733_v47  ;;  %vm830_vm5 = vcmp.ge.f32.partialorder %v765_v48, 0.0  ;;  %v900_v54 = vmul.f32 %v1837_v44, %v765_v48 }
  0xd3   :  { %v731_v55 = vadd.f32 %v1830_v40, %v660_v49  ;;  %v763_v56 = vadd.f32 %v1830_v40, %v692_v50  ;;  %v663_v57 = vmul.f32 %v1557_v51, %v1825_v38  ;;  %v695_v58 = vmul.f32 %v1589_v52, %v1825_v38  ;;  %v401_v59 = vpop.f32.mrf.mxu0  ;;  %v529_v60 = vpop.f32.mrf.mxu1 }
  0xd4   :  { %v932_v61 = vsel %vm798_vm4, %v733_v47, %v868_v53  ;;  %v964_v62 = vsel %vm830_vm5, %v765_v48, %v900_v54  ;;  %v661_v63 = vmul.f32 %v1825_v38, %v401_v59  ;;  %v693_v0 = vmul.f32 %v1825_v38, %v529_v60 }
  0xd5   :  { %v1454_v1 = vpack.c.bf16 %v932_v61, %v932_v61  ;;  %v1486_v2 = vpack.c.bf16 %v964_v62, %v964_v62  ;;  %vm796_vm6 = vcmp.ge.f32.partialorder %v731_v55, 0.0  ;;  %v866_v3 = vmul.f32 %v1837_v44, %v731_v55  ;;  %v1560_v4 = vpop.f32.mrf.mxu0  ;;  %v1592_v5 = vpop.f32.mrf.mxu1 }
  0xd6   :  { %vm828_vm7 = vcmp.ge.f32.partialorder %v763_v56, 0.0  ;;  %v898_v6 = vmul.f32 %v1837_v44, %v763_v56  ;;  %v734_v7 = vadd.f32 %v1830_v40, %v663_v57  ;;  %v766_v8 = vadd.f32 %v1830_v40, %v695_v58 }
  0xd7   :  { %1253 = vst.msk [vmem:[%s2345_s5 + $0x8] sm:$0xf] %vm1250_vm3, %v1454_v1  ;;  %1285 = vst.msk [vmem:[%s2345_s5 + $0x88] sm:$0xf] %vm1250_vm3, %v1486_v2  ;;  %v930_v9 = vsel %vm796_vm6, %v731_v55, %v866_v3  ;;  %v732_v10 = vadd.f32 %v1830_v40, %v661_v63  ;;  %v764_v11 = vadd.f32 %v1830_v40, %v693_v0  ;;  %v414_v13 = vpop.f32.mrf.mxu0  ;;  %v542_v14 = vpop.f32.mrf.mxu1 }
  0xd8   :  { %v666_v12 = vmul.f32 %v1560_v4, %v1825_v38  ;;  %v1452_v15 = vpack.c.bf16 %v930_v9, %v930_v9  ;;  %v962_v16 = vsel %vm828_vm7, %v763_v56, %v898_v6  ;;  %vm799_vm8 = vcmp.ge.f32.partialorder %v734_v7, 0.0 }
  0xd9   :  { %v869_v17 = vmul.f32 %v1837_v44, %v734_v7  ;;  %v1484_v18 = vpack.c.bf16 %v962_v16, %v962_v16  ;;  %vm831_vm9 = vcmp.ge.f32.partialorder %v766_v8, 0.0  ;;  %v901_v19 = vmul.f32 %v1837_v44, %v766_v8  ;;  %v1561_v20 = vpop.f32.mrf.mxu0  ;;  %v1593_v21 = vpop.f32.mrf.mxu1 }
  0xda   :  { %vm797_vm10 = vcmp.ge.f32.partialorder %v732_v10, 0.0  ;;  %1251 = vst.msk [vmem:[%s2345_s5] sm:$0xf] %vm1250_vm3, %v1452_v15  ;;  %v867_v23 = vmul.f32 %v1837_v44, %v732_v10  ;;  %vm829_vm11 = vcmp.ge.f32.partialorder %v764_v11, 0.0  ;;  %v899_v24 = vmul.f32 %v1837_v44, %v764_v11 }
  0xdb   :  { %v933_v22 = vsel %vm799_vm8, %v734_v7, %v869_v17  ;;  %1283 = vst.msk [vmem:[%s2345_s5 + $0x80] sm:$0xf] %vm1250_vm3, %v1484_v18  ;;  %v965_v26 = vsel %vm831_vm9, %v766_v8, %v901_v19  ;;  %v737_v27 = vadd.f32 %v1830_v40, %v666_v12  ;;  %v698_v28 = vmul.f32 %v1592_v5, %v1825_v38  ;;  %v417_v29 = vpop.f32.mrf.mxu0  ;;  %v545_v30 = vpop.f32.mrf.mxu1 }
  0xdc   :  { %v1455_v25 = vpack.c.bf16 %v933_v22, %v933_v22  ;;  %v1487_v31 = vpack.c.bf16 %v965_v26, %v965_v26  ;;  %v931_v32 = vsel %vm797_vm10, %v732_v10, %v867_v23  ;;  %v963_v33 = vsel %vm829_vm11, %v764_v11, %v899_v24 }
  0xdd   :  { %v664_v34 = vmul.f32 %v1825_v38, %v414_v13  ;;  %v1453_v35 = vpack.c.bf16 %v931_v32, %v931_v32  ;;  %v1485_v36 = vpack.c.bf16 %v963_v33, %v963_v33  ;;  %vm802_vm12 = vcmp.ge.f32.partialorder %v737_v27, 0.0  ;;  %v1564_v39 = vpop.f32.mrf.mxu0  ;;  %v1596_v41 = vpop.f32.mrf.mxu1 }
  0xde   :  { %1254 = vst.msk [vmem:[%s2345_s5 + $0xc] sm:$0xf] %vm1250_vm3, %v1455_v25  ;;  %v872_v37 = vmul.f32 %v1837_v44, %v737_v27  ;;  %1286 = vst.msk [vmem:[%s2345_s5 + $0x8c] sm:$0xf] %vm1250_vm3, %v1487_v31  ;;  %v769_v42 = vadd.f32 %v1830_v40, %v698_v28  ;;  %v696_v45 = vmul.f32 %v1825_v38, %v542_v14 }
  0xdf   :  { %v735_v43 = vadd.f32 %v1830_v40, %v664_v34  ;;  %v667_v46 = vmul.f32 %v1561_v20, %v1825_v38  ;;  %1252 = vst.msk [vmem:[%s2345_s5 + $0x4] sm:$0xf] %vm1250_vm3, %v1453_v35  ;;  %1284 = vst.msk [vmem:[%s2345_s5 + $0x84] sm:$0xf] %vm1250_vm3, %v1485_v36  ;;  %v699_v48 = vmul.f32 %v1593_v21, %v1825_v38  ;;  %v430_v51 = vpop.f32.mrf.mxu0  ;;  %v558_v52 = vpop.f32.mrf.mxu1 }
  0xe0   :  { %v936_v47 = vsel %vm802_vm12, %v737_v27, %v872_v37  ;;  %v665_v49 = vmul.f32 %v1825_v38, %v417_v29  ;;  %v697_v50 = vmul.f32 %v1825_v38, %v545_v30  ;;  %vm834_vm13 = vcmp.ge.f32.partialorder %v769_v42, 0.0 }
  0xe1   :  { %v1458_v53 = vpack.c.bf16 %v936_v47, %v936_v47  ;;  %v904_v54 = vmul.f32 %v1837_v44, %v769_v42  ;;  %vm800_vm14 = vcmp.ge.f32.partialorder %v735_v43, 0.0  ;;  %v870_v55 = vmul.f32 %v1837_v44, %v735_v43  ;;  %v1565_v59 = vpop.f32.mrf.mxu0  ;;  %v1597_v60 = vpop.f32.mrf.mxu1 }
  0xe2   :  { %v767_v56 = vadd.f32 %v1830_v40, %v696_v45  ;;  %v738_v57 = vadd.f32 %v1830_v40, %v667_v46  ;;  %v770_v58 = vadd.f32 %v1830_v40, %v699_v48  ;;  %v736_v62 = vadd.f32 %v1830_v40, %v665_v49 }
  0xe3   :  { %1257 = vst.msk [vmem:[%s2345_s5 + $0x18] sm:$0xf] %vm1250_vm3, %v1458_v53  ;;  %v968_v61 = vsel %vm834_vm13, %v769_v42, %v904_v54  ;;  %v768_v63 = vadd.f32 %v1830_v40, %v697_v50  ;;  %v670_v0 = vmul.f32 %v1564_v39, %v1825_v38  ;;  %v934_v2 = vsel %vm800_vm14, %v735_v43, %v870_v55  ;;  %v433_v4 = vpop.f32.mrf.mxu0  ;;  %v561_v5 = vpop.f32.mrf.mxu1 }
  0xe4   :  { %v1490_v1 = vpack.c.bf16 %v968_v61, %v968_v61  ;;  %vm832_vm15 = vcmp.ge.f32.partialorder %v767_v56, 0.0  ;;  %v902_v3 = vmul.f32 %v1837_v44, %v767_v56  ;;  %v1456_v6 = vpack.c.bf16 %v934_v2, %v934_v2 }
  0xe5   :  { %vm803_vm0 = vcmp.ge.f32.partialorder %v738_v57, 0.0  ;;  %v873_v7 = vmul.f32 %v1837_v44, %v738_v57  ;;  %vm835_vm1 = vcmp.ge.f32.partialorder %v770_v58, 0.0  ;;  %v905_v9 = vmul.f32 %v1837_v44, %v770_v58  ;;  %v1926_v11 = vpop.f32.mrf.mxu0  ;;  %v1928_v12 = vpop.f32.mrf.mxu1 }
  0xe6   :  { %1289 = vst.msk [vmem:[%s2345_s5 + $0x98] sm:$0xf] %vm1250_vm3, %v1490_v1  ;;  %v966_v8 = vsel %vm832_vm15, %v767_v56, %v902_v3  ;;  %vm801_vm2 = vcmp.ge.f32.partialorder %v736_v62, 0.0  ;;  %v871_v10 = vmul.f32 %v1837_v44, %v736_v62  ;;  %1255 = vst.msk [vmem:[%s2345_s5 + $0x10] sm:$0xf] %vm1250_vm3, %v1456_v6  ;;  %vm833_vm4 = vcmp.ge.f32.partialorder %v768_v63, 0.0 }
  0xe7   :  { %v1488_v13 = vpack.c.bf16 %v966_v8, %v966_v8  ;;  %v937_v14 = vsel %vm803_vm0, %v738_v57, %v873_v7  ;;  %v903_v15 = vmul.f32 %v1837_v44, %v768_v63  ;;  %v969_v17 = vsel %vm835_vm1, %v770_v58, %v905_v9  ;;  %v1936_v20 = vpop.f32.mrf.mxu0  ;;  %v1938_v21 = vpop.f32.mrf.mxu1 }
  0xe8   :  { %v1459_v16 = vpack.c.bf16 %v937_v14, %v937_v14  ;;  %v935_v18 = vsel %vm801_vm2, %v736_v62, %v871_v10  ;;  %v741_v19 = vadd.f32 %v1830_v40, %v670_v0  ;;  %v1491_v22 = vpack.c.bf16 %v969_v17, %v969_v17 }
  0xe9   :  { %1287 = vst.msk [vmem:[%s2345_s5 + $0x90] sm:$0xf] %vm1250_vm3, %v1488_v13  ;;  %v1457_v23 = vpack.c.bf16 %v935_v18, %v935_v18  ;;  %v967_v24 = vsel %vm833_vm4, %v768_v63, %v903_v15  ;;  %v702_v25 = vmul.f32 %v1596_v41, %v1825_v38  ;;  %v668_v28 = vmul.f32 %v1825_v38, %v430_v51  ;;  %v1951_v29 = vpop.f32.mrf.mxu0  ;;  %v1953_v30 = vpop.f32.mrf.mxu1 }
  0xea   :  { %1258 = vst.msk [vmem:[%s2345_s5 + $0x1c] sm:$0xf] %vm1250_vm3, %v1459_v16  ;;  %v1489_v26 = vpack.c.bf16 %v967_v24, %v967_v24  ;;  %vm806_vm5 = vcmp.ge.f32.partialorder %v741_v19, 0.0  ;;  %v876_v27 = vmul.f32 %v1837_v44, %v741_v19  ;;  %1290 = vst.msk [vmem:[%s2345_s5 + $0x9c] sm:$0xf] %vm1250_vm3, %v1491_v22  ;;  %v700_v32 = vmul.f32 %v1825_v38, %v558_v52 }
  0xeb   :  { %1256 = vst.msk [vmem:[%s2345_s5 + $0x14] sm:$0xf] %vm1250_vm3, %v1457_v23  ;;  %v773_v31 = vadd.f32 %v1830_v40, %v702_v25  ;;  %v671_v33 = vmul.f32 %v1565_v59, %v1825_v38  ;;  %v703_v34 = vmul.f32 %v1597_v60, %v1825_v38  ;;  %v739_v36 = vadd.f32 %v1830_v40, %v668_v28  ;;  %v1974_v41 = vpop.f32.mrf.mxu0  ;;  %v1976_v42 = vpop.f32.mrf.mxu1 }
  0xec   :  { %1288 = vst.msk [vmem:[%s2345_s5 + $0x94] sm:$0xf] %vm1250_vm3, %v1489_v26  ;;  %v940_v35 = vsel %vm806_vm5, %v741_v19, %v876_v27  ;;  %v669_v37 = vmul.f32 %v1825_v38, %v433_v4  ;;  %v701_v39 = vmul.f32 %v1825_v38, %v561_v5  ;;  %v771_v46 = vadd.f32 %v1830_v40, %v700_v32 }
  0xed   :  { %v1462_v43 = vpack.c.bf16 %v940_v35, %v940_v35  ;;  %vm838_vm6 = vcmp.ge.f32.partialorder %v773_v31, 0.0  ;;  %v908_v45 = vmul.f32 %v1837_v44, %v773_v31  ;;  %vm804_vm7 = vcmp.ge.f32.partialorder %v739_v36, 0.0  ;;  %v1983_v50 = vpop.f32.mrf.mxu0  ;;  %v1985_v51 = vpop.f32.mrf.mxu1 }
  0xee   :  { %v874_v47 = vmul.f32 %v1837_v44, %v739_v36  ;;  %v742_v48 = vadd.f32 %v1830_v40, %v671_v33  ;;  %v774_v49 = vadd.f32 %v1830_v40, %v703_v34  ;;  %vm836_vm8 = vcmp.ge.f32.partialorder %v771_v46, 0.0 }
  0xef   :  { %1261 = vst.msk [vmem:[%s2345_s5 + $0x28] sm:$0xf] %vm1250_vm3, %v1462_v43  ;;  %v972_v52 = vsel %vm838_vm6, %v773_v31, %v908_v45  ;;  %v906_v53 = vmul.f32 %v1837_v44, %v771_v46  ;;  %v740_v54 = vadd.f32 %v1830_v40, %v669_v37  ;;  %v1994_v58 = vpop.f32.mrf.mxu0  ;;  %v1996_v59 = vpop.f32.mrf.mxu1  ;;  %v772_v4 = vadd.f32 %v1830_v40, %v701_v39 }
  0xf0   :  { %v1494_v55 = vpack.c.bf16 %v972_v52, %v972_v52  ;;  %v938_v56 = vsel %vm804_vm7, %v739_v36, %v874_v47  ;;  %vm807_vm9 = vcmp.ge.f32.partialorder %v742_v48, 0.0  ;;  %v877_v57 = vmul.f32 %v1837_v44, %v742_v48 }
  0xf1   :  { %v1460_v60 = vpack.c.bf16 %v938_v56, %v938_v56  ;;  %v970_v61 = vsel %vm836_vm8, %v771_v46, %v906_v53  ;;  %vm839_vm10 = vcmp.ge.f32.partialorder %v774_v49, 0.0  ;;  %v909_v62 = vmul.f32 %v1837_v44, %v774_v49  ;;  %v2019_v10 = vpop.f32.mrf.mxu0  ;;  %v2021_v13 = vpop.f32.mrf.mxu1 }
  0xf2   :  { %1293 = vst.msk [vmem:[%s2345_s5 + $0xa8] sm:$0xf] %vm1250_vm3, %v1494_v55  ;;  %v1492_v63 = vpack.c.bf16 %v970_v61, %v970_v61  ;;  %v941_v0 = vsel %vm807_vm9, %v742_v48, %v877_v57  ;;  %vm805_vm11 = vcmp.ge.f32.partialorder %v740_v54, 0.0  ;;  %v875_v1 = vmul.f32 %v1837_v44, %v740_v54 }
  0xf3   :  { %1259 = vst.msk [vmem:[%s2345_s5 + $0x20] sm:$0xf] %vm1250_vm3, %v1460_v60  ;;  %v1463_v2 = vpack.c.bf16 %v941_v0, %v941_v0  ;;  %v973_v3 = vsel %vm839_vm10, %v774_v49, %v909_v62  ;;  %v674_v5 = vmul.f32 %v1926_v11, %v1825_v38  ;;  %v706_v8 = vmul.f32 %v1928_v12, %v1825_v38  ;;  %v2049_v25 = vpop.f32.mrf.mxu1 }
  0xf4   :  { %1291 = vst.msk [vmem:[%s2345_s5 + $0xa0] sm:$0xf] %vm1250_vm3, %v1492_v63  ;;  %v1495_v6 = vpack.c.bf16 %v973_v3, %v973_v3  ;;  %v939_v7 = vsel %vm805_vm11, %v740_v54, %v875_v1  ;;  %v672_v9 = vmul.f32 %v1825_v38, %v1936_v20  ;;  %vm837_vm12 = vcmp.ge.f32.partialorder %v772_v4, 0.0 }
  0xf5   :  { %1262 = vst.msk [vmem:[%s2345_s5 + $0x2c] sm:$0xf] %vm1250_vm3, %v1463_v2  ;;  %v1461_v11 = vpack.c.bf16 %v939_v7, %v939_v7  ;;  %v907_v14 = vmul.f32 %v1837_v44, %v772_v4  ;;  %v745_v15 = vadd.f32 %v1830_v40, %v674_v5  ;;  %v777_v12 = vadd.f32 %v1830_v40, %v706_v8  ;;  %v2067_v45 = vpop.f32.mrf.mxu1 }
  0xf6   :  { %1294 = vst.msk [vmem:[%s2345_s5 + $0xac] sm:$0xf] %vm1250_vm3, %v1495_v6  ;;  %v743_v16 = vadd.f32 %v1830_v40, %v672_v9  ;;  %v704_v17 = vmul.f32 %v1825_v38, %v1938_v21  ;;  %v675_v18 = vmul.f32 %v1951_v29, %v1825_v38  ;;  %v707_v22 = vmul.f32 %v1953_v30, %v1825_v38  ;;  %v2047_v21 = vpop.f32.mrf.mxu0 }
  0xf7   :  { %1260 = vst.msk [vmem:[%s2345_s5 + $0x24] sm:$0xf] %vm1250_vm3, %v1461_v11  ;;  %v971_v19 = vsel %vm837_vm12, %v772_v4, %v907_v14  ;;  %vm810_vm13 = vcmp.ge.f32.partialorder %v745_v15, 0.0  ;;  %v880_v20 = vmul.f32 %v1837_v44, %v745_v15  ;;  %vm842_vm14 = vcmp.ge.f32.partialorder %v777_v12, 0.0  ;;  %v606_v63 = vpop.f32.mrf.mxu1 }
  0xf8   :  { %v1493_v23 = vpack.c.bf16 %v971_v19, %v971_v19  ;;  %v912_v24 = vmul.f32 %v1837_v44, %v777_v12  ;;  %vm808_vm15 = vcmp.ge.f32.partialorder %v743_v16, 0.0  ;;  %v878_v27 = vmul.f32 %v1837_v44, %v743_v16  ;;  %v1576_v43 = vpop.f32.mrf.mxu0 }
  0xf9   :  { %v944_v26 = vsel %vm810_vm13, %v745_v15, %v880_v20  ;;  %v775_v28 = vadd.f32 %v1830_v40, %v704_v17  ;;  %v746_v29 = vadd.f32 %v1830_v40, %v675_v18  ;;  %v778_v32 = vadd.f32 %v1830_v40, %v707_v22  ;;  %v2119_v11 = vpop.f32.mrf.mxu1 }
  0xfa   :  { %1292 = vst.msk [vmem:[%s2345_s5 + $0xa4] sm:$0xf] %vm1250_vm3, %v1493_v23  ;;  %v1466_v30 = vpack.c.bf16 %v944_v26, %v944_v26  ;;  %v976_v31 = vsel %vm842_vm14, %v777_v12, %v912_v24  ;;  %v673_v33 = vmul.f32 %v1825_v38, %v1974_v41  ;;  %v942_v35 = vsel %vm808_vm15, %v743_v16, %v878_v27  ;;  %v478_v62 = vpop.f32.mrf.mxu0 }
  0xfb   :  { %v1498_v34 = vpack.c.bf16 %v976_v31, %v976_v31  ;;  %vm840_vm0 = vcmp.ge.f32.partialorder %v775_v28, 0.0  ;;  %v910_v36 = vmul.f32 %v1837_v44, %v775_v28  ;;  %v1464_v37 = vpack.c.bf16 %v942_v35, %v942_v35 }
  0xfc   :  { %1265 = vst.msk [vmem:[%s2345_s5 + $0x38] sm:$0xf] %vm1250_vm3, %v1466_v30  ;;  %vm811_vm1 = vcmp.ge.f32.partialorder %v746_v29, 0.0  ;;  %v881_v39 = vmul.f32 %v1837_v44, %v746_v29  ;;  %vm843_vm2 = vcmp.ge.f32.partialorder %v778_v32, 0.0  ;;  %v913_v46 = vmul.f32 %v1837_v44, %v778_v32 }
  0xfd   :  { %1297 = vst.msk [vmem:[%s2345_s5 + $0xb8] sm:$0xf] %vm1250_vm3, %v1498_v34  ;;  %v974_v41 = vsel %vm840_vm0, %v775_v28, %v910_v36  ;;  %v744_v47 = vadd.f32 %v1830_v40, %v673_v33  ;;  %v705_v48 = vmul.f32 %v1825_v38, %v1976_v42  ;;  %1263 = vst.msk [vmem:[%s2345_s5 + $0x30] sm:$0xf] %vm1250_vm3, %v1464_v37  ;;  %v609_v28 = vpop.f32.mrf.mxu1 }
  0xfe   :  { %v1496_v49 = vpack.c.bf16 %v974_v41, %v974_v41  ;;  %v945_v52 = vsel %vm811_vm1, %v746_v29, %v881_v39  ;;  %v678_v53 = vmul.f32 %v1983_v50, %v1825_v38  ;;  %v710_v54 = vmul.f32 %v1985_v51, %v1825_v38 }
  0xff   :  { %v1467_v55 = vpack.c.bf16 %v945_v52, %v945_v52  ;;  %v977_v56 = vsel %vm843_vm2, %v778_v32, %v913_v46  ;;  %vm809_vm4 = vcmp.ge.f32.partialorder %v744_v47, 0.0  ;;  %v879_v57 = vmul.f32 %v1837_v44, %v744_v47 }
 0x100   :  { %1295 = vst.msk [vmem:[%s2345_s5 + $0xb0] sm:$0xf] %vm1250_vm3, %v1496_v49  ;;  %v1499_v42 = vpack.c.bf16 %v977_v56, %v977_v56  ;;  %v776_v60 = vadd.f32 %v1830_v40, %v705_v48  ;;  %v749_v61 = vadd.f32 %v1830_v40, %v678_v53  ;;  %v781_v50 = vadd.f32 %v1830_v40, %v710_v54 }
 0x101   :  { %1266 = vst.msk [vmem:[%s2345_s5 + $0x3c] sm:$0xf] %vm1250_vm3, %v1467_v55  ;;  %v943_v51 = vsel %vm809_vm4, %v744_v47, %v879_v57  ;;  %v676_v0 = vmul.f32 %v1825_v38, %v1994_v58  ;;  %v708_v1 = vmul.f32 %v1825_v38, %v1996_v59  ;;  %v679_v2 = vmul.f32 %v2019_v10, %v1825_v38  ;;  %v1577_v10 = vpop.f32.mrf.mxu0 }
 0x102   :  { %1298 = vst.msk [vmem:[%s2345_s5 + $0xbc] sm:$0xf] %vm1250_vm3, %v1499_v42  ;;  %v1465_v3 = vpack.c.bf16 %v943_v51, %v943_v51  ;;  %vm841_vm5 = vcmp.ge.f32.partialorder %v776_v60, 0.0  ;;  %v911_v4 = vmul.f32 %v1837_v44, %v776_v60  ;;  %vm814_vm6 = vcmp.ge.f32.partialorder %v749_v61, 0.0 }
 0x103   :  { %v884_v5 = vmul.f32 %v1837_v44, %v749_v61  ;;  %vm846_vm7 = vcmp.ge.f32.partialorder %v781_v50, 0.0  ;;  %v916_v58 = vmul.f32 %v1837_v44, %v781_v50  ;;  %v747_v59 = vadd.f32 %v1830_v40, %v676_v0  ;;  %v481_v27 = vpop.f32.mrf.mxu0 }
 0x104   :  { %1264 = vst.msk [vmem:[%s2345_s5 + $0x34] sm:$0xf] %vm1250_vm3, %v1465_v3  ;;  %v975_v6 = vsel %vm841_vm5, %v776_v60, %v911_v4  ;;  %v779_v7 = vadd.f32 %v1830_v40, %v708_v1  ;;  %v750_v8 = vadd.f32 %v1830_v40, %v679_v2  ;;  %v711_v9 = vmul.f32 %v2021_v13, %v1825_v38 }
 0x105   :  { %v1497_v14 = vpack.c.bf16 %v975_v6, %v975_v6  ;;  %v948_v15 = vsel %vm814_vm6, %v749_v61, %v884_v5  ;;  %v980_v12 = vsel %vm846_vm7, %v781_v50, %v916_v58  ;;  %vm812_vm8 = vcmp.ge.f32.partialorder %v747_v59, 0.0  ;;  %v1580_v46 = vpop.f32.mrf.mxu0 }
 0x106   :  { %v1470_v16 = vpack.c.bf16 %v948_v15, %v948_v15  ;;  %v1502_v17 = vpack.c.bf16 %v980_v12, %v980_v12  ;;  %v882_v18 = vmul.f32 %v1837_v44, %v747_v59  ;;  %vm844_vm9 = vcmp.ge.f32.partialorder %v779_v7, 0.0 }
 0x107   :  { %1296 = vst.msk [vmem:[%s2345_s5 + $0xb4] sm:$0xf] %vm1250_vm3, %v1497_v14  ;;  %v914_v19 = vmul.f32 %v1837_v44, %v779_v7  ;;  %vm815_vm10 = vcmp.ge.f32.partialorder %v750_v8, 0.0  ;;  %v885_v13 = vmul.f32 %v1837_v44, %v750_v8  ;;  %v782_v20 = vadd.f32 %v1830_v40, %v711_v9 }
 0x108   :  { %1269 = vst.msk [vmem:[%s2345_s5 + $0x48] sm:$0xf] %vm1250_vm3, %v1470_v16  ;;  %1301 = vst.msk [vmem:[%s2345_s5 + $0xc8] sm:$0xf] %vm1250_vm3, %v1502_v17  ;;  %v946_v22 = vsel %vm812_vm8, %v747_v59, %v882_v18  ;;  %v677_v23 = vmul.f32 %v1825_v38, %v2047_v21  ;;  %v709_v24 = vmul.f32 %v1825_v38, %v2049_v25 }
 0x109   :  { %v682_v26 = vmul.f32 %v1576_v43, %v1825_v38  ;;  %v1468_v29 = vpack.c.bf16 %v946_v22, %v946_v22  ;;  %v978_v30 = vsel %vm844_vm9, %v779_v7, %v914_v19  ;;  %v949_v31 = vsel %vm815_vm10, %v750_v8, %v885_v13 }
 0x10a   :  { %vm847_vm11 = vcmp.ge.f32.partialorder %v782_v20, 0.0  ;;  %v1500_v32 = vpack.c.bf16 %v978_v30, %v978_v30  ;;  %v1471_v33 = vpack.c.bf16 %v949_v31, %v949_v31  ;;  %v917_v34 = vmul.f32 %v1837_v44, %v782_v20 }
 0x10b   :  { %v748_v35 = vadd.f32 %v1830_v40, %v677_v23  ;;  %1267 = vst.msk [vmem:[%s2345_s5 + $0x40] sm:$0xf] %vm1250_vm3, %v1468_v29  ;;  %v780_v21 = vadd.f32 %v1830_v40, %v709_v24  ;;  %v753_v25 = vadd.f32 %v1830_v40, %v682_v26  ;;  %v714_v36 = vmul.f32 %v2067_v45, %v1825_v38  ;;  %v1612_v45 = vpop.f32.mrf.mxu1 }
 0x10c   :  { %v680_v37 = vmul.f32 %v1825_v38, %v478_v62  ;;  %1299 = vst.msk [vmem:[%s2345_s5 + $0xc0] sm:$0xf] %vm1250_vm3, %v1500_v32  ;;  %1270 = vst.msk [vmem:[%s2345_s5 + $0x4c] sm:$0xf] %vm1250_vm3, %v1471_v33  ;;  %v981_v39 = vsel %vm847_vm11, %v782_v20, %v917_v34  ;;  %v712_v41 = vmul.f32 %v1825_v38, %v606_v63  ;;  %v494_v62 = vpop.f32.mrf.mxu0 }
 0x10d   :  { %vm813_vm12 = vcmp.ge.f32.partialorder %v748_v35, 0.0  ;;  %v883_v43 = vmul.f32 %v1837_v44, %v748_v35  ;;  %v1503_v47 = vpack.c.bf16 %v981_v39, %v981_v39  ;;  %vm845_vm13 = vcmp.ge.f32.partialorder %v780_v21, 0.0  ;;  %v622_v63 = vpop.f32.mrf.mxu1 }
 0x10e   :  { %v915_v48 = vmul.f32 %v1837_v44, %v780_v21  ;;  %vm818_vm14 = vcmp.ge.f32.partialorder %v753_v25, 0.0  ;;  %v888_v52 = vmul.f32 %v1837_v44, %v753_v25  ;;  %v785_v53 = vadd.f32 %v1830_v40, %v714_v36 }
 0x10f   :  { %v947_v49 = vsel %vm813_vm12, %v748_v35, %v883_v43  ;;  %v751_v54 = vadd.f32 %v1830_v40, %v680_v37  ;;  %1302 = vst.msk [vmem:[%s2345_s5 + $0xcc] sm:$0xf] %vm1250_vm3, %v1503_v47  ;;  %v783_v57 = vadd.f32 %v1830_v40, %v712_v41  ;;  %v683_v42 = vmul.f32 %v1577_v10, %v1825_v38  ;;  %v1581_v10 = vpop.f32.mrf.mxu0  ;;  %v1613_v14 = vpop.f32.mrf.mxu1 }
 0x110   :  { %v1469_v55 = vpack.c.bf16 %v947_v49, %v947_v49  ;;  %v979_v56 = vsel %vm845_vm13, %v780_v21, %v915_v48  ;;  %v952_v61 = vsel %vm818_vm14, %v753_v25, %v888_v52  ;;  %vm850_vm15 = vcmp.ge.f32.partialorder %v785_v53, 0.0 }
 0x111   :  { %v1501_v60 = vpack.c.bf16 %v979_v56, %v979_v56  ;;  %v920_v50 = vmul.f32 %v1837_v44, %v785_v53  ;;  %v1474_v51 = vpack.c.bf16 %v952_v61, %v952_v61  ;;  %vm816_vm0 = vcmp.ge.f32.partialorder %v751_v54, 0.0 }
 0x112   :  { %1268 = vst.msk [vmem:[%s2345_s5 + $0x44] sm:$0xf] %vm1250_vm3, %v1469_v55  ;;  %v886_v0 = vmul.f32 %v1837_v44, %v751_v54  ;;  %vm848_vm1 = vcmp.ge.f32.partialorder %v783_v57, 0.0  ;;  %v918_v2 = vmul.f32 %v1837_v44, %v783_v57  ;;  %v754_v3 = vadd.f32 %v1830_v40, %v683_v42 }
 0x113   :  { %1300 = vst.msk [vmem:[%s2345_s5 + $0xc4] sm:$0xf] %vm1250_vm3, %v1501_v60  ;;  %v984_v1 = vsel %vm850_vm15, %v785_v53, %v920_v50  ;;  %v715_v4 = vmul.f32 %v2119_v11, %v1825_v38  ;;  %1273 = vst.msk [vmem:[%s2345_s5 + $0x58] sm:$0xf] %vm1250_vm3, %v1474_v51  ;;  %v681_v59 = vmul.f32 %v1825_v38, %v481_v27  ;;  %v497_v27 = vpop.f32.mrf.mxu0 }
 0x114   :  { %v1506_v5 = vpack.c.bf16 %v984_v1, %v984_v1  ;;  %v950_v58 = vsel %vm816_vm0, %v751_v54, %v886_v0  ;;  %v713_v6 = vmul.f32 %v1825_v38, %v609_v28  ;;  %v982_v8 = vsel %vm848_vm1, %v783_v57, %v918_v2  ;;  %v625_v28 = vpop.f32.mrf.mxu1 }
 0x115   :  { %v1472_v7 = vpack.c.bf16 %v950_v58, %v950_v58  ;;  %vm819_vm2 = vcmp.ge.f32.partialorder %v754_v3, 0.0  ;;  %v889_v9 = vmul.f32 %v1837_v44, %v754_v3  ;;  %v1504_v11 = vpack.c.bf16 %v982_v8, %v982_v8  ;;  %v1584_v41 = vpop.f32.mrf.mxu0 }
 0x116   :  { %1305 = vst.msk [vmem:[%s2345_s5 + $0xd8] sm:$0xf] %vm1250_vm3, %v1506_v5  ;;  %v786_v15 = vadd.f32 %v1830_v40, %v715_v4  ;;  %v752_v12 = vadd.f32 %v1830_v40, %v681_v59  ;;  %v784_v16 = vadd.f32 %v1830_v40, %v713_v6  ;;  %v686_v18 = vmul.f32 %v1580_v46, %v1825_v38  ;;  %v1616_v46 = vpop.f32.mrf.mxu1 }
 0x117   :  { %1271 = vst.msk [vmem:[%s2345_s5 + $0x50] sm:$0xf] %vm1250_vm3, %v1472_v7  ;;  %v953_v17 = vsel %vm819_vm2, %v754_v3, %v889_v9  ;;  %v718_v19 = vmul.f32 %v1612_v45, %v1825_v38  ;;  %v684_v13 = vmul.f32 %v1825_v38, %v494_v62  ;;  %1303 = vst.msk [vmem:[%s2345_s5 + $0xd0] sm:$0xf] %vm1250_vm3, %v1504_v11 }
 0x118   :  { %v1475_v20 = vpack.c.bf16 %v953_v17, %v953_v17  ;;  %vm851_vm4 = vcmp.ge.f32.partialorder %v786_v15, 0.0  ;;  %v921_v22 = vmul.f32 %v1837_v44, %v786_v15  ;;  %vm817_vm5 = vcmp.ge.f32.partialorder %v752_v12, 0.0  ;;  %v638_v51 = vpop.f32.mrf.mxu1 }
 0x119   :  { %v887_v23 = vmul.f32 %v1837_v44, %v752_v12  ;;  %vm849_vm6 = vcmp.ge.f32.partialorder %v784_v16, 0.0  ;;  %v919_v24 = vmul.f32 %v1837_v44, %v784_v16  ;;  %v757_v26 = vadd.f32 %v1830_v40, %v686_v18 }
 0x11a   :  { %1274 = vst.msk [vmem:[%s2345_s5 + $0x5c] sm:$0xf] %vm1250_vm3, %v1475_v20  ;;  %v985_v29 = vsel %vm851_vm4, %v786_v15, %v921_v22  ;;  %v789_v30 = vadd.f32 %v1830_v40, %v718_v19  ;;  %v755_v31 = vadd.f32 %v1830_v40, %v684_v13  ;;  %v716_v32 = vmul.f32 %v1825_v38, %v622_v63  ;;  %v510_v63 = vpop.f32.mrf.mxu0  ;;  %v1617_v11 = vpop.f32.mrf.mxu1 }
 0x11b   :  { %v1507_v33 = vpack.c.bf16 %v985_v29, %v985_v29  ;;  %v951_v34 = vsel %vm817_vm5, %v752_v12, %v887_v23  ;;  %v983_v35 = vsel %vm849_vm6, %v784_v16, %v919_v24  ;;  %vm822_vm7 = vcmp.ge.f32.partialorder %v757_v26, 0.0 }
 0x11c   :  { %v1473_v21 = vpack.c.bf16 %v951_v34, %v951_v34  ;;  %v1505_v25 = vpack.c.bf16 %v983_v35, %v983_v35  ;;  %v892_v36 = vmul.f32 %v1837_v44, %v757_v26  ;;  %vm854_vm8 = vcmp.ge.f32.partialorder %v789_v30, 0.0  ;;  %v641_v29 = vpop.f32.mrf.mxu1 }
 0x11d   :  { %1306 = vst.msk [vmem:[%s2345_s5 + $0xdc] sm:$0xf] %vm1250_vm3, %v1507_v33  ;;  %v924_v37 = vmul.f32 %v1837_v44, %v789_v30  ;;  %vm820_vm9 = vcmp.ge.f32.partialorder %v755_v31, 0.0  ;;  %v890_v39 = vmul.f32 %v1837_v44, %v755_v31  ;;  %v787_v43 = vadd.f32 %v1830_v40, %v716_v32 }
 0x11e   :  { %1272 = vst.msk [vmem:[%s2345_s5 + $0x54] sm:$0xf] %vm1250_vm3, %v1473_v21  ;;  %1304 = vst.msk [vmem:[%s2345_s5 + $0xd4] sm:$0xf] %vm1250_vm3, %v1505_v25  ;;  %v956_v45 = vsel %vm822_vm7, %v757_v26, %v892_v36  ;;  %v687_v47 = vmul.f32 %v1581_v10, %v1825_v38  ;;  %v719_v48 = vmul.f32 %v1613_v14, %v1825_v38  ;;  %v1585_v14 = vpop.f32.mrf.mxu0 }
 0x11f   :  { %v685_v49 = vmul.f32 %v1825_v38, %v497_v27  ;;  %v1478_v52 = vpack.c.bf16 %v956_v45, %v956_v45  ;;  %v988_v53 = vsel %vm854_vm8, %v789_v30, %v924_v37  ;;  %v954_v54 = vsel %vm820_vm9, %v755_v31, %v890_v39 }
 0x120   :  { %vm852_vm10 = vcmp.ge.f32.partialorder %v787_v43, 0.0  ;;  %v1510_v55 = vpack.c.bf16 %v988_v53, %v988_v53  ;;  %v1476_v56 = vpack.c.bf16 %v954_v54, %v954_v54  ;;  %v922_v57 = vmul.f32 %v1837_v44, %v787_v43 }
 0x121   :  { %v758_v42 = vadd.f32 %v1830_v40, %v687_v47  ;;  %1277 = vst.msk [vmem:[%s2345_s5 + $0x68] sm:$0xf] %vm1250_vm3, %v1478_v52  ;;  %v790_v60 = vadd.f32 %v1830_v40, %v719_v48  ;;  %v756_v61 = vadd.f32 %v1830_v40, %v685_v49  ;;  %v717_v50 = vmul.f32 %v1825_v38, %v625_v28  ;;  %v513_v28 = vpop.f32.mrf.mxu0 }
 0x122   :  { %v690_v62 = vmul.f32 %v1584_v41, %v1825_v38  ;;  %1309 = vst.msk [vmem:[%s2345_s5 + $0xe8] sm:$0xf] %vm1250_vm3, %v1510_v55  ;;  %1275 = vst.msk [vmem:[%s2345_s5 + $0x60] sm:$0xf] %vm1250_vm3, %v1476_v56  ;;  %v986_v0 = vsel %vm852_vm10, %v787_v43, %v922_v57  ;;  %v722_v2 = vmul.f32 %v1616_v46, %v1825_v38 }
 0x123   :  { %vm823_vm11 = vcmp.ge.f32.partialorder %v758_v42, 0.0  ;;  %v893_v1 = vmul.f32 %v1837_v44, %v758_v42  ;;  %v1508_v3 = vpack.c.bf16 %v986_v0, %v986_v0  ;;  %vm855_vm12 = vcmp.ge.f32.partialorder %v790_v60, 0.0 }
 0x124   :  { %v925_v4 = vmul.f32 %v1837_v44, %v790_v60  ;;  %vm821_vm13 = vcmp.ge.f32.partialorder %v756_v61, 0.0  ;;  %v891_v58 = vmul.f32 %v1837_v44, %v756_v61  ;;  %v788_v59 = vadd.f32 %v1830_v40, %v717_v50 }
 0x125   :  { %v957_v5 = vsel %vm823_vm11, %v758_v42, %v893_v1  ;;  %v761_v6 = vadd.f32 %v1830_v40, %v690_v62  ;;  %1307 = vst.msk [vmem:[%s2345_s5 + $0xe0] sm:$0xf] %vm1250_vm3, %v1508_v3  ;;  %v793_v9 = vadd.f32 %v1830_v40, %v722_v2  ;;  %v688_v10 = vmul.f32 %v1825_v38, %v510_v63 }
 0x126   :  { %v1479_v7 = vpack.c.bf16 %v957_v5, %v957_v5  ;;  %v989_v8 = vsel %vm855_vm12, %v790_v60, %v925_v4  ;;  %v955_v12 = vsel %vm821_vm13, %v756_v61, %v891_v58  ;;  %vm853_vm14 = vcmp.ge.f32.partialorder %v788_v59, 0.0 }
 0x127   :  { %v1511_v15 = vpack.c.bf16 %v989_v8, %v989_v8  ;;  %v923_v16 = vmul.f32 %v1837_v44, %v788_v59  ;;  %v1477_v17 = vpack.c.bf16 %v955_v12, %v955_v12  ;;  %vm826_vm15 = vcmp.ge.f32.partialorder %v761_v6, 0.0 }
 0x128   :  { %1278 = vst.msk [vmem:[%s2345_s5 + $0x6c] sm:$0xf] %vm1250_vm3, %v1479_v7  ;;  %v896_v18 = vmul.f32 %v1837_v44, %v761_v6  ;;  %vm858_vm0 = vcmp.ge.f32.partialorder %v793_v9, 0.0  ;;  %v928_v13 = vmul.f32 %v1837_v44, %v793_v9  ;;  %v759_v20 = vadd.f32 %v1830_v40, %v688_v10 }
 0x129   :  { %1310 = vst.msk [vmem:[%s2345_s5 + $0xec] sm:$0xf] %vm1250_vm3, %v1511_v15  ;;  %v987_v19 = vsel %vm853_vm14, %v788_v59, %v923_v16  ;;  %v720_v22 = vmul.f32 %v1825_v38, %v638_v51  ;;  %1276 = vst.msk [vmem:[%s2345_s5 + $0x64] sm:$0xf] %vm1250_vm3, %v1477_v17  ;;  %v691_v26 = vmul.f32 %v1585_v14, %v1825_v38 }
 0x12a   :  { %v1509_v23 = vpack.c.bf16 %v987_v19, %v987_v19  ;;  %v960_v24 = vsel %vm826_vm15, %v761_v6, %v896_v18  ;;  %v723_v27 = vmul.f32 %v1617_v11, %v1825_v38  ;;  %v992_v31 = vsel %vm858_vm0, %v793_v9, %v928_v13 }
 0x12b   :  { %v1482_v30 = vpack.c.bf16 %v960_v24, %v960_v24  ;;  %vm824_vm1 = vcmp.ge.f32.partialorder %v759_v20, 0.0  ;;  %v894_v32 = vmul.f32 %v1837_v44, %v759_v20  ;;  %v1514_v33 = vpack.c.bf16 %v992_v31, %v992_v31 }
 0x12c   :  { %1308 = vst.msk [vmem:[%s2345_s5 + $0xe4] sm:$0xf] %vm1250_vm3, %v1509_v23  ;;  %v791_v34 = vadd.f32 %v1830_v40, %v720_v22  ;;  %v762_v35 = vadd.f32 %v1830_v40, %v691_v26  ;;  %v794_v21 = vadd.f32 %v1830_v40, %v723_v27  ;;  %v689_v36 = vmul.f32 %v1825_v38, %v513_v28 }
 0x12d   :  { %1281 = vst.msk [vmem:[%s2345_s5 + $0x78] sm:$0xf] %vm1250_vm3, %v1482_v30  ;;  %v958_v25 = vsel %vm824_vm1, %v759_v20, %v894_v32  ;;  %v721_v37 = vmul.f32 %v1825_v38, %v641_v29  ;;  %1313 = vst.msk [vmem:[%s2345_s5 + $0xf8] sm:$0xf] %vm1250_vm3, %v1514_v33 }
 0x12e   :  { %v1480_v39 = vpack.c.bf16 %v958_v25, %v958_v25  ;;  %vm856_vm2 = vcmp.ge.f32.partialorder %v791_v34, 0.0  ;;  %v926_v43 = vmul.f32 %v1837_v44, %v791_v34  ;;  %vm827_vm4 = vcmp.ge.f32.partialorder %v762_v35, 0.0 }
 0x12f   :  { %v897_v41 = vmul.f32 %v1837_v44, %v762_v35  ;;  %vm859_vm5 = vcmp.ge.f32.partialorder %v794_v21, 0.0  ;;  %v929_v46 = vmul.f32 %v1837_v44, %v794_v21  ;;  %v760_v45 = vadd.f32 %v1830_v40, %v689_v36 }
 0x130   :  { %1279 = vst.msk [vmem:[%s2345_s5 + $0x70] sm:$0xf] %vm1250_vm3, %v1480_v39  ;;  %v990_v38 = vsel %vm856_vm2, %v791_v34, %v926_v43  ;;  %v792_v47 = vadd.f32 %v1830_v40, %v721_v37 }
 0x131   :  { %v1512_v48 = vpack.c.bf16 %v990_v38, %v990_v38  ;;  %v961_v49 = vsel %vm827_vm4, %v762_v35, %v897_v41  ;;  %v993_v52 = vsel %vm859_vm5, %v794_v21, %v929_v46  ;;  %vm825_vm6 = vcmp.ge.f32.partialorder %v760_v45, 0.0 }
 0x132   :  { %v1483_v53 = vpack.c.bf16 %v961_v49, %v961_v49  ;;  %v1515_v54 = vpack.c.bf16 %v993_v52, %v993_v52  ;;  %v895_v55 = vmul.f32 %v1837_v44, %v760_v45  ;;  %vm857_vm7 = vcmp.ge.f32.partialorder %v792_v47, 0.0 }
 0x133   :  { %1311 = vst.msk [vmem:[%s2345_s5 + $0xf0] sm:$0xf] %vm1250_vm3, %v1512_v48  ;;  %v927_v56 = vmul.f32 %v1837_v44, %v792_v47 }
 0x134   :  { %1282 = vst.msk [vmem:[%s2345_s5 + $0x7c] sm:$0xf] %vm1250_vm3, %v1483_v53  ;;  %1314 = vst.msk [vmem:[%s2345_s5 + $0xfc] sm:$0xf] %vm1250_vm3, %v1515_v54  ;;  %v959_v40 = vsel %vm825_vm6, %v760_v45, %v895_v55 }
 0x135   :  { %v1481_v57 = vpack.c.bf16 %v959_v40, %v959_v40  ;;  %v991_v42 = vsel %vm857_vm7, %v792_v47, %v927_v56 }
 0x136   :  { %v1513_v60 = vpack.c.bf16 %v991_v42, %v991_v42 }
 0x137   :  { %1280 = vst.msk [vmem:[%s2345_s5 + $0x74] sm:$0xf] %vm1250_vm3, %v1481_v57 }
 0x138   :  { %1312 = vst.msk [vmem:[%s2345_s5 + $0xf4] sm:$0xf] %vm1250_vm3, %v1513_v60 }

// kernel: _lambda_.10
= control target key start
LH: loop header
LB: loop body
LE: loop exit
PB: predicated region body
PF: predicated region fallthrough
CT: control target
= control target key end

     0   :  { %v1993_v0 = vmov 0.0   ;;  %vm1994_vm0 = vmmov 0   ;;  %vm744_vm1 = vcmask 130048   ;;  %vm854_vm2 = vcmask 15360   ;;  %s2718_s0 = inlined_call_operand.vmem [shape: bf16[9,128,16], index: 0, kind: input, shape index: {}]   ;;  %s2719_s1 = inlined_call_operand.vmem [shape: f32[9,1,16], index: 1, kind: input, shape index: {}]   ;;  %s2720_s2 = inlined_call_operand.vmem [shape: bf16[2,128], index: 2, kind: input, shape index: {}]   ;;  %s2721_s4 = inlined_call_operand.vmem [shape: bf16[16,16], index: 4, kind: input, shape index: {}]   ;;  %s2722_s3 = inlined_call_operand.vmem [shape: bf16[128,2], index: 3, kind: input, shape index: {}]   ;;  %s2723_s5 = inlined_call_operand.vmem [shape: f32[1,16], index: 5, kind: input, shape index: {}]   ;;  %s2724_s6 = inlined_call_operand.vmem [shape: f32[1,16], index: 6, kind: input, shape index: {}]   ;;  %s2725_s7 = inlined_call_operand.vmem [shape: bf16[16,20], index: 7, kind: input, shape index: {}]   ;;  %s2726_s8 = inlined_call_operand.vmem [shape: f32[1,20], index: 8, kind: input, shape index: {}]   ;;  %s2727_s9 = inlined_call_operand.vmem [shape: f32[1,20], index: 9, kind: input, shape index: {}]   ;;  %s2728_s10 = inlined_call_operand.vmem [shape: f32[1,20], index: 10, kind: input, shape index: {}]   ;;  %s2729_s11 = inlined_call_operand.vmem [shape: bf16[128,20], index: 11, kind: output, shape index: {}]  }
   0x1   :  { %1916 = vmatprep.subr.bf16.mxu0 %v1993_v0  ;;  %v1822_v1 = vld [vmem:[%s2718_s0 + $0x38] sm:$0xff]   ;;  %v2062_v2 = vld [vmem:[%s2719_s1] ss:$0 sm:$0xff]  ;;  %1932 = vmatprep.mubr.msk.bf16.mxu0 %vm1994_vm0, %v1993_v0  ;;  %v2071_v8 = vld [vmem:[%s2719_s1 + $0x1] ss:$0 sm:$0xff]  ;;  %vm879_vm4 = vcmask 1040384  }
   0x2   :  { %v1830_v3 = vld [vmem:[%s2718_s0 + $0x78] sm:$0xff]   ;;  %v1558_v4 = vunpack.c.l.bf16 %v1822_v1  ;;  %v1559_v5 = vunpack.c.h.bf16 %v1822_v1  ;;  %v2079_v10 = vld [vmem:[%s2719_s1 + $0x2] ss:$0 sm:$0xff]  ;;  %1936 = vmatprep.subr.bf16.mxu1 %v1993_v0  ;;  %1938 = vmatprep.mubr.msk.bf16.mxu1 %vm1994_vm0, %v1993_v0  ;;  %v2096_v19 = vld [vmem:[%s2719_s1 + $0x3] ss:$0 sm:$0xff]  ;;  %vm1298_vm6 = vcmask 158720  }
   0x3   :  { %v1590_v6 = vunpack.c.l.bf16 %v1830_v3  ;;  %v1591_v7 = vunpack.c.h.bf16 %v1830_v3  ;;  %v1838_v9 = vld [vmem:[%s2718_s0 + $0xb8] sm:$0xff]   ;;  %v2106_v25 = vld [vmem:[%s2719_s1 + $0x4] ss:$0 sm:$0xff]  ;;  %v2111_v30 = vld [vmem:[%s2719_s1 + $0x5] ss:$0 sm:$0xff] }
   0x4   :  { %v1622_v11 = vunpack.c.l.bf16 %v1838_v9  ;;  %v1623_v12 = vunpack.c.h.bf16 %v1838_v9  ;;  %v1846_v13 = vld [vmem:[%s2718_s0 + $0xf8] sm:$0xff]   ;;  %v92_v15 = vmul.f32 %v1558_v4, %v2062_v2  ;;  %v93_v16 = vmul.f32 %v1559_v5, %v2062_v2  ;;  %v2126_v41 = vld [vmem:[%s2719_s1 + $0x6] ss:$0 sm:$0xff]  ;;  %v2136_v47 = vld [vmem:[%s2719_s1 + $0x7] ss:$0 sm:$0xff] }
   0x5   :  { %v1854_v14 = vld [vmem:[%s2718_s0 + $0x138] sm:$0xff]   ;;  %v149_v17 = vmul.f32 %v1590_v6, %v2071_v8  ;;  %v150_v18 = vmul.f32 %v1591_v7, %v2071_v8  ;;  %v1654_v23 = vunpack.c.l.bf16 %v1846_v13  ;;  %v1655_v24 = vunpack.c.h.bf16 %v1846_v13  ;;  %v2141_v52 = vld [vmem:[%s2719_s1 + $0x8] ss:$0 sm:$0xff]  ;;  %v1821_v53 = vld [vmem:[%s2718_s0 + $0x30] sm:$0xff]  }
   0x6   :  { %v1862_v20 = vld [vmem:[%s2718_s0 + $0x178] sm:$0xff]   ;;  %v222_v21 = vmul.f32 %v1622_v11, %v2079_v10  ;;  %v223_v22 = vmul.f32 %v1623_v12, %v2079_v10  ;;  %v1686_v28 = vunpack.c.l.bf16 %v1854_v14  ;;  %v1687_v29 = vunpack.c.h.bf16 %v1854_v14  ;;  %v1829_v58 = vld [vmem:[%s2718_s0 + $0x70] sm:$0xff]  }
   0x7   :  { %v165_v26 = vadd.f32 %v149_v17, %v92_v15  ;;  %v166_v27 = vadd.f32 %v150_v18, %v93_v16  ;;  %v1870_v31 = vld [vmem:[%s2718_s0 + $0x1b8] sm:$0xff]   ;;  %v295_v32 = vmul.f32 %v1654_v23, %v2096_v19  ;;  %v296_v33 = vmul.f32 %v1655_v24, %v2096_v19  ;;  %v1837_v63 = vld [vmem:[%s2718_s0 + $0xb0] sm:$0xff]  }
   0x8   :  { %v1718_v34 = vunpack.c.l.bf16 %v1862_v20  ;;  %v1719_v35 = vunpack.c.h.bf16 %v1862_v20  ;;  %v1878_v36 = vld [vmem:[%s2718_s0 + $0x1f8] sm:$0xff]   ;;  %v368_v39 = vmul.f32 %v1686_v28, %v2106_v25  ;;  %v369_v40 = vmul.f32 %v1687_v29, %v2106_v25  ;;  %v1845_v12 = vld [vmem:[%s2718_s0 + $0xf0] sm:$0xff]  }
   0x9   :  { %v238_v37 = vadd.f32 %v222_v21, %v165_v26  ;;  %v239_v38 = vadd.f32 %v223_v22, %v166_v27  ;;  %v1886_v42 = vld [vmem:[%s2718_s0 + $0x238] sm:$0xff]   ;;  %v1750_v45 = vunpack.c.l.bf16 %v1870_v31  ;;  %v1751_v46 = vunpack.c.h.bf16 %v1870_v31  ;;  %v1853_v22 = vld [vmem:[%s2718_s0 + $0x130] sm:$0xff]  }
   0xa   :  { %v441_v43 = vmul.f32 %v1718_v34, %v2111_v30  ;;  %v442_v44 = vmul.f32 %v1719_v35, %v2111_v30  ;;  %v1782_v50 = vunpack.c.l.bf16 %v1878_v36  ;;  %v1783_v51 = vunpack.c.h.bf16 %v1878_v36 }
   0xb   :  { %v311_v48 = vadd.f32 %v295_v32, %v238_v37  ;;  %v312_v49 = vadd.f32 %v296_v33, %v239_v38  ;;  %v514_v54 = vmul.f32 %v1750_v45, %v2126_v41  ;;  %v515_v55 = vmul.f32 %v1751_v46, %v2126_v41  ;;  %v1861_v33 = vld [vmem:[%s2718_s0 + $0x170] sm:$0xff]  }
   0xc   :  { %v1814_v56 = vunpack.c.l.bf16 %v1886_v42  ;;  %v1815_v57 = vunpack.c.h.bf16 %v1886_v42  ;;  %v587_v61 = vmul.f32 %v1782_v50, %v2136_v47  ;;  %v588_v62 = vmul.f32 %v1783_v51, %v2136_v47  ;;  %v1869_v38 = vld [vmem:[%s2718_s0 + $0x1b0] sm:$0xff]  }
   0xd   :  { %v384_v59 = vadd.f32 %v368_v39, %v311_v48  ;;  %v385_v60 = vadd.f32 %v369_v40, %v312_v49  ;;  %v1554_v4 = vunpack.c.l.bf16 %v1821_v53  ;;  %v1555_v5 = vunpack.c.h.bf16 %v1821_v53 }
   0xe   :  { %v660_v1 = vmul.f32 %v1814_v56, %v2141_v52  ;;  %v661_v3 = vmul.f32 %v1815_v57, %v2141_v52  ;;  %v1586_v9 = vunpack.c.l.bf16 %v1829_v58  ;;  %v1587_v11 = vunpack.c.h.bf16 %v1829_v58 }
   0xf   :  { %v457_v6 = vadd.f32 %v441_v43, %v384_v59  ;;  %v458_v7 = vadd.f32 %v442_v44, %v385_v60  ;;  %v90_v13 = vmul.f32 %v1554_v4, %v2062_v2  ;;  %v91_v14 = vmul.f32 %v1555_v5, %v2062_v2  ;;  %v1877_v44 = vld [vmem:[%s2718_s0 + $0x1f0] sm:$0xff]   ;;  %v1820_v60 = vld [vmem:[%s2718_s0 + $0x28] sm:$0xff]  }
  0x10   :  { %v1618_v15 = vunpack.c.l.bf16 %v1837_v63  ;;  %v1619_v16 = vunpack.c.h.bf16 %v1837_v63  ;;  %v147_v20 = vmul.f32 %v1586_v9, %v2071_v8  ;;  %v148_v21 = vmul.f32 %v1587_v11, %v2071_v8 }
  0x11   :  { %v530_v17 = vadd.f32 %v514_v54, %v457_v6  ;;  %v531_v18 = vadd.f32 %v515_v55, %v458_v7  ;;  %v1650_v26 = vunpack.c.l.bf16 %v1845_v12  ;;  %v1651_v27 = vunpack.c.h.bf16 %v1845_v12  ;;  %v1885_v55 = vld [vmem:[%s2718_s0 + $0x230] sm:$0xff]  }
  0x12   :  { %v220_v23 = vmul.f32 %v1618_v15, %v2079_v10  ;;  %v221_v24 = vmul.f32 %v1619_v16, %v2079_v10  ;;  %v163_v31 = vadd.f32 %v147_v20, %v90_v13  ;;  %v164_v32 = vadd.f32 %v148_v21, %v91_v14  ;;  %v1836_v14 = vld [vmem:[%s2718_s0 + $0xa8] sm:$0xff]  }
  0x13   :  { %v603_v28 = vadd.f32 %v587_v61, %v530_v17  ;;  %v604_v29 = vadd.f32 %v588_v62, %v531_v18  ;;  %v293_v34 = vmul.f32 %v1650_v26, %v2096_v19  ;;  %v294_v35 = vmul.f32 %v1651_v27, %v2096_v19  ;;  %v1844_v20 = vld [vmem:[%s2718_s0 + $0xe8] sm:$0xff]  }
  0x14   :  { %v1682_v36 = vunpack.c.l.bf16 %v1853_v22  ;;  %v1683_v37 = vunpack.c.h.bf16 %v1853_v22  ;;  %v236_v42 = vadd.f32 %v220_v23, %v163_v31  ;;  %v237_v43 = vadd.f32 %v221_v24, %v164_v32 }
  0x15   :  { %v2178_v39 = vadd.f32 %v660_v1, %v603_v28  ;;  %v2180_v40 = vadd.f32 %v661_v3, %v604_v29  ;;  %v1714_v48 = vunpack.c.l.bf16 %v1861_v33  ;;  %v1715_v49 = vunpack.c.h.bf16 %v1861_v33  ;;  %v1828_v3 = vld [vmem:[%s2718_s0 + $0x68] sm:$0xff]  }
  0x16   :  { %v366_v45 = vmul.f32 %v1682_v36, %v2106_v25  ;;  %v367_v46 = vmul.f32 %v1683_v37, %v2106_v25  ;;  %v309_v51 = vadd.f32 %v293_v34, %v236_v42  ;;  %v310_v53 = vadd.f32 %v294_v35, %v237_v43  ;;  %v1852_v35 = vld [vmem:[%s2718_s0 + $0x128] sm:$0xff]  }
  0x17   :  { %v686_v50 = vpack.c.bf16 %v2180_v40, %v2178_v39  ;;  %v1746_v54 = vunpack.c.l.bf16 %v1869_v38  ;;  %v439_v56 = vmul.f32 %v1714_v48, %v2111_v30  ;;  %v440_v57 = vmul.f32 %v1715_v49, %v2111_v30  ;;  %v1860_v43 = vld [vmem:[%s2718_s0 + $0x168] sm:$0xff]  }
  0x18   :  { %v1747_v58 = vunpack.c.h.bf16 %v1869_v38  ;;  %v1778_v59 = vunpack.c.l.bf16 %v1877_v44  ;;  %v382_v61 = vadd.f32 %v366_v45, %v309_v51  ;;  %v383_v62 = vadd.f32 %v367_v46, %v310_v53  ;;  %v1868_v49 = vld [vmem:[%s2718_s0 + $0x1a8] sm:$0xff]  }
  0x19   :  { %1917 = vmatpush3.bf16.msra.mxu0 %v686_v50  ;;  %v512_v63 = vmul.f32 %v1746_v54, %v2126_v41  ;;  %v1779_v1 = vunpack.c.h.bf16 %v1877_v44  ;;  %v1810_v6 = vunpack.c.l.bf16 %v1885_v55  ;;  %v1811_v7 = vunpack.c.h.bf16 %v1885_v55 }
  0x1a   :  { %1918 = vmatprep.subr.bf16.mxu0 %v1993_v0  ;;  %v513_v4 = vmul.f32 %v1747_v58, %v2126_v41  ;;  %v585_v5 = vmul.f32 %v1778_v59, %v2136_v47  ;;  %v455_v9 = vadd.f32 %v439_v56, %v382_v61  ;;  %v456_v11 = vadd.f32 %v440_v57, %v383_v62  ;;  %v1876_v59 = vld [vmem:[%s2718_s0 + $0x1e8] sm:$0xff]  }
  0x1b   :  { %v586_v12 = vmul.f32 %v1779_v1, %v2136_v47  ;;  %v1550_v13 = vunpack.c.l.bf16 %v1820_v60  ;;  %v658_v15 = vmul.f32 %v1810_v6, %v2141_v52  ;;  %v659_v16 = vmul.f32 %v1811_v7, %v2141_v52  ;;  %v1884_v1 = vld [vmem:[%s2718_s0 + $0x228] sm:$0xff]   ;;  %v1819_v7 = vld [vmem:[%s2718_s0 + $0x20] sm:$0xff]  }
  0x1c   :  { %v1551_v17 = vunpack.c.h.bf16 %v1820_v60  ;;  %v1582_v18 = vunpack.c.l.bf16 %v1828_v3  ;;  %v528_v21 = vadd.f32 %v512_v63, %v455_v9  ;;  %v529_v22 = vadd.f32 %v513_v4, %v456_v11 }
  0x1d   :  { %v88_v23 = vmul.f32 %v1550_v13, %v2062_v2  ;;  %v1583_v24 = vunpack.c.h.bf16 %v1828_v3  ;;  %v1614_v28 = vunpack.c.l.bf16 %v1836_v14  ;;  %v1615_v29 = vunpack.c.h.bf16 %v1836_v14 }
  0x1e   :  { %v89_v26 = vmul.f32 %v1551_v17, %v2062_v2  ;;  %v145_v27 = vmul.f32 %v1582_v18, %v2071_v8  ;;  %v601_v31 = vadd.f32 %v585_v5, %v528_v21  ;;  %v602_v32 = vadd.f32 %v586_v12, %v529_v22  ;;  %v1827_v18 = vld [vmem:[%s2718_s0 + $0x60] sm:$0xff]  }
  0x1f   :  { %v146_v33 = vmul.f32 %v1583_v24, %v2071_v8  ;;  %v1646_v34 = vunpack.c.l.bf16 %v1844_v20  ;;  %v218_v37 = vmul.f32 %v1614_v28, %v2079_v10  ;;  %v219_v38 = vmul.f32 %v1615_v29, %v2079_v10  ;;  %v1835_v24 = vld [vmem:[%s2718_s0 + $0xa0] sm:$0xff]  }
  0x20   :  { %v161_v36 = vadd.f32 %v145_v27, %v88_v23  ;;  %v1647_v42 = vunpack.c.h.bf16 %v1844_v20  ;;  %v2225_v44 = vadd.f32 %v658_v15, %v601_v31  ;;  %v2227_v45 = vadd.f32 %v659_v16, %v602_v32  ;;  %v1843_v31 = vld [vmem:[%s2718_s0 + $0xe0] sm:$0xff]  }
  0x21   :  { %v162_v46 = vadd.f32 %v146_v33, %v89_v26  ;;  %v291_v48 = vmul.f32 %v1646_v34, %v2096_v19  ;;  %v1678_v53 = vunpack.c.l.bf16 %v1852_v35  ;;  %v1679_v54 = vunpack.c.h.bf16 %v1852_v35 }
  0x22   :  { %v234_v50 = vadd.f32 %v218_v37, %v161_v36  ;;  %v292_v51 = vmul.f32 %v1647_v42, %v2096_v19  ;;  %v685_v55 = vpack.c.bf16 %v2227_v45, %v2225_v44  ;;  %v1710_v57 = vunpack.c.l.bf16 %v1860_v43 }
  0x23   :  { %v235_v56 = vadd.f32 %v219_v38, %v162_v46  ;;  %v1711_v58 = vunpack.c.h.bf16 %v1860_v43  ;;  %v364_v61 = vmul.f32 %v1678_v53, %v2106_v25  ;;  %v365_v62 = vmul.f32 %v1679_v54, %v2106_v25 }
  0x24   :  { %v307_v60 = vadd.f32 %v291_v48, %v234_v50  ;;  %v1742_v63 = vunpack.c.l.bf16 %v1868_v49  ;;  %1919 = vmatpush3.bf16.msra.mxu0 %v685_v55  ;;  %v437_v4 = vmul.f32 %v1710_v57, %v2111_v30  ;;  %v1743_v6 = vunpack.c.h.bf16 %v1868_v49  ;;  %v1851_v50 = vld [vmem:[%s2718_s0 + $0x120] sm:$0xff]  }
  0x25   :  { %v308_v3 = vadd.f32 %v292_v51, %v235_v56  ;;  %v438_v5 = vmul.f32 %v1711_v58, %v2111_v30  ;;  %1920 = vmatprep.subr.bf16.mxu0 %v1993_v0  ;;  %v1774_v12 = vunpack.c.l.bf16 %v1876_v59  ;;  %v1775_v13 = vunpack.c.h.bf16 %v1876_v59  ;;  %v1859_v56 = vld [vmem:[%s2718_s0 + $0x160] sm:$0xff]  }
  0x26   :  { %v380_v9 = vadd.f32 %v364_v61, %v307_v60  ;;  %v510_v11 = vmul.f32 %v1742_v63, %v2126_v41  ;;  %v511_v15 = vmul.f32 %v1743_v6, %v2126_v41  ;;  %v1806_v16 = vunpack.c.l.bf16 %v1884_v1  ;;  %v1867_v61 = vld [vmem:[%s2718_s0 + $0x1a0] sm:$0xff]  }
  0x27   :  { %v381_v14 = vadd.f32 %v365_v62, %v308_v3  ;;  %v1807_v17 = vunpack.c.h.bf16 %v1884_v1  ;;  %v583_v21 = vmul.f32 %v1774_v12, %v2136_v47  ;;  %v584_v22 = vmul.f32 %v1775_v13, %v2136_v47 }
  0x28   :  { %v453_v20 = vadd.f32 %v437_v4, %v380_v9  ;;  %v1546_v23 = vunpack.c.l.bf16 %v1819_v7  ;;  %v656_v27 = vmul.f32 %v1806_v16, %v2141_v52  ;;  %v1547_v29 = vunpack.c.h.bf16 %v1819_v7  ;;  %v1875_v9 = vld [vmem:[%s2718_s0 + $0x1e0] sm:$0xff]  }
  0x29   :  { %v454_v26 = vadd.f32 %v438_v5, %v381_v14  ;;  %v657_v28 = vmul.f32 %v1807_v17, %v2141_v52  ;;  %v1578_v34 = vunpack.c.l.bf16 %v1827_v18  ;;  %v1579_v35 = vunpack.c.h.bf16 %v1827_v18 }
  0x2a   :  { %v526_v32 = vadd.f32 %v510_v11, %v453_v20  ;;  %v86_v33 = vmul.f32 %v1546_v23, %v2062_v2  ;;  %v87_v37 = vmul.f32 %v1547_v29, %v2062_v2  ;;  %v1610_v38 = vunpack.c.l.bf16 %v1835_v24 }
  0x2b   :  { %v527_v36 = vadd.f32 %v511_v15, %v454_v26  ;;  %v1611_v42 = vunpack.c.h.bf16 %v1835_v24  ;;  %v143_v46 = vmul.f32 %v1578_v34, %v2071_v8  ;;  %v144_v48 = vmul.f32 %v1579_v35, %v2071_v8  ;;  %v1883_v15 = vld [vmem:[%s2718_s0 + $0x220] sm:$0xff]  }
  0x2c   :  { %v599_v43 = vadd.f32 %v583_v21, %v526_v32  ;;  %v1642_v49 = vunpack.c.l.bf16 %v1843_v31  ;;  %v216_v53 = vmul.f32 %v1610_v38, %v2079_v10  ;;  %v1643_v55 = vunpack.c.h.bf16 %v1843_v31  ;;  %v1818_v21 = vld [vmem:[%s2718_s0 + $0x18] sm:$0xff]  }
  0x2d   :  { %v600_v51 = vadd.f32 %v584_v22, %v527_v36  ;;  %v217_v54 = vmul.f32 %v1611_v42, %v2079_v10  ;;  %v159_v58 = vadd.f32 %v143_v46, %v86_v33  ;;  %v160_v59 = vadd.f32 %v144_v48, %v87_v37  ;;  %v1826_v32 = vld [vmem:[%s2718_s0 + $0x58] sm:$0xff]  }
  0x2e   :  { %v2277_v57 = vadd.f32 %v656_v27, %v599_v43  ;;  %v289_v60 = vmul.f32 %v1642_v49, %v2096_v19  ;;  %v290_v63 = vmul.f32 %v1643_v55, %v2096_v19  ;;  %v1674_v1 = vunpack.c.l.bf16 %v1851_v50  ;;  %v1834_v37 = vld [vmem:[%s2718_s0 + $0x98] sm:$0xff]  }
  0x2f   :  { %v2283_v62 = vadd.f32 %v657_v28, %v600_v51  ;;  %v1675_v3 = vunpack.c.h.bf16 %v1851_v50  ;;  %v232_v4 = vadd.f32 %v216_v53, %v159_v58  ;;  %v233_v5 = vadd.f32 %v217_v54, %v160_v59  ;;  %v1842_v48 = vld [vmem:[%s2718_s0 + $0xd8] sm:$0xff]  }
  0x30   :  { %v1706_v6 = vunpack.c.l.bf16 %v1859_v56  ;;  %v1707_v7 = vunpack.c.h.bf16 %v1859_v56  ;;  %v362_v12 = vmul.f32 %v1674_v1, %v2106_v25  ;;  %v1738_v14 = vunpack.c.l.bf16 %v1867_v61  ;;  %v1850_v1 = vld [vmem:[%s2718_s0 + $0x118] sm:$0xff]  }
  0x31   :  { %v684_v11 = vpack.c.bf16 %v2283_v62, %v2277_v57  ;;  %v363_v13 = vmul.f32 %v1675_v3, %v2106_v25  ;;  %v305_v16 = vadd.f32 %v289_v60, %v232_v4  ;;  %v306_v17 = vadd.f32 %v290_v63, %v233_v5 }
  0x32   :  { %v435_v18 = vmul.f32 %v1706_v6, %v2111_v30  ;;  %v436_v20 = vmul.f32 %v1707_v7, %v2111_v30  ;;  %v1739_v22 = vunpack.c.h.bf16 %v1867_v61  ;;  %v508_v23 = vmul.f32 %v1738_v14, %v2126_v41  ;;  %v1858_v7 = vld [vmem:[%s2718_s0 + $0x158] sm:$0xff]  }
  0x33   :  { %1921 = vmatpush3.bf16.msra.mxu0 %v684_v11  ;;  %v1770_v24 = vunpack.c.l.bf16 %v1875_v9  ;;  %v1771_v26 = vunpack.c.h.bf16 %v1875_v9  ;;  %v378_v27 = vadd.f32 %v362_v12, %v305_v16  ;;  %v379_v28 = vadd.f32 %v363_v13, %v306_v17 }
  0x34   :  { %1922 = vmatprep.subr.bf16.mxu0 %v1993_v0  ;;  %v1802_v29 = vunpack.c.l.bf16 %v1883_v15  ;;  %v1803_v31 = vunpack.c.h.bf16 %v1883_v15  ;;  %v509_v33 = vmul.f32 %v1739_v22, %v2126_v41  ;;  %v1542_v36 = vunpack.c.l.bf16 %v1818_v21 }
  0x35   :  { %v581_v34 = vmul.f32 %v1770_v24, %v2136_v47  ;;  %v582_v35 = vmul.f32 %v1771_v26, %v2136_v47  ;;  %v451_v38 = vadd.f32 %v435_v18, %v378_v27  ;;  %v452_v42 = vadd.f32 %v436_v20, %v379_v28  ;;  %v1866_v18 = vld [vmem:[%s2718_s0 + $0x198] sm:$0xff]  }
  0x36   :  { %v654_v43 = vmul.f32 %v1802_v29, %v2141_v52  ;;  %v655_v46 = vmul.f32 %v1803_v31, %v2141_v52  ;;  %v1543_v49 = vunpack.c.h.bf16 %v1818_v21  ;;  %v84_v50 = vmul.f32 %v1542_v36, %v2062_v2  ;;  %v1874_v24 = vld [vmem:[%s2718_s0 + $0x1d8] sm:$0xff]  }
  0x37   :  { %v1574_v51 = vunpack.c.l.bf16 %v1826_v32  ;;  %v1575_v53 = vunpack.c.h.bf16 %v1826_v32  ;;  %v524_v54 = vadd.f32 %v508_v23, %v451_v38  ;;  %v525_v55 = vadd.f32 %v509_v33, %v452_v42  ;;  %v1882_v31 = vld [vmem:[%s2718_s0 + $0x218] sm:$0xff]  }
  0x38   :  { %v1606_v56 = vunpack.c.l.bf16 %v1834_v37  ;;  %v1607_v58 = vunpack.c.h.bf16 %v1834_v37  ;;  %v85_v59 = vmul.f32 %v1543_v49, %v2062_v2  ;;  %v1638_v63 = vunpack.c.l.bf16 %v1842_v48 }
  0x39   :  { %v141_v60 = vmul.f32 %v1574_v51, %v2071_v8  ;;  %v142_v61 = vmul.f32 %v1575_v53, %v2071_v8  ;;  %v597_v3 = vadd.f32 %v581_v34, %v524_v54  ;;  %v598_v4 = vadd.f32 %v582_v35, %v525_v55  ;;  %v1825_v51 = vld [vmem:[%s2718_s0 + $0x50] sm:$0xff]  }
  0x3a   :  { %v214_v5 = vmul.f32 %v1606_v56, %v2079_v10  ;;  %v215_v6 = vmul.f32 %v1607_v58, %v2079_v10  ;;  %v1639_v12 = vunpack.c.h.bf16 %v1842_v48  ;;  %v287_v13 = vmul.f32 %v1638_v63, %v2096_v19  ;;  %v1833_v58 = vld [vmem:[%s2718_s0 + $0x90] sm:$0xff]  }
  0x3b   :  { %v157_v9 = vadd.f32 %v141_v60, %v84_v50  ;;  %v158_v11 = vadd.f32 %v142_v61, %v85_v59  ;;  %v2330_v14 = vadd.f32 %v654_v43, %v597_v3  ;;  %v2332_v15 = vadd.f32 %v655_v46, %v598_v4  ;;  %v1817_v43 = vld [vmem:[%s2718_s0 + $0x10] sm:$0xff]  }
  0x3c   :  { %v1670_v16 = vunpack.c.l.bf16 %v1850_v1  ;;  %v1671_v17 = vunpack.c.h.bf16 %v1850_v1  ;;  %v288_v22 = vmul.f32 %v1639_v12, %v2096_v19  ;;  %v1702_v23 = vunpack.c.l.bf16 %v1858_v7 }
  0x3d   :  { %v230_v20 = vadd.f32 %v214_v5, %v157_v9  ;;  %v231_v21 = vadd.f32 %v215_v6, %v158_v11  ;;  %v683_v26 = vpack.c.bf16 %v2332_v15, %v2330_v14  ;;  %v1703_v29 = vunpack.c.h.bf16 %v1858_v7  ;;  %v1841_v6 = vld [vmem:[%s2718_s0 + $0xd0] sm:$0xff]  }
  0x3e   :  { %v360_v27 = vmul.f32 %v1670_v16, %v2106_v25  ;;  %v361_v28 = vmul.f32 %v1671_v17, %v2106_v25  ;;  %v433_v34 = vmul.f32 %v1702_v23, %v2111_v30  ;;  %v1734_v35 = vunpack.c.l.bf16 %v1866_v18 }
  0x3f   :  { %v303_v32 = vadd.f32 %v287_v13, %v230_v20  ;;  %v304_v33 = vadd.f32 %v288_v22, %v231_v21  ;;  %1923 = vmatpush3.bf16.msra.mxu0 %v683_v26  ;;  %v434_v36 = vmul.f32 %v1703_v29, %v2111_v30  ;;  %v1735_v37 = vunpack.c.h.bf16 %v1866_v18  ;;  %v1849_v20 = vld [vmem:[%s2718_s0 + $0x110] sm:$0xff]  }
  0x40   :  { %v1766_v38 = vunpack.c.l.bf16 %v1874_v24  ;;  %v1767_v42 = vunpack.c.h.bf16 %v1874_v24  ;;  %1924 = vmatprep.subr.bf16.mxu0 %v1993_v0  ;;  %v506_v49 = vmul.f32 %v1734_v35, %v2126_v41  ;;  %v1798_v50 = vunpack.c.l.bf16 %v1882_v31 }
  0x41   :  { %v376_v46 = vadd.f32 %v360_v27, %v303_v32  ;;  %v377_v48 = vadd.f32 %v361_v28, %v304_v33  ;;  %v507_v53 = vmul.f32 %v1735_v37, %v2126_v41  ;;  %v1799_v56 = vunpack.c.h.bf16 %v1882_v31  ;;  %v1857_v31 = vld [vmem:[%s2718_s0 + $0x150] sm:$0xff]  }
  0x42   :  { %v579_v54 = vmul.f32 %v1766_v38, %v2136_v47  ;;  %v580_v55 = vmul.f32 %v1767_v42, %v2136_v47  ;;  %v652_v61 = vmul.f32 %v1798_v50, %v2141_v52  ;;  %v1538_v63 = vunpack.c.l.bf16 %v1817_v43 }
  0x43   :  { %v449_v59 = vadd.f32 %v433_v34, %v376_v46  ;;  %v450_v60 = vadd.f32 %v434_v36, %v377_v48  ;;  %v653_v1 = vmul.f32 %v1799_v56, %v2141_v52  ;;  %v1539_v3 = vunpack.c.h.bf16 %v1817_v43  ;;  %v1865_v36 = vld [vmem:[%s2718_s0 + $0x190] sm:$0xff]  }
  0x44   :  { %v1570_v4 = vunpack.c.l.bf16 %v1825_v51  ;;  %v1571_v5 = vunpack.c.h.bf16 %v1825_v51  ;;  %v82_v11 = vmul.f32 %v1538_v63, %v2062_v2  ;;  %v1602_v12 = vunpack.c.l.bf16 %v1833_v58  ;;  %v1873_v46 = vld [vmem:[%s2718_s0 + $0x1d0] sm:$0xff]  }
  0x45   :  { %v522_v7 = vadd.f32 %v506_v49, %v449_v59  ;;  %v523_v9 = vadd.f32 %v507_v53, %v450_v60  ;;  %v83_v13 = vmul.f32 %v1539_v3, %v2062_v2  ;;  %v1603_v18 = vunpack.c.h.bf16 %v1833_v58  ;;  %v1881_v58 = vld [vmem:[%s2718_s0 + $0x210] sm:$0xff]  }
  0x46   :  { %v139_v16 = vmul.f32 %v1570_v4, %v2071_v8  ;;  %v140_v17 = vmul.f32 %v1571_v5, %v2071_v8  ;;  %v212_v23 = vmul.f32 %v1602_v12, %v2079_v10  ;;  %v1634_v24 = vunpack.c.l.bf16 %v1841_v6 }
  0x47   :  { %v595_v21 = vadd.f32 %v579_v54, %v522_v7  ;;  %v596_v22 = vadd.f32 %v580_v55, %v523_v9  ;;  %v213_v28 = vmul.f32 %v1603_v18, %v2079_v10  ;;  %v1635_v29 = vunpack.c.h.bf16 %v1841_v6  ;;  %v1824_v7 = vld [vmem:[%s2718_s0 + $0x48] sm:$0xff]  }
  0x48   :  { %v155_v26 = vadd.f32 %v139_v16, %v82_v11  ;;  %v156_v27 = vadd.f32 %v140_v17, %v83_v13  ;;  %v285_v34 = vmul.f32 %v1634_v24, %v2096_v19  ;;  %v1666_v35 = vunpack.c.l.bf16 %v1849_v20 }
  0x49   :  { %v2381_v32 = vadd.f32 %v652_v61, %v595_v21  ;;  %v2383_v33 = vadd.f32 %v653_v1, %v596_v22  ;;  %v286_v42 = vmul.f32 %v1635_v29, %v2096_v19  ;;  %v1667_v43 = vunpack.c.h.bf16 %v1849_v20  ;;  %v1816_v1 = vld [vmem:[%s2718_s0 + $0x8] sm:$0xff]  }
  0x4a   :  { %v228_v37 = vadd.f32 %v212_v23, %v155_v26  ;;  %v229_v38 = vadd.f32 %v213_v28, %v156_v27  ;;  %v358_v49 = vmul.f32 %v1666_v35, %v2106_v25  ;;  %v1698_v50 = vunpack.c.l.bf16 %v1857_v31  ;;  %v1832_v21 = vld [vmem:[%s2718_s0 + $0x88] sm:$0xff]  }
  0x4b   :  { %v682_v48 = vpack.c.bf16 %v2383_v33, %v2381_v32  ;;  %v1699_v51 = vunpack.c.h.bf16 %v1857_v31  ;;  %v359_v55 = vmul.f32 %v1667_v43, %v2106_v25  ;;  %v1730_v56 = vunpack.c.l.bf16 %v1865_v36  ;;  %v1840_v27 = vld [vmem:[%s2718_s0 + $0xc8] sm:$0xff]  }
  0x4c   :  { %v301_v53 = vadd.f32 %v285_v34, %v228_v37  ;;  %v302_v54 = vadd.f32 %v286_v42, %v229_v38  ;;  %v431_v59 = vmul.f32 %v1698_v50, %v2111_v30  ;;  %v1731_v61 = vunpack.c.h.bf16 %v1865_v36 }
  0x4d   :  { %1925 = vmatpush3.bf16.msra.mxu0 %v682_v48  ;;  %v432_v60 = vmul.f32 %v1699_v51, %v2111_v30  ;;  %v1762_v63 = vunpack.c.l.bf16 %v1873_v46  ;;  %v504_v5 = vmul.f32 %v1730_v56, %v2126_v41  ;;  %v1763_v6 = vunpack.c.h.bf16 %v1873_v46 }
  0x4e   :  { %1926 = vmatprep.subr.bf16.mxu0 %v1993_v0  ;;  %v374_v3 = vadd.f32 %v358_v49, %v301_v53  ;;  %v375_v4 = vadd.f32 %v359_v55, %v302_v54  ;;  %v505_v9 = vmul.f32 %v1731_v61, %v2126_v41  ;;  %v1794_v12 = vunpack.c.l.bf16 %v1881_v58  ;;  %v1848_v49 = vld [vmem:[%s2718_s0 + $0x108] sm:$0xff]  }
  0x4f   :  { %v577_v11 = vmul.f32 %v1762_v63, %v2136_v47  ;;  %v1795_v13 = vunpack.c.h.bf16 %v1881_v58  ;;  %v578_v18 = vmul.f32 %v1763_v6, %v2136_v47  ;;  %v1534_v20 = vunpack.c.l.bf16 %v1816_v1  ;;  %v1856_v55 = vld [vmem:[%s2718_s0 + $0x148] sm:$0xff]  }
  0x50   :  { %v447_v16 = vadd.f32 %v431_v59, %v374_v3  ;;  %v448_v17 = vadd.f32 %v432_v60, %v375_v4  ;;  %v650_v22 = vmul.f32 %v1794_v12, %v2141_v52  ;;  %v1535_v24 = vunpack.c.h.bf16 %v1816_v1  ;;  %v1864_v61 = vld [vmem:[%s2718_s0 + $0x188] sm:$0xff]  }
  0x51   :  { %v651_v23 = vmul.f32 %v1795_v13, %v2141_v52  ;;  %v1566_v26 = vunpack.c.l.bf16 %v1824_v7  ;;  %v80_v31 = vmul.f32 %v1534_v20, %v2062_v2  ;;  %v1567_v34 = vunpack.c.h.bf16 %v1824_v7 }
  0x52   :  { %v520_v28 = vadd.f32 %v504_v5, %v447_v16  ;;  %v521_v29 = vadd.f32 %v505_v9, %v448_v17  ;;  %v81_v35 = vmul.f32 %v1535_v24, %v2062_v2  ;;  %v1598_v37 = vunpack.c.l.bf16 %v1832_v21  ;;  %v1529_v24 = vld [vmem:[%s2718_s0] sm:$0xff]  }
  0x53   :  { %v137_v36 = vmul.f32 %v1566_v26, %v2071_v8  ;;  %v1599_v38 = vunpack.c.h.bf16 %v1832_v21  ;;  %v138_v46 = vmul.f32 %v1567_v34, %v2071_v8  ;;  %v1630_v48 = vunpack.c.l.bf16 %v1840_v27 }
  0x54   :  { %v593_v42 = vadd.f32 %v577_v11, %v520_v28  ;;  %v594_v43 = vadd.f32 %v578_v18, %v521_v29  ;;  %v210_v51 = vmul.f32 %v1598_v37, %v2079_v10  ;;  %v1631_v54 = vunpack.c.h.bf16 %v1840_v27  ;;  %v1872_v11 = vld [vmem:[%s2718_s0 + $0x1c8] sm:$0xff]   ;;  %v1823_v37 = vld [vmem:[%s2718_s0 + $0x40] sm:$0xff]  }
  0x55   :  { %v153_v50 = vadd.f32 %v137_v36, %v80_v31  ;;  %v211_v53 = vmul.f32 %v1599_v38, %v2079_v10  ;;  %v154_v59 = vadd.f32 %v138_v46, %v81_v35  ;;  %v283_v60 = vmul.f32 %v1630_v48, %v2096_v19  ;;  %v1880_v18 = vld [vmem:[%s2718_s0 + $0x208] sm:$0xff]   ;;  %v1831_v48 = vld [vmem:[%s2718_s0 + $0x80] sm:$0xff]  }
  0x56   :  { %v2433_v56 = vadd.f32 %v650_v22, %v593_v42  ;;  %v2435_v58 = vadd.f32 %v651_v23, %v594_v43  ;;  %v284_v1 = vmul.f32 %v1631_v54, %v2096_v19  ;;  %v1662_v3 = vunpack.c.l.bf16 %v1848_v49  ;;  %v1839_v54 = vld [vmem:[%s2718_s0 + $0xc0] sm:$0xff]  }
  0x57   :  { %v226_v63 = vadd.f32 %v210_v51, %v153_v50  ;;  %v1663_v4 = vunpack.c.h.bf16 %v1848_v49  ;;  %v227_v6 = vadd.f32 %v211_v53, %v154_v59  ;;  %v1694_v7 = vunpack.c.l.bf16 %v1856_v55 }
  0x58   :  { %v681_v5 = vpack.c.bf16 %v2435_v58, %v2433_v56  ;;  %v1695_v9 = vunpack.c.h.bf16 %v1856_v55  ;;  %v356_v13 = vmul.f32 %v1662_v3, %v2106_v25  ;;  %v1726_v17 = vunpack.c.l.bf16 %v1864_v61 }
  0x59   :  { %v299_v12 = vadd.f32 %v283_v60, %v226_v63  ;;  %v357_v16 = vmul.f32 %v1663_v4, %v2106_v25  ;;  %v300_v20 = vadd.f32 %v284_v1, %v227_v6  ;;  %v429_v21 = vmul.f32 %v1694_v7, %v2111_v30 }
  0x5a   :  { %1927 = vmatpush3.bf16.msra.mxu0 %v681_v5  ;;  %v430_v22 = vmul.f32 %v1695_v9, %v2111_v30  ;;  %v1727_v23 = vunpack.c.h.bf16 %v1864_v61  ;;  %v502_v27 = vmul.f32 %v1726_v17, %v2126_v41  ;;  %v1758_v28 = vunpack.c.l.bf16 %v1872_v11 }
  0x5b   :  { %1928 = vmatprep.subr.bf16.mxu0 %v1993_v0  ;;  %v372_v26 = vadd.f32 %v356_v13, %v299_v12  ;;  %v1759_v29 = vunpack.c.h.bf16 %v1872_v11  ;;  %v373_v31 = vadd.f32 %v357_v16, %v300_v20  ;;  %v1790_v35 = vunpack.c.l.bf16 %v1880_v18  ;;  %v1847_v11 = vld [vmem:[%s2718_s0 + $0x100] sm:$0xff]  }
  0x5c   :  { %v503_v34 = vmul.f32 %v1727_v23, %v2126_v41  ;;  %v1791_v36 = vunpack.c.h.bf16 %v1880_v18  ;;  %v575_v42 = vmul.f32 %v1758_v28, %v2136_v47  ;;  %v1530_v46 = vunpack.c.l.bf16 %v1529_v24 }
  0x5d   :  { %v445_v38 = vadd.f32 %v429_v21, %v372_v26  ;;  %v576_v43 = vmul.f32 %v1759_v29, %v2136_v47  ;;  %v446_v49 = vadd.f32 %v430_v22, %v373_v31  ;;  %v648_v50 = vmul.f32 %v1790_v35, %v2141_v52  ;;  %v1863_v22 = vld [vmem:[%s2718_s0 + $0x180] sm:$0xff]  }
  0x5e   :  { %v649_v51 = vmul.f32 %v1791_v36, %v2141_v52  ;;  %v1531_v53 = vunpack.c.h.bf16 %v1529_v24  ;;  %v78_v59 = vmul.f32 %v1530_v46, %v2062_v2  ;;  %v1562_v60 = vunpack.c.l.bf16 %v1823_v37 }
  0x5f   :  { %v518_v55 = vadd.f32 %v502_v27, %v445_v38  ;;  %v1563_v61 = vunpack.c.h.bf16 %v1823_v37  ;;  %v519_v63 = vadd.f32 %v503_v34, %v446_v49  ;;  %v1594_v3 = vunpack.c.l.bf16 %v1831_v48  ;;  %v1871_v34 = vld [vmem:[%s2718_s0 + $0x1c0] sm:$0xff]  }
  0x60   :  { %v79_v1 = vmul.f32 %v1531_v53, %v2062_v2  ;;  %v1595_v4 = vunpack.c.h.bf16 %v1831_v48  ;;  %v135_v6 = vmul.f32 %v1562_v60, %v2071_v8  ;;  %v1626_v9 = vunpack.c.l.bf16 %v1839_v54  ;;  %v1855_v2 = vld [vmem:[%s2718_s0 + $0x140] sm:$0xff]  }
  0x61   :  { %v591_v5 = vadd.f32 %v575_v42, %v518_v55  ;;  %v136_v7 = vmul.f32 %v1563_v61, %v2071_v8  ;;  %v592_v12 = vadd.f32 %v576_v43, %v519_v63  ;;  %v208_v13 = vmul.f32 %v1594_v3, %v2079_v10 }
  0x62   :  { %v209_v16 = vmul.f32 %v1595_v4, %v2079_v10  ;;  %v1627_v17 = vunpack.c.h.bf16 %v1839_v54  ;;  %v151_v20 = vadd.f32 %v135_v6, %v78_v59  ;;  %v281_v8 = vmul.f32 %v1626_v9, %v2096_v19 }
  0x63   :  { %v2485_v18 = vadd.f32 %v648_v50, %v591_v5  ;;  %v152_v21 = vadd.f32 %v136_v7, %v79_v1  ;;  %v2491_v23 = vadd.f32 %v649_v51, %v592_v12  ;;  %v1658_v10 = vunpack.c.l.bf16 %v1847_v11  ;;  %v1983_v12 = vld [vmem:[%s2721_s4] sm:$0xff]  }
  0x64   :  { %v282_v24 = vmul.f32 %v1627_v17, %v2096_v19  ;;  %v1659_v26 = vunpack.c.h.bf16 %v1847_v11  ;;  %v224_v27 = vadd.f32 %v208_v13, %v151_v20  ;;  %v1690_v29 = vunpack.c.l.bf16 %v1855_v2  ;;  %v1879_v19 = vld [vmem:[%s2718_s0 + $0x200] sm:$0xff]   ;;  %1937 = vmatpush3.bf16.msra.mxu1 %v1983_v12 }
  0x65   :  { %v225_v28 = vadd.f32 %v209_v16, %v152_v21  ;;  %v1691_v31 = vunpack.c.h.bf16 %v1855_v2  ;;  %v680_v35 = vpack.c.bf16 %v2491_v23, %v2485_v18  ;;  %v354_v36 = vmul.f32 %v1658_v10, %v2106_v25  ;;  %v1984_v20 = vld [vmem:[%s2722_s3] sm:$0xff]  }
  0x66   :  { %v355_v37 = vmul.f32 %v1659_v26, %v2106_v25  ;;  %v1722_v38 = vunpack.c.l.bf16 %v1863_v22  ;;  %v297_v42 = vadd.f32 %v281_v8, %v224_v27  ;;  %v427_v46 = vmul.f32 %v1690_v29, %v2111_v30  ;;  %v1464_v21 = vld [vmem:[%s2723_s5] ss:$0 sm:$0xff] }
  0x67   :  { %v298_v43 = vadd.f32 %v282_v24, %v225_v28  ;;  %v428_v48 = vmul.f32 %v1691_v31, %v2111_v30  ;;  %1929 = vmatpush3.bf16.msra.mxu0 %v680_v35  ;;  %v1723_v49 = vunpack.c.h.bf16 %v1863_v22  ;;  %v1754_v51 = vunpack.c.l.bf16 %v1871_v34  ;;  %v1467_v8 = vld [vmem:[%s2724_s6] ss:$0 sm:$0xff]  ;;  %v1985_v35 = vld [vmem:[%s2722_s3 + $0x8] sm:$0xff]  }
  0x68   :  { %v500_v50 = vmul.f32 %v1722_v38, %v2126_v41  ;;  %v1755_v53 = vunpack.c.h.bf16 %v1871_v34  ;;  %1930 = vmatprep.subr.bf16.mxu0 %v1993_v0  ;;  %v370_v25 = vadd.f32 %v354_v36, %v297_v42  ;;  %v1786_v55 = vunpack.c.l.bf16 %v1879_v19  ;;  %v1986_v36 = vld [vmem:[%s2722_s3 + $0x10] sm:$0xff]   ;;  %v1988_v38 = vld [vmem:[%s2722_s3 + $0x20] sm:$0xff]  }
  0x69   :  { %v371_v54 = vadd.f32 %v355_v37, %v298_v43  ;;  %v1787_v59 = vunpack.c.h.bf16 %v1879_v19  ;;  %v501_v60 = vmul.f32 %v1723_v49, %v2126_v41  ;;  %v573_v1 = vmul.f32 %v1754_v51, %v2136_v47  ;;  %v1987_v37 = vld [vmem:[%s2722_s3 + $0x18] sm:$0xff]   ;;  %v1989_v19 = vld [vmem:[%s2722_s3 + $0x28] sm:$0xff]   ;;  %v1990_v42 = vld [vmem:[%s2722_s3 + $0x30] sm:$0xff]  }
  0x6a   :  { %v443_v61 = vadd.f32 %v427_v46, %v370_v25  ;;  %v574_v30 = vmul.f32 %v1755_v53, %v2136_v47  ;;  %v646_v5 = vmul.f32 %v1786_v55, %v2141_v52  ;;  %v678_v47 = vld [vmem:[%s2720_s2] sm:$0x1]  ;;  %v1991_v43 = vld [vmem:[%s2722_s3 + $0x38] sm:$0xff]  }
  0x6b   :  { %v444_v63 = vadd.f32 %v428_v48, %v371_v54  ;;  %v647_v6 = vmul.f32 %v1787_v59, %v2141_v52  ;;  %v1992_v46 = vld [vmem:[%s2725_s7] sm:$0xff]  }
  0x6c   :  { %v516_v3 = vadd.f32 %v500_v50, %v443_v61 }
  0x6d   :  { %v517_v4 = vadd.f32 %v501_v60, %v444_v63 }
  0x6e   :  { %v589_v7 = vadd.f32 %v573_v1, %v516_v3 }
  0x6f   :  { %v590_v0 = vadd.f32 %v574_v30, %v517_v4 }
  0x70   :  { %v2513_v9 = vadd.f32 %v646_v5, %v589_v7 }
  0x71   :  { %v2515_v11 = vadd.f32 %v647_v6, %v590_v0 }
  0x73   :  { %v679_v41 = vpack.c.bf16 %v2515_v11, %v2513_v9 }
  0x75   :  { %1931 = vmatpush3.bf16.msra.mxu0 %v679_v41 }
  0x76   :  { %1960 = vmatprep.subr.bf16.mxu0 %v1992_v46 }
  0x78   :  { %1933 = vmatmul.mubr.bf16.vlgmr.msra.gmra.mxu0 %v678_v47 }
  0x79   :  { %1961 = vmatpush3.bf16.msra.mxu0 %v1992_v46 }
 0x138   :  { %v721_v52 = vpop.f32.mrf.mxu0 }
 0x139   :  { %v731_v13 = vpack.c.bf16 %v721_v52, %v721_v52 }
 0x13a   :  { %v1934_v16 = vpop.f32.mrf.mxu0 }
 0x13b   :  { %1939 = vmatmul.mubr.msk.bf16.vlgmr.msra.gmra.mxu1 %vm744_vm1, %v731_v13 }
 0x13c   :  { %v724_v17 = vpop.f32.mrf.mxu0  ;;  %1944 = vmatprep.mubr.msk.bf16.mxu1 %vm854_vm2, %v1984_v20  ;;  %v2594_v20 = vld [vmem:[%s2726_s8] ss:$0 sm:$0xff] }
 0x13e   :  { %v1935_v2 = vpop.f32.mrf.mxu0 }
 0x1fb   :  { %v782_v22 = vpop.f32.mrf.mxu1 }
 0x1fc   :  { %v783_v24 = vadd.f32 %v1464_v21, %v782_v22 }
 0x1fd   :  { %v1940_v10 = vpop.f32.mrf.mxu1 }
 0x1fe   :  { %vm788_vm3 = vcmp.ge.f32.partialorder %v783_v24, 0.0  ;;  %v795_v26 = vmul.f32 %v1467_v8, %v783_v24 }
 0x1ff   :  { %v785_v27 = vpop.f32.mrf.mxu1 }
 0x200   :  { %v796_v28 = vsel %vm788_vm3, %v783_v24, %v795_v26 }
 0x201   :  { %v813_v29 = vpack.c.bf16 %v796_v28, %v796_v28  ;;  %v1941_v31 = vpop.f32.mrf.mxu1 }
 0x203   :  { %1980 = vmatprep.subr.msk.bf16.mxu1 %vm879_vm4, %v813_v29  ;;  %v881_v34 = vsel %vm879_vm4, %v813_v29, 0 }
 0x204   :  { %1943 = vmatpush3.bf16.msra.mxu1 %v881_v34 }
 0x205   :  { %1978 = vmatprep.subr.bf16.mxu1 %v1992_v46 }
 0x207   :  { %1945 = vmatmul.mubr.msk.bf16.vlgmr.msra.gmra.mxu1 %vm854_vm2, %v1985_v35 }
 0x208   :  { %1948 = vmatprep.mubr.msk.bf16.mxu1 %vm854_vm2, %v1986_v36  ;;  %1979 = vmatpush3.bf16.msra.mxu1 %v1992_v46 }
 0x20f   :  { %1949 = vmatmul.mubr.msk.bf16.gmra.mxu1 %vm854_vm2, %v1987_v37 }
 0x210   :  { %1952 = vmatprep.mubr.msk.bf16.mxu1 %vm854_vm2, %v1988_v38 }
 0x217   :  { %1953 = vmatmul.mubr.msk.bf16.gmra.mxu1 %vm854_vm2, %v1989_v19 }
 0x218   :  { %1956 = vmatprep.mubr.msk.bf16.mxu1 %vm854_vm2, %v1990_v42 }
 0x21f   :  { %1957 = vmatmul.mubr.msk.bf16.gmra.mxu1 %vm854_vm2, %v1991_v43 }
 0x2c7   :  { %v1946_v48 = vpop.f32.mrf.mxu1 }
 0x2c8   :  { %v982_v55 = vmul.f32 %v1946_v48, %v2485_v18 }
 0x2c9   :  { %v917_v49 = vpop.f32.mrf.mxu1 }
 0x2ca   :  { %v980_v25 = vmul.f32 %v917_v49, %v2513_v9 }
 0x2cb   :  { %v1947_v50 = vpop.f32.mrf.mxu1 }
 0x2cc   :  { %v983_v51 = vmul.f32 %v1947_v50, %v2491_v23 }
 0x2cd   :  { %v920_v53 = vpop.f32.mrf.mxu1 }
 0x2ce   :  { %v981_v54 = vmul.f32 %v920_v53, %v2515_v11  ;;  %v999_v61 = vpack.c.bf16 %v983_v51, %v982_v55 }
 0x2cf   :  { %v1950_v59 = vpop.f32.mrf.mxu1 }
 0x2d0   :  { %v998_v60 = vpack.c.bf16 %v981_v54, %v980_v25  ;;  %v986_v5 = vmul.f32 %v1950_v59, %v2381_v32 }
 0x2d1   :  { %v933_v63 = vpop.f32.mrf.mxu1 }
 0x2d2   :  { %1962 = vmatprep.mubr.msk.bf16.mxu0 %vm744_vm1, %v998_v60  ;;  %v984_v23 = vmul.f32 %v933_v63, %v2433_v56 }
 0x2d3   :  { %v1951_v1 = vpop.f32.mrf.mxu1  ;;  %1963 = vmatmul.mubr.msk.bf16.vlgmr.msra.gmra.mxu0 %vm744_vm1, %v999_v61 }
 0x2d4   :  { %v987_v30 = vmul.f32 %v1951_v1, %v2383_v33 }
 0x2d5   :  { %v936_v3 = vpop.f32.mrf.mxu1 }
 0x2d6   :  { %v985_v4 = vmul.f32 %v936_v3, %v2435_v58  ;;  %v1001_v7 = vpack.c.bf16 %v987_v30, %v986_v5 }
 0x2d7   :  { %v1954_v6 = vpop.f32.mrf.mxu1 }
 0x2d8   :  { %v1000_v18 = vpack.c.bf16 %v985_v4, %v984_v23  ;;  %v990_v58 = vmul.f32 %v1954_v6, %v2277_v57 }
 0x2d9   :  { %v949_v0 = vpop.f32.mrf.mxu1 }
 0x2da   :  { %1966 = vmatprep.mubr.msk.bf16.mxu0 %vm744_vm1, %v1000_v18  ;;  %v988_v33 = vmul.f32 %v949_v0, %v2330_v14 }
 0x2db   :  { %v1955_v9 = vpop.f32.mrf.mxu1  ;;  %1967 = vmatmul.mubr.msk.bf16.gmra.mxu0 %vm744_vm1, %v1001_v7 }
 0x2dc   :  { %v991_v11 = vmul.f32 %v1955_v9, %v2283_v62 }
 0x2dd   :  { %v952_v41 = vpop.f32.mrf.mxu1 }
 0x2de   :  { %v989_v56 = vmul.f32 %v952_v41, %v2332_v15  ;;  %v1003_v12 = vpack.c.bf16 %v991_v11, %v990_v58 }
 0x2df   :  { %v1958_v47 = vpop.f32.mrf.mxu1 }
 0x2e0   :  { %v1002_v32 = vpack.c.bf16 %v989_v56, %v988_v33  ;;  %v994_v15 = vmul.f32 %v1958_v47, %v2178_v39  ;;  %v2605_v39 = vld [vmem:[%s2728_s10] ss:$0 sm:$0xff] }
 0x2e1   :  { %v965_v52 = vpop.f32.mrf.mxu1 }
 0x2e2   :  { %1970 = vmatprep.mubr.msk.bf16.mxu0 %vm744_vm1, %v1002_v32  ;;  %v992_v62 = vmul.f32 %v965_v52, %v2225_v44 }
 0x2e3   :  { %v1959_v13 = vpop.f32.mrf.mxu1  ;;  %1971 = vmatmul.mubr.msk.bf16.gmra.mxu0 %vm744_vm1, %v1003_v12 }
 0x2e4   :  { %v995_v16 = vmul.f32 %v1959_v13, %v2180_v40  ;;  %v2599_v40 = vld [vmem:[%s2727_s9] ss:$0 sm:$0xff] }
 0x2e5   :  { %v968_v17 = vpop.f32.mrf.mxu1 }
 0x2e6   :  { %v993_v14 = vmul.f32 %v968_v17, %v2227_v45  ;;  %v1005_v57 = vpack.c.bf16 %v995_v16, %v994_v15 }
 0x2e8   :  { %v1004_v2 = vpack.c.bf16 %v993_v14, %v992_v62 }
 0x2ea   :  { %1974 = vmatprep.mubr.msk.bf16.mxu1 %vm744_vm1, %v1004_v2 }
 0x2eb   :  { %1975 = vmatmul.mubr.msk.bf16.vlgmr.msra.gmra.mxu1 %vm744_vm1, %v1005_v57 }
 0x393   :  { %v1964_v21 = vpop.f32.mrf.mxu0 }
 0x394   :  { %v1142_v44 = vmul.f32 %v1964_v21, %v2594_v20 }
 0x395   :  { %v1070_v45 = vpop.f32.mrf.mxu0 }
 0x396   :  { %v1165_v8 = vadd.f32 %v2599_v40, %v1142_v44  ;;  %v1140_v22 = vmul.f32 %v2594_v20, %v1070_v45 }
 0x397   :  { %v1965_v24 = vpop.f32.mrf.mxu0 }
 0x398   :  { %vm1182_vm5 = vcmp.ge.f32.partialorder %v1165_v8, 0.0  ;;  %v1204_v10 = vmul.f32 %v2605_v39, %v1165_v8  ;;  %v1163_v26 = vadd.f32 %v2599_v40, %v1140_v22  ;;  %v1143_v27 = vmul.f32 %v1965_v24, %v2594_v20 }
 0x399   :  { %v1073_v28 = vpop.f32.mrf.mxu0 }
 0x39a   :  { %v1220_v29 = vsel %vm1182_vm5, %v1165_v8, %v1204_v10  ;;  %vm1180_vm7 = vcmp.ge.f32.partialorder %v1163_v26, 0.0  ;;  %v1202_v31 = vmul.f32 %v2605_v39, %v1163_v26  ;;  %v1166_v34 = vadd.f32 %v2599_v40, %v1143_v27 }
 0x39b   :  { %v1514_v35 = vpack.c.bf16 %v1220_v29, %v1220_v29  ;;  %v1141_v36 = vmul.f32 %v2594_v20, %v1073_v28  ;;  %v1968_v37 = vpop.f32.mrf.mxu0 }
 0x39c   :  { %v1218_v38 = vsel %vm1180_vm7, %v1163_v26, %v1202_v31  ;;  %vm1183_vm8 = vcmp.ge.f32.partialorder %v1166_v34, 0.0  ;;  %v1205_v19 = vmul.f32 %v2605_v39, %v1166_v34  ;;  %v1146_v42 = vmul.f32 %v1968_v37, %v2594_v20 }
 0x39d   :  { %1301 = vst.msk [vmem:[%s2729_s11 + $0x8] sm:$0xf] %vm1298_vm6, %v1514_v35  ;;  %v1512_v43 = vpack.c.bf16 %v1218_v38, %v1218_v38  ;;  %v1164_v46 = vadd.f32 %v2599_v40, %v1141_v36  ;;  %v1086_v48 = vpop.f32.mrf.mxu0 }
 0x39e   :  { %v1221_v49 = vsel %vm1183_vm8, %v1166_v34, %v1205_v19  ;;  %v1169_v50 = vadd.f32 %v2599_v40, %v1146_v42  ;;  %v1144_v51 = vmul.f32 %v2594_v20, %v1086_v48 }
 0x39f   :  { %1299 = vst.msk [vmem:[%s2729_s11] sm:$0xf] %vm1298_vm6, %v1512_v43  ;;  %v1515_v53 = vpack.c.bf16 %v1221_v49, %v1221_v49  ;;  %vm1181_vm9 = vcmp.ge.f32.partialorder %v1164_v46, 0.0  ;;  %v1203_v25 = vmul.f32 %v2605_v39, %v1164_v46  ;;  %v1969_v54 = vpop.f32.mrf.mxu0 }
 0x3a0   :  { %vm1186_vm10 = vcmp.ge.f32.partialorder %v1169_v50, 0.0  ;;  %v1208_v55 = vmul.f32 %v2605_v39, %v1169_v50  ;;  %v1167_v59 = vadd.f32 %v2599_v40, %v1144_v51  ;;  %v1147_v60 = vmul.f32 %v1969_v54, %v2594_v20 }
 0x3a1   :  { %1302 = vst.msk [vmem:[%s2729_s11 + $0xc] sm:$0xf] %vm1298_vm6, %v1515_v53  ;;  %v1219_v61 = vsel %vm1181_vm9, %v1164_v46, %v1203_v25  ;;  %v1089_v63 = vpop.f32.mrf.mxu0 }
 0x3a2   :  { %v1513_v1 = vpack.c.bf16 %v1219_v61, %v1219_v61  ;;  %v1224_v30 = vsel %vm1186_vm10, %v1169_v50, %v1208_v55  ;;  %vm1184_vm11 = vcmp.ge.f32.partialorder %v1167_v59, 0.0  ;;  %v1206_v3 = vmul.f32 %v2605_v39, %v1167_v59 }
 0x3a3   :  { %v1518_v23 = vpack.c.bf16 %v1224_v30, %v1224_v30  ;;  %v1170_v4 = vadd.f32 %v2599_v40, %v1147_v60  ;;  %v1145_v5 = vmul.f32 %v2594_v20, %v1089_v63  ;;  %v1972_v6 = vpop.f32.mrf.mxu0 }
 0x3a4   :  { %1300 = vst.msk [vmem:[%s2729_s11 + $0x4] sm:$0xf] %vm1298_vm6, %v1513_v1  ;;  %v1222_v18 = vsel %vm1184_vm11, %v1167_v59, %v1206_v3  ;;  %v1150_v7 = vmul.f32 %v1972_v6, %v2594_v20 }
 0x3a5   :  { %1305 = vst.msk [vmem:[%s2729_s11 + $0x18] sm:$0xf] %vm1298_vm6, %v1518_v23  ;;  %v1516_v0 = vpack.c.bf16 %v1222_v18, %v1222_v18  ;;  %vm1187_vm12 = vcmp.ge.f32.partialorder %v1170_v4, 0.0  ;;  %v1209_v9 = vmul.f32 %v2605_v39, %v1170_v4  ;;  %v1168_v11 = vadd.f32 %v2599_v40, %v1145_v5  ;;  %v1102_v41 = vpop.f32.mrf.mxu0 }
 0x3a6   :  { %v1173_v33 = vadd.f32 %v2599_v40, %v1150_v7  ;;  %v1148_v56 = vmul.f32 %v2594_v20, %v1102_v41 }
 0x3a7   :  { %1303 = vst.msk [vmem:[%s2729_s11 + $0x10] sm:$0xf] %vm1298_vm6, %v1516_v0  ;;  %v1225_v58 = vsel %vm1187_vm12, %v1170_v4, %v1209_v9  ;;  %vm1185_vm13 = vcmp.ge.f32.partialorder %v1168_v11, 0.0  ;;  %v1207_v47 = vmul.f32 %v2605_v39, %v1168_v11  ;;  %v1973_v32 = vpop.f32.mrf.mxu0 }
 0x3a8   :  { %v1519_v12 = vpack.c.bf16 %v1225_v58, %v1225_v58  ;;  %vm1190_vm14 = vcmp.ge.f32.partialorder %v1173_v33, 0.0  ;;  %v1212_v52 = vmul.f32 %v2605_v39, %v1173_v33  ;;  %v1171_v13 = vadd.f32 %v2599_v40, %v1148_v56 }
 0x3a9   :  { %v1223_v16 = vsel %vm1185_vm13, %v1168_v11, %v1207_v47  ;;  %v1151_v17 = vmul.f32 %v1973_v32, %v2594_v20  ;;  %v1105_v62 = vpop.f32.mrf.mxu0 }
 0x3aa   :  { %1306 = vst.msk [vmem:[%s2729_s11 + $0x1c] sm:$0xf] %vm1298_vm6, %v1519_v12  ;;  %v1517_v14 = vpack.c.bf16 %v1223_v16, %v1223_v16  ;;  %v1228_v15 = vsel %vm1190_vm14, %v1173_v33, %v1212_v52  ;;  %vm1188_vm15 = vcmp.ge.f32.partialorder %v1171_v13, 0.0  ;;  %v1210_v2 = vmul.f32 %v2605_v39, %v1171_v13 }
 0x3ab   :  { %v1522_v57 = vpack.c.bf16 %v1228_v15, %v1228_v15  ;;  %v1174_v21 = vadd.f32 %v2599_v40, %v1151_v17  ;;  %v1149_v44 = vmul.f32 %v2594_v20, %v1105_v62  ;;  %v1976_v45 = vpop.f32.mrf.mxu1 }
 0x3ac   :  { %1304 = vst.msk [vmem:[%s2729_s11 + $0x14] sm:$0xf] %vm1298_vm6, %v1517_v14  ;;  %v1226_v8 = vsel %vm1188_vm15, %v1171_v13, %v1210_v2  ;;  %v1154_v22 = vmul.f32 %v1976_v45, %v2594_v20 }
 0x3ad   :  { %1309 = vst.msk [vmem:[%s2729_s11 + $0x28] sm:$0xf] %vm1298_vm6, %v1522_v57  ;;  %v1520_v24 = vpack.c.bf16 %v1226_v8, %v1226_v8  ;;  %vm1191_vm0 = vcmp.ge.f32.partialorder %v1174_v21, 0.0  ;;  %v1213_v10 = vmul.f32 %v2605_v39, %v1174_v21  ;;  %v1172_v26 = vadd.f32 %v2599_v40, %v1149_v44  ;;  %v1118_v27 = vpop.f32.mrf.mxu1 }
 0x3ae   :  { %v1177_v28 = vadd.f32 %v2599_v40, %v1154_v22  ;;  %v1152_v29 = vmul.f32 %v2594_v20, %v1118_v27 }
 0x3af   :  { %1307 = vst.msk [vmem:[%s2729_s11 + $0x20] sm:$0xf] %vm1298_vm6, %v1520_v24  ;;  %v1229_v31 = vsel %vm1191_vm0, %v1174_v21, %v1213_v10  ;;  %vm1189_vm1 = vcmp.ge.f32.partialorder %v1172_v26, 0.0  ;;  %v1211_v34 = vmul.f32 %v2605_v39, %v1172_v26  ;;  %v1977_v35 = vpop.f32.mrf.mxu1 }
 0x3b0   :  { %v1523_v36 = vpack.c.bf16 %v1229_v31, %v1229_v31  ;;  %vm1194_vm2 = vcmp.ge.f32.partialorder %v1177_v28, 0.0  ;;  %v1216_v37 = vmul.f32 %v2605_v39, %v1177_v28  ;;  %v1175_v38 = vadd.f32 %v2599_v40, %v1152_v29 }
 0x3b1   :  { %v1227_v19 = vsel %vm1189_vm1, %v1172_v26, %v1211_v34  ;;  %v1155_v42 = vmul.f32 %v1977_v35, %v2594_v20  ;;  %v1121_v43 = vpop.f32.mrf.mxu1 }
 0x3b2   :  { %1310 = vst.msk [vmem:[%s2729_s11 + $0x2c] sm:$0xf] %vm1298_vm6, %v1523_v36  ;;  %v1521_v46 = vpack.c.bf16 %v1227_v19, %v1227_v19  ;;  %v1232_v48 = vsel %vm1194_vm2, %v1177_v28, %v1216_v37  ;;  %vm1192_vm3 = vcmp.ge.f32.partialorder %v1175_v38, 0.0  ;;  %v1214_v49 = vmul.f32 %v2605_v39, %v1175_v38 }
 0x3b3   :  { %v1526_v50 = vpack.c.bf16 %v1232_v48, %v1232_v48  ;;  %v1178_v51 = vadd.f32 %v2599_v40, %v1155_v42  ;;  %v1153_v53 = vmul.f32 %v2594_v20, %v1121_v43 }
 0x3b4   :  { %1308 = vst.msk [vmem:[%s2729_s11 + $0x24] sm:$0xf] %vm1298_vm6, %v1521_v46  ;;  %v1230_v25 = vsel %vm1192_vm3, %v1175_v38, %v1214_v49 }
 0x3b5   :  { %1313 = vst.msk [vmem:[%s2729_s11 + $0x38] sm:$0xf] %vm1298_vm6, %v1526_v50  ;;  %v1524_v54 = vpack.c.bf16 %v1230_v25, %v1230_v25  ;;  %vm1195_vm4 = vcmp.ge.f32.partialorder %v1178_v51, 0.0  ;;  %v1217_v55 = vmul.f32 %v2605_v39, %v1178_v51  ;;  %v1176_v59 = vadd.f32 %v2599_v40, %v1153_v53 }
 0x3b7   :  { %1311 = vst.msk [vmem:[%s2729_s11 + $0x30] sm:$0xf] %vm1298_vm6, %v1524_v54  ;;  %v1233_v20 = vsel %vm1195_vm4, %v1178_v51, %v1217_v55  ;;  %vm1193_vm5 = vcmp.ge.f32.partialorder %v1176_v59, 0.0  ;;  %v1215_v60 = vmul.f32 %v2605_v39, %v1176_v59 }
 0x3b8   :  { %v1527_v61 = vpack.c.bf16 %v1233_v20, %v1233_v20 }
 0x3b9   :  { %v1231_v63 = vsel %vm1193_vm5, %v1176_v59, %v1215_v60 }
 0x3ba   :  { %1314 = vst.msk [vmem:[%s2729_s11 + $0x3c] sm:$0xf] %vm1298_vm6, %v1527_v61  ;;  %v1525_v1 = vpack.c.bf16 %v1231_v63, %v1231_v63 }
 0x3bc   :  { %1312 = vst.msk [vmem:[%s2729_s11 + $0x34] sm:$0xf] %vm1298_vm6, %v1525_v1 }

// kernel: _lambda_.12
= control target key start
LH: loop header
LB: loop body
LE: loop exit
PB: predicated region body
PF: predicated region fallthrough
CT: control target
= control target key end

     0   :  { %vm78_vm0 = vcmask 1043456   ;;  %vm71_vm1 = vcmask 195584   ;;  %v769_v5 = vmov 0.0   ;;  %vm627_vm11 = vcmask 388096   ;;  %s1219_s1 = inlined_call_operand.vmem [shape: bf16[24,24], index: 1, kind: input, shape index: {}]   ;;  %s1220_s0 = inlined_call_operand.vmem [shape: bf16[32,24], index: 0, kind: input, shape index: {}]   ;;  %s1221_s5 = inlined_call_operand.vmem [shape: bf16[24,48], index: 5, kind: input, shape index: {}]   ;;  %s1222_s9 = inlined_call_operand.vmem [shape: bf16[24,48], index: 9, kind: input, shape index: {}]   ;;  %s1223_s2 = inlined_call_operand.vmem [shape: f32[6,32,24], index: 2, kind: input, shape index: {}]   ;;  %s1224_s6 = inlined_call_operand.vmem [shape: f32[10,32,24], index: 6, kind: input, shape index: {}]   ;;  %s1225_s3 = inlined_call_operand.vmem [shape: f32[1,24], index: 3, kind: input, shape index: {}]   ;;  %s1226_s4 = inlined_call_operand.vmem [shape: f32[1,24], index: 4, kind: input, shape index: {}]   ;;  %s1227_s7 = inlined_call_operand.vmem [shape: f32[1,24], index: 7, kind: input, shape index: {}]   ;;  %s1228_s8 = inlined_call_operand.vmem [shape: f32[1,24], index: 8, kind: input, shape index: {}]   ;;  %s1229_s10 = inlined_call_operand.vmem [shape: f32[1,48], index: 10, kind: input, shape index: {}]   ;;  %s1230_s11 = inlined_call_operand.vmem [shape: f32[1,48], index: 11, kind: input, shape index: {}]   ;;  %s1231_s12 = inlined_call_operand.vmem [shape: f32[1,48], index: 12, kind: input, shape index: {}]   ;;  %s1232_s13 = inlined_call_operand.vmem [shape: bf16[32,48], index: 13, kind: output, shape index: {}]  }
   0x1   :  { %v761_v0 = vld [vmem:[%s1219_s1 + $0x8] ss:$0 sps:$4 sm:$0xff]   ;;  %v762_v1 = vld [vmem:[%s1219_s1] sm:$0xff]   ;;  %131 = vst.msk [vmem:[#allocation2] sm:$0xff] %vm71_vm1, %v769_v5  ;;  %134 = vst.msk [vmem:[#allocation2 + $0x18] sm:$0xff] %vm71_vm1, %v769_v5 }
   0x2   :  { %757 = vmatprep.subr.msk.bf16.mxu0 %vm78_vm0, %v761_v0  ;;  %v80_v2 = vsel %vm78_vm0, %v761_v0, 0  ;;  %v763_v3 = vld [vmem:[%s1220_s0] sm:$0xff]   ;;  %v764_v4 = vld [vmem:[%s1220_s0 + $0x8] sm:$0xff]   ;;  %136 = vst.msk [vmem:[#allocation2 + $0x28] sm:$0xff] %vm71_vm1, %v769_v5  ;;  %132 = vst.msk [vmem:[#allocation2 + $0x8] sm:$0xff] %vm71_vm1, %v769_v5 }
   0x3   :  { %734 = vmatpush3.bf16.msra.mxu0 %v80_v2  ;;  %737 = vmatprep.mubr.msk.bf16.mxu0 %vm71_vm1, %v763_v3  ;;  %133 = vst.msk [vmem:[#allocation2 + $0x10] sm:$0xff] %vm71_vm1, %v769_v5  ;;  %135 = vst.msk [vmem:[#allocation2 + $0x20] sm:$0xff] %vm71_vm1, %v769_v5  ;;  %v765_v6 = vld [vmem:[%s1221_s5 + $0x8] ss:$0 sps:$4 sm:$0xff]   ;;  %v766_v7 = vld [vmem:[%s1221_s5] sm:$0xff]  }
   0x4   :  { %735 = vmatprep.subr.bf16.mxu0 %v762_v1  ;;  %v519_v8 = vsel %vm78_vm0, %v765_v6, 0  ;;  %v767_v9 = vld [vmem:[%s1222_s9 + $0x8] ss:$0 sps:$4 sm:$0xff]   ;;  %v768_v10 = vld [vmem:[%s1222_s9] sm:$0xff]   ;;  %v644_v19 = vld [vmem:[%s1223_s2 + $0x30] sm:$0xff] }
   0x5   :  { %758 = vmatprep.subr.msk.bf16.mxu1 %vm78_vm0, %v767_v9  ;;  %v452_v11 = vsel %vm78_vm0, %v767_v9, 0  ;;  %v145_v16 = vld [vmem:[%s1223_s2] sm:$0xff]  ;;  %v656_v20 = vld [vmem:[%s1223_s2 + $0x90] sm:$0xff]  ;;  %v677_v24 = vld [vmem:[%s1224_s6 + $0x88] sm:$0xff] }
   0x6   :  { %742 = vmatpush3.bf16.msra.mxu1 %v452_v11  ;;  %v642_v17 = vld [vmem:[%s1223_s2 + $0x20] sm:$0xff]  ;;  %v148_v25 = vld [vmem:[%s1223_s2 + $0x18] sm:$0xff]  ;;  %v265_v28 = vld [vmem:[%s1224_s6 + $0x8] sm:$0xff] }
   0x7   :  { %736 = vmatpush3.bf16.msra.mxu0 %v762_v1  ;;  %743 = vmatprep.subr.bf16.mxu1 %v768_v10  ;;  %v650_v18 = vld [vmem:[%s1223_s2 + $0x60] sm:$0xff]  ;;  %v645_v27 = vld [vmem:[%s1223_s2 + $0x38] sm:$0xff]  ;;  %v648_v30 = vld [vmem:[%s1223_s2 + $0x50] sm:$0xff] }
   0x8   :  { %759 = vmatprep.subr.msk.bf16.mxu0 %vm78_vm0, %v765_v6  ;;  %v654_v21 = vld [vmem:[%s1223_s2 + $0x80] sm:$0xff]  ;;  %v267_v29 = vld [vmem:[%s1224_s6 + $0x18] sm:$0xff]  ;;  %v146_v37 = vld [vmem:[%s1223_s2 + $0x8] sm:$0xff] }
   0x9   :  { %v263_v22 = vld [vmem:[#allocation2] sm:$0xff]  ;;  %v649_v31 = vld [vmem:[%s1223_s2 + $0x58] sm:$0xff]  ;;  %v643_v39 = vld [vmem:[%s1223_s2 + $0x28] sm:$0xff] }
   0xa   :  { %738 = vmatmul.mubr.msk.bf16.vlgmr.msra.gmra.mxu0 %vm71_vm1, %v764_v4  ;;  %744 = vmatpush3.bf16.msra.mxu1 %v768_v10  ;;  %v264_v23 = vld [vmem:[%s1224_s6] sm:$0xff]  ;;  %v653_v32 = vld [vmem:[%s1223_s2 + $0x78] sm:$0xff]  ;;  %v647_v48 = vld [vmem:[%s1223_s2 + $0x48] sm:$0xff] }
   0xb   :  { %750 = vmatpush3.bf16.msra.mxu0 %v519_v8  ;;  %v664_v33 = vld [vmem:[%s1224_s6 + $0x20] sm:$0xff]  ;;  %v957_v44 = vmul.f32 %v264_v23, %v263_v22  ;;  %v651_v49 = vld [vmem:[%s1223_s2 + $0x68] sm:$0xff]  ;;  %v657_v53 = vld [vmem:[%s1223_s2 + $0x98] sm:$0xff] }
   0xc   :  { %751 = vmatprep.subr.bf16.mxu0 %v766_v7  ;;  %v668_v34 = vld [vmem:[%s1224_s6 + $0x40] sm:$0xff]  ;;  %v655_v51 = vld [vmem:[%s1223_s2 + $0x88] sm:$0xff]  ;;  %v660_v54 = vld [vmem:[%s1223_s2 + $0xb0] sm:$0xff] }
   0xd   :  { %v680_v35 = vld [vmem:[%s1224_s6 + $0xa0] sm:$0xff]  ;;  %v659_v58 = vld [vmem:[%s1223_s2 + $0xa8] sm:$0xff]  ;;  %v147_v60 = vld [vmem:[%s1223_s2 + $0x10] sm:$0xff] }
   0xe   :  { %v646_v40 = vld [vmem:[%s1223_s2 + $0x40] sm:$0xff]  ;;  %v666_v3 = vld [vmem:[%s1224_s6 + $0x30] sm:$0xff]  ;;  %v665_v9 = vld [vmem:[%s1224_s6 + $0x28] sm:$0xff] }
   0xf   :  { %752 = vmatpush3.bf16.msra.mxu0 %v766_v7  ;;  %v658_v52 = vld [vmem:[%s1223_s2 + $0xa0] sm:$0xff]  ;;  %v652_v7 = vld [vmem:[%s1223_s2 + $0x70] sm:$0xff] }
  0xca   :  { %v739_v12 = vpop.f32.mrf.mxu0 }
  0xcb   :  { %139 = vst.msk [vmem:[#allocation2 + $0x18] sm:$0xff] %vm71_vm1, %v739_v12 }
  0xcc   :  { %v116_v13 = vpop.f32.mrf.mxu0 }
  0xcd   :  { %137 = vst.msk [vmem:[#allocation2 + $0x8] sm:$0xff] %vm71_vm1, %v116_v13 }
  0xce   :  { %v740_v14 = vpop.f32.mrf.mxu0 }
  0xcf   :  { %140 = vst.msk [vmem:[#allocation2 + $0x20] sm:$0xff] %vm71_vm1, %v740_v14 }
  0xd0   :  { %v119_v15 = vpop.f32.mrf.mxu0 }
  0xd1   :  { %138 = vst.msk [vmem:[#allocation2 + $0x10] sm:$0xff] %vm71_vm1, %v119_v15 }
  0xd2   :  { %v909_v26 = vld [vmem:[#allocation2 + $0x18] sm:$0xff] }
  0xd3   :  { %v952_v42 = vmul.f32 %v644_v19, %v909_v26  ;;  %v955_v43 = vmul.f32 %v656_v20, %v909_v26  ;;  %v960_v45 = vmul.f32 %v677_v24, %v909_v26  ;;  %v983_v56 = vmul.f32 %v267_v29, %v909_v26 }
  0xd4   :  { %v141_v36 = vld [vmem:[#allocation2 + $0x4] sm:$0xff] }
  0xd5   :  { %v941_v38 = vld [vmem:[#allocation2 + $0x8] sm:$0xff]  ;;  %v149_v46 = vmul.f32 %v145_v16, %v141_v36  ;;  %v277_v0 = vmul.f32 %v664_v33, %v141_v36  ;;  %v672_v36 = vld [vmem:[%s1224_s6 + $0x60] sm:$0xff] }
  0xd6   :  { %v949_v41 = vld [vmem:[#allocation2 + $0x7] sm:$0xff]  ;;  %v162_v47 = vmul.f32 %v642_v17, %v941_v38  ;;  %v206_v57 = vmul.f32 %v654_v21, %v941_v38  ;;  %v989_v59 = vld [vmem:[#allocation2 + $0x1c] sm:$0xff]  ;;  %v269_v63 = vmul.f32 %v265_v28, %v941_v38  ;;  %v290_v1 = vmul.f32 %v668_v34, %v941_v38 }
  0xd7   :  { %v193_v50 = vmul.f32 %v650_v18, %v949_v41  ;;  %v325_v55 = vld [vmem:[#allocation2 + $0x6] sm:$0xff]  ;;  %v152_v4 = vmul.f32 %v148_v25, %v989_v59  ;;  %v1010_v8 = vld [vmem:[#allocation2 + $0x19] sm:$0xff]  ;;  %v178_v14 = vmul.f32 %v648_v30, %v989_v59 }
  0xd8   :  { %v994_v61 = vld [vmem:[#allocation2 + $0x20] sm:$0xff]  ;;  %v166_v2 = vadd.f32 %v162_v47, %v149_v46  ;;  %v1015_v10 = vmul.f32 %v680_v35, %v325_v55  ;;  %v142_v11 = vld [vmem:[#allocation2 + $0xc] sm:$0xff]  ;;  %v143_v12 = vld [vmem:[#allocation2 + $0x14] sm:$0xff]  ;;  %v1031_v24 = vmul.f32 %v660_v54, %v1010_v8 }
  0xd9   :  { %v996_v62 = vld [vmem:[#allocation2 + $0x24] sm:$0xff]  ;;  %v165_v5 = vmul.f32 %v645_v27, %v994_v61  ;;  %v1017_v13 = vld [vmem:[#allocation2 + $0x10] sm:$0xff]  ;;  %v209_v17 = vmul.f32 %v657_v53, %v994_v61  ;;  %v150_v18 = vmul.f32 %v146_v37, %v142_v11  ;;  %v176_v20 = vmul.f32 %v646_v40, %v142_v11  ;;  %v661_v55 = vld [vmem:[%s1223_s2 + $0xb8] sm:$0xff] }
  0xda   :  { %v1005_v6 = vld [vmem:[#allocation2 + $0x1f] sm:$0xff]  ;;  %v179_v15 = vmul.f32 %v649_v31, %v996_v62  ;;  %v163_v19 = vmul.f32 %v643_v39, %v1017_v13  ;;  %v1024_v21 = vld [vmem:[#allocation2 + $0xf] sm:$0xff]  ;;  %v177_v25 = vmul.f32 %v647_v48, %v143_v12  ;;  %v207_v28 = vmul.f32 %v655_v51, %v1017_v13  ;;  %v1036_v30 = vld [vmem:[#allocation2 + $0x17] sm:$0xff] }
  0xdb   :  { %v196_v16 = vmul.f32 %v653_v32, %v1005_v6  ;;  %v1026_v22 = vld [vmem:[#allocation2 + $0x9] sm:$0xff]  ;;  %v1028_v23 = vld [vmem:[#allocation2 + $0x11] sm:$0xff]  ;;  %v194_v27 = vmul.f32 %v651_v49, %v1024_v21  ;;  %v180_v32 = vadd.f32 %v176_v20, %v166_v2  ;;  %v151_v34 = vmul.f32 %v147_v60, %v143_v12  ;;  %v676_v53 = vld [vmem:[%s1224_s6 + $0x80] sm:$0xff] }
  0xdc   :  { %v223_v29 = vmul.f32 %v658_v52, %v1026_v22  ;;  %v167_v31 = vadd.f32 %v163_v19, %v150_v18  ;;  %v224_v33 = vmul.f32 %v659_v58, %v1028_v23  ;;  %v669_v35 = vld [vmem:[%s1224_s6 + $0x48] sm:$0xff]  ;;  %v1045_v37 = vmul.f32 %v666_v3, %v143_v12 }
  0xdd   :  { %v169_v39 = vadd.f32 %v165_v5, %v152_v4  ;;  %v195_v40 = vmul.f32 %v652_v7, %v1036_v30  ;;  %v278_v46 = vmul.f32 %v665_v9, %v142_v11  ;;  %v197_v48 = vadd.f32 %v193_v50, %v180_v32  ;;  %v673_v52 = vld [vmem:[%s1224_s6 + $0x68] sm:$0xff]  ;;  %v662_v7 = vld [vmem:[%s1225_s3] ss:$0 sm:$0xff] }
  0xde   :  { %v181_v47 = vadd.f32 %v177_v25, %v167_v31  ;;  %v168_v49 = vadd.f32 %v952_v42, %v151_v34  ;;  %v281_v51 = vadd.f32 %v277_v0, %v957_v44  ;;  %v291_v50 = vmul.f32 %v669_v35, %v1017_v13  ;;  %v1060_v0 = vld [vmem:[#allocation2 + $0x21] sm:$0xff]  ;;  %v326_v4 = vld [vmem:[#allocation2 + $0xe] sm:$0xff] }
  0xdf   :  { %v183_v54 = vadd.f32 %v179_v15, %v169_v39  ;;  %v282_v58 = vadd.f32 %v278_v46, %v269_v63  ;;  %v303_v60 = vmul.f32 %v672_v36, %v142_v11  ;;  %v210_v2 = vadd.f32 %v206_v57, %v197_v48  ;;  %v681_v5 = vld [vmem:[%s1224_s6 + $0xa8] sm:$0xff] }
  0xe0   :  { %v198_v42 = vadd.f32 %v194_v27, %v181_v47  ;;  %v182_v44 = vadd.f32 %v178_v14, %v168_v49  ;;  %v294_v3 = vadd.f32 %v290_v1, %v281_v51  ;;  %v304_v15 = vmul.f32 %v673_v52, %v143_v12  ;;  %v684_v1 = vld [vmem:[%s1224_s6 + $0xc0] sm:$0xff]  ;;  %v685_v20 = vld [vmem:[%s1224_s6 + $0xc8] sm:$0xff] }
  0xe1   :  { %v200_v9 = vadd.f32 %v196_v16, %v183_v54  ;;  %v295_v63 = vadd.f32 %v291_v50, %v282_v58  ;;  %v317_v11 = vmul.f32 %v676_v53, %v1017_v13  ;;  %v227_v57 = vadd.f32 %v223_v29, %v210_v2  ;;  %v663_v16 = vld [vmem:[%s1226_s4] ss:$0 sm:$0xff]  ;;  %v689_v46 = vld [vmem:[%s1224_s6 + $0xe8] sm:$0xff]  ;;  %v266_v2 = vld [vmem:[%s1224_s6 + $0x10] sm:$0xff] }
  0xe2   :  { %v211_v18 = vadd.f32 %v207_v28, %v198_v42  ;;  %v199_v14 = vadd.f32 %v195_v40, %v182_v44  ;;  %v307_v19 = vadd.f32 %v303_v60, %v294_v3  ;;  %v226_v12 = vmul.f32 %v661_v55, %v1060_v0  ;;  %v688_v29 = vld [vmem:[%s1224_s6 + $0xe0] sm:$0xff]  ;;  %v381_v58 = vld [vmem:[#allocation2 + $0xa] sm:$0xff]  ;;  %v667_v44 = vld [vmem:[%s1224_s6 + $0x38] sm:$0xff] }
  0xe3   :  { %v213_v25 = vadd.f32 %v209_v17, %v200_v9  ;;  %v308_v27 = vadd.f32 %v304_v15, %v295_v63  ;;  %v335_v28 = vmul.f32 %v681_v5, %v326_v4  ;;  %v238_v32 = vadd.f32 %v662_v7, %v227_v57  ;;  %v692_v53 = vld [vmem:[%s1224_s6 + $0x100] sm:$0xff]  ;;  %v382_v9 = vld [vmem:[#allocation2 + $0x12] sm:$0xff]  ;;  %v697_v63 = vld [vmem:[%s1224_s6 + $0x128] sm:$0xff] }
  0xe4   :  { %v228_v31 = vadd.f32 %v224_v33, %v211_v18  ;;  %v212_v34 = vadd.f32 %v955_v43, %v199_v14  ;;  %v321_v35 = vadd.f32 %v317_v11, %v307_v19  ;;  %v347_v40 = vmul.f32 %v684_v1, %v949_v41  ;;  %v670_v15 = vld [vmem:[%s1224_s6 + $0x50] sm:$0xff]  ;;  %v671_v19 = vld [vmem:[%s1224_s6 + $0x58] sm:$0xff] }
  0xe5   :  { %v230_v36 = vadd.f32 %v226_v12, %v213_v25  ;;  %v322_v39 = vadd.f32 %v960_v45, %v308_v27  ;;  %v348_v17 = vmul.f32 %v685_v20, %v1024_v21  ;;  %v253_v48 = vmul.f32 %v663_v16, %v238_v32  ;;  %v674_v25 = vld [vmem:[%s1224_s6 + $0x70] sm:$0xff]  ;;  %v311_v12 = vld [vmem:[#allocation2 + $0x28] sm:$0xff] }
  0xe6   :  { %v239_v47 = vadd.f32 %v662_v7, %v228_v31  ;;  %v229_v49 = vadd.f32 %v1031_v24, %v212_v34  ;;  %v360_v33 = vmul.f32 %v688_v29, %v941_v38  ;;  %vm242_vm2 = vcmp.ge.f32.partialorder %v238_v32, 0.0  ;;  %v693_v38 = vld [vmem:[%s1224_s6 + $0x108] sm:$0xff]  ;;  %v1133_v29 = vld [vmem:[%s1227_s7] ss:$0 sm:$0xff]  ;;  %v675_v31 = vld [vmem:[%s1224_s6 + $0x78] sm:$0xff] }
  0xe7   :  { %v241_v43 = vadd.f32 %v662_v7, %v230_v36  ;;  %v338_v51 = vadd.f32 %v1015_v10, %v321_v35  ;;  %v339_v52 = vadd.f32 %v335_v28, %v322_v39  ;;  %v361_v21 = vmul.f32 %v689_v46, %v1017_v13  ;;  %v696_v10 = vld [vmem:[%s1224_s6 + $0x120] sm:$0xff]  ;;  %v678_v39 = vld [vmem:[%s1224_s6 + $0x90] sm:$0xff] }
  0xe8   :  { %vm243_vm3 = vcmp.ge.f32.partialorder %v239_v47, 0.0  ;;  %v254_v45 = vmul.f32 %v663_v16, %v239_v47  ;;  %v240_v41 = vadd.f32 %v662_v7, %v229_v49  ;;  %v257_v50 = vsel %vm242_vm2, %v238_v32, %v253_v48 }
  0xe9   :  { %vm245_vm4 = vcmp.ge.f32.partialorder %v241_v43, 0.0  ;;  %v256_v54 = vmul.f32 %v663_v16, %v241_v43  ;;  %v351_v55 = vadd.f32 %v347_v40, %v338_v51  ;;  %v352_v24 = vadd.f32 %v348_v17, %v339_v52  ;;  %v701_v17 = vld [vmem:[%s1228_s8] ss:$0 sm:$0xff]  ;;  %v327_v52 = vld [vmem:[#allocation2 + $0x16] sm:$0xff] }
  0xea   :  { %v258_v60 = vsel %vm243_vm3, %v239_v47, %v254_v45  ;;  %vm244_vm5 = vcmp.ge.f32.partialorder %v240_v41, 0.0  ;;  %v255_v42 = vmul.f32 %v663_v16, %v240_v41  ;;  %v373_v7 = vmul.f32 %v692_v53, %v1026_v22  ;;  %v328_v45 = vld [vmem:[#allocation2 + $0x1e] sm:$0xff] }
  0xeb   :  { %v261_v3 = vpack.c.bf16 %v258_v60, %v257_v50  ;;  %v364_v4 = vadd.f32 %v360_v33, %v351_v55  ;;  %v365_v5 = vadd.f32 %v361_v21, %v352_v24  ;;  %v260_v18 = vsel %vm245_vm4, %v241_v43, %v256_v54  ;;  %v683_v33 = vld [vmem:[%s1224_s6 + $0xb8] sm:$0xff] }
  0xec   :  { %v259_v11 = vsel %vm244_vm5, %v240_v41, %v255_v42  ;;  %v374_v57 = vmul.f32 %v693_v38, %v1028_v23  ;;  %v390_v14 = vmul.f32 %v696_v10, %v381_v58  ;;  %v270_v20 = vmul.f32 %v266_v2, %v1017_v13  ;;  %v679_v23 = vld [vmem:[%s1224_s6 + $0x98] sm:$0xff]  ;;  %v690_v2 = vld [vmem:[%s1224_s6 + $0xf0] sm:$0xff] }
  0xed   :  { %753 = vmatprep.mubr.msk.bf16.mxu0 %vm71_vm1, %v261_v3  ;;  %v262_v22 = vpack.c.bf16 %v260_v18, %v259_v11  ;;  %v377_v1 = vadd.f32 %v373_v7, %v364_v4  ;;  %v280_v16 = vmul.f32 %v667_v44, %v989_v59  ;;  %v391_v28 = vmul.f32 %v697_v63, %v382_v9  ;;  %v687_v55 = vld [vmem:[%s1224_s6 + $0xd8] sm:$0xff]  ;;  %v694_v9 = vld [vmem:[%s1224_s6 + $0x110] sm:$0xff] }
  0xee   :  { %v378_v27 = vadd.f32 %v374_v57, %v365_v5  ;;  %v292_v13 = vmul.f32 %v670_v15, %v909_v26  ;;  %v283_v34 = vadd.f32 %v1045_v37, %v270_v20  ;;  %v293_v36 = vmul.f32 %v671_v19, %v994_v61  ;;  %v691_v44 = vld [vmem:[%s1224_s6 + $0xf8] sm:$0xff] }
  0xef   :  { %754 = vmatmul.mubr.msk.bf16.vlgmr.msra.gmra.mxu0 %vm71_vm1, %v262_v22  ;;  %v394_v32 = vadd.f32 %v390_v14, %v377_v1  ;;  %v284_v35 = vadd.f32 %v280_v16, %v983_v56  ;;  %v305_v46 = vmul.f32 %v674_v25, %v989_v59  ;;  %v320_v47 = vmul.f32 %v679_v23, %v311_v12  ;;  %v682_v59 = vld [vmem:[%s1224_s6 + $0xb0] sm:$0xff]  ;;  %v383_v57 = vld [vmem:[#allocation2 + $0x1a] sm:$0xff]  ;;  %v384_v14 = vld [vmem:[#allocation2 + $0x22] sm:$0xff] }
  0xf0   :  { %v395_v40 = vadd.f32 %v391_v28, %v378_v27  ;;  %v296_v49 = vadd.f32 %v292_v13, %v283_v34  ;;  %v306_v56 = vmul.f32 %v675_v31, %v996_v62  ;;  %v319_v51 = vmul.f32 %v678_v39, %v994_v61  ;;  %v686_v62 = vld [vmem:[%s1224_s6 + $0xd0] sm:$0xff]  ;;  %v699_v19 = vld [vmem:[%s1224_s6 + $0x138] sm:$0xff] }
  0xf1   :  { %v405_v48 = vadd.f32 %v1133_v29, %v394_v32  ;;  %v297_v37 = vadd.f32 %v293_v36, %v284_v35  ;;  %v336_v58 = vmul.f32 %v682_v59, %v327_v52  ;;  %v337_v10 = vmul.f32 %v683_v33, %v328_v45 }
  0xf2   :  { %v406_v43 = vadd.f32 %v1133_v29, %v395_v40  ;;  %v309_v21 = vadd.f32 %v305_v46, %v296_v49  ;;  %v349_v42 = vmul.f32 %v686_v62, %v1036_v30  ;;  %v350_v7 = vmul.f32 %v687_v55, %v1005_v6  ;;  %v695_v30 = vld [vmem:[%s1224_s6 + $0x118] sm:$0xff]  ;;  %v698_v6 = vld [vmem:[%s1224_s6 + $0x130] sm:$0xff]  ;;  %v710_v40 = vld [vmem:[%s1229_s10] ss:$0 sm:$0xff] }
  0xf3   :  { %vm409_vm6 = vcmp.ge.f32.partialorder %v405_v48, 0.0  ;;  %v420_v41 = vmul.f32 %v701_v17, %v405_v48  ;;  %v310_v53 = vadd.f32 %v306_v56, %v297_v37  ;;  %v362_v11 = vmul.f32 %v690_v2, %v909_v26  ;;  %v712_v37 = vld [vmem:[%s1231_s12] ss:$0 sm:$0xff] }
  0xf4   :  { %vm410_vm7 = vcmp.ge.f32.partialorder %v406_v43, 0.0  ;;  %v421_v54 = vmul.f32 %v701_v17, %v406_v43  ;;  %v323_v24 = vadd.f32 %v319_v51, %v309_v21  ;;  %v363_v18 = vmul.f32 %v691_v44, %v994_v61 }
  0xf5   :  { %v324_v38 = vadd.f32 %v320_v47, %v310_v53  ;;  %v424_v50 = vsel %vm409_vm6, %v405_v48, %v420_v41  ;;  %v375_v20 = vmul.f32 %v694_v9, %v1010_v8  ;;  %v376_v16 = vmul.f32 %v695_v30, %v1060_v0 }
  0xf6   :  { %v425_v60 = vsel %vm410_vm7, %v406_v43, %v421_v54  ;;  %v340_v4 = vadd.f32 %v336_v58, %v323_v24  ;;  %v392_v12 = vmul.f32 %v698_v6, %v383_v57  ;;  %v393_v61 = vmul.f32 %v699_v19, %v384_v14 }
  0xf7   :  { %v428_v3 = vpack.c.bf16 %v425_v60, %v424_v50  ;;  %v341_v5 = vadd.f32 %v337_v10, %v324_v38 }
  0xf8   :  { %v353_v63 = vadd.f32 %v349_v42, %v340_v4 }
  0xf9   :  { %745 = vmatprep.mubr.msk.bf16.mxu1 %vm71_vm1, %v428_v3  ;;  %v354_v15 = vadd.f32 %v350_v7, %v341_v5 }
  0xfa   :  { %v366_v22 = vadd.f32 %v362_v11, %v353_v63 }
  0xfb   :  { %v367_v1 = vadd.f32 %v363_v18, %v354_v15 }
  0xfc   :  { %v379_v25 = vadd.f32 %v375_v20, %v366_v22 }
  0xfd   :  { %v380_v26 = vadd.f32 %v376_v16, %v367_v1 }
  0xfe   :  { %v396_v23 = vadd.f32 %v392_v12, %v379_v25 }
  0xff   :  { %v397_v27 = vadd.f32 %v393_v61, %v380_v26 }
 0x100   :  { %v407_v28 = vadd.f32 %v1133_v29, %v396_v23 }
 0x101   :  { %v408_v13 = vadd.f32 %v1133_v29, %v397_v27  ;;  %v711_v29 = vld [vmem:[%s1230_s11] ss:$0 sm:$0xff] }
 0x102   :  { %vm411_vm8 = vcmp.ge.f32.partialorder %v407_v28, 0.0  ;;  %v422_v31 = vmul.f32 %v701_v17, %v407_v28 }
 0x103   :  { %vm412_vm9 = vcmp.ge.f32.partialorder %v408_v13, 0.0  ;;  %v423_v32 = vmul.f32 %v701_v17, %v408_v13 }
 0x104   :  { %v426_v34 = vsel %vm411_vm8, %v407_v28, %v422_v31 }
 0x105   :  { %v427_v35 = vsel %vm412_vm9, %v408_v13, %v423_v32 }
 0x106   :  { %v429_v36 = vpack.c.bf16 %v427_v35, %v426_v34 }
 0x108   :  { %746 = vmatmul.mubr.msk.bf16.vlgmr.msra.gmra.mxu1 %vm71_vm1, %v429_v36 }
 0x1af   :  { %v755_v8 = vpop.f32.mrf.mxu0 }
 0x1b1   :  { %v555_v0 = vpop.f32.mrf.mxu0 }
 0x1b3   :  { %v756_v48 = vpop.f32.mrf.mxu0 }
 0x1b5   :  { %v558_v45 = vpop.f32.mrf.mxu0 }
 0x1c8   :  { %v747_v39 = vpop.f32.mrf.mxu1 }
 0x1c9   :  { %v564_v46 = vadd.f32 %v755_v8, %v747_v39 }
 0x1ca   :  { %v488_v47 = vpop.f32.mrf.mxu1 }
 0x1cb   :  { %v579_v17 = vmul.f32 %v710_v40, %v564_v46  ;;  %v556_v49 = vadd.f32 %v555_v0, %v488_v47 }
 0x1cc   :  { %v748_v56 = vpop.f32.mrf.mxu1 }
 0x1cd   :  { %v590_v33 = vadd.f32 %v711_v29, %v579_v17  ;;  %v577_v43 = vmul.f32 %v710_v40, %v556_v49  ;;  %v567_v51 = vadd.f32 %v756_v48, %v748_v56 }
 0x1ce   :  { %v491_v52 = vpop.f32.mrf.mxu1 }
 0x1cf   :  { %vm594_vm10 = vcmp.ge.f32.partialorder %v590_v33, 0.0  ;;  %v605_v59 = vmul.f32 %v712_v37, %v590_v33  ;;  %v588_v41 = vadd.f32 %v711_v29, %v577_v43  ;;  %v580_v21 = vmul.f32 %v710_v40, %v567_v51 }
 0x1d0   :  { %v559_v53 = vadd.f32 %v558_v45, %v491_v52 }
 0x1d1   :  { %v609_v62 = vsel %vm594_vm10, %v590_v33, %v605_v59  ;;  %vm592_vm12 = vcmp.ge.f32.partialorder %v588_v41, 0.0  ;;  %v603_v54 = vmul.f32 %v712_v37, %v588_v41  ;;  %v591_v55 = vadd.f32 %v711_v29, %v580_v21 }
 0x1d2   :  { %v719_v24 = vpack.c.bf16 %v609_v62, %v609_v62  ;;  %v578_v38 = vmul.f32 %v710_v40, %v559_v53 }
 0x1d3   :  { %v607_v58 = vsel %vm592_vm12, %v588_v41, %v603_v54  ;;  %vm595_vm13 = vcmp.ge.f32.partialorder %v591_v55, 0.0  ;;  %v606_v10 = vmul.f32 %v712_v37, %v591_v55 }
 0x1d4   :  { %630 = vst.msk [vmem:[%s1232_s13 + $0x8] sm:$0xf] %vm627_vm11, %v719_v24  ;;  %v717_v50 = vpack.c.bf16 %v607_v58, %v607_v58  ;;  %v589_v60 = vadd.f32 %v711_v29, %v578_v38 }
 0x1d5   :  { %v610_v42 = vsel %vm595_vm13, %v591_v55, %v606_v10 }
 0x1d6   :  { %628 = vst.msk [vmem:[%s1232_s13] sm:$0xf] %vm627_vm11, %v717_v50  ;;  %v720_v2 = vpack.c.bf16 %v610_v42, %v610_v42  ;;  %vm593_vm14 = vcmp.ge.f32.partialorder %v589_v60, 0.0  ;;  %v604_v44 = vmul.f32 %v712_v37, %v589_v60 }
 0x1d8   :  { %631 = vst.msk [vmem:[%s1232_s13 + $0xc] sm:$0xf] %vm627_vm11, %v720_v2  ;;  %v608_v3 = vsel %vm593_vm14, %v589_v60, %v604_v44 }
 0x1d9   :  { %v718_v4 = vpack.c.bf16 %v608_v3, %v608_v3 }
 0x1db   :  { %629 = vst.msk [vmem:[%s1232_s13 + $0x4] sm:$0xf] %vm627_vm11, %v718_v4 }

// kernel: _lambda_.11
= control target key start
LH: loop header
LB: loop body
LE: loop exit
PB: predicated region body
PF: predicated region fallthrough
CT: control target
= control target key end

     0   :  { %v903_v0 = vmov 0.0   ;;  %vm904_vm0 = vmmov 0   ;;  %vm341_vm1 = vcmask 1041408   ;;  %vm272_vm2 = vcmask 261120   ;;  %s1219_s0 = inlined_call_operand.vmem [shape: bf16[9,32,20], index: 0, kind: input, shape index: {}]   ;;  %s1220_s1 = inlined_call_operand.vmem [shape: f32[9,1,20], index: 1, kind: input, shape index: {}]   ;;  %s1221_s4 = inlined_call_operand.vmem [shape: bf16[20,20], index: 4, kind: input, shape index: {}]   ;;  %s1222_s2 = inlined_call_operand.vmem [shape: bf16[2,32], index: 2, kind: input, shape index: {}]   ;;  %s1223_s3 = inlined_call_operand.vmem [shape: bf16[32,2], index: 3, kind: input, shape index: {}]   ;;  %s1224_s5 = inlined_call_operand.vmem [shape: f32[1,20], index: 5, kind: input, shape index: {}]   ;;  %s1225_s6 = inlined_call_operand.vmem [shape: f32[1,20], index: 6, kind: input, shape index: {}]   ;;  %s1226_s7 = inlined_call_operand.vmem [shape: bf16[20,24], index: 7, kind: input, shape index: {}]   ;;  %s1227_s8 = inlined_call_operand.vmem [shape: f32[1,24], index: 8, kind: input, shape index: {}]   ;;  %s1228_s9 = inlined_call_operand.vmem [shape: f32[1,24], index: 9, kind: input, shape index: {}]   ;;  %s1229_s10 = inlined_call_operand.vmem [shape: f32[1,24], index: 10, kind: input, shape index: {}]   ;;  %s1230_s11 = inlined_call_operand.vmem [shape: f32[1,24], index: 11, kind: input, shape index: {}]   ;;  %s1231_s12 = inlined_call_operand.vmem [shape: f32[1,24], index: 12, kind: input, shape index: {}]   ;;  %s1232_s13 = inlined_call_operand.vmem [shape: f32[1,24], index: 13, kind: input, shape index: {}]   ;;  %s1233_s14 = inlined_call_operand.vmem [shape: bf16[32,24], index: 14, kind: output, shape index: {0}]   ;;  %s1234_s15 = inlined_call_operand.vmem [shape: bf16[32,24], index: 15, kind: output, shape index: {1}]  }
   0x1   :  { %863 = vmatprep.subr.bf16.mxu0 %v903_v0  ;;  %v833_v1 = vld [vmem:[%s1219_s0 + $0x8] sm:$0xff]   ;;  %v992_v2 = vld [vmem:[%s1220_s1] ss:$0 sm:$0xff]  ;;  %v835_v3 = vld [vmem:[%s1219_s0 + $0x18] sm:$0xff]   ;;  %867 = vmatprep.mubr.msk.bf16.mxu0 %vm904_vm0, %v903_v0  ;;  %vm337_vm3 = vcmask 162816   ;;  %vm409_vm4 = vcmask 15360  }
   0x2   :  { %v767_v4 = vunpack.c.l.bf16 %v833_v1  ;;  %v768_v5 = vunpack.c.h.bf16 %v833_v1  ;;  %v775_v6 = vunpack.c.l.bf16 %v835_v3  ;;  %v776_v7 = vunpack.c.h.bf16 %v835_v3  ;;  %v1001_v8 = vld [vmem:[%s1220_s1 + $0x1] ss:$0 sm:$0xff]  ;;  %v837_v9 = vld [vmem:[%s1219_s0 + $0x28] sm:$0xff]   ;;  %v1009_v10 = vld [vmem:[%s1220_s1 + $0x2] ss:$0 sm:$0xff]  ;;  %871 = vmatprep.subr.bf16.mxu1 %v903_v0  ;;  %875 = vmatprep.mubr.msk.bf16.mxu1 %vm904_vm0, %v903_v0 }
   0x3   :  { %v783_v11 = vunpack.c.l.bf16 %v837_v9  ;;  %v784_v12 = vunpack.c.h.bf16 %v837_v9  ;;  %v839_v13 = vld [vmem:[%s1219_s0 + $0x38] sm:$0xff]   ;;  %v841_v14 = vld [vmem:[%s1219_s0 + $0x48] sm:$0xff]   ;;  %v1026_v19 = vld [vmem:[%s1220_s1 + $0x3] ss:$0 sm:$0xff]  ;;  %vm416_vm6 = vcmask 1040384   ;;  %vm643_vm8 = vcmask 191488  }
   0x4   :  { %v67_v15 = vmul.f32 %v767_v4, %v992_v2  ;;  %v68_v16 = vmul.f32 %v768_v5, %v992_v2  ;;  %v88_v17 = vmul.f32 %v775_v6, %v1001_v8  ;;  %v89_v18 = vmul.f32 %v776_v7, %v1001_v8  ;;  %v843_v20 = vld [vmem:[%s1219_s0 + $0x58] sm:$0xff]   ;;  %v1036_v25 = vld [vmem:[%s1220_s1 + $0x4] ss:$0 sm:$0xff]  ;;  %v1041_v30 = vld [vmem:[%s1220_s1 + $0x5] ss:$0 sm:$0xff] }
   0x5   :  { %v113_v21 = vmul.f32 %v783_v11, %v1009_v10  ;;  %v114_v22 = vmul.f32 %v784_v12, %v1009_v10  ;;  %v791_v23 = vunpack.c.l.bf16 %v839_v13  ;;  %v792_v24 = vunpack.c.h.bf16 %v839_v13  ;;  %v845_v31 = vld [vmem:[%s1219_s0 + $0x68] sm:$0xff]   ;;  %v847_v36 = vld [vmem:[%s1219_s0 + $0x78] sm:$0xff]   ;;  %v1056_v41 = vld [vmem:[%s1220_s1 + $0x6] ss:$0 sm:$0xff] }
   0x6   :  { %v92_v26 = vadd.f32 %v88_v17, %v67_v15  ;;  %v93_v27 = vadd.f32 %v89_v18, %v68_v16  ;;  %v799_v28 = vunpack.c.l.bf16 %v841_v14  ;;  %v800_v29 = vunpack.c.h.bf16 %v841_v14  ;;  %v849_v42 = vld [vmem:[%s1219_s0 + $0x88] sm:$0xff]   ;;  %v1066_v47 = vld [vmem:[%s1220_s1 + $0x7] ss:$0 sm:$0xff]  ;;  %v834_v58 = vld [vmem:[%s1219_s0 + $0x10] sm:$0xff]  }
   0x7   :  { %v138_v32 = vmul.f32 %v791_v23, %v1026_v19  ;;  %v139_v33 = vmul.f32 %v792_v24, %v1026_v19  ;;  %v807_v34 = vunpack.c.l.bf16 %v843_v20  ;;  %v808_v35 = vunpack.c.h.bf16 %v843_v20  ;;  %v1071_v48 = vld [vmem:[%s1220_s1 + $0x8] ss:$0 sm:$0xff]  ;;  %v762_v53 = vld [vmem:[%s1219_s0] sm:$0xff]   ;;  %v838_v12 = vld [vmem:[%s1219_s0 + $0x30] sm:$0xff]  }
   0x8   :  { %v117_v37 = vadd.f32 %v113_v21, %v92_v26  ;;  %v118_v38 = vadd.f32 %v114_v22, %v93_v27  ;;  %v163_v39 = vmul.f32 %v799_v28, %v1036_v25  ;;  %v164_v40 = vmul.f32 %v800_v29, %v1036_v25  ;;  %v836_v63 = vld [vmem:[%s1219_s0 + $0x20] sm:$0xff]  }
   0x9   :  { %v188_v43 = vmul.f32 %v807_v34, %v1041_v30  ;;  %v189_v44 = vmul.f32 %v808_v35, %v1041_v30  ;;  %v815_v45 = vunpack.c.l.bf16 %v845_v31  ;;  %v816_v46 = vunpack.c.h.bf16 %v845_v31  ;;  %v840_v22 = vld [vmem:[%s1219_s0 + $0x40] sm:$0xff]  }
   0xa   :  { %v142_v49 = vadd.f32 %v138_v32, %v117_v37  ;;  %v143_v50 = vadd.f32 %v139_v33, %v118_v38  ;;  %v823_v51 = vunpack.c.l.bf16 %v847_v36  ;;  %v824_v52 = vunpack.c.h.bf16 %v847_v36  ;;  %v842_v32 = vld [vmem:[%s1219_s0 + $0x50] sm:$0xff]  }
   0xb   :  { %v213_v54 = vmul.f32 %v815_v45, %v1056_v41  ;;  %v214_v55 = vmul.f32 %v816_v46, %v1056_v41  ;;  %v831_v56 = vunpack.c.l.bf16 %v849_v42  ;;  %v832_v57 = vunpack.c.h.bf16 %v849_v42 }
   0xc   :  { %v167_v59 = vadd.f32 %v163_v39, %v142_v49  ;;  %v168_v60 = vadd.f32 %v164_v40, %v143_v50  ;;  %v238_v61 = vmul.f32 %v823_v51, %v1066_v47  ;;  %v239_v62 = vmul.f32 %v824_v52, %v1066_v47  ;;  %v846_v40 = vld [vmem:[%s1219_s0 + $0x70] sm:$0xff]   ;;  %v848_v51 = vld [vmem:[%s1219_s0 + $0x80] sm:$0xff]   ;;  %v897_v52 = vld [vmem:[%s1221_s4 + $0x8] ss:$0 sps:$4 sm:$0x33]  }
   0xd   :  { %v263_v1 = vmul.f32 %v831_v56, %v1071_v48  ;;  %v264_v3 = vmul.f32 %v832_v57, %v1071_v48  ;;  %v763_v4 = vunpack.c.l.bf16 %v762_v53  ;;  %v764_v5 = vunpack.c.h.bf16 %v762_v53 }
   0xe   :  { %v192_v6 = vadd.f32 %v188_v43, %v167_v59  ;;  %v193_v7 = vadd.f32 %v189_v44, %v168_v60  ;;  %v771_v9 = vunpack.c.l.bf16 %v834_v58  ;;  %v772_v11 = vunpack.c.h.bf16 %v834_v58 }
   0xf   :  { %v65_v13 = vmul.f32 %v763_v4, %v992_v2  ;;  %v66_v14 = vmul.f32 %v764_v5, %v992_v2  ;;  %v779_v15 = vunpack.c.l.bf16 %v836_v63  ;;  %v780_v16 = vunpack.c.h.bf16 %v836_v63 }
  0x10   :  { %v217_v17 = vadd.f32 %v213_v54, %v192_v6  ;;  %v218_v18 = vadd.f32 %v214_v55, %v193_v7  ;;  %v86_v20 = vmul.f32 %v771_v9, %v1001_v8  ;;  %v87_v21 = vmul.f32 %v772_v11, %v1001_v8 }
  0x11   :  { %v111_v23 = vmul.f32 %v779_v15, %v1009_v10  ;;  %v112_v24 = vmul.f32 %v780_v16, %v1009_v10  ;;  %v787_v26 = vunpack.c.l.bf16 %v838_v12  ;;  %v788_v27 = vunpack.c.h.bf16 %v838_v12  ;;  %v844_v10 = vld [vmem:[%s1219_s0 + $0x60] sm:$0xff]  }
  0x12   :  { %v242_v2 = vadd.f32 %v238_v61, %v217_v17  ;;  %v243_v28 = vadd.f32 %v239_v62, %v218_v18  ;;  %v90_v29 = vadd.f32 %v86_v20, %v65_v13  ;;  %v91_v31 = vadd.f32 %v87_v21, %v66_v14  ;;  %v898_v15 = vld [vmem:[%s1221_s4] sm:$0xff]  }
  0x13   :  { %v136_v8 = vmul.f32 %v787_v26, %v1026_v19  ;;  %v137_v33 = vmul.f32 %v788_v27, %v1026_v19  ;;  %v795_v34 = vunpack.c.l.bf16 %v840_v22  ;;  %v796_v35 = vunpack.c.h.bf16 %v840_v22  ;;  %v899_v20 = vld [vmem:[%s1223_s3] sm:$0xff]  }
  0x14   :  { %v1108_v36 = vadd.f32 %v263_v1, %v242_v2  ;;  %v1110_v37 = vadd.f32 %v264_v3, %v243_v28  ;;  %v115_v38 = vadd.f32 %v111_v23, %v90_v29  ;;  %v116_v39 = vadd.f32 %v112_v24, %v91_v31  ;;  %v726_v21 = vld [vmem:[%s1224_s5] ss:$0 sm:$0xff] }
  0x15   :  { %v161_v42 = vmul.f32 %v795_v34, %v1036_v25  ;;  %v162_v19 = vmul.f32 %v796_v35, %v1036_v25  ;;  %v803_v43 = vunpack.c.l.bf16 %v842_v32  ;;  %v804_v44 = vunpack.c.h.bf16 %v842_v32  ;;  %v730_v22 = vld [vmem:[%s1225_s6] ss:$0 sm:$0xff] }
  0x16   :  { %v271_v45 = vpack.c.bf16 %v1110_v37, %v1108_v36  ;;  %v140_v46 = vadd.f32 %v136_v8, %v115_v38  ;;  %v141_v49 = vadd.f32 %v137_v33, %v116_v39  ;;  %v811_v50 = vunpack.c.l.bf16 %v844_v10  ;;  %v900_v8 = vld [vmem:[%s1223_s3 + $0x8] sm:$0xff]   ;;  %v902_v35 = vld [vmem:[%s1226_s7] sm:$0xff]  }
  0x17   :  { %v186_v53 = vmul.f32 %v803_v43, %v1041_v30  ;;  %v187_v25 = vmul.f32 %v804_v44, %v1041_v30  ;;  %v812_v54 = vunpack.c.h.bf16 %v844_v10  ;;  %v819_v55 = vunpack.c.l.bf16 %v846_v40  ;;  %v901_v33 = vld [vmem:[%s1226_s7 + $0x8] ss:$0 sps:$4 sm:$0x33]  }
  0x18   :  { %864 = vmatpush3.bf16.msra.mxu0 %v271_v45  ;;  %v165_v56 = vadd.f32 %v161_v42, %v140_v46  ;;  %v166_v57 = vadd.f32 %v162_v19, %v141_v49  ;;  %v211_v58 = vmul.f32 %v811_v50, %v1056_v41  ;;  %v820_v59 = vunpack.c.h.bf16 %v846_v40  ;;  %v739_v49 = vld [vmem:[%s1227_s8] ss:$0 sm:$0xff] }
  0x19   :  { %865 = vmatprep.subr.bf16.mxu0 %v903_v0  ;;  %v212_v60 = vmul.f32 %v812_v54, %v1056_v41  ;;  %v236_v61 = vmul.f32 %v819_v55, %v1066_v47  ;;  %v827_v62 = vunpack.c.l.bf16 %v848_v51  ;;  %v828_v63 = vunpack.c.h.bf16 %v848_v51 }
  0x1a   :  { %v190_v1 = vadd.f32 %v186_v53, %v165_v56  ;;  %v191_v3 = vadd.f32 %v187_v25, %v166_v57  ;;  %v237_v30 = vmul.f32 %v820_v59, %v1066_v47  ;;  %v343_v4 = vsel %vm341_vm1, %v897_v52, 0  ;;  %v269_v47 = vld [vmem:[%s1222_s2] sm:$0x1] }
  0x1b   :  { %872 = vmatpush3.bf16.msra.mxu1 %v343_v4  ;;  %v261_v7 = vmul.f32 %v827_v62, %v1071_v48  ;;  %v262_v9 = vmul.f32 %v828_v63, %v1071_v48  ;;  %v494_v34 = vsel %vm341_vm1, %v901_v33, 0  ;;  %v742_v56 = vld [vmem:[%s1230_s11] ss:$0 sm:$0xff] }
  0x1c   :  { %v215_v5 = vadd.f32 %v211_v58, %v190_v1  ;;  %v216_v6 = vadd.f32 %v212_v60, %v191_v3  ;;  %873 = vmatprep.subr.bf16.mxu1 %v903_v0  ;;  %v744_v4 = vld [vmem:[%s1232_s13] ss:$0 sm:$0xff] }
  0x1e   :  { %v240_v41 = vadd.f32 %v236_v61, %v215_v5  ;;  %v241_v11 = vadd.f32 %v237_v30, %v216_v6  ;;  %v743_v61 = vld [vmem:[%s1231_s12] ss:$0 sm:$0xff] }
  0x1f   :  { %874 = vmatpush3.bf16.msra.mxu1 %v898_v15 }
  0x20   :  { %v265_v12 = vadd.f32 %v261_v7, %v240_v41  ;;  %v266_v13 = vadd.f32 %v262_v9, %v241_v11  ;;  %894 = vmatprep.subr.msk.bf16.mxu1 %vm341_vm1, %v901_v33 }
  0x22   :  { %v270_v14 = vpack.c.bf16 %v266_v13, %v265_v12 }
  0x24   :  { %866 = vmatpush3.bf16.msra.mxu0 %v270_v14 }
  0x27   :  { %868 = vmatmul.mubr.msk.bf16.vlgmr.msra.gmra.mxu0 %vm272_vm2, %v269_v47 }
  0x28   :  { %881 = vmatprep.mubr.msk.bf16.mxu0 %vm409_vm4, %v899_v20 }
  0xe7   :  { %v310_v48 = vpop.f32.mrf.mxu0 }
  0xe8   :  { %v321_v0 = vpack.c.bf16 %v310_v48, %v310_v48 }
  0xe9   :  { %v869_v16 = vpop.f32.mrf.mxu0 }
  0xea   :  { %876 = vmatmul.mubr.msk.bf16.vlgmr.msra.gmra.mxu1 %vm337_vm3, %v321_v0 }
  0xeb   :  { %v313_v17 = vpop.f32.mrf.mxu0  ;;  %886 = vmatpush3.bf16.msra.mxu1 %v494_v34 }
  0xec   :  { %887 = vmatprep.subr.bf16.mxu1 %v902_v35 }
  0xed   :  { %v870_v18 = vpop.f32.mrf.mxu0 }
  0xef   :  { %888 = vmatpush3.bf16.msra.mxu1 %v902_v35 }
 0x1aa   :  { %v379_v23 = vpop.f32.mrf.mxu1 }
 0x1ab   :  { %v380_v24 = vadd.f32 %v726_v21, %v379_v23 }
 0x1ac   :  { %v877_v26 = vpop.f32.mrf.mxu1 }
 0x1ad   :  { %vm385_vm5 = vcmp.ge.f32.partialorder %v380_v24, 0.0  ;;  %v392_v27 = vmul.f32 %v730_v22, %v380_v24 }
 0x1ae   :  { %v382_v2 = vpop.f32.mrf.mxu1 }
 0x1af   :  { %v393_v28 = vsel %vm385_vm5, %v380_v24, %v392_v27 }
 0x1b0   :  { %v398_v29 = vpack.c.bf16 %v393_v28, %v393_v28  ;;  %v878_v31 = vpop.f32.mrf.mxu1 }
 0x1b2   :  { %893 = vmatprep.subr.msk.bf16.mxu0 %vm416_vm6, %v398_v29  ;;  %v418_v32 = vsel %vm416_vm6, %v398_v29, 0 }
 0x1b3   :  { %880 = vmatpush3.bf16.msra.mxu0 %v418_v32 }
 0x1b6   :  { %882 = vmatmul.mubr.msk.bf16.vlgmr.msra.gmra.mxu0 %vm409_vm4, %v900_v8 }
 0x276   :  { %v883_v10 = vpop.f32.mrf.mxu0 }
 0x277   :  { %v471_v44 = vmul.f32 %v883_v10, %v1108_v36  ;;  %v741_v36 = vld [vmem:[%s1229_s10] ss:$0 sm:$0xff] }
 0x278   :  { %v454_v38 = vpop.f32.mrf.mxu0 }
 0x279   :  { %v469_v19 = vmul.f32 %v454_v38, %v265_v12 }
 0x27a   :  { %v884_v39 = vpop.f32.mrf.mxu0 }
 0x27b   :  { %v472_v40 = vmul.f32 %v884_v39, %v1110_v37  ;;  %v740_v37 = vld [vmem:[%s1228_s9] ss:$0 sm:$0xff] }
 0x27c   :  { %v457_v42 = vpop.f32.mrf.mxu0 }
 0x27d   :  { %v470_v43 = vmul.f32 %v457_v42, %v266_v13  ;;  %v477_v46 = vpack.c.bf16 %v472_v40, %v471_v44 }
 0x27f   :  { %v476_v45 = vpack.c.bf16 %v470_v43, %v469_v19 }
 0x281   :  { %889 = vmatprep.mubr.msk.bf16.mxu1 %vm337_vm3, %v476_v45 }
 0x282   :  { %890 = vmatmul.mubr.msk.bf16.vlgmr.msra.gmra.mxu1 %vm337_vm3, %v477_v46 }
 0x342   :  { %v891_v50 = vpop.f32.mrf.mxu1 }
 0x343   :  { %v554_v51 = vmul.f32 %v891_v50, %v739_v49 }
 0x344   :  { %v530_v52 = vpop.f32.mrf.mxu1 }
 0x345   :  { %v565_v53 = vadd.f32 %v740_v37, %v554_v51  ;;  %v552_v25 = vmul.f32 %v739_v49, %v530_v52 }
 0x346   :  { %v892_v54 = vpop.f32.mrf.mxu1 }
 0x347   :  { %vm570_vm7 = vcmp.ge.f32.partialorder %v565_v53, 0.0  ;;  %v580_v55 = vmul.f32 %v741_v36, %v565_v53  ;;  %v563_v57 = vadd.f32 %v740_v37, %v552_v25  ;;  %v555_v58 = vmul.f32 %v892_v54, %v739_v49 }
 0x348   :  { %v533_v59 = vpop.f32.mrf.mxu1 }
 0x349   :  { %v584_v60 = vsel %vm570_vm7, %v565_v53, %v580_v55  ;;  %vm568_vm9 = vcmp.ge.f32.partialorder %v563_v57, 0.0  ;;  %v578_v62 = vmul.f32 %v741_v36, %v563_v57  ;;  %v566_v63 = vadd.f32 %v740_v37, %v555_v58 }
 0x34a   :  { %v597_v1 = vmul.f32 %v742_v56, %v584_v60  ;;  %v755_v3 = vpack.c.bf16 %v584_v60, %v584_v60  ;;  %v553_v30 = vmul.f32 %v739_v49, %v533_v59 }
 0x34b   :  { %v582_v5 = vsel %vm568_vm9, %v563_v57, %v578_v62  ;;  %vm571_vm10 = vcmp.ge.f32.partialorder %v566_v63, 0.0  ;;  %v581_v6 = vmul.f32 %v741_v36, %v566_v63 }
 0x34c   :  { %v607_v7 = vadd.f32 %v743_v61, %v597_v1  ;;  %646 = vst.msk [vmem:[%s1233_s14 + $0x8] sm:$0xf] %vm643_vm8, %v755_v3  ;;  %v595_v9 = vmul.f32 %v742_v56, %v582_v5  ;;  %v753_v41 = vpack.c.bf16 %v582_v5, %v582_v5  ;;  %v564_v11 = vadd.f32 %v740_v37, %v553_v30 }
 0x34d   :  { %v585_v12 = vsel %vm571_vm10, %v566_v63, %v581_v6 }
 0x34e   :  { %vm611_vm11 = vcmp.ge.f32.partialorder %v607_v7, 0.0  ;;  %v621_v13 = vmul.f32 %v744_v4, %v607_v7  ;;  %v605_v14 = vadd.f32 %v743_v61, %v595_v9  ;;  %644 = vst.msk [vmem:[%s1233_s14] sm:$0xf] %vm643_vm8, %v753_v41  ;;  %v598_v47 = vmul.f32 %v742_v56, %v585_v12 }
 0x34f   :  { %v756_v15 = vpack.c.bf16 %v585_v12, %v585_v12  ;;  %vm569_vm12 = vcmp.ge.f32.partialorder %v564_v11, 0.0  ;;  %v579_v48 = vmul.f32 %v741_v36, %v564_v11 }
 0x350   :  { %v625_v0 = vsel %vm611_vm11, %v607_v7, %v621_v13  ;;  %vm609_vm13 = vcmp.ge.f32.partialorder %v605_v14, 0.0  ;;  %v619_v16 = vmul.f32 %v744_v4, %v605_v14  ;;  %v608_v17 = vadd.f32 %v743_v61, %v598_v47 }
 0x351   :  { %v759_v18 = vpack.c.bf16 %v625_v0, %v625_v0  ;;  %647 = vst.msk [vmem:[%s1233_s14 + $0xc] sm:$0xf] %vm643_vm8, %v756_v15  ;;  %v583_v20 = vsel %vm569_vm12, %v564_v11, %v579_v48 }
 0x352   :  { %v623_v21 = vsel %vm609_vm13, %v605_v14, %v619_v16  ;;  %vm612_vm14 = vcmp.ge.f32.partialorder %v608_v17, 0.0  ;;  %v622_v22 = vmul.f32 %v744_v4, %v608_v17  ;;  %v596_v23 = vmul.f32 %v742_v56, %v583_v20 }
 0x353   :  { %666 = vst.msk [vmem:[%s1234_s15 + $0x8] sm:$0xf] %vm643_vm8, %v759_v18  ;;  %v757_v24 = vpack.c.bf16 %v623_v21, %v623_v21  ;;  %v754_v26 = vpack.c.bf16 %v583_v20, %v583_v20 }
 0x354   :  { %v626_v27 = vsel %vm612_vm14, %v608_v17, %v622_v22  ;;  %v606_v2 = vadd.f32 %v743_v61, %v596_v23 }
 0x355   :  { %664 = vst.msk [vmem:[%s1234_s15] sm:$0xf] %vm643_vm8, %v757_v24  ;;  %v760_v28 = vpack.c.bf16 %v626_v27, %v626_v27  ;;  %645 = vst.msk [vmem:[%s1233_s14 + $0x4] sm:$0xf] %vm643_vm8, %v754_v26 }
 0x356   :  { %vm610_vm15 = vcmp.ge.f32.partialorder %v606_v2, 0.0  ;;  %v620_v29 = vmul.f32 %v744_v4, %v606_v2 }
 0x357   :  { %667 = vst.msk [vmem:[%s1234_s15 + $0xc] sm:$0xf] %vm643_vm8, %v760_v28 }
 0x358   :  { %v624_v31 = vsel %vm610_vm15, %v606_v2, %v620_v29 }
 0x359   :  { %v758_v32 = vpack.c.bf16 %v624_v31, %v624_v31 }
 0x35b   :  { %665 = vst.msk [vmem:[%s1234_s15 + $0x4] sm:$0xf] %vm643_vm8, %v758_v32 }

// kernel: _lambda_.13
= control target key start
LH: loop header
LB: loop body
LE: loop exit
PB: predicated region body
PF: predicated region fallthrough
CT: control target
= control target key end

     0   :  { %vm95_vm0 = vcmask 392192   ;;  %vm151_vm1 = vcmask 195584   ;;  %v844_v5 = vmov 0.0   ;;  %vm459_vm2 = vcmask 1043456   ;;  %s1306_s1 = inlined_call_operand.vmem [shape: bf16[48,24], index: 1, kind: input, shape index: {}]   ;;  %s1307_s0 = inlined_call_operand.vmem [shape: bf16[32,48], index: 0, kind: input, shape index: {}]   ;;  %s1308_s9 = inlined_call_operand.vmem [shape: bf16[24,48], index: 9, kind: input, shape index: {}]   ;;  %s1309_s5 = inlined_call_operand.vmem [shape: bf16[24,48], index: 5, kind: input, shape index: {}]   ;;  %s1310_s2 = inlined_call_operand.vmem [shape: f32[9,32,24], index: 2, kind: input, shape index: {}]   ;;  %s1311_s6 = inlined_call_operand.vmem [shape: f32[6,32,24], index: 6, kind: input, shape index: {}]   ;;  %s1312_s7 = inlined_call_operand.vmem [shape: f32[1,24], index: 7, kind: input, shape index: {}]   ;;  %s1313_s8 = inlined_call_operand.vmem [shape: f32[1,24], index: 8, kind: input, shape index: {}]   ;;  %s1314_s3 = inlined_call_operand.vmem [shape: f32[1,24], index: 3, kind: input, shape index: {}]   ;;  %s1315_s4 = inlined_call_operand.vmem [shape: f32[1,24], index: 4, kind: input, shape index: {}]   ;;  %s1316_s12 = inlined_call_operand.vmem [shape: f32[1,48], index: 12, kind: input, shape index: {}]   ;;  %s1317_s10 = inlined_call_operand.vmem [shape: f32[1,48], index: 10, kind: input, shape index: {}]   ;;  %s1318_s11 = inlined_call_operand.vmem [shape: f32[1,48], index: 11, kind: input, shape index: {}]   ;;  %s1319_s13 = inlined_call_operand.vmem [shape: f32[1,48], index: 13, kind: input, shape index: {}]   ;;  %s1320_s14 = inlined_call_operand.vmem [shape: f32[1,48], index: 14, kind: input, shape index: {}]   ;;  %s1321_s15 = inlined_call_operand.vmem [shape: f32[1,48], index: 15, kind: input, shape index: {}]   ;;  %s1322_s16 = inlined_call_operand.vmem [shape: f32[1,48], index: 16, kind: input, shape index: {}]   ;;  %s1323_s17 = inlined_call_operand.vmem [shape: bf16[32,48], index: 17, kind: output, shape index: {}]  }
   0x1   :  { %1326 = sst [smem:[#allocation3_spill]] %s1306_s1  ;;  %152 = vst.msk [vmem:[#allocation2] sm:$0xff] %vm151_vm1, %v844_v5  ;;  %155 = vst.msk [vmem:[#allocation2 + $0x18] sm:$0xff] %vm151_vm1, %v844_v5  ;;  %v838_v6 = vld [vmem:[%s1308_s9 + $0x8] ss:$0 sps:$4 sm:$0xff]   ;;  %v839_v7 = vld [vmem:[%s1308_s9] sm:$0xff]  }
   0x2   :  { %1327 = sst [smem:[#allocation4_spill]] %s1307_s0  ;;  %157 = vst.msk [vmem:[#allocation2 + $0x28] sm:$0xff] %vm151_vm1, %v844_v5  ;;  %153 = vst.msk [vmem:[#allocation2 + $0x8] sm:$0xff] %vm151_vm1, %v844_v5  ;;  %830 = vmatprep.subr.msk.bf16.mxu1 %vm459_vm2, %v838_v6  ;;  %v461_v8 = vsel %vm459_vm2, %v838_v6, 0  ;;  %v840_v9 = vld [vmem:[%s1309_s5 + $0x8] ss:$0 sps:$4 sm:$0xff]  }
   0x3   :  { %s1328_s26 = sld [smem:[#allocation3_spill]]  ;;  %154 = vst.msk [vmem:[#allocation2 + $0x10] sm:$0xff] %vm151_vm1, %v844_v5  ;;  %156 = vst.msk [vmem:[#allocation2 + $0x20] sm:$0xff] %vm151_vm1, %v844_v5  ;;  %815 = vmatpush3.bf16.msra.mxu1 %v461_v8  ;;  %v971_v10 = vsel %vm459_vm2, %v840_v9, 0  ;;  %v166_v15 = vld [vmem:[%s1310_s2] sm:$0xff]  ;;  %v726_v24 = vld [vmem:[%s1310_s2 + $0x90] sm:$0xff] }
   0x4   :  { %s1329_s30 = sld [smem:[#allocation4_spill]]  ;;  %816 = vmatprep.subr.bf16.mxu1 %v839_v7  ;;  %v712_v16 = vld [vmem:[%s1310_s2 + $0x20] sm:$0xff]  ;;  %v169_v26 = vld [vmem:[%s1310_s2 + $0x18] sm:$0xff]  ;;  %v748_v28 = vld [vmem:[%s1311_s6 + $0x30] sm:$0xff]  ;;  %vm696_vm15 = vcmask 388096  }
   0x5   :  { %v716_v17 = vld [vmem:[%s1310_s2 + $0x40] sm:$0xff]  ;;  %v715_v27 = vld [vmem:[%s1310_s2 + $0x38] sm:$0xff]  ;;  %v760_v29 = vld [vmem:[%s1311_s6 + $0x90] sm:$0xff] }
   0x6   :  { %v333_v18 = vld [vmem:[%s1311_s6] sm:$0xff]  ;;  %v167_v31 = vld [vmem:[%s1310_s2 + $0x8] sm:$0xff]  ;;  %v719_v35 = vld [vmem:[%s1310_s2 + $0x58] sm:$0xff] }
   0x7   :  { %817 = vmatpush3.bf16.msra.mxu1 %v839_v7  ;;  %v746_v19 = vld [vmem:[%s1311_s6 + $0x20] sm:$0xff]  ;;  %v713_v33 = vld [vmem:[%s1310_s2 + $0x28] sm:$0xff]  ;;  %v168_v36 = vld [vmem:[%s1310_s2 + $0x10] sm:$0xff] }
   0x8   :  { %831 = vmatprep.subr.msk.bf16.mxu1 %vm459_vm2, %v840_v9  ;;  %v720_v20 = vld [vmem:[%s1310_s2 + $0x60] sm:$0xff]  ;;  %v717_v39 = vld [vmem:[%s1310_s2 + $0x48] sm:$0xff]  ;;  %v723_v43 = vld [vmem:[%s1310_s2 + $0x78] sm:$0xff] }
   0x9   :  { %v833_v0 = vld [vmem:[%s1328_s26 + $0x10] sm:$0xff]   ;;  %v834_v1 = vld [vmem:[%s1328_s26 + $0x8] sm:$0xff]   ;;  %v835_v3 = vld [vmem:[%s1328_s26] sm:$0xff]  }
   0xa   :  { %804 = vmatprep.subr.bf16.mxu0 %v833_v0  ;;  %v944_v2 = vld [vmem:[%s1329_s30] sm:$0xff]   ;;  %v953_v4 = vld [vmem:[%s1329_s30 + $0x8] sm:$0xff]   ;;  %v727_v63 = vld [vmem:[%s1310_s2 + $0x98] sm:$0xff] }
   0xb   :  { %805 = vmatpush3.bf16.msra.mxu0 %v833_v0  ;;  %810 = vmatprep.mubr.msk.bf16.mxu0 %vm95_vm0, %v944_v2  ;;  %v724_v21 = vld [vmem:[%s1310_s2 + $0x80] sm:$0xff]  ;;  %v721_v46 = vld [vmem:[%s1310_s2 + $0x68] sm:$0xff] }
   0xc   :  { %806 = vmatprep.subr.bf16.mxu0 %v834_v1  ;;  %v754_v22 = vld [vmem:[%s1311_s6 + $0x60] sm:$0xff]  ;;  %v733_v57 = vld [vmem:[%s1310_s2 + $0xc8] sm:$0xff] }
   0xd   :  { %v758_v25 = vld [vmem:[%s1311_s6 + $0x80] sm:$0xff]  ;;  %v334_v58 = vld [vmem:[%s1311_s6 + $0x8] sm:$0xff] }
   0xe   :  { %v732_v47 = vld [vmem:[%s1310_s2 + $0xc0] sm:$0xff]  ;;  %v747_v59 = vld [vmem:[%s1311_s6 + $0x28] sm:$0xff] }
   0xf   :  { %807 = vmatpush3.bf16.msra.mxu0 %v834_v1  ;;  %v725_v5 = vld [vmem:[%s1310_s2 + $0x88] sm:$0xff]  ;;  %v728_v6 = vld [vmem:[%s1310_s2 + $0xa0] sm:$0xff] }
  0x10   :  { %808 = vmatprep.subr.bf16.mxu0 %v835_v3 }
  0x13   :  { %809 = vmatpush3.bf16.msra.mxu0 %v835_v3 }
  0x16   :  { %811 = vmatmul.mubr.msk.bf16.vlgmr.msra.gmra.mxu0 %vm95_vm0, %v953_v4 }
  0xd6   :  { %v812_v11 = vpop.f32.mrf.mxu0 }
  0xd7   :  { %160 = vst.msk [vmem:[#allocation2 + $0x18] sm:$0xff] %vm151_vm1, %v812_v11 }
  0xd8   :  { %v136_v12 = vpop.f32.mrf.mxu0 }
  0xd9   :  { %158 = vst.msk [vmem:[#allocation2 + $0x8] sm:$0xff] %vm151_vm1, %v136_v12 }
  0xda   :  { %v813_v13 = vpop.f32.mrf.mxu0 }
  0xdb   :  { %161 = vst.msk [vmem:[#allocation2 + $0x20] sm:$0xff] %vm151_vm1, %v813_v13 }
  0xdc   :  { %v139_v14 = vpop.f32.mrf.mxu0 }
  0xdd   :  { %159 = vst.msk [vmem:[#allocation2 + $0x10] sm:$0xff] %vm151_vm1, %v139_v14 }
  0xde   :  { %v227_v23 = vld [vmem:[#allocation2 + $0x18] sm:$0xff] }
  0xdf   :  { %v1037_v44 = vmul.f32 %v726_v24, %v227_v23  ;;  %v1051_v52 = vmul.f32 %v748_v28, %v227_v23  ;;  %v1053_v53 = vmul.f32 %v760_v29, %v227_v23  ;;  %v729_v23 = vld [vmem:[%s1310_s2 + $0xa8] sm:$0xff] }
  0xe0   :  { %v162_v30 = vld [vmem:[#allocation2 + $0x3] sm:$0xff] }
  0xe1   :  { %v174_v32 = vld [vmem:[#allocation2 + $0x4] sm:$0xff]  ;;  %v170_v37 = vmul.f32 %v166_v15, %v162_v30 }
  0xe2   :  { %v191_v34 = vld [vmem:[#allocation2 + $0x5] sm:$0xff]  ;;  %v183_v38 = vmul.f32 %v712_v16, %v174_v32  ;;  %v337_v42 = vmul.f32 %v333_v18, %v174_v32  ;;  %v1045_v49 = vld [vmem:[#allocation2 + $0x1b] sm:$0xff] }
  0xe3   :  { %v208_v40 = vld [vmem:[#allocation2 + $0x7] sm:$0xff]  ;;  %v200_v45 = vmul.f32 %v716_v17, %v191_v34  ;;  %v1047_v50 = vld [vmem:[#allocation2 + $0x1c] sm:$0xff]  ;;  %v173_v9 = vmul.f32 %v169_v26, %v1045_v49 }
  0xe4   :  { %v225_v41 = vld [vmem:[#allocation2 + $0x8] sm:$0xff]  ;;  %v1049_v51 = vld [vmem:[#allocation2 + $0x1d] sm:$0xff]  ;;  %v187_v54 = vadd.f32 %v183_v38, %v170_v37  ;;  %v217_v55 = vmul.f32 %v720_v20, %v208_v40  ;;  %v372_v60 = vmul.f32 %v754_v22, %v208_v40  ;;  %v164_v1 = vld [vmem:[#allocation2 + $0x13] sm:$0xff]  ;;  %v186_v11 = vmul.f32 %v715_v27, %v1047_v50 }
  0xe5   :  { %v346_v48 = vmul.f32 %v746_v19, %v225_v41  ;;  %v234_v56 = vmul.f32 %v724_v21, %v225_v41  ;;  %v1064_v61 = vld [vmem:[#allocation2 + $0x1f] sm:$0xff]  ;;  %v163_v0 = vld [vmem:[#allocation2 + $0xb] sm:$0xff]  ;;  %v385_v8 = vmul.f32 %v758_v25, %v225_v41  ;;  %v203_v18 = vmul.f32 %v719_v35, %v1049_v51  ;;  %v1098_v26 = vld [vmem:[#allocation2 + $0x14] sm:$0xff] }
  0xe6   :  { %v1066_v62 = vld [vmem:[#allocation2 + $0x20] sm:$0xff]  ;;  %v1071_v3 = vld [vmem:[#allocation2 + $0xc] sm:$0xff]  ;;  %v171_v12 = vmul.f32 %v167_v31, %v163_v0  ;;  %v204_v15 = vadd.f32 %v200_v45, %v187_v54  ;;  %v1088_v19 = vmul.f32 %v168_v36, %v164_v1  ;;  %v220_v24 = vmul.f32 %v723_v43, %v1064_v61 }
  0xe7   :  { %v350_v7 = vadd.f32 %v346_v48, %v337_v42  ;;  %v184_v13 = vmul.f32 %v713_v33, %v1071_v3  ;;  %v1082_v14 = vld [vmem:[#allocation2 + $0xd] sm:$0xff]  ;;  %v750_v17 = vld [vmem:[%s1311_s6 + $0x40] sm:$0xff]  ;;  %v1096_v25 = vmul.f32 %v727_v63, %v1066_v62  ;;  %v265_v31 = vmul.f32 %v732_v47, %v163_v0  ;;  %v731_v63 = vld [vmem:[%s1310_s2 + $0xb8] sm:$0xff] }
  0xe8   :  { %v209_v16 = vld [vmem:[#allocation2 + $0xf] sm:$0xff]  ;;  %v201_v20 = vmul.f32 %v717_v39, %v1082_v14  ;;  %v221_v29 = vadd.f32 %v217_v55, %v204_v15  ;;  %v1103_v33 = vmul.f32 %v733_v57, %v164_v1  ;;  %v338_v34 = vmul.f32 %v334_v58, %v1071_v3  ;;  %v762_v43 = vld [vmem:[%s1311_s6 + $0xa0] sm:$0xff] }
  0xe9   :  { %v226_v21 = vld [vmem:[#allocation2 + $0x10] sm:$0xff]  ;;  %v188_v27 = vadd.f32 %v184_v13, %v171_v12  ;;  %v218_v28 = vmul.f32 %v721_v46, %v209_v16  ;;  %v751_v32 = vld [vmem:[%s1311_s6 + $0x48] sm:$0xff]  ;;  %v359_v36 = vmul.f32 %v750_v17, %v1071_v3  ;;  %v190_v58 = vadd.f32 %v186_v11, %v173_v9  ;;  %v336_v12 = vld [vmem:[%s1311_s6 + $0x18] sm:$0xff] }
  0xea   :  { %v242_v22 = vld [vmem:[#allocation2 + $0x9] sm:$0xff]  ;;  %v243_v30 = vld [vmem:[#allocation2 + $0x11] sm:$0xff]  ;;  %v347_v35 = vmul.f32 %v747_v59, %v226_v21  ;;  %v235_v39 = vmul.f32 %v725_v5, %v226_v21  ;;  %v238_v40 = vadd.f32 %v234_v56, %v221_v29  ;;  %v360_v47 = vmul.f32 %v751_v32, %v1098_v26  ;;  %v1120_v59 = vld [vmem:[#allocation2 + $0x21] sm:$0xff] }
  0xeb   :  { %v755_v37 = vld [vmem:[%s1311_s6 + $0x68] sm:$0xff]  ;;  %v205_v38 = vadd.f32 %v201_v20, %v188_v27  ;;  %v251_v41 = vmul.f32 %v728_v6, %v242_v22  ;;  %v252_v45 = vmul.f32 %v729_v23, %v243_v30  ;;  %v363_v48 = vadd.f32 %v359_v36, %v350_v7  ;;  %v335_v0 = vld [vmem:[%s1311_s6 + $0x10] sm:$0xff]  ;;  %v749_v9 = vld [vmem:[%s1311_s6 + $0x38] sm:$0xff] }
  0xec   :  { %v759_v42 = vld [vmem:[%s1311_s6 + $0x88] sm:$0xff]  ;;  %v351_v46 = vadd.f32 %v347_v35, %v338_v34  ;;  %v373_v57 = vmul.f32 %v755_v37, %v209_v16  ;;  %v398_v7 = vmul.f32 %v762_v43, %v242_v22  ;;  %v207_v16 = vadd.f32 %v203_v18, %v190_v58  ;;  %v735_v17 = vld [vmem:[%s1310_s2 + $0xd8] sm:$0xff]  ;;  %v756_v35 = vld [vmem:[%s1311_s6 + $0x70] sm:$0xff] }
  0xed   :  { %v763_v54 = vld [vmem:[%s1311_s6 + $0xa8] sm:$0xff]  ;;  %v222_v55 = vadd.f32 %v218_v28, %v205_v38  ;;  %v255_v56 = vadd.f32 %v251_v41, %v238_v40  ;;  %v376_v5 = vadd.f32 %v372_v60, %v363_v48  ;;  %v386_v6 = vmul.f32 %v759_v42, %v226_v21  ;;  %v752_v60 = vld [vmem:[%s1311_s6 + $0x50] sm:$0xff]  ;;  %v753_v18 = vld [vmem:[%s1311_s6 + $0x58] sm:$0xff] }
  0xee   :  { %v364_v1 = vadd.f32 %v360_v47, %v351_v46  ;;  %v399_v15 = vmul.f32 %v763_v54, %v243_v30  ;;  %v254_v22 = vmul.f32 %v731_v63, %v1120_v59  ;;  %v259_v23 = vld [vmem:[#allocation2 + $0x23] sm:$0xff]  ;;  %v339_v28 = vmul.f32 %v335_v0, %v1098_v26  ;;  %v1152_v30 = vld [vmem:[%s1312_s7] ss:$0 sm:$0xff]  ;;  %v757_v40 = vld [vmem:[%s1311_s6 + $0x78] sm:$0xff] }
  0xef   :  { %v239_v11 = vadd.f32 %v235_v39, %v222_v55  ;;  %v1134_v13 = vadd.f32 %v265_v31, %v255_v56  ;;  %v389_v21 = vadd.f32 %v385_v8, %v376_v5  ;;  %v1143_v27 = vld [vmem:[#allocation2 + $0x24] sm:$0xff]  ;;  %v1154_v31 = vld [vmem:[#allocation2 + $0x17] sm:$0xff]  ;;  %v224_v8 = vadd.f32 %v220_v24, %v207_v16  ;;  %v1169_v24 = vld [vmem:[%s1313_s8] ss:$0 sm:$0xff] }
  0xf0   :  { %v377_v20 = vadd.f32 %v373_v57, %v364_v1  ;;  %v340_v32 = vmul.f32 %v336_v12, %v1047_v50  ;;  %v349_v34 = vmul.f32 %v749_v9, %v1066_v62  ;;  %v352_v38 = vadd.f32 %v1051_v52, %v339_v28  ;;  %v761_v52 = vld [vmem:[%s1311_s6 + $0x98] sm:$0xff]  ;;  %v714_v1 = vld [vmem:[%s1310_s2 + $0x30] sm:$0xff] }
  0xf1   :  { %v256_v29 = vadd.f32 %v252_v45, %v239_v11  ;;  %v402_v37 = vadd.f32 %v398_v7, %v389_v21  ;;  %v361_v39 = vmul.f32 %v752_v60, %v1047_v50  ;;  %v241_v41 = vadd.f32 %v1096_v25, %v224_v8  ;;  %v1177_v48 = vld [vmem:[#allocation2 + $0x19] sm:$0xff]  ;;  %v764_v25 = vld [vmem:[%s1311_s6 + $0xb0] sm:$0xff] }
  0xf2   :  { %v390_v36 = vadd.f32 %v386_v6, %v377_v20  ;;  %v268_v42 = vmul.f32 %v735_v17, %v259_v23  ;;  %v353_v43 = vadd.f32 %v349_v34, %v340_v32  ;;  %v362_v45 = vmul.f32 %v753_v18, %v1143_v27  ;;  %v765_v56 = vld [vmem:[%s1311_s6 + $0xb8] sm:$0xff]  ;;  %v718_v9 = vld [vmem:[%s1310_s2 + $0x50] sm:$0xff]  ;;  %v737_v17 = vld [vmem:[%s1310_s2 + $0xe8] sm:$0xff] }
  0xf3   :  { %v413_v47 = vadd.f32 %v1152_v30, %v402_v37  ;;  %v365_v54 = vadd.f32 %v361_v39, %v352_v38  ;;  %v374_v55 = vmul.f32 %v756_v35, %v1154_v31  ;;  %v270_v57 = vadd.f32 %v1103_v33, %v256_v29  ;;  %v193_v12 = vld [vmem:[#allocation2 + $0x15] sm:$0xff]  ;;  %v736_v33 = vld [vmem:[%s1310_s2 + $0xe0] sm:$0xff]  ;;  %v741_v18 = vld [vmem:[%s1310_s2 + $0x108] sm:$0xff] }
  0xf4   :  { %v403_v46 = vadd.f32 %v399_v15, %v390_v36  ;;  %v258_v58 = vadd.f32 %v254_v22, %v241_v41  ;;  %v366_v63 = vadd.f32 %v362_v45, %v353_v43  ;;  %v375_v0 = vmul.f32 %v757_v40, %v1064_v61  ;;  %v740_v60 = vld [vmem:[%s1310_s2 + $0x100] sm:$0xff]  ;;  %v722_v8 = vld [vmem:[%s1310_s2 + $0x70] sm:$0xff]  ;;  %v739_v38 = vld [vmem:[%s1310_s2 + $0xf8] sm:$0xff] }
  0xf5   :  { %vm417_vm3 = vcmp.ge.f32.partialorder %v413_v47, 0.0  ;;  %v428_v6 = vmul.f32 %v1169_v24, %v413_v47  ;;  %v378_v7 = vadd.f32 %v374_v55, %v365_v54  ;;  %v388_v11 = vmul.f32 %v761_v52, %v1066_v62 }
  0xf6   :  { %v414_v5 = vadd.f32 %v1152_v30, %v403_v46  ;;  %v379_v61 = vadd.f32 %v375_v0, %v366_v63  ;;  %v400_v15 = vmul.f32 %v764_v25, %v1177_v48  ;;  %v401_v16 = vmul.f32 %v765_v56, %v1120_v59  ;;  %v287_v56 = vld [vmem:[#allocation2 + $0x25] sm:$0xff]  ;;  %v734_v0 = vld [vmem:[%s1310_s2 + $0xd0] sm:$0xff] }
  0xf7   :  { %v432_v21 = vsel %vm417_vm3, %v413_v47, %v428_v6  ;;  %v391_v22 = vadd.f32 %v1053_v53, %v378_v7  ;;  %v185_v62 = vmul.f32 %v714_v1, %v1098_v26  ;;  %v202_v28 = vmul.f32 %v718_v9, %v193_v12  ;;  %v745_v47 = vld [vmem:[%s1315_s4] ss:$0 sm:$0xff] }
  0xf8   :  { %vm418_vm4 = vcmp.ge.f32.partialorder %v414_v5, 0.0  ;;  %v429_v20 = vmul.f32 %v1169_v24, %v414_v5  ;;  %v392_v23 = vadd.f32 %v388_v11, %v379_v61  ;;  %v279_v59 = vmul.f32 %v736_v33, %v1071_v3  ;;  %v841_v7 = vld [vmem:[%s1309_s5] sm:$0xff]  }
  0xf9   :  { %v404_v32 = vadd.f32 %v400_v15, %v391_v22  ;;  %v280_v34 = vmul.f32 %v737_v17, %v1098_v26  ;;  %v293_v53 = vmul.f32 %v740_v60, %v1082_v14  ;;  %v189_v37 = vadd.f32 %v185_v62, %v1088_v19  ;;  %v744_v26 = vld [vmem:[%s1314_s3] ss:$0 sm:$0xff]  ;;  %v730_v19 = vld [vmem:[%s1310_s2 + $0xb0] sm:$0xff] }
  0xfa   :  { %v433_v29 = vsel %vm418_vm4, %v414_v5, %v429_v20  ;;  %v405_v36 = vadd.f32 %v401_v16, %v392_v23  ;;  %v283_v3 = vadd.f32 %v279_v59, %v1134_v13  ;;  %v272_v39 = vadd.f32 %v268_v42, %v258_v58  ;;  %v742_v15 = vld [vmem:[%s1310_s2 + $0x110] sm:$0xff] }
  0xfb   :  { %v436_v35 = vpack.c.bf16 %v433_v29, %v432_v21  ;;  %v415_v40 = vadd.f32 %v1152_v30, %v404_v32  ;;  %v284_v41 = vadd.f32 %v280_v34, %v270_v57  ;;  %v294_v43 = vmul.f32 %v741_v18, %v193_v12 }
  0xfc   :  { %v219_v14 = vmul.f32 %v722_v8, %v1154_v31  ;;  %v416_v13 = vadd.f32 %v1152_v30, %v405_v36  ;;  %v206_v45 = vadd.f32 %v202_v28, %v189_v37  ;;  %v297_v42 = vadd.f32 %v293_v53, %v283_v3  ;;  %v743_v30 = vld [vmem:[%s1310_s2 + $0x118] sm:$0xff]  ;;  %v776_v36 = vld [vmem:[%s1317_s10] ss:$0 sm:$0xff] }
  0xfd   :  { %818 = vmatprep.mubr.msk.bf16.mxu1 %vm151_vm1, %v436_v35  ;;  %vm419_vm5 = vcmp.ge.f32.partialorder %v415_v40, 0.0  ;;  %v430_v52 = vmul.f32 %v1169_v24, %v415_v40  ;;  %v298_v46 = vadd.f32 %v294_v43, %v284_v41  ;;  %v282_v54 = vmul.f32 %v739_v38, %v1143_v27 }
  0xfe   :  { %vm420_vm6 = vcmp.ge.f32.partialorder %v416_v13, 0.0  ;;  %v431_v31 = vmul.f32 %v1169_v24, %v416_v13  ;;  %v223_v55 = vadd.f32 %v219_v14, %v206_v45  ;;  %v308_v25 = vadd.f32 %v744_v26, %v297_v42 }
  0xff   :  { %v253_v57 = vmul.f32 %v730_v19, %v1177_v48  ;;  %v434_v58 = vsel %vm419_vm5, %v415_v40, %v430_v52  ;;  %v309_v63 = vadd.f32 %v744_v26, %v298_v46  ;;  %v286_v1 = vadd.f32 %v282_v54, %v272_v39  ;;  %v738_v48 = vld [vmem:[%s1310_s2 + $0xf0] sm:$0xff]  ;;  %v777_v39 = vld [vmem:[%s1318_s11] ss:$0 sm:$0xff] }
 0x100   :  { %v435_v27 = vsel %vm420_vm6, %v416_v13, %v431_v31  ;;  %v240_v5 = vadd.f32 %v1037_v44, %v223_v55  ;;  %vm312_vm7 = vcmp.ge.f32.partialorder %v308_v25, 0.0  ;;  %v323_v24 = vmul.f32 %v745_v47, %v308_v25  ;;  %v779_v46 = vld [vmem:[%s1319_s13] ss:$0 sm:$0xff] }
 0x101   :  { %v437_v6 = vpack.c.bf16 %v435_v27, %v434_v58  ;;  %vm313_vm8 = vcmp.ge.f32.partialorder %v309_v63, 0.0  ;;  %v324_v12 = vmul.f32 %v745_v47, %v309_v63  ;;  %v296_v9 = vmul.f32 %v743_v30, %v287_v56  ;;  %v780_v30 = vld [vmem:[%s1320_s14] ss:$0 sm:$0xff] }
 0x102   :  { %v257_v33 = vadd.f32 %v253_v57, %v240_v5  ;;  %v267_v61 = vmul.f32 %v734_v0, %v1045_v49  ;;  %v327_v44 = vsel %vm312_vm7, %v308_v25, %v323_v24  ;;  %v281_v20 = vmul.f32 %v738_v48, %v1047_v50 }
 0x103   :  { %819 = vmatmul.mubr.msk.bf16.vlgmr.msra.gmra.mxu1 %vm151_vm1, %v437_v6  ;;  %v328_v11 = vsel %vm313_vm8, %v309_v63, %v324_v12  ;;  %v300_v16 = vadd.f32 %v296_v9, %v286_v1  ;;  %v295_v49 = vmul.f32 %v742_v15, %v1049_v51  ;;  %v603_v53 = vunpack.c.l.bf16 %v953_v4  ;;  %v778_v51 = vld [vmem:[%s1316_s12] ss:$0 sm:$0xff] }
 0x104   :  { %823 = vmatpush3.bf16.msra.mxu1 %v971_v10  ;;  %v331_v17 = vpack.c.bf16 %v328_v11, %v327_v44  ;;  %v271_v60 = vadd.f32 %v267_v61, %v257_v33  ;;  %v601_v37 = vunpack.c.l.bf16 %v944_v2  ;;  %v604_v38 = vunpack.c.h.bf16 %v953_v4  ;;  %v781_v1 = vld [vmem:[%s1321_s15] ss:$0 sm:$0xff] }
 0x105   :  { %824 = vmatprep.subr.bf16.mxu1 %v841_v7  ;;  %v311_v22 = vadd.f32 %v744_v26, %v300_v16  ;;  %v614_v43 = vmul.f32 %v778_v51, %v603_v53  ;;  %v602_v52 = vunpack.c.h.bf16 %v944_v2 }
 0x106   :  { %826 = vmatprep.mubr.msk.bf16.mxu1 %vm151_vm1, %v331_v17  ;;  %v285_v21 = vadd.f32 %v281_v20, %v271_v60  ;;  %v612_v19 = vmul.f32 %v778_v51, %v601_v37  ;;  %v615_v4 = vmul.f32 %v778_v51, %v604_v38 }
 0x107   :  { %v326_v28 = vmul.f32 %v745_v47, %v311_v22  ;;  %vm315_vm9 = vcmp.ge.f32.partialorder %v311_v22, 0.0  ;;  %v613_v63 = vmul.f32 %v778_v51, %v602_v52 }
 0x108   :  { %825 = vmatpush3.bf16.msra.mxu1 %v841_v7  ;;  %v299_v23 = vadd.f32 %v295_v49, %v285_v21  ;;  %v782_v7 = vld [vmem:[%s1322_s16] ss:$0 sm:$0xff] }
 0x109   :  { %v330_v10 = vsel %vm315_vm9, %v311_v22, %v326_v28 }
 0x10a   :  { %v310_v62 = vadd.f32 %v744_v26, %v299_v23 }
 0x10c   :  { %vm314_vm10 = vcmp.ge.f32.partialorder %v310_v62, 0.0  ;;  %v325_v59 = vmul.f32 %v745_v47, %v310_v62 }
 0x10e   :  { %v329_v18 = vsel %vm314_vm10, %v310_v62, %v325_v59 }
 0x10f   :  { %v332_v29 = vpack.c.bf16 %v330_v10, %v329_v18 }
 0x111   :  { %827 = vmatmul.mubr.msk.bf16.vlgmr.msra.gmra.mxu1 %vm151_vm1, %v332_v29 }
 0x1c3   :  { %v820_v50 = vpop.f32.mrf.mxu1 }
 0x1c5   :  { %v497_v8 = vpop.f32.mrf.mxu1 }
 0x1c7   :  { %v821_v32 = vpop.f32.mrf.mxu1 }
 0x1c9   :  { %v500_v34 = vpop.f32.mrf.mxu1 }
 0x1d1   :  { %v828_v35 = vpop.f32.mrf.mxu1 }
 0x1d2   :  { %v573_v3 = vadd.f32 %v828_v35, %v820_v50 }
 0x1d3   :  { %v564_v40 = vpop.f32.mrf.mxu1 }
 0x1d4   :  { %v588_v41 = vmul.f32 %v776_v36, %v573_v3  ;;  %v565_v26 = vadd.f32 %v564_v40, %v497_v8 }
 0x1d5   :  { %v829_v14 = vpop.f32.mrf.mxu1 }
 0x1d6   :  { %v599_v13 = vadd.f32 %v777_v39, %v588_v41  ;;  %v586_v45 = vmul.f32 %v776_v36, %v565_v26  ;;  %v576_v42 = vadd.f32 %v829_v14, %v821_v32 }
 0x1d7   :  { %v567_v47 = vpop.f32.mrf.mxu1 }
 0x1d8   :  { %v618_v54 = vadd.f32 %v614_v43, %v599_v13  ;;  %v597_v31 = vadd.f32 %v777_v39, %v586_v45  ;;  %v589_v55 = vmul.f32 %v776_v36, %v576_v42  ;;  %v568_v25 = vadd.f32 %v567_v47, %v500_v34 }
 0x1da   :  { %vm622_vm11 = vcmp.ge.f32.partialorder %v618_v54, 0.0  ;;  %v633_v56 = vmul.f32 %v779_v46, %v618_v54  ;;  %v616_v57 = vadd.f32 %v612_v19, %v597_v31  ;;  %v600_v58 = vadd.f32 %v777_v39, %v589_v55 }
 0x1db   :  { %v587_v2 = vmul.f32 %v776_v36, %v568_v25 }
 0x1dc   :  { %v637_v0 = vsel %vm622_vm11, %v618_v54, %v633_v56  ;;  %vm620_vm12 = vcmp.ge.f32.partialorder %v616_v57, 0.0  ;;  %v631_v27 = vmul.f32 %v779_v46, %v616_v57  ;;  %v619_v5 = vadd.f32 %v615_v4, %v600_v58 }
 0x1dd   :  { %v648_v24 = vmul.f32 %v780_v30, %v637_v0  ;;  %v598_v6 = vadd.f32 %v777_v39, %v587_v2 }
 0x1de   :  { %v635_v12 = vsel %vm620_vm12, %v616_v57, %v631_v27  ;;  %vm623_vm13 = vcmp.ge.f32.partialorder %v619_v5, 0.0  ;;  %v634_v48 = vmul.f32 %v779_v46, %v619_v5 }
 0x1df   :  { %v659_v9 = vadd.f32 %v781_v1, %v648_v24  ;;  %v646_v33 = vmul.f32 %v780_v30, %v635_v12  ;;  %v617_v61 = vadd.f32 %v613_v63, %v598_v6 }
 0x1e0   :  { %v638_v44 = vsel %vm623_vm13, %v619_v5, %v634_v48 }
 0x1e1   :  { %vm663_vm14 = vcmp.ge.f32.partialorder %v659_v9, 0.0  ;;  %v674_v11 = vmul.f32 %v782_v7, %v659_v9  ;;  %v657_v15 = vadd.f32 %v781_v1, %v646_v33  ;;  %v649_v16 = vmul.f32 %v780_v30, %v638_v44 }
 0x1e2   :  { %vm621_vm0 = vcmp.ge.f32.partialorder %v617_v61, 0.0  ;;  %v632_v17 = vmul.f32 %v779_v46, %v617_v61 }
 0x1e3   :  { %v678_v60 = vsel %vm663_vm14, %v659_v9, %v674_v11  ;;  %vm661_vm1 = vcmp.ge.f32.partialorder %v657_v15, 0.0  ;;  %v672_v20 = vmul.f32 %v782_v7, %v657_v15  ;;  %v660_v21 = vadd.f32 %v781_v1, %v649_v16 }
 0x1e4   :  { %v789_v49 = vpack.c.bf16 %v678_v60, %v678_v60  ;;  %v636_v22 = vsel %vm621_vm0, %v617_v61, %v632_v17 }
 0x1e5   :  { %v676_v23 = vsel %vm661_vm1, %v657_v15, %v672_v20  ;;  %vm664_vm2 = vcmp.ge.f32.partialorder %v660_v21, 0.0  ;;  %v675_v62 = vmul.f32 %v782_v7, %v660_v21  ;;  %v647_v28 = vmul.f32 %v780_v30, %v636_v22 }
 0x1e6   :  { %699 = vst.msk [vmem:[%s1323_s17 + $0x8] sm:$0xf] %vm696_vm15, %v789_v49  ;;  %v787_v59 = vpack.c.bf16 %v676_v23, %v676_v23 }
 0x1e7   :  { %v679_v18 = vsel %vm664_vm2, %v660_v21, %v675_v62  ;;  %v658_v10 = vadd.f32 %v781_v1, %v647_v28 }
 0x1e8   :  { %697 = vst.msk [vmem:[%s1323_s17] sm:$0xf] %vm696_vm15, %v787_v59  ;;  %v790_v29 = vpack.c.bf16 %v679_v18, %v679_v18 }
 0x1e9   :  { %vm662_vm3 = vcmp.ge.f32.partialorder %v658_v10, 0.0  ;;  %v673_v50 = vmul.f32 %v782_v7, %v658_v10 }
 0x1ea   :  { %700 = vst.msk [vmem:[%s1323_s17 + $0xc] sm:$0xf] %vm696_vm15, %v790_v29 }
 0x1eb   :  { %v677_v8 = vsel %vm662_vm3, %v658_v10, %v673_v50 }
 0x1ec   :  { %v788_v32 = vpack.c.bf16 %v677_v8, %v677_v8 }
 0x1ee   :  { %698 = vst.msk [vmem:[%s1323_s17 + $0x4] sm:$0xf] %vm696_vm15, %v788_v32 }

// kernel: _lambda_.17
= control target key start
LH: loop header
LB: loop body
LE: loop exit
PB: predicated region body
PF: predicated region fallthrough
CT: control target
= control target key end

     0   :  { %v279_v1 = vmov 0.0   ;;  %vm280_vm0 = vmmov 0   ;;  %s343_s0 = inlined_call_operand.vmem [shape: bf16[8,48], index: 0, kind: input, shape index: {}]   ;;  %s344_s1 = inlined_call_operand.vmem [shape: bf16[48,20], index: 1, kind: input, shape index: {}]   ;;  %s345_s2 = inlined_call_operand.vmem [shape: bf16[8,96], index: 2, kind: input, shape index: {}]   ;;  %s346_s3 = inlined_call_operand.vmem [shape: bf16[96,20], index: 3, kind: input, shape index: {}]   ;;  %s347_s4 = inlined_call_operand.hbm [shape: f32[8,20], index: 4, kind: output, shape index: {}]  }
   0x1   :  { %v248_v0 = vld [vmem:[%s346_s3 + $0x28] sm:$0xff]   ;;  %219 = vmatprep.subr.bf16.mxu0 %v279_v1  ;;  %v249_v2 = vld [vmem:[%s346_s3 + $0x20] sm:$0xff]   ;;  %235 = vmatprep.subr.bf16.mxu1 %v279_v1  ;;  %v250_v3 = vld [vmem:[%s344_s1 + $0x10] sm:$0xff]  }
   0x2   :  { %220 = vmatpush3.bf16.msra.mxu0 %v248_v0  ;;  %241 = vmatprep.mubr.msk.bf16.mxu1 %vm280_vm0, %v279_v1  ;;  %v252_v4 = vld [vmem:[%s344_s1 + $0x8] sm:$0xff]   ;;  %v251_v5 = vld [vmem:[%s346_s3 + $0x18] sm:$0xff]   ;;  %v254_v6 = vld [vmem:[%s344_s1] sm:$0xff]  }
   0x3   :  { %221 = vmatprep.subr.bf16.mxu0 %v279_v1  ;;  %231 = vmatprep.mubr.msk.bf16.mxu0 %vm280_vm0, %v279_v1 }
   0x4   :  { %236 = vmatpush3.bf16.msra.mxu1 %v250_v3 }
   0x5   :  { %237 = vmatprep.subr.bf16.mxu1 %v279_v1 }
   0x6   :  { %222 = vmatpush3.bf16.msra.mxu0 %v249_v2 }
   0x7   :  { %223 = vmatprep.subr.bf16.mxu0 %v279_v1 }
   0x8   :  { %238 = vmatpush3.bf16.msra.mxu1 %v252_v4 }
   0x9   :  { %239 = vmatprep.subr.bf16.mxu1 %v279_v1 }
   0xa   :  { %9 = vsyncpa [#allocation3], 0  ;;  %224 = vmatpush3.bf16.msra.mxu0 %v251_v5  ;;  %v253_v7 = vld [vmem:[%s346_s3 + $0x10] sm:$0xff]   ;;  %v19_v8 = vld [vmem:[%s343_s0] sm:$0xf]  ;;  %vm137_vm1 = vcmask 392192  }
   0xb   :  { %225 = vmatprep.subr.bf16.mxu0 %v279_v1  ;;  %v255_v9 = vld [vmem:[%s346_s3 + $0x8] sm:$0xff]   ;;  %v256_v10 = vld [vmem:[%s346_s3] sm:$0xff]   ;;  %vm75_vm2 = vcmask 785408   ;;  %s281_s0 = smov [#allocation2]   ;;  %vm181_vm3 = vcmask 162816  }
   0xc   :  { %240 = vmatpush3.bf16.msra.mxu1 %v254_v6  ;;  %v26_v11 = vld [vmem:[%s345_s2] sm:$0xf]  ;;  %s189_s10 = sshll.u32 %s281_s0, 4  ;;  %s190_s10 = int_to_ptr.vmem [resolvable:$true] %s189_s10 }
   0xd   :  { %s257_s3 = scalar_lea.vmem %s190_s10, 128  ;;  %p262_p1 = scmp.lt.s32.totalorder %s190_s10, %s190_s10 }
   0xe   :  { %226 = vmatpush3.bf16.msra.mxu0 %v253_v7  ;;  %p258_p0 = scmp.ne.s32.totalorder %s190_s10, %s257_s3  ;;  %p263_p2 = scmp.lt.s32.totalorder %s257_s3, %s257_s3 }
   0xf   :  { %227 = vmatprep.subr.bf16.mxu0 %v279_v1  ;;  %242 = vmatmul.mubr.msk.bf16.vlgmr.msra.gmra.mxu1 %vm137_vm1, %v19_v8 }
  0x10   :  { %p264_p3 = por %p263_p2, %p262_p1 }
  0x12   :  { %228 = vmatpush3.bf16.msra.mxu0 %v255_v9  ;;  %p265_p4 = pnand %p264_p3, %p258_p0 }
  0x13   :  { %229 = vmatprep.subr.bf16.mxu0 %v279_v1 }
  0x16   :  { %230 = vmatpush3.bf16.msra.mxu0 %v256_v10 }
  0x19   :  { %232 = vmatmul.mubr.msk.bf16.vlgmr.msra.gmra.mxu0 %vm75_vm2, %v26_v11 }
  0xcf   :  { %v175_v12 = vpop.f32.mrf.mxu1 }
  0xd1   :  { %v243_v13 = vpop.f32.mrf.mxu1 }
  0xd3   :  { %v178_v14 = vpop.f32.mrf.mxu1 }
  0xd5   :  { %v244_v15 = vpop.f32.mrf.mxu1 }
  0xd9   :  { %v113_v16 = vpop.f32.mrf.mxu0 }
  0xda   :  { %v176_v17 = vadd.f32 %v175_v12, %v113_v16 }
  0xdb   :  { %v233_v18 = vpop.f32.mrf.mxu0 }
  0xdc   :  { %182 = vst.msk [vmem:[#allocation2] sm:$0xff] %vm181_vm3, %v176_v17 }
  0xdd   :  { %v116_v19 = vpop.f32.mrf.mxu0 }
  0xde   :  { %268 = shalt.err (!%p265_p4)
}
  0xdf   :  { %192 = dma.vmem_to_hbm [thread:$0]  %s190_s10, 128, %s347_s4, [#allocation3]   ;;  %v234_v20 = vpop.f32.mrf.mxu0 }
  0xe0   :  { %277 = dma.done.wait [#allocation3], 128  }
  0xe1   :  { %278 = vsyncadd [#allocation3], 4294967168 }
  0xe2   :  { %196 = vsyncpa [#allocation3], 1 }

// kernel: _lambda_.14
= control target key start
LH: loop header
LB: loop body
LE: loop exit
PB: predicated region body
PF: predicated region fallthrough
CT: control target
= control target key end

     0   :  { %v751_v0 = vmov 0.0   ;;  %vm752_vm0 = vmmov 0   ;;  %vm179_vm1 = vcmask 1043456   ;;  %vm175_vm2 = vcmask 64512   ;;  %s1006_s0 = inlined_call_operand.vmem [shape: bf16[9,8,72], index: 0, kind: input, shape index: {}]   ;;  %s1007_s1 = inlined_call_operand.vmem [shape: f32[9,1,72], index: 1, kind: input, shape index: {}]   ;;  %s1008_s4 = inlined_call_operand.vmem [shape: bf16[72,36], index: 4, kind: input, shape index: {}]   ;;  %s1009_s2 = inlined_call_operand.vmem [shape: bf16[2,8], index: 2, kind: input, shape index: {}]   ;;  %s1010_s7 = inlined_call_operand.vmem [shape: bf16[36,72], index: 7, kind: input, shape index: {}]   ;;  %s1011_s5 = inlined_call_operand.vmem [shape: f32[1,36], index: 5, kind: input, shape index: {}]   ;;  %s1012_s6 = inlined_call_operand.vmem [shape: f32[1,36], index: 6, kind: input, shape index: {}]   ;;  %s1013_s10 = inlined_call_operand.vmem [shape: bf16[72,48], index: 10, kind: input, shape index: {}]   ;;  %s1014_s8 = inlined_call_operand.vmem [shape: f32[1,72], index: 8, kind: input, shape index: {}]   ;;  %s1015_s9 = inlined_call_operand.vmem [shape: f32[1,72], index: 9, kind: input, shape index: {}]   ;;  %s1016_s3 = inlined_call_operand.vmem [shape: bf16[8,2], index: 3, kind: input, shape index: {}]   ;;  %s1017_s11 = inlined_call_operand.vmem [shape: f32[1,48], index: 11, kind: input, shape index: {}]   ;;  %s1018_s12 = inlined_call_operand.vmem [shape: f32[1,48], index: 12, kind: input, shape index: {}]   ;;  %s1019_s13 = inlined_call_operand.vmem [shape: f32[1,48], index: 13, kind: input, shape index: {}]   ;;  %s1020_s14 = inlined_call_operand.vmem [shape: f32[1,48], index: 14, kind: input, shape index: {}]   ;;  %s1021_s15 = inlined_call_operand.vmem [shape: f32[1,48], index: 15, kind: input, shape index: {}]   ;;  %s1022_s16 = inlined_call_operand.vmem [shape: f32[1,48], index: 16, kind: input, shape index: {}]   ;;  %s1023_s17 = inlined_call_operand.vmem [shape: bf16[8,48], index: 17, kind: output, shape index: {0}]   ;;  %s1024_s18 = inlined_call_operand.vmem [shape: bf16[8,48], index: 18, kind: output, shape index: {1}]  }
   0x1   :  { %1028 = sst [smem:[#allocation2_spill]] %s1006_s0  ;;  %686 = vmatprep.subr.bf16.mxu0 %v751_v0  ;;  %688 = vmatprep.mubr.msk.bf16.mxu0 %vm752_vm0, %v751_v0  ;;  %v173_v48 = vld [vmem:[%s1009_s2] sm:$0x1]  ;;  %vm357_vm3 = vcmask 1041408   ;;  %vm268_vm4 = vcmask 588800   ;;  %v744_v57 = vld [vmem:[%s1010_s7 + $0x8] sm:$0xff]  }
   0x2   :  { %1029 = sst [smem:[#allocation3_spill]] %s1007_s1  ;;  %692 = vmatprep.subr.bf16.mxu1 %v751_v0  ;;  %702 = vmatprep.mubr.msk.bf16.mxu1 %vm752_vm0, %v751_v0  ;;  %v743_v50 = vld [vmem:[%s1010_s7 + $0x10] ss:$0 sps:$4 sm:$0x33]   ;;  %v745_v58 = vld [vmem:[%s1010_s7] sm:$0xff]   ;;  %vm353_vm6 = vcmask 293888  }
   0x3   :  { %1030 = sst [smem:[#allocation4_spill]] %s1008_s4  ;;  %v359_v51 = vsel %vm357_vm3, %v743_v50, 0  ;;  %v635_v59 = vld [vmem:[%s1011_s5] ss:$0 sm:$0xff]  ;;  %vm416_vm8 = vcmask 1040384   ;;  %vm412_vm9 = vcmask 15360  }
   0x4   :  { %s1031_s29 = sld [smem:[#allocation2_spill]]  ;;  %v642_v60 = vld [vmem:[%s1012_s6] ss:$0 sm:$0xff]  ;;  %vm597_vm11 = vcmask 388096  }
   0x5   :  { %s1032_s19 = sld [smem:[#allocation3_spill]] }
   0x6   :  { %s1033_s23 = sld [smem:[#allocation4_spill]] }
   0xa   :  { %v663_v1 = vld [vmem:[%s1031_s29] sm:$0xff]   ;;  %v613_v6 = vld [vmem:[%s1031_s29 + $0x8] sm:$0xff]   ;;  %v619_v11 = vld [vmem:[%s1031_s29 + $0x10] sm:$0xff]  }
   0xb   :  { %v609_v2 = vld [vmem:[%s1032_s19] ss:$0 sm:$0xff]  ;;  %v612_v3 = vld [vmem:[%s1032_s19 + $0x1] ss:$0 sm:$0xff]  ;;  %v664_v4 = vunpack.c.l.bf16 %v663_v1  ;;  %v665_v5 = vunpack.c.h.bf16 %v663_v1  ;;  %v615_v7 = vld [vmem:[%s1032_s19 + $0x2] ss:$0 sm:$0xff]  ;;  %v86_v8 = vunpack.c.l.bf16 %v613_v6  ;;  %v99_v10 = vunpack.c.h.bf16 %v613_v6 }
   0xc   :  { %v618_v9 = vld [vmem:[%s1032_s19 + $0x3] ss:$0 sm:$0xff]  ;;  %v112_v14 = vunpack.c.l.bf16 %v619_v11  ;;  %v621_v16 = vld [vmem:[%s1032_s19 + $0x4] ss:$0 sm:$0xff]  ;;  %v624_v17 = vld [vmem:[%s1032_s19 + $0x5] ss:$0 sm:$0xff]  ;;  %v125_v21 = vunpack.c.h.bf16 %v619_v11 }
   0xd   :  { %v68_v12 = vmul.f32 %v664_v4, %v609_v2  ;;  %v80_v13 = vmul.f32 %v665_v5, %v612_v3  ;;  %v93_v15 = vmul.f32 %v615_v7, %v86_v8  ;;  %v625_v18 = vld [vmem:[%s1031_s29 + $0x18] sm:$0xff]   ;;  %v106_v20 = vmul.f32 %v618_v9, %v99_v10  ;;  %v738_v22 = vld [vmem:[%s1033_s23 + $0x20] ss:$0 sps:$4 sm:$0xff]   ;;  %v627_v23 = vld [vmem:[%s1032_s19 + $0x6] ss:$0 sm:$0xff] }
   0xe   :  { %v631_v24 = vld [vmem:[%s1031_s29 + $0x20] sm:$0xf]  ;;  %v119_v26 = vmul.f32 %v621_v16, %v112_v14  ;;  %v138_v27 = vunpack.c.l.bf16 %v625_v18  ;;  %v273_v28 = vsel %vm179_vm1, %v738_v22, 0  ;;  %v739_v29 = vld [vmem:[%s1033_s23 + $0x18] sm:$0xff]   ;;  %v132_v31 = vmul.f32 %v624_v17, %v125_v21  ;;  %v630_v33 = vld [vmem:[%s1032_s19 + $0x7] ss:$0 sm:$0xff] }
   0xf   :  { %v81_v19 = vadd.f32 %v80_v13, %v68_v12  ;;  %693 = vmatpush3.bf16.msra.mxu1 %v273_v28  ;;  %v151_v32 = vunpack.c.h.bf16 %v625_v18  ;;  %v164_v36 = vunpack.c.l.bf16 %v631_v24  ;;  %v633_v37 = vld [vmem:[%s1032_s19 + $0x8] ss:$0 sm:$0xff]  ;;  %v740_v38 = vld [vmem:[%s1033_s23 + $0x10] sm:$0xff]   ;;  %v742_v49 = vld [vmem:[%s1033_s23] sm:$0xff]  }
  0x10   :  { %694 = vmatprep.subr.bf16.mxu1 %v751_v0  ;;  %v145_v35 = vmul.f32 %v627_v23, %v138_v27  ;;  %v741_v43 = vld [vmem:[%s1033_s23 + $0x8] sm:$0xff]   ;;  %v746_v6 = vld [vmem:[%s1013_s10 + $0x20] ss:$0 sps:$4 sm:$0xff]   ;;  %v747_v8 = vld [vmem:[%s1013_s10 + $0x18] sm:$0xff]  }
  0x11   :  { %v94_v25 = vadd.f32 %v93_v15, %v81_v19  ;;  %v158_v40 = vmul.f32 %v630_v33, %v151_v32  ;;  %v171_v42 = vmul.f32 %v633_v37, %v164_v36  ;;  %v502_v7 = vsel %vm179_vm1, %v746_v6, 0  ;;  %v748_v9 = vld [vmem:[%s1013_s10 + $0x10] sm:$0xff]   ;;  %v749_v10 = vld [vmem:[%s1013_s10 + $0x8] sm:$0xff]   ;;  %v643_v11 = vld [vmem:[%s1014_s8] ss:$0 sm:$0xff] }
  0x12   :  { %v648_v12 = vld [vmem:[%s1015_s9] ss:$0 sm:$0xff] }
  0x13   :  { %v107_v30 = vadd.f32 %v106_v20, %v94_v25  ;;  %695 = vmatpush3.bf16.msra.mxu1 %v739_v29  ;;  %v750_v22 = vld [vmem:[%s1013_s10] sm:$0xff]  }
  0x14   :  { %696 = vmatprep.subr.bf16.mxu1 %v751_v0  ;;  %v656_v29 = vld [vmem:[%s1017_s11] ss:$0 sm:$0xff] }
  0x15   :  { %v120_v34 = vadd.f32 %v119_v26, %v107_v30  ;;  %v658_v33 = vld [vmem:[%s1019_s13] ss:$0 sm:$0xff] }
  0x17   :  { %v133_v39 = vadd.f32 %v132_v31, %v120_v34  ;;  %697 = vmatpush3.bf16.msra.mxu1 %v740_v38  ;;  %v657_v31 = vld [vmem:[%s1018_s12] ss:$0 sm:$0xff] }
  0x18   :  { %698 = vmatprep.subr.bf16.mxu1 %v751_v0  ;;  %v659_v38 = vld [vmem:[%s1020_s14] ss:$0 sm:$0xff] }
  0x19   :  { %v146_v41 = vadd.f32 %v145_v35, %v133_v39 }
  0x1b   :  { %v159_v44 = vadd.f32 %v158_v40, %v146_v41  ;;  %699 = vmatpush3.bf16.msra.mxu1 %v741_v43  ;;  %v660_v41 = vld [vmem:[%s1021_s15] ss:$0 sm:$0xff] }
  0x1c   :  { %700 = vmatprep.subr.bf16.mxu1 %v751_v0 }
  0x1d   :  { %v912_v45 = vadd.f32 %v171_v42, %v159_v44  ;;  %v661_v44 = vld [vmem:[%s1022_s16] ss:$0 sm:$0xff] }
  0x1f   :  { %v174_v46 = vpack.c.bf16 %v912_v45, %v912_v45  ;;  %701 = vmatpush3.bf16.msra.mxu1 %v742_v49 }
  0x20   :  { %722 = vmatprep.subr.bf16.mxu1 %v751_v0 }
  0x21   :  { %v181_v47 = vsel %vm179_vm1, %v174_v46, 0 }
  0x22   :  { %687 = vmatpush3.bf16.msra.mxu0 %v181_v47 }
  0x23   :  { %706 = vmatprep.subr.bf16.mxu0 %v751_v0 }
  0x25   :  { %689 = vmatmul.mubr.msk.bf16.vlgmr.msra.gmra.mxu0 %vm175_vm2, %v173_v48 }
  0x26   :  { %712 = vmatprep.mubr.msk.bf16.mxu0 %vm752_vm0, %v751_v0  ;;  %707 = vmatpush3.bf16.msra.mxu0 %v359_v51 }
  0x27   :  { %708 = vmatprep.subr.bf16.mxu0 %v751_v0 }
  0x2a   :  { %709 = vmatpush3.bf16.msra.mxu0 %v744_v57 }
  0x2b   :  { %710 = vmatprep.subr.bf16.mxu0 %v751_v0 }
  0x2e   :  { %711 = vmatpush3.bf16.msra.mxu0 %v745_v58 }
  0x2f   :  { %716 = vmatprep.subr.bf16.mxu0 %v751_v0 }
  0xe5   :  { %v217_v52 = vpop.f32.mrf.mxu0 }
  0xe6   :  { %v234_v53 = vpack.c.bf16 %v217_v52, %v217_v52 }
  0xe7   :  { %v690_v54 = vpop.f32.mrf.mxu0 }
  0xe8   :  { %703 = vmatmul.mubr.msk.bf16.vlgmr.msra.gmra.mxu1 %vm268_vm4, %v234_v53 }
  0xe9   :  { %v220_v55 = vpop.f32.mrf.mxu0  ;;  %732 = vmatprep.mubr.msk.bf16.mxu1 %vm752_vm0, %v751_v0  ;;  %723 = vmatpush3.bf16.msra.mxu1 %v502_v7 }
  0xea   :  { %724 = vmatprep.subr.bf16.mxu1 %v751_v0 }
  0xeb   :  { %v691_v56 = vpop.f32.mrf.mxu0 }
  0xed   :  { %725 = vmatpush3.bf16.msra.mxu1 %v747_v8 }
  0xee   :  { %726 = vmatprep.subr.bf16.mxu1 %v751_v0 }
  0xf1   :  { %727 = vmatpush3.bf16.msra.mxu1 %v748_v9 }
  0xf2   :  { %728 = vmatprep.subr.bf16.mxu1 %v751_v0 }
  0xf5   :  { %729 = vmatpush3.bf16.msra.mxu1 %v749_v10 }
  0xf6   :  { %730 = vmatprep.subr.bf16.mxu1 %v751_v0 }
  0xf9   :  { %731 = vmatpush3.bf16.msra.mxu1 %v750_v22 }
 0x1a8   :  { %v309_v61 = vpop.f32.mrf.mxu1 }
 0x1a9   :  { %v310_v62 = vadd.f32 %v635_v59, %v309_v61 }
 0x1aa   :  { %v704_v63 = vpop.f32.mrf.mxu1 }
 0x1ab   :  { %vm315_vm5 = vcmp.ge.f32.partialorder %v310_v62, 0.0  ;;  %v322_v1 = vmul.f32 %v642_v60, %v310_v62 }
 0x1ac   :  { %v312_v2 = vpop.f32.mrf.mxu1 }
 0x1ad   :  { %v323_v3 = vsel %vm315_vm5, %v310_v62, %v322_v1 }
 0x1ae   :  { %v331_v4 = vpack.c.bf16 %v323_v3, %v323_v3  ;;  %v705_v5 = vpop.f32.mrf.mxu1 }
 0x1b0   :  { %713 = vmatmul.mubr.msk.bf16.vlgmr.msra.gmra.mxu0 %vm353_vm6, %v331_v4 }
 0x1b1   :  { %718 = vmatprep.mubr.msk.bf16.mxu0 %vm752_vm0, %v751_v0  ;;  %v410_v0 = vld [vmem:[%s1016_s3] sm:$0xf] }
 0x270   :  { %v395_v13 = vpop.f32.mrf.mxu0 }
 0x271   :  { %v396_v14 = vadd.f32 %v643_v11, %v395_v13 }
 0x272   :  { %v714_v15 = vpop.f32.mrf.mxu0 }
 0x273   :  { %vm401_vm7 = vcmp.ge.f32.partialorder %v396_v14, 0.0  ;;  %v408_v16 = vmul.f32 %v648_v12, %v396_v14 }
 0x274   :  { %v398_v17 = vpop.f32.mrf.mxu0 }
 0x275   :  { %v409_v18 = vsel %vm401_vm7, %v396_v14, %v408_v16 }
 0x276   :  { %v411_v19 = vpack.c.bf16 %v409_v18, %v409_v18  ;;  %v715_v20 = vpop.f32.mrf.mxu0 }
 0x278   :  { %v418_v21 = vsel %vm416_vm8, %v411_v19, 0 }
 0x279   :  { %717 = vmatpush3.bf16.msra.mxu0 %v418_v21 }
 0x27c   :  { %719 = vmatmul.mubr.msk.bf16.vlgmr.msra.gmra.mxu0 %vm412_vm9, %v410_v0 }
 0x33c   :  { %v454_v23 = vpop.f32.mrf.mxu0 }
 0x33d   :  { %v460_v24 = vmul.f32 %v454_v23, %v912_v45 }
 0x33e   :  { %v720_v25 = vpop.f32.mrf.mxu0 }
 0x33f   :  { %v470_v26 = vpack.c.bf16 %v460_v24, %v460_v24 }
 0x340   :  { %v457_v27 = vpop.f32.mrf.mxu0 }
 0x341   :  { %733 = vmatmul.mubr.msk.bf16.vlgmr.msra.gmra.mxu1 %vm268_vm4, %v470_v26 }
 0x342   :  { %v721_v28 = vpop.f32.mrf.mxu0 }
 0x401   :  { %v538_v30 = vpop.f32.mrf.mxu1 }
 0x402   :  { %v551_v32 = vmul.f32 %v656_v29, %v538_v30 }
 0x403   :  { %v734_v34 = vpop.f32.mrf.mxu1 }
 0x404   :  { %v559_v35 = vadd.f32 %v657_v31, %v551_v32 }
 0x405   :  { %v541_v36 = vpop.f32.mrf.mxu1 }
 0x406   :  { %vm561_vm10 = vcmp.ge.f32.partialorder %v559_v35, 0.0  ;;  %v568_v37 = vmul.f32 %v658_v33, %v559_v35 }
 0x407   :  { %v735_v39 = vpop.f32.mrf.mxu1 }
 0x408   :  { %v569_v40 = vsel %vm561_vm10, %v559_v35, %v568_v37 }
 0x409   :  { %v579_v42 = vmul.f32 %v659_v38, %v569_v40  ;;  %v596_v43 = vpack.c.bf16 %v569_v40, %v569_v40 }
 0x40b   :  { %v586_v45 = vadd.f32 %v660_v41, %v579_v42  ;;  %598 = vst.msk [vmem:[%s1023_s17] sm:$0xf] %vm597_vm11, %v596_v43 }
 0x40d   :  { %vm587_vm12 = vcmp.ge.f32.partialorder %v586_v45, 0.0  ;;  %v594_v46 = vmul.f32 %v661_v44, %v586_v45 }
 0x40f   :  { %v595_v47 = vsel %vm587_vm12, %v586_v45, %v594_v46 }
 0x410   :  { %v599_v48 = vpack.c.bf16 %v595_v47, %v595_v47 }
 0x412   :  { %600 = vst.msk [vmem:[%s1024_s18] sm:$0xf] %vm597_vm11, %v599_v48 }

// kernel: _lambda_.15
= control target key start
LH: loop header
LB: loop body
LE: loop exit
PB: predicated region body
PF: predicated region fallthrough
CT: control target
= control target key end

     0   :  { %v476_v0 = vmov 0.0   ;;  %vm477_vm0 = vmmov 0   ;;  %vm70_vm1 = vcmask 392192   ;;  %vm114_vm2 = vcmask 293888   ;;  %s659_s1 = inlined_call_operand.vmem [shape: bf16[48,36], index: 1, kind: input, shape index: {}]   ;;  %s660_s0 = inlined_call_operand.vmem [shape: bf16[8,48], index: 0, kind: input, shape index: {}]   ;;  %s661_s5 = inlined_call_operand.vmem [shape: bf16[36,72], index: 5, kind: input, shape index: {}]   ;;  %s662_s9 = inlined_call_operand.vmem [shape: bf16[36,72], index: 9, kind: input, shape index: {}]   ;;  %s663_s2 = inlined_call_operand.vmem [shape: f32[6,8,36], index: 2, kind: input, shape index: {}]   ;;  %s664_s6 = inlined_call_operand.vmem [shape: f32[10,8,36], index: 6, kind: input, shape index: {}]   ;;  %s665_s3 = inlined_call_operand.vmem [shape: f32[1,36], index: 3, kind: input, shape index: {}]   ;;  %s666_s4 = inlined_call_operand.vmem [shape: f32[1,36], index: 4, kind: input, shape index: {}]   ;;  %s667_s7 = inlined_call_operand.vmem [shape: f32[1,36], index: 7, kind: input, shape index: {}]   ;;  %s668_s8 = inlined_call_operand.vmem [shape: f32[1,36], index: 8, kind: input, shape index: {}]   ;;  %s669_s10 = inlined_call_operand.vmem [shape: f32[1,72], index: 10, kind: input, shape index: {}]   ;;  %s670_s11 = inlined_call_operand.vmem [shape: f32[1,72], index: 11, kind: input, shape index: {}]   ;;  %s671_s12 = inlined_call_operand.vmem [shape: f32[1,72], index: 12, kind: input, shape index: {}]   ;;  %s672_s13 = inlined_call_operand.vmem [shape: bf16[8,72], index: 13, kind: output, shape index: {}]  }
   0x1   :  { %435 = vmatprep.subr.bf16.mxu0 %v476_v0  ;;  %v467_v1 = vld [vmem:[%s659_s1 + $0x10] sm:$0xff]   ;;  %441 = vmatprep.mubr.msk.bf16.mxu0 %vm477_vm0, %v476_v0  ;;  %v468_v2 = vld [vmem:[%s659_s1 + $0x8] sm:$0xff]   ;;  %v469_v3 = vld [vmem:[%s659_s1] sm:$0xff]   ;;  %115 = vst.msk [vmem:[#allocation2] sm:$0xff] %vm114_vm2, %v476_v0  ;;  %vm252_vm3 = vcmask 1041408   ;;  %vm384_vm7 = vcmask 584704  }
   0x2   :  { %445 = vmatprep.subr.bf16.mxu1 %v476_v0  ;;  %451 = vmatprep.mubr.msk.bf16.mxu1 %vm477_vm0, %v476_v0  ;;  %v45_v4 = vld [vmem:[%s660_s0] sm:$0xf]  ;;  %116 = vst.msk [vmem:[#allocation2 + $0x8] sm:$0xff] %vm114_vm2, %v476_v0  ;;  %117 = vst.msk [vmem:[#allocation2 + $0x10] sm:$0xff] %vm114_vm2, %v476_v0  ;;  %v471_v8 = vld [vmem:[%s661_s5 + $0x8] sm:$0xff]  }
   0x3   :  { %436 = vmatpush3.bf16.msra.mxu0 %v467_v1  ;;  %v470_v5 = vld [vmem:[%s661_s5 + $0x10] ss:$0 sps:$4 sm:$0x33]   ;;  %v473_v10 = vld [vmem:[%s661_s5] sm:$0xff]   ;;  %v474_v11 = vld [vmem:[%s662_s9 + $0x8] sm:$0xff]  }
   0x4   :  { %437 = vmatprep.subr.bf16.mxu0 %v476_v0  ;;  %v315_v6 = vsel %vm252_vm3, %v470_v5, 0  ;;  %v472_v7 = vld [vmem:[%s662_s9 + $0x10] ss:$0 sps:$4 sm:$0x33]   ;;  %v475_v12 = vld [vmem:[%s662_s9] sm:$0xff]   ;;  %v394_v18 = vld [vmem:[%s663_s2 + $0x8] sm:$0xff] }
   0x5   :  { %v254_v9 = vsel %vm252_vm3, %v472_v7, 0  ;;  %v120_v17 = vld [vmem:[%s663_s2] sm:$0xff]  ;;  %v395_v19 = vld [vmem:[%s663_s2 + $0x10] sm:$0xff]  ;;  %v401_v21 = vld [vmem:[%s664_s6 + $0x8] sm:$0xff] }
   0x6   :  { %446 = vmatpush3.bf16.msra.mxu1 %v254_v9  ;;  %v166_v20 = vld [vmem:[%s664_s6] sm:$0xff]  ;;  %v402_v28 = vld [vmem:[%s664_s6 + $0x10] sm:$0xff]  ;;  %v396_v30 = vld [vmem:[%s663_s2 + $0x18] sm:$0xff] }
   0x7   :  { %438 = vmatpush3.bf16.msra.mxu0 %v468_v2  ;;  %447 = vmatprep.subr.bf16.mxu1 %v476_v0  ;;  %v403_v35 = vld [vmem:[%s664_s6 + $0x18] sm:$0xff]  ;;  %v397_v36 = vld [vmem:[%s663_s2 + $0x20] sm:$0xff]  ;;  %v398_v44 = vld [vmem:[%s663_s2 + $0x28] sm:$0xff] }
   0x8   :  { %439 = vmatprep.subr.bf16.mxu0 %v476_v0  ;;  %v404_v42 = vld [vmem:[%s664_s6 + $0x20] sm:$0xff]  ;;  %v405_v49 = vld [vmem:[%s664_s6 + $0x28] sm:$0xff]  ;;  %v406_v54 = vld [vmem:[%s664_s6 + $0x30] sm:$0xff] }
   0x9   :  { %v399_v55 = vld [vmem:[%s665_s3] ss:$0 sm:$0xff]  ;;  %v407_v59 = vld [vmem:[%s664_s6 + $0x38] sm:$0xff] }
   0xa   :  { %448 = vmatpush3.bf16.msra.mxu1 %v474_v11  ;;  %v400_v60 = vld [vmem:[%s666_s4] ss:$0 sm:$0xff] }
   0xb   :  { %440 = vmatpush3.bf16.msra.mxu0 %v469_v3  ;;  %449 = vmatprep.subr.bf16.mxu1 %v476_v0  ;;  %v410_v11 = vld [vmem:[%s667_s7] ss:$0 sm:$0xff] }
   0xc   :  { %455 = vmatprep.subr.bf16.mxu0 %v476_v0 }
   0xe   :  { %442 = vmatmul.mubr.msk.bf16.vlgmr.msra.gmra.mxu0 %vm70_vm1, %v45_v4  ;;  %450 = vmatpush3.bf16.msra.mxu1 %v475_v12  ;;  %v409_v4 = vld [vmem:[%s664_s6 + $0x48] sm:$0xff] }
   0xf   :  { %461 = vmatprep.mubr.msk.bf16.mxu0 %vm477_vm0, %v476_v0  ;;  %456 = vmatpush3.bf16.msra.mxu0 %v315_v6 }
  0x10   :  { %457 = vmatprep.subr.bf16.mxu0 %v476_v0 }
  0x13   :  { %458 = vmatpush3.bf16.msra.mxu0 %v471_v8 }
  0x14   :  { %459 = vmatprep.subr.bf16.mxu0 %v476_v0  ;;  %v408_v0 = vld [vmem:[%s664_s6 + $0x40] sm:$0xff] }
  0x17   :  { %460 = vmatpush3.bf16.msra.mxu0 %v473_v10 }
  0xce   :  { %v108_v13 = vpop.f32.mrf.mxu0 }
  0xcf   :  { %118 = vst.msk [vmem:[#allocation2 + $0x8] sm:$0xff] %vm114_vm2, %v108_v13  ;;  %v411_v13 = vld [vmem:[%s668_s8] ss:$0 sm:$0xff] }
  0xd0   :  { %v443_v14 = vpop.f32.mrf.mxu0 }
  0xd2   :  { %v111_v15 = vpop.f32.mrf.mxu0 }
  0xd4   :  { %v444_v16 = vpop.f32.mrf.mxu0 }
  0xd6   :  { %v119_v22 = vld [vmem:[#allocation2 + $0x6] sm:$0xff] }
  0xd7   :  { %v122_v23 = vld [vmem:[#allocation2 + $0x8] sm:$0xff]  ;;  %v121_v25 = vmul.f32 %v120_v17, %v119_v22  ;;  %v170_v32 = vmul.f32 %v401_v21, %v119_v22  ;;  %v187_v57 = vmul.f32 %v405_v49, %v119_v22 }
  0xd8   :  { %v127_v24 = vld [vmem:[#allocation2 + $0xa] sm:$0xff]  ;;  %v125_v26 = vmul.f32 %v394_v18, %v122_v23  ;;  %v174_v38 = vmul.f32 %v402_v28, %v122_v23  ;;  %v139_v48 = vmul.f32 %v397_v36, %v122_v23  ;;  %v195_v2 = vmul.f32 %v407_v59, %v122_v23  ;;  %v420_v23 = vld [vmem:[%s669_s10] ss:$0 sm:$0xff] }
  0xd9   :  { %v165_v27 = vld [vmem:[#allocation2 + $0x4] sm:$0xff]  ;;  %v130_v34 = vmul.f32 %v395_v19, %v127_v24  ;;  %v180_v41 = vld [vmem:[#allocation2 + $0xc] sm:$0xff]  ;;  %v178_v46 = vmul.f32 %v403_v35, %v127_v24  ;;  %v203_v10 = vmul.f32 %v409_v4, %v127_v24  ;;  %v422_v28 = vld [vmem:[%s671_s12] ss:$0 sm:$0xff] }
  0xda   :  { %v132_v29 = vld [vmem:[#allocation2 + $0x7] sm:$0xff]  ;;  %v167_v31 = vmul.f32 %v166_v20, %v165_v27  ;;  %v126_v33 = vadd.f32 %v125_v26, %v121_v25  ;;  %v183_v51 = vmul.f32 %v404_v42, %v180_v41  ;;  %v421_v25 = vld [vmem:[%s670_s11] ss:$0 sm:$0xff] }
  0xdb   :  { %v135_v40 = vmul.f32 %v396_v30, %v132_v29  ;;  %v141_v43 = vld [vmem:[#allocation2 + $0x9] sm:$0xff]  ;;  %v191_v62 = vmul.f32 %v406_v54, %v132_v29 }
  0xdc   :  { %v171_v37 = vadd.f32 %v170_v32, %v167_v31  ;;  %v131_v39 = vadd.f32 %v130_v34, %v126_v33  ;;  %v144_v53 = vmul.f32 %v398_v44, %v141_v43  ;;  %v199_v6 = vmul.f32 %v408_v0, %v141_v43 }
  0xde   :  { %v175_v45 = vadd.f32 %v174_v38, %v171_v37  ;;  %v136_v47 = vadd.f32 %v135_v40, %v131_v39 }
  0xe0   :  { %v179_v50 = vadd.f32 %v178_v46, %v175_v45  ;;  %v140_v52 = vadd.f32 %v139_v48, %v136_v47 }
  0xe2   :  { %v184_v56 = vadd.f32 %v183_v51, %v179_v50  ;;  %v145_v58 = vadd.f32 %v144_v53, %v140_v52 }
  0xe4   :  { %v188_v61 = vadd.f32 %v187_v57, %v184_v56  ;;  %v153_v63 = vadd.f32 %v399_v55, %v145_v58 }
  0xe6   :  { %v192_v1 = vadd.f32 %v191_v62, %v188_v61  ;;  %vm154_vm4 = vcmp.ge.f32.partialorder %v153_v63, 0.0  ;;  %v162_v3 = vmul.f32 %v400_v60, %v153_v63 }
  0xe8   :  { %v196_v5 = vadd.f32 %v195_v2, %v192_v1  ;;  %v163_v7 = vsel %vm154_vm4, %v153_v63, %v162_v3 }
  0xe9   :  { %v164_v8 = vpack.c.bf16 %v163_v7, %v163_v7 }
  0xea   :  { %v200_v9 = vadd.f32 %v199_v6, %v196_v5 }
  0xeb   :  { %462 = vmatmul.mubr.msk.bf16.vlgmr.msra.gmra.mxu0 %vm114_vm2, %v164_v8 }
  0xec   :  { %v204_v12 = vadd.f32 %v203_v10, %v200_v9 }
  0xee   :  { %v212_v14 = vadd.f32 %v410_v11, %v204_v12 }
  0xf0   :  { %vm213_vm5 = vcmp.ge.f32.partialorder %v212_v14, 0.0  ;;  %v221_v15 = vmul.f32 %v411_v13, %v212_v14 }
  0xf2   :  { %v222_v16 = vsel %vm213_vm5, %v212_v14, %v221_v15 }
  0xf3   :  { %v223_v17 = vpack.c.bf16 %v222_v16, %v222_v16 }
  0xf5   :  { %452 = vmatmul.mubr.msk.bf16.vlgmr.msra.gmra.mxu1 %vm114_vm2, %v223_v17 }
 0x1ab   :  { %v351_v18 = vpop.f32.mrf.mxu0 }
 0x1ad   :  { %v463_v19 = vpop.f32.mrf.mxu0 }
 0x1af   :  { %v354_v20 = vpop.f32.mrf.mxu0 }
 0x1b1   :  { %v464_v21 = vpop.f32.mrf.mxu0 }
 0x1b5   :  { %v290_v22 = vpop.f32.mrf.mxu1 }
 0x1b6   :  { %v352_v24 = vadd.f32 %v351_v18, %v290_v22 }
 0x1b7   :  { %v453_v26 = vpop.f32.mrf.mxu1 }
 0x1b8   :  { %v364_v27 = vmul.f32 %v420_v23, %v352_v24 }
 0x1b9   :  { %v293_v29 = vpop.f32.mrf.mxu1 }
 0x1ba   :  { %v372_v30 = vadd.f32 %v421_v25, %v364_v27 }
 0x1bb   :  { %v454_v31 = vpop.f32.mrf.mxu1 }
 0x1bc   :  { %vm373_vm6 = vcmp.ge.f32.partialorder %v372_v30, 0.0  ;;  %v381_v32 = vmul.f32 %v422_v28, %v372_v30 }
 0x1be   :  { %v382_v33 = vsel %vm373_vm6, %v372_v30, %v381_v32 }
 0x1bf   :  { %v383_v34 = vpack.c.bf16 %v382_v33, %v382_v33 }
 0x1c1   :  { %385 = vst.msk [vmem:[%s672_s13] sm:$0xf] %vm384_vm7, %v383_v34 }

// kernel: _lambda_.16
= control target key start
LH: loop header
LB: loop body
LE: loop exit
PB: predicated region body
PF: predicated region fallthrough
CT: control target
= control target key end

     0   :  { %vm95_vm0 = vcmask 1043456   ;;  %v536_v0 = vmov 0.0   ;;  %vm537_vm1 = vmmov 0   ;;  %vm91_vm2 = vcmask 588800   ;;  %s763_s1 = inlined_call_operand.vmem [shape: bf16[72,48], index: 1, kind: input, shape index: {}]   ;;  %s764_s0 = inlined_call_operand.vmem [shape: bf16[8,72], index: 0, kind: input, shape index: {}]   ;;  %s765_s9 = inlined_call_operand.vmem [shape: bf16[48,96], index: 9, kind: input, shape index: {}]   ;;  %s766_s5 = inlined_call_operand.vmem [shape: bf16[48,96], index: 5, kind: input, shape index: {}]   ;;  %s767_s6 = inlined_call_operand.vmem [shape: f32[9,8,48], index: 6, kind: input, shape index: {}]   ;;  %s768_s2 = inlined_call_operand.vmem [shape: f32[6,8,48], index: 2, kind: input, shape index: {}]   ;;  %s769_s7 = inlined_call_operand.vmem [shape: f32[1,48], index: 7, kind: input, shape index: {}]   ;;  %s770_s8 = inlined_call_operand.vmem [shape: f32[1,48], index: 8, kind: input, shape index: {}]   ;;  %s771_s3 = inlined_call_operand.vmem [shape: f32[1,48], index: 3, kind: input, shape index: {}]   ;;  %s772_s4 = inlined_call_operand.vmem [shape: f32[1,48], index: 4, kind: input, shape index: {}]   ;;  %s773_s10 = inlined_call_operand.vmem [shape: f32[1,96], index: 10, kind: input, shape index: {}]   ;;  %s774_s11 = inlined_call_operand.vmem [shape: f32[1,96], index: 11, kind: input, shape index: {}]   ;;  %s775_s12 = inlined_call_operand.vmem [shape: f32[1,96], index: 12, kind: input, shape index: {}]   ;;  %s776_s13 = inlined_call_operand.vmem [shape: f32[1,96], index: 13, kind: input, shape index: {}]   ;;  %s777_s14 = inlined_call_operand.vmem [shape: f32[1,96], index: 14, kind: input, shape index: {}]   ;;  %s778_s15 = inlined_call_operand.vmem [shape: f32[1,96], index: 15, kind: input, shape index: {}]   ;;  %s779_s16 = inlined_call_operand.vmem [shape: bf16[8,96], index: 16, kind: output, shape index: {}]  }
   0x1   :  { %781 = sst [smem:[#allocation3_spill]] %s763_s1  ;;  %489 = vmatprep.subr.bf16.mxu0 %v536_v0  ;;  %499 = vmatprep.mubr.msk.bf16.mxu0 %vm537_vm1, %v536_v0  ;;  %v54_v7 = vld [vmem:[%s764_s0] sm:$0xf]  ;;  %vm139_vm3 = vcmask 392192   ;;  %v530_v8 = vld [vmem:[%s765_s9 + $0x10] sm:$0xff]   ;;  %v531_v9 = vld [vmem:[%s765_s9 + $0x8] sm:$0xff]  }
   0x2   :  { %s782_s23 = sld [smem:[#allocation3_spill]]  ;;  %503 = vmatprep.subr.bf16.mxu1 %v536_v0  ;;  %509 = vmatprep.mubr.msk.bf16.mxu1 %vm537_vm1, %v536_v0  ;;  %140 = vst.msk [vmem:[#allocation2] sm:$0xff] %vm139_vm3, %v536_v0  ;;  %141 = vst.msk [vmem:[#allocation2 + $0x8] sm:$0xff] %vm139_vm3, %v536_v0  ;;  %v532_v10 = vld [vmem:[%s765_s9] sm:$0xff]   ;;  %v451_v15 = vld [vmem:[%s767_s6 + $0x8] sm:$0xff]  ;;  %vm432_vm8 = vcmask 781312  }
   0x3   :  { %142 = vst.msk [vmem:[#allocation2 + $0x10] sm:$0xff] %vm139_vm3, %v536_v0  ;;  %504 = vmatpush3.bf16.msra.mxu1 %v530_v8  ;;  %v145_v16 = vld [vmem:[%s768_s2] sm:$0xff]  ;;  %v444_v17 = vld [vmem:[%s768_s2 + $0x8] sm:$0xff]  ;;  %v452_v24 = vld [vmem:[%s767_s6 + $0x10] sm:$0xff] }
   0x4   :  { %505 = vmatprep.subr.bf16.mxu1 %v536_v0  ;;  %v191_v18 = vld [vmem:[%s767_s6] sm:$0xff]  ;;  %v453_v28 = vld [vmem:[%s767_s6 + $0x18] sm:$0xff]  ;;  %v445_v32 = vld [vmem:[%s768_s2 + $0x10] sm:$0xff] }
   0x5   :  { %v454_v33 = vld [vmem:[%s767_s6 + $0x20] sm:$0xff]  ;;  %v455_v38 = vld [vmem:[%s767_s6 + $0x28] sm:$0xff]  ;;  %v456_v42 = vld [vmem:[%s767_s6 + $0x30] sm:$0xff] }
   0x6   :  { %v446_v43 = vld [vmem:[%s768_s2 + $0x18] sm:$0xff]  ;;  %v458_v52 = vld [vmem:[%s767_s6 + $0x40] sm:$0xff]  ;;  %v448_v61 = vld [vmem:[%s768_s2 + $0x28] sm:$0xff] }
   0x7   :  { %506 = vmatpush3.bf16.msra.mxu1 %v531_v9  ;;  %v457_v47 = vld [vmem:[%s767_s6 + $0x38] sm:$0xff]  ;;  %v447_v53 = vld [vmem:[%s768_s2 + $0x20] sm:$0xff]  ;;  %v533_v8 = vld [vmem:[%s766_s5 + $0x10] sm:$0xff]  }
   0x8   :  { %v525_v1 = vld [vmem:[%s782_s23 + $0x20] ss:$0 sps:$4 sm:$0xff]   ;;  %v526_v3 = vld [vmem:[%s782_s23 + $0x18] sm:$0xff]   ;;  %v527_v4 = vld [vmem:[%s782_s23 + $0x10] sm:$0xff]   ;;  %507 = vmatprep.subr.bf16.mxu1 %v536_v0 }
   0x9   :  { %v97_v2 = vsel %vm95_vm0, %v525_v1, 0  ;;  %v528_v5 = vld [vmem:[%s782_s23 + $0x8] sm:$0xff]   ;;  %v529_v6 = vld [vmem:[%s782_s23] sm:$0xff]  }
   0xa   :  { %490 = vmatpush3.bf16.msra.mxu0 %v97_v2  ;;  %v459_v60 = vld [vmem:[%s769_s7] ss:$0 sm:$0xff] }
   0xb   :  { %491 = vmatprep.subr.bf16.mxu0 %v536_v0  ;;  %508 = vmatpush3.bf16.msra.mxu1 %v532_v10  ;;  %v460_v1 = vld [vmem:[%s770_s8] ss:$0 sm:$0xff] }
   0xc   :  { %513 = vmatprep.subr.bf16.mxu1 %v536_v0 }
   0xe   :  { %492 = vmatpush3.bf16.msra.mxu0 %v526_v3 }
   0xf   :  { %493 = vmatprep.subr.bf16.mxu0 %v536_v0 }
  0x12   :  { %494 = vmatpush3.bf16.msra.mxu0 %v527_v4 }
  0x13   :  { %495 = vmatprep.subr.bf16.mxu0 %v536_v0 }
  0x16   :  { %496 = vmatpush3.bf16.msra.mxu0 %v528_v5 }
  0x17   :  { %497 = vmatprep.subr.bf16.mxu0 %v536_v0 }
  0x1a   :  { %498 = vmatpush3.bf16.msra.mxu0 %v529_v6  ;;  %v449_v6 = vld [vmem:[%s771_s3] ss:$0 sm:$0xff] }
  0x1d   :  { %500 = vmatmul.mubr.msk.bf16.vlgmr.msra.gmra.mxu0 %vm91_vm2, %v54_v7 }
  0xdd   :  { %v133_v11 = vpop.f32.mrf.mxu0 }
  0xde   :  { %143 = vst.msk [vmem:[#allocation2 + $0x8] sm:$0xff] %vm139_vm3, %v133_v11  ;;  %v450_v11 = vld [vmem:[%s772_s4] ss:$0 sm:$0xff] }
  0xdf   :  { %v501_v12 = vpop.f32.mrf.mxu0 }
  0xe0   :  { %v534_v12 = vld [vmem:[%s766_s5 + $0x8] sm:$0xff]  }
  0xe1   :  { %v136_v13 = vpop.f32.mrf.mxu0 }
  0xe3   :  { %v502_v14 = vpop.f32.mrf.mxu0 }
  0xe4   :  { %v535_v14 = vld [vmem:[%s766_s5] sm:$0xff]  }
  0xe5   :  { %v144_v19 = vld [vmem:[#allocation2 + $0x6] sm:$0xff] }
  0xe6   :  { %v147_v20 = vld [vmem:[#allocation2 + $0x8] sm:$0xff]  ;;  %v195_v23 = vmul.f32 %v451_v15, %v144_v19  ;;  %v146_v25 = vmul.f32 %v145_v16, %v144_v19 }
  0xe7   :  { %v157_v21 = vld [vmem:[#allocation2 + $0x7] sm:$0xff]  ;;  %v150_v26 = vmul.f32 %v444_v17, %v147_v20  ;;  %v207_v41 = vmul.f32 %v454_v33, %v147_v20  ;;  %v164_v59 = vmul.f32 %v447_v53, %v147_v20  ;;  %v473_v33 = vld [vmem:[%s777_s14] ss:$0 sm:$0xff] }
  0xe8   :  { %v190_v22 = vld [vmem:[#allocation2 + $0x5] sm:$0xff]  ;;  %v199_v30 = vmul.f32 %v452_v24, %v157_v21  ;;  %v203_v36 = vmul.f32 %v453_v28, %v157_v21  ;;  %v160_v50 = vmul.f32 %v446_v43, %v157_v21  ;;  %v470_v24 = vld [vmem:[%s774_s11] ss:$0 sm:$0xff] }
  0xe9   :  { %v192_v27 = vmul.f32 %v191_v18, %v190_v22  ;;  %v152_v31 = vld [vmem:[#allocation2 + $0xa] sm:$0xff]  ;;  %v151_v34 = vadd.f32 %v150_v26, %v146_v25  ;;  %v469_v22 = vld [vmem:[%s773_s10] ss:$0 sm:$0xff] }
  0xea   :  { %v166_v37 = vld [vmem:[#allocation2 + $0x9] sm:$0xff]  ;;  %v155_v39 = vmul.f32 %v445_v32, %v152_v31  ;;  %v219_v55 = vmul.f32 %v457_v47, %v152_v31  ;;  %v471_v26 = vld [vmem:[%s775_s12] ss:$0 sm:$0xff] }
  0xeb   :  { %v196_v29 = vadd.f32 %v195_v23, %v192_v27  ;;  %v211_v46 = vmul.f32 %v455_v38, %v166_v37  ;;  %v215_v49 = vmul.f32 %v456_v42, %v166_v37  ;;  %v221_v51 = vld [vmem:[#allocation2 + $0xb] sm:$0xff]  ;;  %v169_v3 = vmul.f32 %v448_v61, %v166_v37  ;;  %v472_v31 = vld [vmem:[%s776_s13] ss:$0 sm:$0xff] }
  0xec   :  { %v156_v44 = vadd.f32 %v155_v39, %v151_v34  ;;  %v224_v58 = vmul.f32 %v458_v52, %v221_v51 }
  0xed   :  { %v200_v35 = vadd.f32 %v199_v30, %v196_v29 }
  0xee   :  { %v161_v56 = vadd.f32 %v160_v50, %v156_v44 }
  0xef   :  { %v204_v40 = vadd.f32 %v203_v36, %v200_v35  ;;  %v474_v35 = vld [vmem:[%s778_s15] ss:$0 sm:$0xff] }
  0xf0   :  { %v165_v63 = vadd.f32 %v164_v59, %v161_v56 }
  0xf1   :  { %v208_v45 = vadd.f32 %v207_v41, %v204_v40 }
  0xf2   :  { %v170_v5 = vadd.f32 %v169_v3, %v165_v63 }
  0xf3   :  { %v212_v48 = vadd.f32 %v211_v46, %v208_v45 }
  0xf4   :  { %v178_v10 = vadd.f32 %v449_v6, %v170_v5 }
  0xf5   :  { %v216_v54 = vadd.f32 %v215_v49, %v212_v48 }
  0xf6   :  { %v187_v13 = vmul.f32 %v450_v11, %v178_v10  ;;  %vm179_vm5 = vcmp.ge.f32.partialorder %v178_v10, 0.0 }
  0xf7   :  { %v220_v57 = vadd.f32 %v219_v55, %v216_v54 }
  0xf8   :  { %v188_v15 = vsel %vm179_vm5, %v178_v10, %v187_v13 }
  0xf9   :  { %v225_v62 = vadd.f32 %v224_v58, %v220_v57  ;;  %v189_v16 = vpack.c.bf16 %v188_v15, %v188_v15 }
  0xfb   :  { %v233_v2 = vadd.f32 %v459_v60, %v225_v62 }
  0xfd   :  { %vm234_vm4 = vcmp.ge.f32.partialorder %v233_v2, 0.0  ;;  %v242_v4 = vmul.f32 %v460_v1, %v233_v2 }
  0xff   :  { %v243_v7 = vsel %vm234_vm4, %v233_v2, %v242_v4 }
 0x100   :  { %v244_v9 = vpack.c.bf16 %v243_v7, %v243_v7 }
 0x102   :  { %510 = vmatmul.mubr.msk.bf16.vlgmr.msra.gmra.mxu1 %vm139_vm3, %v244_v9 }
 0x103   :  { %514 = vmatpush3.bf16.msra.mxu1 %v533_v8  ;;  %519 = vmatprep.mubr.msk.bf16.mxu1 %vm537_vm1, %v536_v0 }
 0x104   :  { %515 = vmatprep.subr.bf16.mxu1 %v536_v0 }
 0x107   :  { %516 = vmatpush3.bf16.msra.mxu1 %v534_v12 }
 0x108   :  { %517 = vmatprep.subr.bf16.mxu1 %v536_v0 }
 0x10b   :  { %518 = vmatpush3.bf16.msra.mxu1 %v535_v14 }
 0x10e   :  { %520 = vmatmul.mubr.msk.bf16.vlgmr.msra.gmra.mxu1 %vm139_vm3, %v189_v16 }
 0x1c2   :  { %v312_v17 = vpop.f32.mrf.mxu1 }
 0x1c4   :  { %v511_v18 = vpop.f32.mrf.mxu1 }
 0x1c6   :  { %v315_v19 = vpop.f32.mrf.mxu1 }
 0x1c8   :  { %v512_v20 = vpop.f32.mrf.mxu1 }
 0x1ce   :  { %v373_v21 = vpop.f32.mrf.mxu1 }
 0x1cf   :  { %v374_v23 = vadd.f32 %v373_v21, %v312_v17 }
 0x1d0   :  { %v521_v0 = vpop.f32.mrf.mxu1 }
 0x1d1   :  { %v386_v25 = vmul.f32 %v469_v22, %v374_v23 }
 0x1d2   :  { %v376_v27 = vpop.f32.mrf.mxu1 }
 0x1d3   :  { %v394_v28 = vadd.f32 %v470_v24, %v386_v25 }
 0x1d4   :  { %v522_v29 = vpop.f32.mrf.mxu1 }
 0x1d5   :  { %vm395_vm6 = vcmp.ge.f32.partialorder %v394_v28, 0.0  ;;  %v403_v30 = vmul.f32 %v471_v26, %v394_v28 }
 0x1d7   :  { %v404_v32 = vsel %vm395_vm6, %v394_v28, %v403_v30 }
 0x1d8   :  { %v412_v34 = vmul.f32 %v472_v31, %v404_v32 }
 0x1da   :  { %v420_v36 = vadd.f32 %v473_v33, %v412_v34 }
 0x1dc   :  { %vm421_vm7 = vcmp.ge.f32.partialorder %v420_v36, 0.0  ;;  %v429_v37 = vmul.f32 %v474_v35, %v420_v36 }
 0x1de   :  { %v430_v38 = vsel %vm421_vm7, %v420_v36, %v429_v37 }
 0x1df   :  { %v431_v39 = vpack.c.bf16 %v430_v38, %v430_v38 }
 0x1e1   :  { %433 = vst.msk [vmem:[%s779_s16] sm:$0xf] %vm432_vm8, %v431_v39 }

</bundles_post_ra>
